<compile_context>
chip_gen: v7x
topology: tpu7x:2x2x1
jax: 0.10.0
libtpu: 0.0.40
codegen_flags: <defaults>
</compile_context>

<pallas_src>
import functools

import jax
import jax.numpy as jnp
from jax.experimental import pallas as pl
from jax.experimental.pallas import tpu as pltpu

KSIZE = 7
PAD = (KSIZE - 1) // 2          # 3
TAPS = 2 * KSIZE * KSIZE        # 98 taps per gate (2 ZPool channels x 7 x 7)
BN_EPS = 1e-5
ROWS = 128                      # sublane chunk for the conv accumulator


# ----------------------------- fused Pallas kernel ---------------------------

def _make_fused_kernel(nb, no_spatial):
    inv = 0.5 if no_spatial else (1.0 / 3.0)

    def _gate(zmax, zmean, pad_ref, w_ref, base, shift):
        """7x7 conv (2->1 ch, pad 3, BN scale folded into taps) + shift + sigmoid."""
        A, B = zmax.shape
        Ap, Bp = A + 2 * PAD, B + 2 * PAD

        # Zero only the PAD-wide border strips; the interior is overwritten below.
        # Must happen every grid step (scratch persists per core under "parallel").
        pad_ref[:, :PAD, :] = jnp.zeros((2, PAD, Bp), jnp.float32)
        pad_ref[:, PAD + A:, :] = jnp.zeros((2, PAD, Bp), jnp.float32)
        pad_ref[:, :, :PAD] = jnp.zeros((2, Ap, PAD), jnp.float32)
        pad_ref[:, :, PAD + B:] = jnp.zeros((2, Ap, PAD), jnp.float32)
        pad_ref[0, PAD:PAD + A, PAD:PAD + B] = zmax
        pad_ref[1, PAD:PAD + A, PAD:PAD + B] = zmean

        # Row-chunked 98-tap unrolled conv; each tap is a direct ref-sliced load
        # from the padded scratch (load path, not XLU sublane slicing of values).
        chunks = []
        for r0 in range(0, A, ROWS):
            rows = min(ROWS, A - r0)
            acc = jnp.zeros((rows, B), jnp.float32)
            for c in range(2):
                for kh in range(KSIZE):
                    for kw in range(KSIZE):
                        wt = w_ref[base + c * KSIZE * KSIZE + kh * KSIZE + kw]
                        tap = pad_ref[c, r0 + kh:r0 + kh + rows, kw:kw + B]
                        acc = acc + wt * tap
            chunks.append(jax.nn.sigmoid(acc + shift))
        return chunks[0] if len(chunks) == 1 else jnp.concatenate(chunks, axis=0)

    def kernel(x_ref, w_ref, shift_ref, o_ref, *pads):
        for b in range(nb):                                   # static batch unroll
            x = x_ref[b].astype(jnp.float32)                  # (C, H, W)

            # cw branch: ZPool over H -> conv in the (C, W) plane.
            s_cw = _gate(jnp.max(x, axis=1), jnp.mean(x, axis=1),
                         pads[0], w_ref, 0 * TAPS, shift_ref[0])
            # hc branch: ZPool over W -> conv in the (C, H) plane (taps pre-transposed).
            s_hc = _gate(jnp.max(x, axis=2), jnp.mean(x, axis=2),
                         pads[1], w_ref, 1 * TAPS, shift_ref[1])

            gate = s_cw[:, None, :] + s_hc[:, :, None]        # (C, H, W)
            if not no_spatial:
                # hw branch: ZPool over C -> conv in the (H, W) plane.
                s_hw = _gate(jnp.max(x, axis=0), jnp.mean(x, axis=0),
                             pads[2], w_ref, 2 * TAPS, shift_ref[2])
                gate = gate + s_hw[None, :, :]

            o_ref[b] = (x * (inv * gate)).astype(o_ref.dtype)

    return kernel


# ----------------------------- wrapper ----------------------------------------

@functools.partial(jax.jit, static_argnames=("no_spatial",))
def tattention_forward(x, params, no_spatial=False):
    """x: (N, C, H, W), NCHW — same convention as the PyTorch module."""
    N, C, H, W = x.shape
    names = ("cw", "hc") if no_spatial else ("cw", "hc", "hw")

    # Host-side prep: fold BN scale into conv taps; pre-transpose hc's spatial taps.
    w_list, shift_list = [], []
    for name in names:
        w, bn = params[name]                       # w: (1,2,7,7); bn = [scale, shift]
        wf = w.astype(jnp.float32) * bn[0]         # BN scale folded into the taps
        if name == "hc":
            wf = jnp.transpose(wf, (0, 1, 3, 2))   # conv directly in the (C, H) plane
        w_list.append(wf.reshape(-1))
        shift_list.append(bn[1])
    weights = jnp.concatenate(w_list).astype(jnp.float32)      # (len(names)*98,)
    shifts = jnp.stack(shift_list).astype(jnp.float32)         # (len(names),)

    # Batch-block size: amortize per-step overhead when the per-element block is
    # tiny, but keep >= 2 grid steps so both v7x TensorCores get work.
    elem_bytes = C * H * W * jnp.dtype(x.dtype).itemsize
    target_bytes = 1 << 20
    nb = max(1, min(max(N // 2, 1), target_bytes // max(elem_bytes, 1)))
    while N % nb:
        nb -= 1

    blk = pl.BlockSpec((nb, C, H, W), lambda n: (n, 0, 0, 0))
    scratch = [
        pltpu.VMEM((2, C + 2 * PAD, W + 2 * PAD), jnp.float32),     # cw padded plane
        pltpu.VMEM((2, C + 2 * PAD, H + 2 * PAD), jnp.float32),     # hc padded plane
    ]
    if not no_spatial:
        scratch.append(pltpu.VMEM((2, H + 2 * PAD, W + 2 * PAD), jnp.float32))  # hw

    return pl.pallas_call(
        _make_fused_kernel(nb, no_spatial),
        out_shape=jax.ShapeDtypeStruct((N, C, H, W), x.dtype),
        grid=(N // nb,),
        in_specs=[
            blk,
            pl.BlockSpec(memory_space=pltpu.SMEM),   # folded conv taps (scalars)
            pl.BlockSpec(memory_space=pltpu.SMEM),   # BN shifts
        ],
        out_specs=blk,
        scratch_shapes=scratch,
        compiler_params=pltpu.CompilerParams(
            dimension_semantics=("parallel",),
            # Re-derived for v7x's 64 MiB/TC; still ample on v5e/v6e (128 MiB parts).
            vmem_limit_bytes=48 * 1024 * 1024,
        ),
    )(x, weights, shifts)


# ----------------------------- params & pure-JAX reference --------------------

def init_params(key, no_spatial=False):
    """Deterministic synthetic weights for the gates (cw, hc[, hw])."""
    params = {}
    names = ("cw", "hc") if no_spatial else ("cw", "hc", "hw")
    for i, name in enumerate(names):
        k1, k2, k3, k4, k5 = jax.random.split(jax.random.fold_in(key, i), 5)
        w = 0.1 * jax.random.normal(k1, (1, 2, KSIZE, KSIZE), jnp.float32)
        gamma = 1.0 + 0.1 * jax.random.normal(k2, (1,), jnp.float32)
        beta = 0.1 * jax.random.normal(k3, (1,), jnp.float32)
        rmean = 0.1 * jax.random.normal(k4, (1,), jnp.float32)
        rvar = 1.0 + 0.1 * jax.random.uniform(k5, (1,), jnp.float32)
        scale = gamma / jnp.sqrt(rvar + BN_EPS)
        shift = beta - rmean * scale
        params[name] = (w, jnp.concatenate([scale, shift]))
    return params


def _gate_ref(x, w, bn_ss):
    mx = jnp.max(x, axis=1, keepdims=True)
    mn = jnp.mean(x, axis=1, keepdims=True)
    z = jnp.concatenate([mx, mn], axis=1)
    conv = jax.lax.conv_general_dilated(
        z, w, window_strides=(1, 1), padding=[(PAD, PAD), (PAD, PAD)],
        dimension_numbers=("NCHW", "OIHW", "NCHW"))
    scale = jax.nn.sigmoid(conv * bn_ss[0] + bn_ss[1])
    return x * scale


def tattention_ref(x, params, no_spatial=False):
    xp1 = jnp.transpose(x, (0, 2, 1, 3))
    out11 = jnp.transpose(_gate_ref(xp1, *params["cw"]), (0, 2, 1, 3))
    xp2 = jnp.transpose(x, (0, 3, 2, 1))
    out21 = jnp.transpose(_gate_ref(xp2, *params["hc"]), (0, 3, 2, 1))
    if not no_spatial:
        out_hw = _gate_ref(x, *params["hw"])
        return (1.0 / 3.0) * (out_hw + out11 + out21)
    return 0.5 * (out11 + out21)


# ----------------------------- main --------------------------------------------

if __name__ == "__main__":
    key = jax.random.PRNGKey(0)
    kx, kp = jax.random.split(key)
    x = jax.random.normal(kx, (2, 4, 16, 16), jnp.float32)   # NCHW
    params = init_params(kp)

    out = jax.block_until_ready(tattention_forward(x, params))

    ref = tattention_ref(x, params)
    assert out.shape == x.shape and out.dtype == x.dtype
    err = float(jnp.max(jnp.abs(out - ref)))
    assert jnp.allclose(out, ref, atol=1e-4, rtol=1e-4), f"max abs err {err}"
    print("KERNEL_OK")
</pallas_src>

<mosaic_0001>
module attributes {stable_mosaic.version = 11 : i64} {
  func.func @kernel(%arg0: i32, %arg1: memref<1x4x16x16xf32, #tpu.memory_space<vmem>>, %arg2: memref<294xf32, #tpu.memory_space<smem>>, %arg3: memref<3xf32, #tpu.memory_space<smem>>, %arg4: memref<1x4x16x16xf32, #tpu.memory_space<vmem>>, %arg5: memref<2x10x22xf32, #tpu.memory_space<vmem>>, %arg6: memref<2x10x22xf32, #tpu.memory_space<vmem>>, %arg7: memref<2x22x22xf32, #tpu.memory_space<vmem>>) attributes {dimension_semantics = [#tpu.dimension_semantics<parallel>], iteration_bounds = array<i64: 2>, scalar_prefetch = 0 : i64, scratch_operands = 3 : i64, tpu.core_type = #tpu.core_type<tc>, window_params = [{transform_indices = @transform_0, window_bounds = array<i64: 1, 4, 16, 16>}, {transform_indices = @transform_1, window_bounds = array<i64: 294>}, {transform_indices = @transform_2, window_bounds = array<i64: 3>}, {transform_indices = @transform_3, window_bounds = array<i64: 1, 4, 16, 16>}]} {
    %c0 = arith.constant 0 : index
    %c0_0 = arith.constant 0 : index
    %c0_1 = arith.constant 0 : index
    %c0_2 = arith.constant 0 : index
    %0 = vector.load %arg1[%c0, %c0_0, %c0_1, %c0_2] : memref<1x4x16x16xf32, #tpu.memory_space<vmem>>, vector<1x4x16x16xf32>
    %1 = vector.shape_cast %0 : vector<1x4x16x16xf32> to vector<4x16x16xf32>
    %cst = arith.constant dense<0xFF800000> : vector<4x16xf32>
    %2 = vector.multi_reduction <maximumf>, %1, %cst [1] : vector<4x16x16xf32> to vector<4x16xf32>
    %cst_3 = arith.constant dense<0.000000e+00> : vector<4x16xf32>
    %3 = vector.multi_reduction <add>, %1, %cst_3 [1] : vector<4x16x16xf32> to vector<4x16xf32>
    %cst_4 = arith.constant 1.600000e+01 : f32
    %4 = vector.broadcast %cst_4 : f32 to vector<4x16xf32>
    %5 = arith.divf %3, %4 : vector<4x16xf32>
    %c0_5 = arith.constant 0 : index
    %6 = memref.load %arg3[%c0_5] : memref<3xf32, #tpu.memory_space<smem>>
    %cst_6 = arith.constant 0.000000e+00 : f32
    %7 = vector.broadcast %cst_6 : f32 to vector<2x3x22xf32>
    %c0_7 = arith.constant 0 : index
    %c0_8 = arith.constant 0 : index
    %c0_9 = arith.constant 0 : index
    %8 = vector.load %arg5[%c0_7, %c0_8, %c0_9] : memref<2x10x22xf32, #tpu.memory_space<vmem>>, vector<2x3x22xf32>
    tpu.vector_store %arg5[%c0_7, %c0_8, %c0_9], %7 {strides = array<i32>} : memref<2x10x22xf32, #tpu.memory_space<vmem>>, vector<2x3x22xf32>,
    %cst_10 = arith.constant 0.000000e+00 : f32
    %9 = vector.broadcast %cst_10 : f32 to vector<2x3x22xf32>
    %c0_11 = arith.constant 0 : index
    %c7 = arith.constant 7 : index
    %c0_12 = arith.constant 0 : index
    %10 = vector.load %arg5[%c0_11, %c7, %c0_12] : memref<2x10x22xf32, #tpu.memory_space<vmem>>, vector<2x3x22xf32>
    tpu.vector_store %arg5[%c0_11, %c7, %c0_12], %9 {strides = array<i32>} : memref<2x10x22xf32, #tpu.memory_space<vmem>>, vector<2x3x22xf32>,
    %cst_13 = arith.constant 0.000000e+00 : f32
    %11 = vector.broadcast %cst_13 : f32 to vector<2x10x3xf32>
    %c0_14 = arith.constant 0 : index
    %c0_15 = arith.constant 0 : index
    %c0_16 = arith.constant 0 : index
    %12 = vector.load %arg5[%c0_14, %c0_15, %c0_16] : memref<2x10x22xf32, #tpu.memory_space<vmem>>, vector<2x10x3xf32>
    tpu.vector_store %arg5[%c0_14, %c0_15, %c0_16], %11 {strides = array<i32>} : memref<2x10x22xf32, #tpu.memory_space<vmem>>, vector<2x10x3xf32>,
    %cst_17 = arith.constant 0.000000e+00 : f32
    %13 = vector.broadcast %cst_17 : f32 to vector<2x10x3xf32>
    %c0_18 = arith.constant 0 : index
    %c0_19 = arith.constant 0 : index
    %c19 = arith.constant 19 : index
    %14 = vector.load %arg5[%c0_18, %c0_19, %c19] : memref<2x10x22xf32, #tpu.memory_space<vmem>>, vector<2x10x3xf32>
    tpu.vector_store %arg5[%c0_18, %c0_19, %c19], %13 {strides = array<i32>} : memref<2x10x22xf32, #tpu.memory_space<vmem>>, vector<2x10x3xf32>,
    %c0_20 = arith.constant 0 : index
    %c3 = arith.constant 3 : index
    %c3_21 = arith.constant 3 : index
    %15 = vector.load %arg5[%c0_20, %c3, %c3_21] : memref<2x10x22xf32, #tpu.memory_space<vmem>>, vector<1x4x16xf32>
    %16 = vector.shape_cast %15 : vector<1x4x16xf32> to vector<4x16xf32>
    %17 = vector.shape_cast %2 : vector<4x16xf32> to vector<1x4x16xf32>
    tpu.vector_store %arg5[%c0_20, %c3, %c3_21], %17 {strides = array<i32>} : memref<2x10x22xf32, #tpu.memory_space<vmem>>, vector<1x4x16xf32>,
    %c1 = arith.constant 1 : index
    %c3_22 = arith.constant 3 : index
    %c3_23 = arith.constant 3 : index
    %18 = vector.load %arg5[%c1, %c3_22, %c3_23] : memref<2x10x22xf32, #tpu.memory_space<vmem>>, vector<1x4x16xf32>
    %19 = vector.shape_cast %18 : vector<1x4x16xf32> to vector<4x16xf32>
    %20 = vector.shape_cast %5 : vector<4x16xf32> to vector<1x4x16xf32>
    tpu.vector_store %arg5[%c1, %c3_22, %c3_23], %20 {strides = array<i32>} : memref<2x10x22xf32, #tpu.memory_space<vmem>>, vector<1x4x16xf32>,
    %cst_24 = arith.constant 0.000000e+00 : f32
    %21 = vector.broadcast %cst_24 : f32 to vector<4x16xf32>
    %c0_25 = arith.constant 0 : index
    %22 = memref.load %arg2[%c0_25] : memref<294xf32, #tpu.memory_space<smem>>
    %c0_26 = arith.constant 0 : index
    %c0_27 = arith.constant 0 : index
    %c0_28 = arith.constant 0 : index
    %23 = vector.load %arg5[%c0_26, %c0_27, %c0_28] : memref<2x10x22xf32, #tpu.memory_space<vmem>>, vector<1x4x16xf32>
    %24 = vector.shape_cast %23 : vector<1x4x16xf32> to vector<4x16xf32>
    %25 = vector.broadcast %22 : f32 to vector<4x16xf32>
    %26 = arith.mulf %25, %24 : vector<4x16xf32>
    %27 = arith.addf %21, %26 : vector<4x16xf32>
    %c1_29 = arith.constant 1 : index
    %28 = memref.load %arg2[%c1_29] : memref<294xf32, #tpu.memory_space<smem>>
    %c0_30 = arith.constant 0 : index
    %c0_31 = arith.constant 0 : index
    %c1_32 = arith.constant 1 : index
    %29 = vector.load %arg5[%c0_30, %c0_31, %c1_32] : memref<2x10x22xf32, #tpu.memory_space<vmem>>, vector<1x4x16xf32>
    %30 = vector.shape_cast %29 : vector<1x4x16xf32> to vector<4x16xf32>
    %31 = vector.broadcast %28 : f32 to vector<4x16xf32>
    %32 = arith.mulf %31, %30 : vector<4x16xf32>
    %33 = arith.addf %27, %32 : vector<4x16xf32>
    %c2 = arith.constant 2 : index
    %34 = memref.load %arg2[%c2] : memref<294xf32, #tpu.memory_space<smem>>
    %c0_33 = arith.constant 0 : index
    %c0_34 = arith.constant 0 : index
    %c2_35 = arith.constant 2 : index
    %35 = vector.load %arg5[%c0_33, %c0_34, %c2_35] : memref<2x10x22xf32, #tpu.memory_space<vmem>>, vector<1x4x16xf32>
    %36 = vector.shape_cast %35 : vector<1x4x16xf32> to vector<4x16xf32>
    %37 = vector.broadcast %34 : f32 to vector<4x16xf32>
    %38 = arith.mulf %37, %36 : vector<4x16xf32>
    %39 = arith.addf %33, %38 : vector<4x16xf32>
    %c3_36 = arith.constant 3 : index
    %40 = memref.load %arg2[%c3_36] : memref<294xf32, #tpu.memory_space<smem>>
    %c0_37 = arith.constant 0 : index
    %c0_38 = arith.constant 0 : index
    %c3_39 = arith.constant 3 : index
    %41 = vector.load %arg5[%c0_37, %c0_38, %c3_39] : memref<2x10x22xf32, #tpu.memory_space<vmem>>, vector<1x4x16xf32>
    %42 = vector.shape_cast %41 : vector<1x4x16xf32> to vector<4x16xf32>
    %43 = vector.broadcast %40 : f32 to vector<4x16xf32>
    %44 = arith.mulf %43, %42 : vector<4x16xf32>
    %45 = arith.addf %39, %44 : vector<4x16xf32>
    %c4 = arith.constant 4 : index
    %46 = memref.load %arg2[%c4] : memref<294xf32, #tpu.memory_space<smem>>
    %c0_40 = arith.constant 0 : index
    %c0_41 = arith.constant 0 : index
    %c4_42 = arith.constant 4 : index
    %47 = vector.load %arg5[%c0_40, %c0_41, %c4_42] : memref<2x10x22xf32, #tpu.memory_space<vmem>>, vector<1x4x16xf32>
    %48 = vector.shape_cast %47 : vector<1x4x16xf32> to vector<4x16xf32>
    %49 = vector.broadcast %46 : f32 to vector<4x16xf32>
    %50 = arith.mulf %49, %48 : vector<4x16xf32>
    %51 = arith.addf %45, %50 : vector<4x16xf32>
    %c5 = arith.constant 5 : index
    %52 = memref.load %arg2[%c5] : memref<294xf32, #tpu.memory_space<smem>>
    %c0_43 = arith.constant 0 : index
    %c0_44 = arith.constant 0 : index
    %c5_45 = arith.constant 5 : index
    %53 = vector.load %arg5[%c0_43, %c0_44, %c5_45] : memref<2x10x22xf32, #tpu.memory_space<vmem>>, vector<1x4x16xf32>
    %54 = vector.shape_cast %53 : vector<1x4x16xf32> to vector<4x16xf32>
    %55 = vector.broadcast %52 : f32 to vector<4x16xf32>
    %56 = arith.mulf %55, %54 : vector<4x16xf32>
    %57 = arith.addf %51, %56 : vector<4x16xf32>
    %c6 = arith.constant 6 : index
    %58 = memref.load %arg2[%c6] : memref<294xf32, #tpu.memory_space<smem>>
    %c0_46 = arith.constant 0 : index
    %c0_47 = arith.constant 0 : index
    %c6_48 = arith.constant 6 : index
    %59 = vector.load %arg5[%c0_46, %c0_47, %c6_48] : memref<2x10x22xf32, #tpu.memory_space<vmem>>, vector<1x4x16xf32>
    %60 = vector.shape_cast %59 : vector<1x4x16xf32> to vector<4x16xf32>
    %61 = vector.broadcast %58 : f32 to vector<4x16xf32>
    %62 = arith.mulf %61, %60 : vector<4x16xf32>
    %63 = arith.addf %57, %62 : vector<4x16xf32>
    %c7_49 = arith.constant 7 : index
    %64 = memref.load %arg2[%c7_49] : memref<294xf32, #tpu.memory_space<smem>>
    %c0_50 = arith.constant 0 : index
    %c1_51 = arith.constant 1 : index
    %c0_52 = arith.constant 0 : index
    %65 = vector.load %arg5[%c0_50, %c1_51, %c0_52] : memref<2x10x22xf32, #tpu.memory_space<vmem>>, vector<1x4x16xf32>
    %66 = vector.shape_cast %65 : vector<1x4x16xf32> to vector<4x16xf32>
    %67 = vector.broadcast %64 : f32 to vector<4x16xf32>
    %68 = arith.mulf %67, %66 : vector<4x16xf32>
    %69 = arith.addf %63, %68 : vector<4x16xf32>
    %c8 = arith.constant 8 : index
    %70 = memref.load %arg2[%c8] : memref<294xf32, #tpu.memory_space<smem>>
    %c0_53 = arith.constant 0 : index
    %c1_54 = arith.constant 1 : index
    %c1_55 = arith.constant 1 : index
    %71 = vector.load %arg5[%c0_53, %c1_54, %c1_55] : memref<2x10x22xf32, #tpu.memory_space<vmem>>, vector<1x4x16xf32>
    %72 = vector.shape_cast %71 : vector<1x4x16xf32> to vector<4x16xf32>
    %73 = vector.broadcast %70 : f32 to vector<4x16xf32>
    %74 = arith.mulf %73, %72 : vector<4x16xf32>
    %75 = arith.addf %69, %74 : vector<4x16xf32>
    %c9 = arith.constant 9 : index
    %76 = memref.load %arg2[%c9] : memref<294xf32, #tpu.memory_space<smem>>
    %c0_56 = arith.constant 0 : index
    %c1_57 = arith.constant 1 : index
    %c2_58 = arith.constant 2 : index
    %77 = vector.load %arg5[%c0_56, %c1_57, %c2_58] : memref<2x10x22xf32, #tpu.memory_space<vmem>>, vector<1x4x16xf32>
    %78 = vector.shape_cast %77 : vector<1x4x16xf32> to vector<4x16xf32>
    %79 = vector.broadcast %76 : f32 to vector<4x16xf32>
    %80 = arith.mulf %79, %78 : vector<4x16xf32>
    %81 = arith.addf %75, %80 : vector<4x16xf32>
    %c10 = arith.constant 10 : index
    %82 = memref.load %arg2[%c10] : memref<294xf32, #tpu.memory_space<smem>>
    %c0_59 = arith.constant 0 : index
    %c1_60 = arith.constant 1 : index
    %c3_61 = arith.constant 3 : index
    %83 = vector.load %arg5[%c0_59, %c1_60, %c3_61] : memref<2x10x22xf32, #tpu.memory_space<vmem>>, vector<1x4x16xf32>
    %84 = vector.shape_cast %83 : vector<1x4x16xf32> to vector<4x16xf32>
    %85 = vector.broadcast %82 : f32 to vector<4x16xf32>
    %86 = arith.mulf %85, %84 : vector<4x16xf32>
    %87 = arith.addf %81, %86 : vector<4x16xf32>
    %c11 = arith.constant 11 : index
    %88 = memref.load %arg2[%c11] : memref<294xf32, #tpu.memory_space<smem>>
    %c0_62 = arith.constant 0 : index
    %c1_63 = arith.constant 1 : index
    %c4_64 = arith.constant 4 : index
    %89 = vector.load %arg5[%c0_62, %c1_63, %c4_64] : memref<2x10x22xf32, #tpu.memory_space<vmem>>, vector<1x4x16xf32>
    %90 = vector.shape_cast %89 : vector<1x4x16xf32> to vector<4x16xf32>
    %91 = vector.broadcast %88 : f32 to vector<4x16xf32>
    %92 = arith.mulf %91, %90 : vector<4x16xf32>
    %93 = arith.addf %87, %92 : vector<4x16xf32>
    %c12 = arith.constant 12 : index
    %94 = memref.load %arg2[%c12] : memref<294xf32, #tpu.memory_space<smem>>
    %c0_65 = arith.constant 0 : index
    %c1_66 = arith.constant 1 : index
    %c5_67 = arith.constant 5 : index
    %95 = vector.load %arg5[%c0_65, %c1_66, %c5_67] : memref<2x10x22xf32, #tpu.memory_space<vmem>>, vector<1x4x16xf32>
    %96 = vector.shape_cast %95 : vector<1x4x16xf32> to vector<4x16xf32>
    %97 = vector.broadcast %94 : f32 to vector<4x16xf32>
    %98 = arith.mulf %97, %96 : vector<4x16xf32>
    %99 = arith.addf %93, %98 : vector<4x16xf32>
    %c13 = arith.constant 13 : index
    %100 = memref.load %arg2[%c13] : memref<294xf32, #tpu.memory_space<smem>>
    %c0_68 = arith.constant 0 : index
    %c1_69 = arith.constant 1 : index
    %c6_70 = arith.constant 6 : index
    %101 = vector.load %arg5[%c0_68, %c1_69, %c6_70] : memref<2x10x22xf32, #tpu.memory_space<vmem>>, vector<1x4x16xf32>
    %102 = vector.shape_cast %101 : vector<1x4x16xf32> to vector<4x16xf32>
    %103 = vector.broadcast %100 : f32 to vector<4x16xf32>
    %104 = arith.mulf %103, %102 : vector<4x16xf32>
    %105 = arith.addf %99, %104 : vector<4x16xf32>
    %c14 = arith.constant 14 : index
    %106 = memref.load %arg2[%c14] : memref<294xf32, #tpu.memory_space<smem>>
    %c0_71 = arith.constant 0 : index
    %c2_72 = arith.constant 2 : index
    %c0_73 = arith.constant 0 : index
    %107 = vector.load %arg5[%c0_71, %c2_72, %c0_73] : memref<2x10x22xf32, #tpu.memory_space<vmem>>, vector<1x4x16xf32>
    %108 = vector.shape_cast %107 : vector<1x4x16xf32> to vector<4x16xf32>
    %109 = vector.broadcast %106 : f32 to vector<4x16xf32>
    %110 = arith.mulf %109, %108 : vector<4x16xf32>
    %111 = arith.addf %105, %110 : vector<4x16xf32>
    %c15 = arith.constant 15 : index
    %112 = memref.load %arg2[%c15] : memref<294xf32, #tpu.memory_space<smem>>
    %c0_74 = arith.constant 0 : index
    %c2_75 = arith.constant 2 : index
    %c1_76 = arith.constant 1 : index
    %113 = vector.load %arg5[%c0_74, %c2_75, %c1_76] : memref<2x10x22xf32, #tpu.memory_space<vmem>>, vector<1x4x16xf32>
    %114 = vector.shape_cast %113 : vector<1x4x16xf32> to vector<4x16xf32>
    %115 = vector.broadcast %112 : f32 to vector<4x16xf32>
    %116 = arith.mulf %115, %114 : vector<4x16xf32>
    %117 = arith.addf %111, %116 : vector<4x16xf32>
    %c16 = arith.constant 16 : index
    %118 = memref.load %arg2[%c16] : memref<294xf32, #tpu.memory_space<smem>>
    %c0_77 = arith.constant 0 : index
    %c2_78 = arith.constant 2 : index
    %c2_79 = arith.constant 2 : index
    %119 = vector.load %arg5[%c0_77, %c2_78, %c2_79] : memref<2x10x22xf32, #tpu.memory_space<vmem>>, vector<1x4x16xf32>
    %120 = vector.shape_cast %119 : vector<1x4x16xf32> to vector<4x16xf32>
    %121 = vector.broadcast %118 : f32 to vector<4x16xf32>
    %122 = arith.mulf %121, %120 : vector<4x16xf32>
    %123 = arith.addf %117, %122 : vector<4x16xf32>
    %c17 = arith.constant 17 : index
    %124 = memref.load %arg2[%c17] : memref<294xf32, #tpu.memory_space<smem>>
    %c0_80 = arith.constant 0 : index
    %c2_81 = arith.constant 2 : index
    %c3_82 = arith.constant 3 : index
    %125 = vector.load %arg5[%c0_80, %c2_81, %c3_82] : memref<2x10x22xf32, #tpu.memory_space<vmem>>, vector<1x4x16xf32>
    %126 = vector.shape_cast %125 : vector<1x4x16xf32> to vector<4x16xf32>
    %127 = vector.broadcast %124 : f32 to vector<4x16xf32>
    %128 = arith.mulf %127, %126 : vector<4x16xf32>
    %129 = arith.addf %123, %128 : vector<4x16xf32>
    %c18 = arith.constant 18 : index
    %130 = memref.load %arg2[%c18] : memref<294xf32, #tpu.memory_space<smem>>
    %c0_83 = arith.constant 0 : index
    %c2_84 = arith.constant 2 : index
    %c4_85 = arith.constant 4 : index
    %131 = vector.load %arg5[%c0_83, %c2_84, %c4_85] : memref<2x10x22xf32, #tpu.memory_space<vmem>>, vector<1x4x16xf32>
    %132 = vector.shape_cast %131 : vector<1x4x16xf32> to vector<4x16xf32>
    %133 = vector.broadcast %130 : f32 to vector<4x16xf32>
    %134 = arith.mulf %133, %132 : vector<4x16xf32>
    %135 = arith.addf %129, %134 : vector<4x16xf32>
    %c19_86 = arith.constant 19 : index
    %136 = memref.load %arg2[%c19_86] : memref<294xf32, #tpu.memory_space<smem>>
    %c0_87 = arith.constant 0 : index
    %c2_88 = arith.constant 2 : index
    %c5_89 = arith.constant 5 : index
    %137 = vector.load %arg5[%c0_87, %c2_88, %c5_89] : memref<2x10x22xf32, #tpu.memory_space<vmem>>, vector<1x4x16xf32>
    %138 = vector.shape_cast %137 : vector<1x4x16xf32> to vector<4x16xf32>
    %139 = vector.broadcast %136 : f32 to vector<4x16xf32>
    %140 = arith.mulf %139, %138 : vector<4x16xf32>
    %141 = arith.addf %135, %140 : vector<4x16xf32>
    %c20 = arith.constant 20 : index
    %142 = memref.load %arg2[%c20] : memref<294xf32, #tpu.memory_space<smem>>
    %c0_90 = arith.constant 0 : index
    %c2_91 = arith.constant 2 : index
    %c6_92 = arith.constant 6 : index
    %143 = vector.load %arg5[%c0_90, %c2_91, %c6_92] : memref<2x10x22xf32, #tpu.memory_space<vmem>>, vector<1x4x16xf32>
    %144 = vector.shape_cast %143 : vector<1x4x16xf32> to vector<4x16xf32>
    %145 = vector.broadcast %142 : f32 to vector<4x16xf32>
    %146 = arith.mulf %145, %144 : vector<4x16xf32>
    %147 = arith.addf %141, %146 : vector<4x16xf32>
    %c21 = arith.constant 21 : index
    %148 = memref.load %arg2[%c21] : memref<294xf32, #tpu.memory_space<smem>>
    %c0_93 = arith.constant 0 : index
    %c3_94 = arith.constant 3 : index
    %c0_95 = arith.constant 0 : index
    %149 = vector.load %arg5[%c0_93, %c3_94, %c0_95] : memref<2x10x22xf32, #tpu.memory_space<vmem>>, vector<1x4x16xf32>
    %150 = vector.shape_cast %149 : vector<1x4x16xf32> to vector<4x16xf32>
    %151 = vector.broadcast %148 : f32 to vector<4x16xf32>
    %152 = arith.mulf %151, %150 : vector<4x16xf32>
    %153 = arith.addf %147, %152 : vector<4x16xf32>
    %c22 = arith.constant 22 : index
    %154 = memref.load %arg2[%c22] : memref<294xf32, #tpu.memory_space<smem>>
    %c0_96 = arith.constant 0 : index
    %c3_97 = arith.constant 3 : index
    %c1_98 = arith.constant 1 : index
    %155 = vector.load %arg5[%c0_96, %c3_97, %c1_98] : memref<2x10x22xf32, #tpu.memory_space<vmem>>, vector<1x4x16xf32>
    %156 = vector.shape_cast %155 : vector<1x4x16xf32> to vector<4x16xf32>
    %157 = vector.broadcast %154 : f32 to vector<4x16xf32>
    %158 = arith.mulf %157, %156 : vector<4x16xf32>
    %159 = arith.addf %153, %158 : vector<4x16xf32>
    %c23 = arith.constant 23 : index
    %160 = memref.load %arg2[%c23] : memref<294xf32, #tpu.memory_space<smem>>
    %c0_99 = arith.constant 0 : index
    %c3_100 = arith.constant 3 : index
    %c2_101 = arith.constant 2 : index
    %161 = vector.load %arg5[%c0_99, %c3_100, %c2_101] : memref<2x10x22xf32, #tpu.memory_space<vmem>>, vector<1x4x16xf32>
    %162 = vector.shape_cast %161 : vector<1x4x16xf32> to vector<4x16xf32>
    %163 = vector.broadcast %160 : f32 to vector<4x16xf32>
    %164 = arith.mulf %163, %162 : vector<4x16xf32>
    %165 = arith.addf %159, %164 : vector<4x16xf32>
    %c24 = arith.constant 24 : index
    %166 = memref.load %arg2[%c24] : memref<294xf32, #tpu.memory_space<smem>>
    %c0_102 = arith.constant 0 : index
    %c3_103 = arith.constant 3 : index
    %c3_104 = arith.constant 3 : index
    %167 = vector.load %arg5[%c0_102, %c3_103, %c3_104] : memref<2x10x22xf32, #tpu.memory_space<vmem>>, vector<1x4x16xf32>
    %168 = vector.shape_cast %167 : vector<1x4x16xf32> to vector<4x16xf32>
    %169 = vector.broadcast %166 : f32 to vector<4x16xf32>
    %170 = arith.mulf %169, %168 : vector<4x16xf32>
    %171 = arith.addf %165, %170 : vector<4x16xf32>
    %c25 = arith.constant 25 : index
    %172 = memref.load %arg2[%c25] : memref<294xf32, #tpu.memory_space<smem>>
    %c0_105 = arith.constant 0 : index
    %c3_106 = arith.constant 3 : index
    %c4_107 = arith.constant 4 : index
    %173 = vector.load %arg5[%c0_105, %c3_106, %c4_107] : memref<2x10x22xf32, #tpu.memory_space<vmem>>, vector<1x4x16xf32>
    %174 = vector.shape_cast %173 : vector<1x4x16xf32> to vector<4x16xf32>
    %175 = vector.broadcast %172 : f32 to vector<4x16xf32>
    %176 = arith.mulf %175, %174 : vector<4x16xf32>
    %177 = arith.addf %171, %176 : vector<4x16xf32>
    %c26 = arith.constant 26 : index
    %178 = memref.load %arg2[%c26] : memref<294xf32, #tpu.memory_space<smem>>
    %c0_108 = arith.constant 0 : index
    %c3_109 = arith.constant 3 : index
    %c5_110 = arith.constant 5 : index
    %179 = vector.load %arg5[%c0_108, %c3_109, %c5_110] : memref<2x10x22xf32, #tpu.memory_space<vmem>>, vector<1x4x16xf32>
    %180 = vector.shape_cast %179 : vector<1x4x16xf32> to vector<4x16xf32>
    %181 = vector.broadcast %178 : f32 to vector<4x16xf32>
    %182 = arith.mulf %181, %180 : vector<4x16xf32>
    %183 = arith.addf %177, %182 : vector<4x16xf32>
    %c27 = arith.constant 27 : index
    %184 = memref.load %arg2[%c27] : memref<294xf32, #tpu.memory_space<smem>>
    %c0_111 = arith.constant 0 : index
    %c3_112 = arith.constant 3 : index
    %c6_113 = arith.constant 6 : index
    %185 = vector.load %arg5[%c0_111, %c3_112, %c6_113] : memref<2x10x22xf32, #tpu.memory_space<vmem>>, vector<1x4x16xf32>
    %186 = vector.shape_cast %185 : vector<1x4x16xf32> to vector<4x16xf32>
    %187 = vector.broadcast %184 : f32 to vector<4x16xf32>
    %188 = arith.mulf %187, %186 : vector<4x16xf32>
    %189 = arith.addf %183, %188 : vector<4x16xf32>
    %c28 = arith.constant 28 : index
    %190 = memref.load %arg2[%c28] : memref<294xf32, #tpu.memory_space<smem>>
    %c0_114 = arith.constant 0 : index
    %c4_115 = arith.constant 4 : index
    %c0_116 = arith.constant 0 : index
    %191 = vector.load %arg5[%c0_114, %c4_115, %c0_116] : memref<2x10x22xf32, #tpu.memory_space<vmem>>, vector<1x4x16xf32>
    %192 = vector.shape_cast %191 : vector<1x4x16xf32> to vector<4x16xf32>
    %193 = vector.broadcast %190 : f32 to vector<4x16xf32>
    %194 = arith.mulf %193, %192 : vector<4x16xf32>
    %195 = arith.addf %189, %194 : vector<4x16xf32>
    %c29 = arith.constant 29 : index
    %196 = memref.load %arg2[%c29] : memref<294xf32, #tpu.memory_space<smem>>
    %c0_117 = arith.constant 0 : index
    %c4_118 = arith.constant 4 : index
    %c1_119 = arith.constant 1 : index
    %197 = vector.load %arg5[%c0_117, %c4_118, %c1_119] : memref<2x10x22xf32, #tpu.memory_space<vmem>>, vector<1x4x16xf32>
    %198 = vector.shape_cast %197 : vector<1x4x16xf32> to vector<4x16xf32>
    %199 = vector.broadcast %196 : f32 to vector<4x16xf32>
    %200 = arith.mulf %199, %198 : vector<4x16xf32>
    %201 = arith.addf %195, %200 : vector<4x16xf32>
    %c30 = arith.constant 30 : index
    %202 = memref.load %arg2[%c30] : memref<294xf32, #tpu.memory_space<smem>>
    %c0_120 = arith.constant 0 : index
    %c4_121 = arith.constant 4 : index
    %c2_122 = arith.constant 2 : index
    %203 = vector.load %arg5[%c0_120, %c4_121, %c2_122] : memref<2x10x22xf32, #tpu.memory_space<vmem>>, vector<1x4x16xf32>
    %204 = vector.shape_cast %203 : vector<1x4x16xf32> to vector<4x16xf32>
    %205 = vector.broadcast %202 : f32 to vector<4x16xf32>
    %206 = arith.mulf %205, %204 : vector<4x16xf32>
    %207 = arith.addf %201, %206 : vector<4x16xf32>
    %c31 = arith.constant 31 : index
    %208 = memref.load %arg2[%c31] : memref<294xf32, #tpu.memory_space<smem>>
    %c0_123 = arith.constant 0 : index
    %c4_124 = arith.constant 4 : index
    %c3_125 = arith.constant 3 : index
    %209 = vector.load %arg5[%c0_123, %c4_124, %c3_125] : memref<2x10x22xf32, #tpu.memory_space<vmem>>, vector<1x4x16xf32>
    %210 = vector.shape_cast %209 : vector<1x4x16xf32> to vector<4x16xf32>
    %211 = vector.broadcast %208 : f32 to vector<4x16xf32>
    %212 = arith.mulf %211, %210 : vector<4x16xf32>
    %213 = arith.addf %207, %212 : vector<4x16xf32>
    %c32 = arith.constant 32 : index
    %214 = memref.load %arg2[%c32] : memref<294xf32, #tpu.memory_space<smem>>
    %c0_126 = arith.constant 0 : index
    %c4_127 = arith.constant 4 : index
    %c4_128 = arith.constant 4 : index
    %215 = vector.load %arg5[%c0_126, %c4_127, %c4_128] : memref<2x10x22xf32, #tpu.memory_space<vmem>>, vector<1x4x16xf32>
    %216 = vector.shape_cast %215 : vector<1x4x16xf32> to vector<4x16xf32>
    %217 = vector.broadcast %214 : f32 to vector<4x16xf32>
    %218 = arith.mulf %217, %216 : vector<4x16xf32>
    %219 = arith.addf %213, %218 : vector<4x16xf32>
    %c33 = arith.constant 33 : index
    %220 = memref.load %arg2[%c33] : memref<294xf32, #tpu.memory_space<smem>>
    %c0_129 = arith.constant 0 : index
    %c4_130 = arith.constant 4 : index
    %c5_131 = arith.constant 5 : index
    %221 = vector.load %arg5[%c0_129, %c4_130, %c5_131] : memref<2x10x22xf32, #tpu.memory_space<vmem>>, vector<1x4x16xf32>
    %222 = vector.shape_cast %221 : vector<1x4x16xf32> to vector<4x16xf32>
    %223 = vector.broadcast %220 : f32 to vector<4x16xf32>
    %224 = arith.mulf %223, %222 : vector<4x16xf32>
    %225 = arith.addf %219, %224 : vector<4x16xf32>
    %c34 = arith.constant 34 : index
    %226 = memref.load %arg2[%c34] : memref<294xf32, #tpu.memory_space<smem>>
    %c0_132 = arith.constant 0 : index
    %c4_133 = arith.constant 4 : index
    %c6_134 = arith.constant 6 : index
    %227 = vector.load %arg5[%c0_132, %c4_133, %c6_134] : memref<2x10x22xf32, #tpu.memory_space<vmem>>, vector<1x4x16xf32>
    %228 = vector.shape_cast %227 : vector<1x4x16xf32> to vector<4x16xf32>
    %229 = vector.broadcast %226 : f32 to vector<4x16xf32>
    %230 = arith.mulf %229, %228 : vector<4x16xf32>
    %231 = arith.addf %225, %230 : vector<4x16xf32>
    %c35 = arith.constant 35 : index
    %232 = memref.load %arg2[%c35] : memref<294xf32, #tpu.memory_space<smem>>
    %c0_135 = arith.constant 0 : index
    %c5_136 = arith.constant 5 : index
    %c0_137 = arith.constant 0 : index
    %233 = vector.load %arg5[%c0_135, %c5_136, %c0_137] : memref<2x10x22xf32, #tpu.memory_space<vmem>>, vector<1x4x16xf32>
    %234 = vector.shape_cast %233 : vector<1x4x16xf32> to vector<4x16xf32>
    %235 = vector.broadcast %232 : f32 to vector<4x16xf32>
    %236 = arith.mulf %235, %234 : vector<4x16xf32>
    %237 = arith.addf %231, %236 : vector<4x16xf32>
    %c36 = arith.constant 36 : index
    %238 = memref.load %arg2[%c36] : memref<294xf32, #tpu.memory_space<smem>>
    %c0_138 = arith.constant 0 : index
    %c5_139 = arith.constant 5 : index
    %c1_140 = arith.constant 1 : index
    %239 = vector.load %arg5[%c0_138, %c5_139, %c1_140] : memref<2x10x22xf32, #tpu.memory_space<vmem>>, vector<1x4x16xf32>
    %240 = vector.shape_cast %239 : vector<1x4x16xf32> to vector<4x16xf32>
    %241 = vector.broadcast %238 : f32 to vector<4x16xf32>
    %242 = arith.mulf %241, %240 : vector<4x16xf32>
    %243 = arith.addf %237, %242 : vector<4x16xf32>
    %c37 = arith.constant 37 : index
    %244 = memref.load %arg2[%c37] : memref<294xf32, #tpu.memory_space<smem>>
    %c0_141 = arith.constant 0 : index
    %c5_142 = arith.constant 5 : index
    %c2_143 = arith.constant 2 : index
    %245 = vector.load %arg5[%c0_141, %c5_142, %c2_143] : memref<2x10x22xf32, #tpu.memory_space<vmem>>, vector<1x4x16xf32>
    %246 = vector.shape_cast %245 : vector<1x4x16xf32> to vector<4x16xf32>
    %247 = vector.broadcast %244 : f32 to vector<4x16xf32>
    %248 = arith.mulf %247, %246 : vector<4x16xf32>
    %249 = arith.addf %243, %248 : vector<4x16xf32>
    %c38 = arith.constant 38 : index
    %250 = memref.load %arg2[%c38] : memref<294xf32, #tpu.memory_space<smem>>
    %c0_144 = arith.constant 0 : index
    %c5_145 = arith.constant 5 : index
    %c3_146 = arith.constant 3 : index
    %251 = vector.load %arg5[%c0_144, %c5_145, %c3_146] : memref<2x10x22xf32, #tpu.memory_space<vmem>>, vector<1x4x16xf32>
    %252 = vector.shape_cast %251 : vector<1x4x16xf32> to vector<4x16xf32>
    %253 = vector.broadcast %250 : f32 to vector<4x16xf32>
    %254 = arith.mulf %253, %252 : vector<4x16xf32>
    %255 = arith.addf %249, %254 : vector<4x16xf32>
    %c39 = arith.constant 39 : index
    %256 = memref.load %arg2[%c39] : memref<294xf32, #tpu.memory_space<smem>>
    %c0_147 = arith.constant 0 : index
    %c5_148 = arith.constant 5 : index
    %c4_149 = arith.constant 4 : index
    %257 = vector.load %arg5[%c0_147, %c5_148, %c4_149] : memref<2x10x22xf32, #tpu.memory_space<vmem>>, vector<1x4x16xf32>
    %258 = vector.shape_cast %257 : vector<1x4x16xf32> to vector<4x16xf32>
    %259 = vector.broadcast %256 : f32 to vector<4x16xf32>
    %260 = arith.mulf %259, %258 : vector<4x16xf32>
    %261 = arith.addf %255, %260 : vector<4x16xf32>
    %c40 = arith.constant 40 : index
    %262 = memref.load %arg2[%c40] : memref<294xf32, #tpu.memory_space<smem>>
    %c0_150 = arith.constant 0 : index
    %c5_151 = arith.constant 5 : index
    %c5_152 = arith.constant 5 : index
    %263 = vector.load %arg5[%c0_150, %c5_151, %c5_152] : memref<2x10x22xf32, #tpu.memory_space<vmem>>, vector<1x4x16xf32>
    %264 = vector.shape_cast %263 : vector<1x4x16xf32> to vector<4x16xf32>
    %265 = vector.broadcast %262 : f32 to vector<4x16xf32>
    %266 = arith.mulf %265, %264 : vector<4x16xf32>
    %267 = arith.addf %261, %266 : vector<4x16xf32>
    %c41 = arith.constant 41 : index
    %268 = memref.load %arg2[%c41] : memref<294xf32, #tpu.memory_space<smem>>
    %c0_153 = arith.constant 0 : index
    %c5_154 = arith.constant 5 : index
    %c6_155 = arith.constant 6 : index
    %269 = vector.load %arg5[%c0_153, %c5_154, %c6_155] : memref<2x10x22xf32, #tpu.memory_space<vmem>>, vector<1x4x16xf32>
    %270 = vector.shape_cast %269 : vector<1x4x16xf32> to vector<4x16xf32>
    %271 = vector.broadcast %268 : f32 to vector<4x16xf32>
    %272 = arith.mulf %271, %270 : vector<4x16xf32>
    %273 = arith.addf %267, %272 : vector<4x16xf32>
    %c42 = arith.constant 42 : index
    %274 = memref.load %arg2[%c42] : memref<294xf32, #tpu.memory_space<smem>>
    %c0_156 = arith.constant 0 : index
    %c6_157 = arith.constant 6 : index
    %c0_158 = arith.constant 0 : index
    %275 = vector.load %arg5[%c0_156, %c6_157, %c0_158] : memref<2x10x22xf32, #tpu.memory_space<vmem>>, vector<1x4x16xf32>
    %276 = vector.shape_cast %275 : vector<1x4x16xf32> to vector<4x16xf32>
    %277 = vector.broadcast %274 : f32 to vector<4x16xf32>
    %278 = arith.mulf %277, %276 : vector<4x16xf32>
    %279 = arith.addf %273, %278 : vector<4x16xf32>
    %c43 = arith.constant 43 : index
    %280 = memref.load %arg2[%c43] : memref<294xf32, #tpu.memory_space<smem>>
    %c0_159 = arith.constant 0 : index
    %c6_160 = arith.constant 6 : index
    %c1_161 = arith.constant 1 : index
    %281 = vector.load %arg5[%c0_159, %c6_160, %c1_161] : memref<2x10x22xf32, #tpu.memory_space<vmem>>, vector<1x4x16xf32>
    %282 = vector.shape_cast %281 : vector<1x4x16xf32> to vector<4x16xf32>
    %283 = vector.broadcast %280 : f32 to vector<4x16xf32>
    %284 = arith.mulf %283, %282 : vector<4x16xf32>
    %285 = arith.addf %279, %284 : vector<4x16xf32>
    %c44 = arith.constant 44 : index
    %286 = memref.load %arg2[%c44] : memref<294xf32, #tpu.memory_space<smem>>
    %c0_162 = arith.constant 0 : index
    %c6_163 = arith.constant 6 : index
    %c2_164 = arith.constant 2 : index
    %287 = vector.load %arg5[%c0_162, %c6_163, %c2_164] : memref<2x10x22xf32, #tpu.memory_space<vmem>>, vector<1x4x16xf32>
    %288 = vector.shape_cast %287 : vector<1x4x16xf32> to vector<4x16xf32>
    %289 = vector.broadcast %286 : f32 to vector<4x16xf32>
    %290 = arith.mulf %289, %288 : vector<4x16xf32>
    %291 = arith.addf %285, %290 : vector<4x16xf32>
    %c45 = arith.constant 45 : index
    %292 = memref.load %arg2[%c45] : memref<294xf32, #tpu.memory_space<smem>>
    %c0_165 = arith.constant 0 : index
    %c6_166 = arith.constant 6 : index
    %c3_167 = arith.constant 3 : index
    %293 = vector.load %arg5[%c0_165, %c6_166, %c3_167] : memref<2x10x22xf32, #tpu.memory_space<vmem>>, vector<1x4x16xf32>
    %294 = vector.shape_cast %293 : vector<1x4x16xf32> to vector<4x16xf32>
    %295 = vector.broadcast %292 : f32 to vector<4x16xf32>
    %296 = arith.mulf %295, %294 : vector<4x16xf32>
    %297 = arith.addf %291, %296 : vector<4x16xf32>
    %c46 = arith.constant 46 : index
    %298 = memref.load %arg2[%c46] : memref<294xf32, #tpu.memory_space<smem>>
    %c0_168 = arith.constant 0 : index
    %c6_169 = arith.constant 6 : index
    %c4_170 = arith.constant 4 : index
    %299 = vector.load %arg5[%c0_168, %c6_169, %c4_170] : memref<2x10x22xf32, #tpu.memory_space<vmem>>, vector<1x4x16xf32>
    %300 = vector.shape_cast %299 : vector<1x4x16xf32> to vector<4x16xf32>
    %301 = vector.broadcast %298 : f32 to vector<4x16xf32>
    %302 = arith.mulf %301, %300 : vector<4x16xf32>
    %303 = arith.addf %297, %302 : vector<4x16xf32>
    %c47 = arith.constant 47 : index
    %304 = memref.load %arg2[%c47] : memref<294xf32, #tpu.memory_space<smem>>
    %c0_171 = arith.constant 0 : index
    %c6_172 = arith.constant 6 : index
    %c5_173 = arith.constant 5 : index
    %305 = vector.load %arg5[%c0_171, %c6_172, %c5_173] : memref<2x10x22xf32, #tpu.memory_space<vmem>>, vector<1x4x16xf32>
    %306 = vector.shape_cast %305 : vector<1x4x16xf32> to vector<4x16xf32>
    %307 = vector.broadcast %304 : f32 to vector<4x16xf32>
    %308 = arith.mulf %307, %306 : vector<4x16xf32>
    %309 = arith.addf %303, %308 : vector<4x16xf32>
    %c48 = arith.constant 48 : index
    %310 = memref.load %arg2[%c48] : memref<294xf32, #tpu.memory_space<smem>>
    %c0_174 = arith.constant 0 : index
    %c6_175 = arith.constant 6 : index
    %c6_176 = arith.constant 6 : index
    %311 = vector.load %arg5[%c0_174, %c6_175, %c6_176] : memref<2x10x22xf32, #tpu.memory_space<vmem>>, vector<1x4x16xf32>
    %312 = vector.shape_cast %311 : vector<1x4x16xf32> to vector<4x16xf32>
    %313 = vector.broadcast %310 : f32 to vector<4x16xf32>
    %314 = arith.mulf %313, %312 : vector<4x16xf32>
    %315 = arith.addf %309, %314 : vector<4x16xf32>
    %c49 = arith.constant 49 : index
    %316 = memref.load %arg2[%c49] : memref<294xf32, #tpu.memory_space<smem>>
    %c1_177 = arith.constant 1 : index
    %c0_178 = arith.constant 0 : index
    %c0_179 = arith.constant 0 : index
    %317 = vector.load %arg5[%c1_177, %c0_178, %c0_179] : memref<2x10x22xf32, #tpu.memory_space<vmem>>, vector<1x4x16xf32>
    %318 = vector.shape_cast %317 : vector<1x4x16xf32> to vector<4x16xf32>
    %319 = vector.broadcast %316 : f32 to vector<4x16xf32>
    %320 = arith.mulf %319, %318 : vector<4x16xf32>
    %321 = arith.addf %315, %320 : vector<4x16xf32>
    %c50 = arith.constant 50 : index
    %322 = memref.load %arg2[%c50] : memref<294xf32, #tpu.memory_space<smem>>
    %c1_180 = arith.constant 1 : index
    %c0_181 = arith.constant 0 : index
    %c1_182 = arith.constant 1 : index
    %323 = vector.load %arg5[%c1_180, %c0_181, %c1_182] : memref<2x10x22xf32, #tpu.memory_space<vmem>>, vector<1x4x16xf32>
    %324 = vector.shape_cast %323 : vector<1x4x16xf32> to vector<4x16xf32>
    %325 = vector.broadcast %322 : f32 to vector<4x16xf32>
    %326 = arith.mulf %325, %324 : vector<4x16xf32>
    %327 = arith.addf %321, %326 : vector<4x16xf32>
    %c51 = arith.constant 51 : index
    %328 = memref.load %arg2[%c51] : memref<294xf32, #tpu.memory_space<smem>>
    %c1_183 = arith.constant 1 : index
    %c0_184 = arith.constant 0 : index
    %c2_185 = arith.constant 2 : index
    %329 = vector.load %arg5[%c1_183, %c0_184, %c2_185] : memref<2x10x22xf32, #tpu.memory_space<vmem>>, vector<1x4x16xf32>
    %330 = vector.shape_cast %329 : vector<1x4x16xf32> to vector<4x16xf32>
    %331 = vector.broadcast %328 : f32 to vector<4x16xf32>
    %332 = arith.mulf %331, %330 : vector<4x16xf32>
    %333 = arith.addf %327, %332 : vector<4x16xf32>
    %c52 = arith.constant 52 : index
    %334 = memref.load %arg2[%c52] : memref<294xf32, #tpu.memory_space<smem>>
    %c1_186 = arith.constant 1 : index
    %c0_187 = arith.constant 0 : index
    %c3_188 = arith.constant 3 : index
    %335 = vector.load %arg5[%c1_186, %c0_187, %c3_188] : memref<2x10x22xf32, #tpu.memory_space<vmem>>, vector<1x4x16xf32>
    %336 = vector.shape_cast %335 : vector<1x4x16xf32> to vector<4x16xf32>
    %337 = vector.broadcast %334 : f32 to vector<4x16xf32>
    %338 = arith.mulf %337, %336 : vector<4x16xf32>
    %339 = arith.addf %333, %338 : vector<4x16xf32>
    %c53 = arith.constant 53 : index
    %340 = memref.load %arg2[%c53] : memref<294xf32, #tpu.memory_space<smem>>
    %c1_189 = arith.constant 1 : index
    %c0_190 = arith.constant 0 : index
    %c4_191 = arith.constant 4 : index
    %341 = vector.load %arg5[%c1_189, %c0_190, %c4_191] : memref<2x10x22xf32, #tpu.memory_space<vmem>>, vector<1x4x16xf32>
    %342 = vector.shape_cast %341 : vector<1x4x16xf32> to vector<4x16xf32>
    %343 = vector.broadcast %340 : f32 to vector<4x16xf32>
    %344 = arith.mulf %343, %342 : vector<4x16xf32>
    %345 = arith.addf %339, %344 : vector<4x16xf32>
    %c54 = arith.constant 54 : index
    %346 = memref.load %arg2[%c54] : memref<294xf32, #tpu.memory_space<smem>>
    %c1_192 = arith.constant 1 : index
    %c0_193 = arith.constant 0 : index
    %c5_194 = arith.constant 5 : index
    %347 = vector.load %arg5[%c1_192, %c0_193, %c5_194] : memref<2x10x22xf32, #tpu.memory_space<vmem>>, vector<1x4x16xf32>
    %348 = vector.shape_cast %347 : vector<1x4x16xf32> to vector<4x16xf32>
    %349 = vector.broadcast %346 : f32 to vector<4x16xf32>
    %350 = arith.mulf %349, %348 : vector<4x16xf32>
    %351 = arith.addf %345, %350 : vector<4x16xf32>
    %c55 = arith.constant 55 : index
    %352 = memref.load %arg2[%c55] : memref<294xf32, #tpu.memory_space<smem>>
    %c1_195 = arith.constant 1 : index
    %c0_196 = arith.constant 0 : index
    %c6_197 = arith.constant 6 : index
    %353 = vector.load %arg5[%c1_195, %c0_196, %c6_197] : memref<2x10x22xf32, #tpu.memory_space<vmem>>, vector<1x4x16xf32>
    %354 = vector.shape_cast %353 : vector<1x4x16xf32> to vector<4x16xf32>
    %355 = vector.broadcast %352 : f32 to vector<4x16xf32>
    %356 = arith.mulf %355, %354 : vector<4x16xf32>
    %357 = arith.addf %351, %356 : vector<4x16xf32>
    %c56 = arith.constant 56 : index
    %358 = memref.load %arg2[%c56] : memref<294xf32, #tpu.memory_space<smem>>
    %c1_198 = arith.constant 1 : index
    %c1_199 = arith.constant 1 : index
    %c0_200 = arith.constant 0 : index
    %359 = vector.load %arg5[%c1_198, %c1_199, %c0_200] : memref<2x10x22xf32, #tpu.memory_space<vmem>>, vector<1x4x16xf32>
    %360 = vector.shape_cast %359 : vector<1x4x16xf32> to vector<4x16xf32>
    %361 = vector.broadcast %358 : f32 to vector<4x16xf32>
    %362 = arith.mulf %361, %360 : vector<4x16xf32>
    %363 = arith.addf %357, %362 : vector<4x16xf32>
    %c57 = arith.constant 57 : index
    %364 = memref.load %arg2[%c57] : memref<294xf32, #tpu.memory_space<smem>>
    %c1_201 = arith.constant 1 : index
    %c1_202 = arith.constant 1 : index
    %c1_203 = arith.constant 1 : index
    %365 = vector.load %arg5[%c1_201, %c1_202, %c1_203] : memref<2x10x22xf32, #tpu.memory_space<vmem>>, vector<1x4x16xf32>
    %366 = vector.shape_cast %365 : vector<1x4x16xf32> to vector<4x16xf32>
    %367 = vector.broadcast %364 : f32 to vector<4x16xf32>
    %368 = arith.mulf %367, %366 : vector<4x16xf32>
    %369 = arith.addf %363, %368 : vector<4x16xf32>
    %c58 = arith.constant 58 : index
    %370 = memref.load %arg2[%c58] : memref<294xf32, #tpu.memory_space<smem>>
    %c1_204 = arith.constant 1 : index
    %c1_205 = arith.constant 1 : index
    %c2_206 = arith.constant 2 : index
    %371 = vector.load %arg5[%c1_204, %c1_205, %c2_206] : memref<2x10x22xf32, #tpu.memory_space<vmem>>, vector<1x4x16xf32>
    %372 = vector.shape_cast %371 : vector<1x4x16xf32> to vector<4x16xf32>
    %373 = vector.broadcast %370 : f32 to vector<4x16xf32>
    %374 = arith.mulf %373, %372 : vector<4x16xf32>
    %375 = arith.addf %369, %374 : vector<4x16xf32>
    %c59 = arith.constant 59 : index
    %376 = memref.load %arg2[%c59] : memref<294xf32, #tpu.memory_space<smem>>
    %c1_207 = arith.constant 1 : index
    %c1_208 = arith.constant 1 : index
    %c3_209 = arith.constant 3 : index
    %377 = vector.load %arg5[%c1_207, %c1_208, %c3_209] : memref<2x10x22xf32, #tpu.memory_space<vmem>>, vector<1x4x16xf32>
    %378 = vector.shape_cast %377 : vector<1x4x16xf32> to vector<4x16xf32>
    %379 = vector.broadcast %376 : f32 to vector<4x16xf32>
    %380 = arith.mulf %379, %378 : vector<4x16xf32>
    %381 = arith.addf %375, %380 : vector<4x16xf32>
    %c60 = arith.constant 60 : index
    %382 = memref.load %arg2[%c60] : memref<294xf32, #tpu.memory_space<smem>>
    %c1_210 = arith.constant 1 : index
    %c1_211 = arith.constant 1 : index
    %c4_212 = arith.constant 4 : index
    %383 = vector.load %arg5[%c1_210, %c1_211, %c4_212] : memref<2x10x22xf32, #tpu.memory_space<vmem>>, vector<1x4x16xf32>
    %384 = vector.shape_cast %383 : vector<1x4x16xf32> to vector<4x16xf32>
    %385 = vector.broadcast %382 : f32 to vector<4x16xf32>
    %386 = arith.mulf %385, %384 : vector<4x16xf32>
    %387 = arith.addf %381, %386 : vector<4x16xf32>
    %c61 = arith.constant 61 : index
    %388 = memref.load %arg2[%c61] : memref<294xf32, #tpu.memory_space<smem>>
    %c1_213 = arith.constant 1 : index
    %c1_214 = arith.constant 1 : index
    %c5_215 = arith.constant 5 : index
    %389 = vector.load %arg5[%c1_213, %c1_214, %c5_215] : memref<2x10x22xf32, #tpu.memory_space<vmem>>, vector<1x4x16xf32>
    %390 = vector.shape_cast %389 : vector<1x4x16xf32> to vector<4x16xf32>
    %391 = vector.broadcast %388 : f32 to vector<4x16xf32>
    %392 = arith.mulf %391, %390 : vector<4x16xf32>
    %393 = arith.addf %387, %392 : vector<4x16xf32>
    %c62 = arith.constant 62 : index
    %394 = memref.load %arg2[%c62] : memref<294xf32, #tpu.memory_space<smem>>
    %c1_216 = arith.constant 1 : index
    %c1_217 = arith.constant 1 : index
    %c6_218 = arith.constant 6 : index
    %395 = vector.load %arg5[%c1_216, %c1_217, %c6_218] : memref<2x10x22xf32, #tpu.memory_space<vmem>>, vector<1x4x16xf32>
    %396 = vector.shape_cast %395 : vector<1x4x16xf32> to vector<4x16xf32>
    %397 = vector.broadcast %394 : f32 to vector<4x16xf32>
    %398 = arith.mulf %397, %396 : vector<4x16xf32>
    %399 = arith.addf %393, %398 : vector<4x16xf32>
    %c63 = arith.constant 63 : index
    %400 = memref.load %arg2[%c63] : memref<294xf32, #tpu.memory_space<smem>>
    %c1_219 = arith.constant 1 : index
    %c2_220 = arith.constant 2 : index
    %c0_221 = arith.constant 0 : index
    %401 = vector.load %arg5[%c1_219, %c2_220, %c0_221] : memref<2x10x22xf32, #tpu.memory_space<vmem>>, vector<1x4x16xf32>
    %402 = vector.shape_cast %401 : vector<1x4x16xf32> to vector<4x16xf32>
    %403 = vector.broadcast %400 : f32 to vector<4x16xf32>
    %404 = arith.mulf %403, %402 : vector<4x16xf32>
    %405 = arith.addf %399, %404 : vector<4x16xf32>
    %c64 = arith.constant 64 : index
    %406 = memref.load %arg2[%c64] : memref<294xf32, #tpu.memory_space<smem>>
    %c1_222 = arith.constant 1 : index
    %c2_223 = arith.constant 2 : index
    %c1_224 = arith.constant 1 : index
    %407 = vector.load %arg5[%c1_222, %c2_223, %c1_224] : memref<2x10x22xf32, #tpu.memory_space<vmem>>, vector<1x4x16xf32>
    %408 = vector.shape_cast %407 : vector<1x4x16xf32> to vector<4x16xf32>
    %409 = vector.broadcast %406 : f32 to vector<4x16xf32>
    %410 = arith.mulf %409, %408 : vector<4x16xf32>
    %411 = arith.addf %405, %410 : vector<4x16xf32>
    %c65 = arith.constant 65 : index
    %412 = memref.load %arg2[%c65] : memref<294xf32, #tpu.memory_space<smem>>
    %c1_225 = arith.constant 1 : index
    %c2_226 = arith.constant 2 : index
    %c2_227 = arith.constant 2 : index
    %413 = vector.load %arg5[%c1_225, %c2_226, %c2_227] : memref<2x10x22xf32, #tpu.memory_space<vmem>>, vector<1x4x16xf32>
    %414 = vector.shape_cast %413 : vector<1x4x16xf32> to vector<4x16xf32>
    %415 = vector.broadcast %412 : f32 to vector<4x16xf32>
    %416 = arith.mulf %415, %414 : vector<4x16xf32>
    %417 = arith.addf %411, %416 : vector<4x16xf32>
    %c66 = arith.constant 66 : index
    %418 = memref.load %arg2[%c66] : memref<294xf32, #tpu.memory_space<smem>>
    %c1_228 = arith.constant 1 : index
    %c2_229 = arith.constant 2 : index
    %c3_230 = arith.constant 3 : index
    %419 = vector.load %arg5[%c1_228, %c2_229, %c3_230] : memref<2x10x22xf32, #tpu.memory_space<vmem>>, vector<1x4x16xf32>
    %420 = vector.shape_cast %419 : vector<1x4x16xf32> to vector<4x16xf32>
    %421 = vector.broadcast %418 : f32 to vector<4x16xf32>
    %422 = arith.mulf %421, %420 : vector<4x16xf32>
    %423 = arith.addf %417, %422 : vector<4x16xf32>
    %c67 = arith.constant 67 : index
    %424 = memref.load %arg2[%c67] : memref<294xf32, #tpu.memory_space<smem>>
    %c1_231 = arith.constant 1 : index
    %c2_232 = arith.constant 2 : index
    %c4_233 = arith.constant 4 : index
    %425 = vector.load %arg5[%c1_231, %c2_232, %c4_233] : memref<2x10x22xf32, #tpu.memory_space<vmem>>, vector<1x4x16xf32>
    %426 = vector.shape_cast %425 : vector<1x4x16xf32> to vector<4x16xf32>
    %427 = vector.broadcast %424 : f32 to vector<4x16xf32>
    %428 = arith.mulf %427, %426 : vector<4x16xf32>
    %429 = arith.addf %423, %428 : vector<4x16xf32>
    %c68 = arith.constant 68 : index
    %430 = memref.load %arg2[%c68] : memref<294xf32, #tpu.memory_space<smem>>
    %c1_234 = arith.constant 1 : index
    %c2_235 = arith.constant 2 : index
    %c5_236 = arith.constant 5 : index
    %431 = vector.load %arg5[%c1_234, %c2_235, %c5_236] : memref<2x10x22xf32, #tpu.memory_space<vmem>>, vector<1x4x16xf32>
    %432 = vector.shape_cast %431 : vector<1x4x16xf32> to vector<4x16xf32>
    %433 = vector.broadcast %430 : f32 to vector<4x16xf32>
    %434 = arith.mulf %433, %432 : vector<4x16xf32>
    %435 = arith.addf %429, %434 : vector<4x16xf32>
    %c69 = arith.constant 69 : index
    %436 = memref.load %arg2[%c69] : memref<294xf32, #tpu.memory_space<smem>>
    %c1_237 = arith.constant 1 : index
    %c2_238 = arith.constant 2 : index
    %c6_239 = arith.constant 6 : index
    %437 = vector.load %arg5[%c1_237, %c2_238, %c6_239] : memref<2x10x22xf32, #tpu.memory_space<vmem>>, vector<1x4x16xf32>
    %438 = vector.shape_cast %437 : vector<1x4x16xf32> to vector<4x16xf32>
    %439 = vector.broadcast %436 : f32 to vector<4x16xf32>
    %440 = arith.mulf %439, %438 : vector<4x16xf32>
    %441 = arith.addf %435, %440 : vector<4x16xf32>
    %c70 = arith.constant 70 : index
    %442 = memref.load %arg2[%c70] : memref<294xf32, #tpu.memory_space<smem>>
    %c1_240 = arith.constant 1 : index
    %c3_241 = arith.constant 3 : index
    %c0_242 = arith.constant 0 : index
    %443 = vector.load %arg5[%c1_240, %c3_241, %c0_242] : memref<2x10x22xf32, #tpu.memory_space<vmem>>, vector<1x4x16xf32>
    %444 = vector.shape_cast %443 : vector<1x4x16xf32> to vector<4x16xf32>
    %445 = vector.broadcast %442 : f32 to vector<4x16xf32>
    %446 = arith.mulf %445, %444 : vector<4x16xf32>
    %447 = arith.addf %441, %446 : vector<4x16xf32>
    %c71 = arith.constant 71 : index
    %448 = memref.load %arg2[%c71] : memref<294xf32, #tpu.memory_space<smem>>
    %c1_243 = arith.constant 1 : index
    %c3_244 = arith.constant 3 : index
    %c1_245 = arith.constant 1 : index
    %449 = vector.load %arg5[%c1_243, %c3_244, %c1_245] : memref<2x10x22xf32, #tpu.memory_space<vmem>>, vector<1x4x16xf32>
    %450 = vector.shape_cast %449 : vector<1x4x16xf32> to vector<4x16xf32>
    %451 = vector.broadcast %448 : f32 to vector<4x16xf32>
    %452 = arith.mulf %451, %450 : vector<4x16xf32>
    %453 = arith.addf %447, %452 : vector<4x16xf32>
    %c72 = arith.constant 72 : index
    %454 = memref.load %arg2[%c72] : memref<294xf32, #tpu.memory_space<smem>>
    %c1_246 = arith.constant 1 : index
    %c3_247 = arith.constant 3 : index
    %c2_248 = arith.constant 2 : index
    %455 = vector.load %arg5[%c1_246, %c3_247, %c2_248] : memref<2x10x22xf32, #tpu.memory_space<vmem>>, vector<1x4x16xf32>
    %456 = vector.shape_cast %455 : vector<1x4x16xf32> to vector<4x16xf32>
    %457 = vector.broadcast %454 : f32 to vector<4x16xf32>
    %458 = arith.mulf %457, %456 : vector<4x16xf32>
    %459 = arith.addf %453, %458 : vector<4x16xf32>
    %c73 = arith.constant 73 : index
    %460 = memref.load %arg2[%c73] : memref<294xf32, #tpu.memory_space<smem>>
    %c1_249 = arith.constant 1 : index
    %c3_250 = arith.constant 3 : index
    %c3_251 = arith.constant 3 : index
    %461 = vector.load %arg5[%c1_249, %c3_250, %c3_251] : memref<2x10x22xf32, #tpu.memory_space<vmem>>, vector<1x4x16xf32>
    %462 = vector.shape_cast %461 : vector<1x4x16xf32> to vector<4x16xf32>
    %463 = vector.broadcast %460 : f32 to vector<4x16xf32>
    %464 = arith.mulf %463, %462 : vector<4x16xf32>
    %465 = arith.addf %459, %464 : vector<4x16xf32>
    %c74 = arith.constant 74 : index
    %466 = memref.load %arg2[%c74] : memref<294xf32, #tpu.memory_space<smem>>
    %c1_252 = arith.constant 1 : index
    %c3_253 = arith.constant 3 : index
    %c4_254 = arith.constant 4 : index
    %467 = vector.load %arg5[%c1_252, %c3_253, %c4_254] : memref<2x10x22xf32, #tpu.memory_space<vmem>>, vector<1x4x16xf32>
    %468 = vector.shape_cast %467 : vector<1x4x16xf32> to vector<4x16xf32>
    %469 = vector.broadcast %466 : f32 to vector<4x16xf32>
    %470 = arith.mulf %469, %468 : vector<4x16xf32>
    %471 = arith.addf %465, %470 : vector<4x16xf32>
    %c75 = arith.constant 75 : index
    %472 = memref.load %arg2[%c75] : memref<294xf32, #tpu.memory_space<smem>>
    %c1_255 = arith.constant 1 : index
    %c3_256 = arith.constant 3 : index
    %c5_257 = arith.constant 5 : index
    %473 = vector.load %arg5[%c1_255, %c3_256, %c5_257] : memref<2x10x22xf32, #tpu.memory_space<vmem>>, vector<1x4x16xf32>
    %474 = vector.shape_cast %473 : vector<1x4x16xf32> to vector<4x16xf32>
    %475 = vector.broadcast %472 : f32 to vector<4x16xf32>
    %476 = arith.mulf %475, %474 : vector<4x16xf32>
    %477 = arith.addf %471, %476 : vector<4x16xf32>
    %c76 = arith.constant 76 : index
    %478 = memref.load %arg2[%c76] : memref<294xf32, #tpu.memory_space<smem>>
    %c1_258 = arith.constant 1 : index
    %c3_259 = arith.constant 3 : index
    %c6_260 = arith.constant 6 : index
    %479 = vector.load %arg5[%c1_258, %c3_259, %c6_260] : memref<2x10x22xf32, #tpu.memory_space<vmem>>, vector<1x4x16xf32>
    %480 = vector.shape_cast %479 : vector<1x4x16xf32> to vector<4x16xf32>
    %481 = vector.broadcast %478 : f32 to vector<4x16xf32>
    %482 = arith.mulf %481, %480 : vector<4x16xf32>
    %483 = arith.addf %477, %482 : vector<4x16xf32>
    %c77 = arith.constant 77 : index
    %484 = memref.load %arg2[%c77] : memref<294xf32, #tpu.memory_space<smem>>
    %c1_261 = arith.constant 1 : index
    %c4_262 = arith.constant 4 : index
    %c0_263 = arith.constant 0 : index
    %485 = vector.load %arg5[%c1_261, %c4_262, %c0_263] : memref<2x10x22xf32, #tpu.memory_space<vmem>>, vector<1x4x16xf32>
    %486 = vector.shape_cast %485 : vector<1x4x16xf32> to vector<4x16xf32>
    %487 = vector.broadcast %484 : f32 to vector<4x16xf32>
    %488 = arith.mulf %487, %486 : vector<4x16xf32>
    %489 = arith.addf %483, %488 : vector<4x16xf32>
    %c78 = arith.constant 78 : index
    %490 = memref.load %arg2[%c78] : memref<294xf32, #tpu.memory_space<smem>>
    %c1_264 = arith.constant 1 : index
    %c4_265 = arith.constant 4 : index
    %c1_266 = arith.constant 1 : index
    %491 = vector.load %arg5[%c1_264, %c4_265, %c1_266] : memref<2x10x22xf32, #tpu.memory_space<vmem>>, vector<1x4x16xf32>
    %492 = vector.shape_cast %491 : vector<1x4x16xf32> to vector<4x16xf32>
    %493 = vector.broadcast %490 : f32 to vector<4x16xf32>
    %494 = arith.mulf %493, %492 : vector<4x16xf32>
    %495 = arith.addf %489, %494 : vector<4x16xf32>
    %c79 = arith.constant 79 : index
    %496 = memref.load %arg2[%c79] : memref<294xf32, #tpu.memory_space<smem>>
    %c1_267 = arith.constant 1 : index
    %c4_268 = arith.constant 4 : index
    %c2_269 = arith.constant 2 : index
    %497 = vector.load %arg5[%c1_267, %c4_268, %c2_269] : memref<2x10x22xf32, #tpu.memory_space<vmem>>, vector<1x4x16xf32>
    %498 = vector.shape_cast %497 : vector<1x4x16xf32> to vector<4x16xf32>
    %499 = vector.broadcast %496 : f32 to vector<4x16xf32>
    %500 = arith.mulf %499, %498 : vector<4x16xf32>
    %501 = arith.addf %495, %500 : vector<4x16xf32>
    %c80 = arith.constant 80 : index
    %502 = memref.load %arg2[%c80] : memref<294xf32, #tpu.memory_space<smem>>
    %c1_270 = arith.constant 1 : index
    %c4_271 = arith.constant 4 : index
    %c3_272 = arith.constant 3 : index
    %503 = vector.load %arg5[%c1_270, %c4_271, %c3_272] : memref<2x10x22xf32, #tpu.memory_space<vmem>>, vector<1x4x16xf32>
    %504 = vector.shape_cast %503 : vector<1x4x16xf32> to vector<4x16xf32>
    %505 = vector.broadcast %502 : f32 to vector<4x16xf32>
    %506 = arith.mulf %505, %504 : vector<4x16xf32>
    %507 = arith.addf %501, %506 : vector<4x16xf32>
    %c81 = arith.constant 81 : index
    %508 = memref.load %arg2[%c81] : memref<294xf32, #tpu.memory_space<smem>>
    %c1_273 = arith.constant 1 : index
    %c4_274 = arith.constant 4 : index
    %c4_275 = arith.constant 4 : index
    %509 = vector.load %arg5[%c1_273, %c4_274, %c4_275] : memref<2x10x22xf32, #tpu.memory_space<vmem>>, vector<1x4x16xf32>
    %510 = vector.shape_cast %509 : vector<1x4x16xf32> to vector<4x16xf32>
    %511 = vector.broadcast %508 : f32 to vector<4x16xf32>
    %512 = arith.mulf %511, %510 : vector<4x16xf32>
    %513 = arith.addf %507, %512 : vector<4x16xf32>
    %c82 = arith.constant 82 : index
    %514 = memref.load %arg2[%c82] : memref<294xf32, #tpu.memory_space<smem>>
    %c1_276 = arith.constant 1 : index
    %c4_277 = arith.constant 4 : index
    %c5_278 = arith.constant 5 : index
    %515 = vector.load %arg5[%c1_276, %c4_277, %c5_278] : memref<2x10x22xf32, #tpu.memory_space<vmem>>, vector<1x4x16xf32>
    %516 = vector.shape_cast %515 : vector<1x4x16xf32> to vector<4x16xf32>
    %517 = vector.broadcast %514 : f32 to vector<4x16xf32>
    %518 = arith.mulf %517, %516 : vector<4x16xf32>
    %519 = arith.addf %513, %518 : vector<4x16xf32>
    %c83 = arith.constant 83 : index
    %520 = memref.load %arg2[%c83] : memref<294xf32, #tpu.memory_space<smem>>
    %c1_279 = arith.constant 1 : index
    %c4_280 = arith.constant 4 : index
    %c6_281 = arith.constant 6 : index
    %521 = vector.load %arg5[%c1_279, %c4_280, %c6_281] : memref<2x10x22xf32, #tpu.memory_space<vmem>>, vector<1x4x16xf32>
    %522 = vector.shape_cast %521 : vector<1x4x16xf32> to vector<4x16xf32>
    %523 = vector.broadcast %520 : f32 to vector<4x16xf32>
    %524 = arith.mulf %523, %522 : vector<4x16xf32>
    %525 = arith.addf %519, %524 : vector<4x16xf32>
    %c84 = arith.constant 84 : index
    %526 = memref.load %arg2[%c84] : memref<294xf32, #tpu.memory_space<smem>>
    %c1_282 = arith.constant 1 : index
    %c5_283 = arith.constant 5 : index
    %c0_284 = arith.constant 0 : index
    %527 = vector.load %arg5[%c1_282, %c5_283, %c0_284] : memref<2x10x22xf32, #tpu.memory_space<vmem>>, vector<1x4x16xf32>
    %528 = vector.shape_cast %527 : vector<1x4x16xf32> to vector<4x16xf32>
    %529 = vector.broadcast %526 : f32 to vector<4x16xf32>
    %530 = arith.mulf %529, %528 : vector<4x16xf32>
    %531 = arith.addf %525, %530 : vector<4x16xf32>
    %c85 = arith.constant 85 : index
    %532 = memref.load %arg2[%c85] : memref<294xf32, #tpu.memory_space<smem>>
    %c1_285 = arith.constant 1 : index
    %c5_286 = arith.constant 5 : index
    %c1_287 = arith.constant 1 : index
    %533 = vector.load %arg5[%c1_285, %c5_286, %c1_287] : memref<2x10x22xf32, #tpu.memory_space<vmem>>, vector<1x4x16xf32>
    %534 = vector.shape_cast %533 : vector<1x4x16xf32> to vector<4x16xf32>
    %535 = vector.broadcast %532 : f32 to vector<4x16xf32>
    %536 = arith.mulf %535, %534 : vector<4x16xf32>
    %537 = arith.addf %531, %536 : vector<4x16xf32>
    %c86 = arith.constant 86 : index
    %538 = memref.load %arg2[%c86] : memref<294xf32, #tpu.memory_space<smem>>
    %c1_288 = arith.constant 1 : index
    %c5_289 = arith.constant 5 : index
    %c2_290 = arith.constant 2 : index
    %539 = vector.load %arg5[%c1_288, %c5_289, %c2_290] : memref<2x10x22xf32, #tpu.memory_space<vmem>>, vector<1x4x16xf32>
    %540 = vector.shape_cast %539 : vector<1x4x16xf32> to vector<4x16xf32>
    %541 = vector.broadcast %538 : f32 to vector<4x16xf32>
    %542 = arith.mulf %541, %540 : vector<4x16xf32>
    %543 = arith.addf %537, %542 : vector<4x16xf32>
    %c87 = arith.constant 87 : index
    %544 = memref.load %arg2[%c87] : memref<294xf32, #tpu.memory_space<smem>>
    %c1_291 = arith.constant 1 : index
    %c5_292 = arith.constant 5 : index
    %c3_293 = arith.constant 3 : index
    %545 = vector.load %arg5[%c1_291, %c5_292, %c3_293] : memref<2x10x22xf32, #tpu.memory_space<vmem>>, vector<1x4x16xf32>
    %546 = vector.shape_cast %545 : vector<1x4x16xf32> to vector<4x16xf32>
    %547 = vector.broadcast %544 : f32 to vector<4x16xf32>
    %548 = arith.mulf %547, %546 : vector<4x16xf32>
    %549 = arith.addf %543, %548 : vector<4x16xf32>
    %c88 = arith.constant 88 : index
    %550 = memref.load %arg2[%c88] : memref<294xf32, #tpu.memory_space<smem>>
    %c1_294 = arith.constant 1 : index
    %c5_295 = arith.constant 5 : index
    %c4_296 = arith.constant 4 : index
    %551 = vector.load %arg5[%c1_294, %c5_295, %c4_296] : memref<2x10x22xf32, #tpu.memory_space<vmem>>, vector<1x4x16xf32>
    %552 = vector.shape_cast %551 : vector<1x4x16xf32> to vector<4x16xf32>
    %553 = vector.broadcast %550 : f32 to vector<4x16xf32>
    %554 = arith.mulf %553, %552 : vector<4x16xf32>
    %555 = arith.addf %549, %554 : vector<4x16xf32>
    %c89 = arith.constant 89 : index
    %556 = memref.load %arg2[%c89] : memref<294xf32, #tpu.memory_space<smem>>
    %c1_297 = arith.constant 1 : index
    %c5_298 = arith.constant 5 : index
    %c5_299 = arith.constant 5 : index
    %557 = vector.load %arg5[%c1_297, %c5_298, %c5_299] : memref<2x10x22xf32, #tpu.memory_space<vmem>>, vector<1x4x16xf32>
    %558 = vector.shape_cast %557 : vector<1x4x16xf32> to vector<4x16xf32>
    %559 = vector.broadcast %556 : f32 to vector<4x16xf32>
    %560 = arith.mulf %559, %558 : vector<4x16xf32>
    %561 = arith.addf %555, %560 : vector<4x16xf32>
    %c90 = arith.constant 90 : index
    %562 = memref.load %arg2[%c90] : memref<294xf32, #tpu.memory_space<smem>>
    %c1_300 = arith.constant 1 : index
    %c5_301 = arith.constant 5 : index
    %c6_302 = arith.constant 6 : index
    %563 = vector.load %arg5[%c1_300, %c5_301, %c6_302] : memref<2x10x22xf32, #tpu.memory_space<vmem>>, vector<1x4x16xf32>
    %564 = vector.shape_cast %563 : vector<1x4x16xf32> to vector<4x16xf32>
    %565 = vector.broadcast %562 : f32 to vector<4x16xf32>
    %566 = arith.mulf %565, %564 : vector<4x16xf32>
    %567 = arith.addf %561, %566 : vector<4x16xf32>
    %c91 = arith.constant 91 : index
    %568 = memref.load %arg2[%c91] : memref<294xf32, #tpu.memory_space<smem>>
    %c1_303 = arith.constant 1 : index
    %c6_304 = arith.constant 6 : index
    %c0_305 = arith.constant 0 : index
    %569 = vector.load %arg5[%c1_303, %c6_304, %c0_305] : memref<2x10x22xf32, #tpu.memory_space<vmem>>, vector<1x4x16xf32>
    %570 = vector.shape_cast %569 : vector<1x4x16xf32> to vector<4x16xf32>
    %571 = vector.broadcast %568 : f32 to vector<4x16xf32>
    %572 = arith.mulf %571, %570 : vector<4x16xf32>
    %573 = arith.addf %567, %572 : vector<4x16xf32>
    %c92 = arith.constant 92 : index
    %574 = memref.load %arg2[%c92] : memref<294xf32, #tpu.memory_space<smem>>
    %c1_306 = arith.constant 1 : index
    %c6_307 = arith.constant 6 : index
    %c1_308 = arith.constant 1 : index
    %575 = vector.load %arg5[%c1_306, %c6_307, %c1_308] : memref<2x10x22xf32, #tpu.memory_space<vmem>>, vector<1x4x16xf32>
    %576 = vector.shape_cast %575 : vector<1x4x16xf32> to vector<4x16xf32>
    %577 = vector.broadcast %574 : f32 to vector<4x16xf32>
    %578 = arith.mulf %577, %576 : vector<4x16xf32>
    %579 = arith.addf %573, %578 : vector<4x16xf32>
    %c93 = arith.constant 93 : index
    %580 = memref.load %arg2[%c93] : memref<294xf32, #tpu.memory_space<smem>>
    %c1_309 = arith.constant 1 : index
    %c6_310 = arith.constant 6 : index
    %c2_311 = arith.constant 2 : index
    %581 = vector.load %arg5[%c1_309, %c6_310, %c2_311] : memref<2x10x22xf32, #tpu.memory_space<vmem>>, vector<1x4x16xf32>
    %582 = vector.shape_cast %581 : vector<1x4x16xf32> to vector<4x16xf32>
    %583 = vector.broadcast %580 : f32 to vector<4x16xf32>
    %584 = arith.mulf %583, %582 : vector<4x16xf32>
    %585 = arith.addf %579, %584 : vector<4x16xf32>
    %c94 = arith.constant 94 : index
    %586 = memref.load %arg2[%c94] : memref<294xf32, #tpu.memory_space<smem>>
    %c1_312 = arith.constant 1 : index
    %c6_313 = arith.constant 6 : index
    %c3_314 = arith.constant 3 : index
    %587 = vector.load %arg5[%c1_312, %c6_313, %c3_314] : memref<2x10x22xf32, #tpu.memory_space<vmem>>, vector<1x4x16xf32>
    %588 = vector.shape_cast %587 : vector<1x4x16xf32> to vector<4x16xf32>
    %589 = vector.broadcast %586 : f32 to vector<4x16xf32>
    %590 = arith.mulf %589, %588 : vector<4x16xf32>
    %591 = arith.addf %585, %590 : vector<4x16xf32>
    %c95 = arith.constant 95 : index
    %592 = memref.load %arg2[%c95] : memref<294xf32, #tpu.memory_space<smem>>
    %c1_315 = arith.constant 1 : index
    %c6_316 = arith.constant 6 : index
    %c4_317 = arith.constant 4 : index
    %593 = vector.load %arg5[%c1_315, %c6_316, %c4_317] : memref<2x10x22xf32, #tpu.memory_space<vmem>>, vector<1x4x16xf32>
    %594 = vector.shape_cast %593 : vector<1x4x16xf32> to vector<4x16xf32>
    %595 = vector.broadcast %592 : f32 to vector<4x16xf32>
    %596 = arith.mulf %595, %594 : vector<4x16xf32>
    %597 = arith.addf %591, %596 : vector<4x16xf32>
    %c96 = arith.constant 96 : index
    %598 = memref.load %arg2[%c96] : memref<294xf32, #tpu.memory_space<smem>>
    %c1_318 = arith.constant 1 : index
    %c6_319 = arith.constant 6 : index
    %c5_320 = arith.constant 5 : index
    %599 = vector.load %arg5[%c1_318, %c6_319, %c5_320] : memref<2x10x22xf32, #tpu.memory_space<vmem>>, vector<1x4x16xf32>
    %600 = vector.shape_cast %599 : vector<1x4x16xf32> to vector<4x16xf32>
    %601 = vector.broadcast %598 : f32 to vector<4x16xf32>
    %602 = arith.mulf %601, %600 : vector<4x16xf32>
    %603 = arith.addf %597, %602 : vector<4x16xf32>
    %c97 = arith.constant 97 : index
    %604 = memref.load %arg2[%c97] : memref<294xf32, #tpu.memory_space<smem>>
    %c1_321 = arith.constant 1 : index
    %c6_322 = arith.constant 6 : index
    %c6_323 = arith.constant 6 : index
    %605 = vector.load %arg5[%c1_321, %c6_322, %c6_323] : memref<2x10x22xf32, #tpu.memory_space<vmem>>, vector<1x4x16xf32>
    %606 = vector.shape_cast %605 : vector<1x4x16xf32> to vector<4x16xf32>
    %607 = vector.broadcast %604 : f32 to vector<4x16xf32>
    %608 = arith.mulf %607, %606 : vector<4x16xf32>
    %609 = arith.addf %603, %608 : vector<4x16xf32>
    %610 = vector.broadcast %6 : f32 to vector<4x16xf32>
    %611 = arith.addf %609, %610 : vector<4x16xf32>
    %612 = arith.negf %611 : vector<4x16xf32>
    %613 = math.exp %612 : vector<4x16xf32>
    %cst_324 = arith.constant 1.000000e+00 : f32
    %614 = vector.broadcast %cst_324 : f32 to vector<4x16xf32>
    %615 = arith.addf %614, %613 : vector<4x16xf32>
    %616 = arith.divf %614, %615 : vector<4x16xf32>
    %cst_325 = arith.constant dense<0xFF800000> : vector<4x16xf32>
    %617 = vector.multi_reduction <maximumf>, %1, %cst_325 [2] : vector<4x16x16xf32> to vector<4x16xf32>
    %cst_326 = arith.constant dense<0.000000e+00> : vector<4x16xf32>
    %618 = vector.multi_reduction <add>, %1, %cst_326 [2] : vector<4x16x16xf32> to vector<4x16xf32>
    %cst_327 = arith.constant 1.600000e+01 : f32
    %619 = vector.broadcast %cst_327 : f32 to vector<4x16xf32>
    %620 = arith.divf %618, %619 : vector<4x16xf32>
    %c1_328 = arith.constant 1 : index
    %621 = memref.load %arg3[%c1_328] : memref<3xf32, #tpu.memory_space<smem>>
    %cst_329 = arith.constant 0.000000e+00 : f32
    %622 = vector.broadcast %cst_329 : f32 to vector<2x3x22xf32>
    %c0_330 = arith.constant 0 : index
    %c0_331 = arith.constant 0 : index
    %c0_332 = arith.constant 0 : index
    %623 = vector.load %arg6[%c0_330, %c0_331, %c0_332] : memref<2x10x22xf32, #tpu.memory_space<vmem>>, vector<2x3x22xf32>
    tpu.vector_store %arg6[%c0_330, %c0_331, %c0_332], %622 {strides = array<i32>} : memref<2x10x22xf32, #tpu.memory_space<vmem>>, vector<2x3x22xf32>,
    %cst_333 = arith.constant 0.000000e+00 : f32
    %624 = vector.broadcast %cst_333 : f32 to vector<2x3x22xf32>
    %c0_334 = arith.constant 0 : index
    %c7_335 = arith.constant 7 : index
    %c0_336 = arith.constant 0 : index
    %625 = vector.load %arg6[%c0_334, %c7_335, %c0_336] : memref<2x10x22xf32, #tpu.memory_space<vmem>>, vector<2x3x22xf32>
    tpu.vector_store %arg6[%c0_334, %c7_335, %c0_336], %624 {strides = array<i32>} : memref<2x10x22xf32, #tpu.memory_space<vmem>>, vector<2x3x22xf32>,
    %cst_337 = arith.constant 0.000000e+00 : f32
    %626 = vector.broadcast %cst_337 : f32 to vector<2x10x3xf32>
    %c0_338 = arith.constant 0 : index
    %c0_339 = arith.constant 0 : index
    %c0_340 = arith.constant 0 : index
    %627 = vector.load %arg6[%c0_338, %c0_339, %c0_340] : memref<2x10x22xf32, #tpu.memory_space<vmem>>, vector<2x10x3xf32>
    tpu.vector_store %arg6[%c0_338, %c0_339, %c0_340], %626 {strides = array<i32>} : memref<2x10x22xf32, #tpu.memory_space<vmem>>, vector<2x10x3xf32>,
    %cst_341 = arith.constant 0.000000e+00 : f32
    %628 = vector.broadcast %cst_341 : f32 to vector<2x10x3xf32>
    %c0_342 = arith.constant 0 : index
    %c0_343 = arith.constant 0 : index
    %c19_344 = arith.constant 19 : index
    %629 = vector.load %arg6[%c0_342, %c0_343, %c19_344] : memref<2x10x22xf32, #tpu.memory_space<vmem>>, vector<2x10x3xf32>
    tpu.vector_store %arg6[%c0_342, %c0_343, %c19_344], %628 {strides = array<i32>} : memref<2x10x22xf32, #tpu.memory_space<vmem>>, vector<2x10x3xf32>,
    %c0_345 = arith.constant 0 : index
    %c3_346 = arith.constant 3 : index
    %c3_347 = arith.constant 3 : index
    %630 = vector.load %arg6[%c0_345, %c3_346, %c3_347] : memref<2x10x22xf32, #tpu.memory_space<vmem>>, vector<1x4x16xf32>
    %631 = vector.shape_cast %630 : vector<1x4x16xf32> to vector<4x16xf32>
    %632 = vector.shape_cast %617 : vector<4x16xf32> to vector<1x4x16xf32>
    tpu.vector_store %arg6[%c0_345, %c3_346, %c3_347], %632 {strides = array<i32>} : memref<2x10x22xf32, #tpu.memory_space<vmem>>, vector<1x4x16xf32>,
    %c1_348 = arith.constant 1 : index
    %c3_349 = arith.constant 3 : index
    %c3_350 = arith.constant 3 : index
    %633 = vector.load %arg6[%c1_348, %c3_349, %c3_350] : memref<2x10x22xf32, #tpu.memory_space<vmem>>, vector<1x4x16xf32>
    %634 = vector.shape_cast %633 : vector<1x4x16xf32> to vector<4x16xf32>
    %635 = vector.shape_cast %620 : vector<4x16xf32> to vector<1x4x16xf32>
    tpu.vector_store %arg6[%c1_348, %c3_349, %c3_350], %635 {strides = array<i32>} : memref<2x10x22xf32, #tpu.memory_space<vmem>>, vector<1x4x16xf32>,
    %cst_351 = arith.constant 0.000000e+00 : f32
    %636 = vector.broadcast %cst_351 : f32 to vector<4x16xf32>
    %c98 = arith.constant 98 : index
    %637 = memref.load %arg2[%c98] : memref<294xf32, #tpu.memory_space<smem>>
    %c0_352 = arith.constant 0 : index
    %c0_353 = arith.constant 0 : index
    %c0_354 = arith.constant 0 : index
    %638 = vector.load %arg6[%c0_352, %c0_353, %c0_354] : memref<2x10x22xf32, #tpu.memory_space<vmem>>, vector<1x4x16xf32>
    %639 = vector.shape_cast %638 : vector<1x4x16xf32> to vector<4x16xf32>
    %640 = vector.broadcast %637 : f32 to vector<4x16xf32>
    %641 = arith.mulf %640, %639 : vector<4x16xf32>
    %642 = arith.addf %636, %641 : vector<4x16xf32>
    %c99 = arith.constant 99 : index
    %643 = memref.load %arg2[%c99] : memref<294xf32, #tpu.memory_space<smem>>
    %c0_355 = arith.constant 0 : index
    %c0_356 = arith.constant 0 : index
    %c1_357 = arith.constant 1 : index
    %644 = vector.load %arg6[%c0_355, %c0_356, %c1_357] : memref<2x10x22xf32, #tpu.memory_space<vmem>>, vector<1x4x16xf32>
    %645 = vector.shape_cast %644 : vector<1x4x16xf32> to vector<4x16xf32>
    %646 = vector.broadcast %643 : f32 to vector<4x16xf32>
    %647 = arith.mulf %646, %645 : vector<4x16xf32>
    %648 = arith.addf %642, %647 : vector<4x16xf32>
    %c100 = arith.constant 100 : index
    %649 = memref.load %arg2[%c100] : memref<294xf32, #tpu.memory_space<smem>>
    %c0_358 = arith.constant 0 : index
    %c0_359 = arith.constant 0 : index
    %c2_360 = arith.constant 2 : index
    %650 = vector.load %arg6[%c0_358, %c0_359, %c2_360] : memref<2x10x22xf32, #tpu.memory_space<vmem>>, vector<1x4x16xf32>
    %651 = vector.shape_cast %650 : vector<1x4x16xf32> to vector<4x16xf32>
    %652 = vector.broadcast %649 : f32 to vector<4x16xf32>
    %653 = arith.mulf %652, %651 : vector<4x16xf32>
    %654 = arith.addf %648, %653 : vector<4x16xf32>
    %c101 = arith.constant 101 : index
    %655 = memref.load %arg2[%c101] : memref<294xf32, #tpu.memory_space<smem>>
    %c0_361 = arith.constant 0 : index
    %c0_362 = arith.constant 0 : index
    %c3_363 = arith.constant 3 : index
    %656 = vector.load %arg6[%c0_361, %c0_362, %c3_363] : memref<2x10x22xf32, #tpu.memory_space<vmem>>, vector<1x4x16xf32>
    %657 = vector.shape_cast %656 : vector<1x4x16xf32> to vector<4x16xf32>
    %658 = vector.broadcast %655 : f32 to vector<4x16xf32>
    %659 = arith.mulf %658, %657 : vector<4x16xf32>
    %660 = arith.addf %654, %659 : vector<4x16xf32>
    %c102 = arith.constant 102 : index
    %661 = memref.load %arg2[%c102] : memref<294xf32, #tpu.memory_space<smem>>
    %c0_364 = arith.constant 0 : index
    %c0_365 = arith.constant 0 : index
    %c4_366 = arith.constant 4 : index
    %662 = vector.load %arg6[%c0_364, %c0_365, %c4_366] : memref<2x10x22xf32, #tpu.memory_space<vmem>>, vector<1x4x16xf32>
    %663 = vector.shape_cast %662 : vector<1x4x16xf32> to vector<4x16xf32>
    %664 = vector.broadcast %661 : f32 to vector<4x16xf32>
    %665 = arith.mulf %664, %663 : vector<4x16xf32>
    %666 = arith.addf %660, %665 : vector<4x16xf32>
    %c103 = arith.constant 103 : index
    %667 = memref.load %arg2[%c103] : memref<294xf32, #tpu.memory_space<smem>>
    %c0_367 = arith.constant 0 : index
    %c0_368 = arith.constant 0 : index
    %c5_369 = arith.constant 5 : index
    %668 = vector.load %arg6[%c0_367, %c0_368, %c5_369] : memref<2x10x22xf32, #tpu.memory_space<vmem>>, vector<1x4x16xf32>
    %669 = vector.shape_cast %668 : vector<1x4x16xf32> to vector<4x16xf32>
    %670 = vector.broadcast %667 : f32 to vector<4x16xf32>
    %671 = arith.mulf %670, %669 : vector<4x16xf32>
    %672 = arith.addf %666, %671 : vector<4x16xf32>
    %c104 = arith.constant 104 : index
    %673 = memref.load %arg2[%c104] : memref<294xf32, #tpu.memory_space<smem>>
    %c0_370 = arith.constant 0 : index
    %c0_371 = arith.constant 0 : index
    %c6_372 = arith.constant 6 : index
    %674 = vector.load %arg6[%c0_370, %c0_371, %c6_372] : memref<2x10x22xf32, #tpu.memory_space<vmem>>, vector<1x4x16xf32>
    %675 = vector.shape_cast %674 : vector<1x4x16xf32> to vector<4x16xf32>
    %676 = vector.broadcast %673 : f32 to vector<4x16xf32>
    %677 = arith.mulf %676, %675 : vector<4x16xf32>
    %678 = arith.addf %672, %677 : vector<4x16xf32>
    %c105 = arith.constant 105 : index
    %679 = memref.load %arg2[%c105] : memref<294xf32, #tpu.memory_space<smem>>
    %c0_373 = arith.constant 0 : index
    %c1_374 = arith.constant 1 : index
    %c0_375 = arith.constant 0 : index
    %680 = vector.load %arg6[%c0_373, %c1_374, %c0_375] : memref<2x10x22xf32, #tpu.memory_space<vmem>>, vector<1x4x16xf32>
    %681 = vector.shape_cast %680 : vector<1x4x16xf32> to vector<4x16xf32>
    %682 = vector.broadcast %679 : f32 to vector<4x16xf32>
    %683 = arith.mulf %682, %681 : vector<4x16xf32>
    %684 = arith.addf %678, %683 : vector<4x16xf32>
    %c106 = arith.constant 106 : index
    %685 = memref.load %arg2[%c106] : memref<294xf32, #tpu.memory_space<smem>>
    %c0_376 = arith.constant 0 : index
    %c1_377 = arith.constant 1 : index
    %c1_378 = arith.constant 1 : index
    %686 = vector.load %arg6[%c0_376, %c1_377, %c1_378] : memref<2x10x22xf32, #tpu.memory_space<vmem>>, vector<1x4x16xf32>
    %687 = vector.shape_cast %686 : vector<1x4x16xf32> to vector<4x16xf32>
    %688 = vector.broadcast %685 : f32 to vector<4x16xf32>
    %689 = arith.mulf %688, %687 : vector<4x16xf32>
    %690 = arith.addf %684, %689 : vector<4x16xf32>
    %c107 = arith.constant 107 : index
    %691 = memref.load %arg2[%c107] : memref<294xf32, #tpu.memory_space<smem>>
    %c0_379 = arith.constant 0 : index
    %c1_380 = arith.constant 1 : index
    %c2_381 = arith.constant 2 : index
    %692 = vector.load %arg6[%c0_379, %c1_380, %c2_381] : memref<2x10x22xf32, #tpu.memory_space<vmem>>, vector<1x4x16xf32>
    %693 = vector.shape_cast %692 : vector<1x4x16xf32> to vector<4x16xf32>
    %694 = vector.broadcast %691 : f32 to vector<4x16xf32>
    %695 = arith.mulf %694, %693 : vector<4x16xf32>
    %696 = arith.addf %690, %695 : vector<4x16xf32>
    %c108 = arith.constant 108 : index
    %697 = memref.load %arg2[%c108] : memref<294xf32, #tpu.memory_space<smem>>
    %c0_382 = arith.constant 0 : index
    %c1_383 = arith.constant 1 : index
    %c3_384 = arith.constant 3 : index
    %698 = vector.load %arg6[%c0_382, %c1_383, %c3_384] : memref<2x10x22xf32, #tpu.memory_space<vmem>>, vector<1x4x16xf32>
    %699 = vector.shape_cast %698 : vector<1x4x16xf32> to vector<4x16xf32>
    %700 = vector.broadcast %697 : f32 to vector<4x16xf32>
    %701 = arith.mulf %700, %699 : vector<4x16xf32>
    %702 = arith.addf %696, %701 : vector<4x16xf32>
    %c109 = arith.constant 109 : index
    %703 = memref.load %arg2[%c109] : memref<294xf32, #tpu.memory_space<smem>>
    %c0_385 = arith.constant 0 : index
    %c1_386 = arith.constant 1 : index
    %c4_387 = arith.constant 4 : index
    %704 = vector.load %arg6[%c0_385, %c1_386, %c4_387] : memref<2x10x22xf32, #tpu.memory_space<vmem>>, vector<1x4x16xf32>
    %705 = vector.shape_cast %704 : vector<1x4x16xf32> to vector<4x16xf32>
    %706 = vector.broadcast %703 : f32 to vector<4x16xf32>
    %707 = arith.mulf %706, %705 : vector<4x16xf32>
    %708 = arith.addf %702, %707 : vector<4x16xf32>
    %c110 = arith.constant 110 : index
    %709 = memref.load %arg2[%c110] : memref<294xf32, #tpu.memory_space<smem>>
    %c0_388 = arith.constant 0 : index
    %c1_389 = arith.constant 1 : index
    %c5_390 = arith.constant 5 : index
    %710 = vector.load %arg6[%c0_388, %c1_389, %c5_390] : memref<2x10x22xf32, #tpu.memory_space<vmem>>, vector<1x4x16xf32>
    %711 = vector.shape_cast %710 : vector<1x4x16xf32> to vector<4x16xf32>
    %712 = vector.broadcast %709 : f32 to vector<4x16xf32>
    %713 = arith.mulf %712, %711 : vector<4x16xf32>
    %714 = arith.addf %708, %713 : vector<4x16xf32>
    %c111 = arith.constant 111 : index
    %715 = memref.load %arg2[%c111] : memref<294xf32, #tpu.memory_space<smem>>
    %c0_391 = arith.constant 0 : index
    %c1_392 = arith.constant 1 : index
    %c6_393 = arith.constant 6 : index
    %716 = vector.load %arg6[%c0_391, %c1_392, %c6_393] : memref<2x10x22xf32, #tpu.memory_space<vmem>>, vector<1x4x16xf32>
    %717 = vector.shape_cast %716 : vector<1x4x16xf32> to vector<4x16xf32>
    %718 = vector.broadcast %715 : f32 to vector<4x16xf32>
    %719 = arith.mulf %718, %717 : vector<4x16xf32>
    %720 = arith.addf %714, %719 : vector<4x16xf32>
    %c112 = arith.constant 112 : index
    %721 = memref.load %arg2[%c112] : memref<294xf32, #tpu.memory_space<smem>>
    %c0_394 = arith.constant 0 : index
    %c2_395 = arith.constant 2 : index
    %c0_396 = arith.constant 0 : index
    %722 = vector.load %arg6[%c0_394, %c2_395, %c0_396] : memref<2x10x22xf32, #tpu.memory_space<vmem>>, vector<1x4x16xf32>
    %723 = vector.shape_cast %722 : vector<1x4x16xf32> to vector<4x16xf32>
    %724 = vector.broadcast %721 : f32 to vector<4x16xf32>
    %725 = arith.mulf %724, %723 : vector<4x16xf32>
    %726 = arith.addf %720, %725 : vector<4x16xf32>
    %c113 = arith.constant 113 : index
    %727 = memref.load %arg2[%c113] : memref<294xf32, #tpu.memory_space<smem>>
    %c0_397 = arith.constant 0 : index
    %c2_398 = arith.constant 2 : index
    %c1_399 = arith.constant 1 : index
    %728 = vector.load %arg6[%c0_397, %c2_398, %c1_399] : memref<2x10x22xf32, #tpu.memory_space<vmem>>, vector<1x4x16xf32>
    %729 = vector.shape_cast %728 : vector<1x4x16xf32> to vector<4x16xf32>
    %730 = vector.broadcast %727 : f32 to vector<4x16xf32>
    %731 = arith.mulf %730, %729 : vector<4x16xf32>
    %732 = arith.addf %726, %731 : vector<4x16xf32>
    %c114 = arith.constant 114 : index
    %733 = memref.load %arg2[%c114] : memref<294xf32, #tpu.memory_space<smem>>
    %c0_400 = arith.constant 0 : index
    %c2_401 = arith.constant 2 : index
    %c2_402 = arith.constant 2 : index
    %734 = vector.load %arg6[%c0_400, %c2_401, %c2_402] : memref<2x10x22xf32, #tpu.memory_space<vmem>>, vector<1x4x16xf32>
    %735 = vector.shape_cast %734 : vector<1x4x16xf32> to vector<4x16xf32>
    %736 = vector.broadcast %733 : f32 to vector<4x16xf32>
    %737 = arith.mulf %736, %735 : vector<4x16xf32>
    %738 = arith.addf %732, %737 : vector<4x16xf32>
    %c115 = arith.constant 115 : index
    %739 = memref.load %arg2[%c115] : memref<294xf32, #tpu.memory_space<smem>>
    %c0_403 = arith.constant 0 : index
    %c2_404 = arith.constant 2 : index
    %c3_405 = arith.constant 3 : index
    %740 = vector.load %arg6[%c0_403, %c2_404, %c3_405] : memref<2x10x22xf32, #tpu.memory_space<vmem>>, vector<1x4x16xf32>
    %741 = vector.shape_cast %740 : vector<1x4x16xf32> to vector<4x16xf32>
    %742 = vector.broadcast %739 : f32 to vector<4x16xf32>
    %743 = arith.mulf %742, %741 : vector<4x16xf32>
    %744 = arith.addf %738, %743 : vector<4x16xf32>
    %c116 = arith.constant 116 : index
    %745 = memref.load %arg2[%c116] : memref<294xf32, #tpu.memory_space<smem>>
    %c0_406 = arith.constant 0 : index
    %c2_407 = arith.constant 2 : index
    %c4_408 = arith.constant 4 : index
    %746 = vector.load %arg6[%c0_406, %c2_407, %c4_408] : memref<2x10x22xf32, #tpu.memory_space<vmem>>, vector<1x4x16xf32>
    %747 = vector.shape_cast %746 : vector<1x4x16xf32> to vector<4x16xf32>
    %748 = vector.broadcast %745 : f32 to vector<4x16xf32>
    %749 = arith.mulf %748, %747 : vector<4x16xf32>
    %750 = arith.addf %744, %749 : vector<4x16xf32>
    %c117 = arith.constant 117 : index
    %751 = memref.load %arg2[%c117] : memref<294xf32, #tpu.memory_space<smem>>
    %c0_409 = arith.constant 0 : index
    %c2_410 = arith.constant 2 : index
    %c5_411 = arith.constant 5 : index
    %752 = vector.load %arg6[%c0_409, %c2_410, %c5_411] : memref<2x10x22xf32, #tpu.memory_space<vmem>>, vector<1x4x16xf32>
    %753 = vector.shape_cast %752 : vector<1x4x16xf32> to vector<4x16xf32>
    %754 = vector.broadcast %751 : f32 to vector<4x16xf32>
    %755 = arith.mulf %754, %753 : vector<4x16xf32>
    %756 = arith.addf %750, %755 : vector<4x16xf32>
    %c118 = arith.constant 118 : index
    %757 = memref.load %arg2[%c118] : memref<294xf32, #tpu.memory_space<smem>>
    %c0_412 = arith.constant 0 : index
    %c2_413 = arith.constant 2 : index
    %c6_414 = arith.constant 6 : index
    %758 = vector.load %arg6[%c0_412, %c2_413, %c6_414] : memref<2x10x22xf32, #tpu.memory_space<vmem>>, vector<1x4x16xf32>
    %759 = vector.shape_cast %758 : vector<1x4x16xf32> to vector<4x16xf32>
    %760 = vector.broadcast %757 : f32 to vector<4x16xf32>
    %761 = arith.mulf %760, %759 : vector<4x16xf32>
    %762 = arith.addf %756, %761 : vector<4x16xf32>
    %c119 = arith.constant 119 : index
    %763 = memref.load %arg2[%c119] : memref<294xf32, #tpu.memory_space<smem>>
    %c0_415 = arith.constant 0 : index
    %c3_416 = arith.constant 3 : index
    %c0_417 = arith.constant 0 : index
    %764 = vector.load %arg6[%c0_415, %c3_416, %c0_417] : memref<2x10x22xf32, #tpu.memory_space<vmem>>, vector<1x4x16xf32>
    %765 = vector.shape_cast %764 : vector<1x4x16xf32> to vector<4x16xf32>
    %766 = vector.broadcast %763 : f32 to vector<4x16xf32>
    %767 = arith.mulf %766, %765 : vector<4x16xf32>
    %768 = arith.addf %762, %767 : vector<4x16xf32>
    %c120 = arith.constant 120 : index
    %769 = memref.load %arg2[%c120] : memref<294xf32, #tpu.memory_space<smem>>
    %c0_418 = arith.constant 0 : index
    %c3_419 = arith.constant 3 : index
    %c1_420 = arith.constant 1 : index
    %770 = vector.load %arg6[%c0_418, %c3_419, %c1_420] : memref<2x10x22xf32, #tpu.memory_space<vmem>>, vector<1x4x16xf32>
    %771 = vector.shape_cast %770 : vector<1x4x16xf32> to vector<4x16xf32>
    %772 = vector.broadcast %769 : f32 to vector<4x16xf32>
    %773 = arith.mulf %772, %771 : vector<4x16xf32>
    %774 = arith.addf %768, %773 : vector<4x16xf32>
    %c121 = arith.constant 121 : index
    %775 = memref.load %arg2[%c121] : memref<294xf32, #tpu.memory_space<smem>>
    %c0_421 = arith.constant 0 : index
    %c3_422 = arith.constant 3 : index
    %c2_423 = arith.constant 2 : index
    %776 = vector.load %arg6[%c0_421, %c3_422, %c2_423] : memref<2x10x22xf32, #tpu.memory_space<vmem>>, vector<1x4x16xf32>
    %777 = vector.shape_cast %776 : vector<1x4x16xf32> to vector<4x16xf32>
    %778 = vector.broadcast %775 : f32 to vector<4x16xf32>
    %779 = arith.mulf %778, %777 : vector<4x16xf32>
    %780 = arith.addf %774, %779 : vector<4x16xf32>
    %c122 = arith.constant 122 : index
    %781 = memref.load %arg2[%c122] : memref<294xf32, #tpu.memory_space<smem>>
    %c0_424 = arith.constant 0 : index
    %c3_425 = arith.constant 3 : index
    %c3_426 = arith.constant 3 : index
    %782 = vector.load %arg6[%c0_424, %c3_425, %c3_426] : memref<2x10x22xf32, #tpu.memory_space<vmem>>, vector<1x4x16xf32>
    %783 = vector.shape_cast %782 : vector<1x4x16xf32> to vector<4x16xf32>
    %784 = vector.broadcast %781 : f32 to vector<4x16xf32>
    %785 = arith.mulf %784, %783 : vector<4x16xf32>
    %786 = arith.addf %780, %785 : vector<4x16xf32>
    %c123 = arith.constant 123 : index
    %787 = memref.load %arg2[%c123] : memref<294xf32, #tpu.memory_space<smem>>
    %c0_427 = arith.constant 0 : index
    %c3_428 = arith.constant 3 : index
    %c4_429 = arith.constant 4 : index
    %788 = vector.load %arg6[%c0_427, %c3_428, %c4_429] : memref<2x10x22xf32, #tpu.memory_space<vmem>>, vector<1x4x16xf32>
    %789 = vector.shape_cast %788 : vector<1x4x16xf32> to vector<4x16xf32>
    %790 = vector.broadcast %787 : f32 to vector<4x16xf32>
    %791 = arith.mulf %790, %789 : vector<4x16xf32>
    %792 = arith.addf %786, %791 : vector<4x16xf32>
    %c124 = arith.constant 124 : index
    %793 = memref.load %arg2[%c124] : memref<294xf32, #tpu.memory_space<smem>>
    %c0_430 = arith.constant 0 : index
    %c3_431 = arith.constant 3 : index
    %c5_432 = arith.constant 5 : index
    %794 = vector.load %arg6[%c0_430, %c3_431, %c5_432] : memref<2x10x22xf32, #tpu.memory_space<vmem>>, vector<1x4x16xf32>
    %795 = vector.shape_cast %794 : vector<1x4x16xf32> to vector<4x16xf32>
    %796 = vector.broadcast %793 : f32 to vector<4x16xf32>
    %797 = arith.mulf %796, %795 : vector<4x16xf32>
    %798 = arith.addf %792, %797 : vector<4x16xf32>
    %c125 = arith.constant 125 : index
    %799 = memref.load %arg2[%c125] : memref<294xf32, #tpu.memory_space<smem>>
    %c0_433 = arith.constant 0 : index
    %c3_434 = arith.constant 3 : index
    %c6_435 = arith.constant 6 : index
    %800 = vector.load %arg6[%c0_433, %c3_434, %c6_435] : memref<2x10x22xf32, #tpu.memory_space<vmem>>, vector<1x4x16xf32>
    %801 = vector.shape_cast %800 : vector<1x4x16xf32> to vector<4x16xf32>
    %802 = vector.broadcast %799 : f32 to vector<4x16xf32>
    %803 = arith.mulf %802, %801 : vector<4x16xf32>
    %804 = arith.addf %798, %803 : vector<4x16xf32>
    %c126 = arith.constant 126 : index
    %805 = memref.load %arg2[%c126] : memref<294xf32, #tpu.memory_space<smem>>
    %c0_436 = arith.constant 0 : index
    %c4_437 = arith.constant 4 : index
    %c0_438 = arith.constant 0 : index
    %806 = vector.load %arg6[%c0_436, %c4_437, %c0_438] : memref<2x10x22xf32, #tpu.memory_space<vmem>>, vector<1x4x16xf32>
    %807 = vector.shape_cast %806 : vector<1x4x16xf32> to vector<4x16xf32>
    %808 = vector.broadcast %805 : f32 to vector<4x16xf32>
    %809 = arith.mulf %808, %807 : vector<4x16xf32>
    %810 = arith.addf %804, %809 : vector<4x16xf32>
    %c127 = arith.constant 127 : index
    %811 = memref.load %arg2[%c127] : memref<294xf32, #tpu.memory_space<smem>>
    %c0_439 = arith.constant 0 : index
    %c4_440 = arith.constant 4 : index
    %c1_441 = arith.constant 1 : index
    %812 = vector.load %arg6[%c0_439, %c4_440, %c1_441] : memref<2x10x22xf32, #tpu.memory_space<vmem>>, vector<1x4x16xf32>
    %813 = vector.shape_cast %812 : vector<1x4x16xf32> to vector<4x16xf32>
    %814 = vector.broadcast %811 : f32 to vector<4x16xf32>
    %815 = arith.mulf %814, %813 : vector<4x16xf32>
    %816 = arith.addf %810, %815 : vector<4x16xf32>
    %c128 = arith.constant 128 : index
    %817 = memref.load %arg2[%c128] : memref<294xf32, #tpu.memory_space<smem>>
    %c0_442 = arith.constant 0 : index
    %c4_443 = arith.constant 4 : index
    %c2_444 = arith.constant 2 : index
    %818 = vector.load %arg6[%c0_442, %c4_443, %c2_444] : memref<2x10x22xf32, #tpu.memory_space<vmem>>, vector<1x4x16xf32>
    %819 = vector.shape_cast %818 : vector<1x4x16xf32> to vector<4x16xf32>
    %820 = vector.broadcast %817 : f32 to vector<4x16xf32>
    %821 = arith.mulf %820, %819 : vector<4x16xf32>
    %822 = arith.addf %816, %821 : vector<4x16xf32>
    %c129 = arith.constant 129 : index
    %823 = memref.load %arg2[%c129] : memref<294xf32, #tpu.memory_space<smem>>
    %c0_445 = arith.constant 0 : index
    %c4_446 = arith.constant 4 : index
    %c3_447 = arith.constant 3 : index
    %824 = vector.load %arg6[%c0_445, %c4_446, %c3_447] : memref<2x10x22xf32, #tpu.memory_space<vmem>>, vector<1x4x16xf32>
    %825 = vector.shape_cast %824 : vector<1x4x16xf32> to vector<4x16xf32>
    %826 = vector.broadcast %823 : f32 to vector<4x16xf32>
    %827 = arith.mulf %826, %825 : vector<4x16xf32>
    %828 = arith.addf %822, %827 : vector<4x16xf32>
    %c130 = arith.constant 130 : index
    %829 = memref.load %arg2[%c130] : memref<294xf32, #tpu.memory_space<smem>>
    %c0_448 = arith.constant 0 : index
    %c4_449 = arith.constant 4 : index
    %c4_450 = arith.constant 4 : index
    %830 = vector.load %arg6[%c0_448, %c4_449, %c4_450] : memref<2x10x22xf32, #tpu.memory_space<vmem>>, vector<1x4x16xf32>
    %831 = vector.shape_cast %830 : vector<1x4x16xf32> to vector<4x16xf32>
    %832 = vector.broadcast %829 : f32 to vector<4x16xf32>
    %833 = arith.mulf %832, %831 : vector<4x16xf32>
    %834 = arith.addf %828, %833 : vector<4x16xf32>
    %c131 = arith.constant 131 : index
    %835 = memref.load %arg2[%c131] : memref<294xf32, #tpu.memory_space<smem>>
    %c0_451 = arith.constant 0 : index
    %c4_452 = arith.constant 4 : index
    %c5_453 = arith.constant 5 : index
    %836 = vector.load %arg6[%c0_451, %c4_452, %c5_453] : memref<2x10x22xf32, #tpu.memory_space<vmem>>, vector<1x4x16xf32>
    %837 = vector.shape_cast %836 : vector<1x4x16xf32> to vector<4x16xf32>
    %838 = vector.broadcast %835 : f32 to vector<4x16xf32>
    %839 = arith.mulf %838, %837 : vector<4x16xf32>
    %840 = arith.addf %834, %839 : vector<4x16xf32>
    %c132 = arith.constant 132 : index
    %841 = memref.load %arg2[%c132] : memref<294xf32, #tpu.memory_space<smem>>
    %c0_454 = arith.constant 0 : index
    %c4_455 = arith.constant 4 : index
    %c6_456 = arith.constant 6 : index
    %842 = vector.load %arg6[%c0_454, %c4_455, %c6_456] : memref<2x10x22xf32, #tpu.memory_space<vmem>>, vector<1x4x16xf32>
    %843 = vector.shape_cast %842 : vector<1x4x16xf32> to vector<4x16xf32>
    %844 = vector.broadcast %841 : f32 to vector<4x16xf32>
    %845 = arith.mulf %844, %843 : vector<4x16xf32>
    %846 = arith.addf %840, %845 : vector<4x16xf32>
    %c133 = arith.constant 133 : index
    %847 = memref.load %arg2[%c133] : memref<294xf32, #tpu.memory_space<smem>>
    %c0_457 = arith.constant 0 : index
    %c5_458 = arith.constant 5 : index
    %c0_459 = arith.constant 0 : index
    %848 = vector.load %arg6[%c0_457, %c5_458, %c0_459] : memref<2x10x22xf32, #tpu.memory_space<vmem>>, vector<1x4x16xf32>
    %849 = vector.shape_cast %848 : vector<1x4x16xf32> to vector<4x16xf32>
    %850 = vector.broadcast %847 : f32 to vector<4x16xf32>
    %851 = arith.mulf %850, %849 : vector<4x16xf32>
    %852 = arith.addf %846, %851 : vector<4x16xf32>
    %c134 = arith.constant 134 : index
    %853 = memref.load %arg2[%c134] : memref<294xf32, #tpu.memory_space<smem>>
    %c0_460 = arith.constant 0 : index
    %c5_461 = arith.constant 5 : index
    %c1_462 = arith.constant 1 : index
    %854 = vector.load %arg6[%c0_460, %c5_461, %c1_462] : memref<2x10x22xf32, #tpu.memory_space<vmem>>, vector<1x4x16xf32>
    %855 = vector.shape_cast %854 : vector<1x4x16xf32> to vector<4x16xf32>
    %856 = vector.broadcast %853 : f32 to vector<4x16xf32>
    %857 = arith.mulf %856, %855 : vector<4x16xf32>
    %858 = arith.addf %852, %857 : vector<4x16xf32>
    %c135 = arith.constant 135 : index
    %859 = memref.load %arg2[%c135] : memref<294xf32, #tpu.memory_space<smem>>
    %c0_463 = arith.constant 0 : index
    %c5_464 = arith.constant 5 : index
    %c2_465 = arith.constant 2 : index
    %860 = vector.load %arg6[%c0_463, %c5_464, %c2_465] : memref<2x10x22xf32, #tpu.memory_space<vmem>>, vector<1x4x16xf32>
    %861 = vector.shape_cast %860 : vector<1x4x16xf32> to vector<4x16xf32>
    %862 = vector.broadcast %859 : f32 to vector<4x16xf32>
    %863 = arith.mulf %862, %861 : vector<4x16xf32>
    %864 = arith.addf %858, %863 : vector<4x16xf32>
    %c136 = arith.constant 136 : index
    %865 = memref.load %arg2[%c136] : memref<294xf32, #tpu.memory_space<smem>>
    %c0_466 = arith.constant 0 : index
    %c5_467 = arith.constant 5 : index
    %c3_468 = arith.constant 3 : index
    %866 = vector.load %arg6[%c0_466, %c5_467, %c3_468] : memref<2x10x22xf32, #tpu.memory_space<vmem>>, vector<1x4x16xf32>
    %867 = vector.shape_cast %866 : vector<1x4x16xf32> to vector<4x16xf32>
    %868 = vector.broadcast %865 : f32 to vector<4x16xf32>
    %869 = arith.mulf %868, %867 : vector<4x16xf32>
    %870 = arith.addf %864, %869 : vector<4x16xf32>
    %c137 = arith.constant 137 : index
    %871 = memref.load %arg2[%c137] : memref<294xf32, #tpu.memory_space<smem>>
    %c0_469 = arith.constant 0 : index
    %c5_470 = arith.constant 5 : index
    %c4_471 = arith.constant 4 : index
    %872 = vector.load %arg6[%c0_469, %c5_470, %c4_471] : memref<2x10x22xf32, #tpu.memory_space<vmem>>, vector<1x4x16xf32>
    %873 = vector.shape_cast %872 : vector<1x4x16xf32> to vector<4x16xf32>
    %874 = vector.broadcast %871 : f32 to vector<4x16xf32>
    %875 = arith.mulf %874, %873 : vector<4x16xf32>
    %876 = arith.addf %870, %875 : vector<4x16xf32>
    %c138 = arith.constant 138 : index
    %877 = memref.load %arg2[%c138] : memref<294xf32, #tpu.memory_space<smem>>
    %c0_472 = arith.constant 0 : index
    %c5_473 = arith.constant 5 : index
    %c5_474 = arith.constant 5 : index
    %878 = vector.load %arg6[%c0_472, %c5_473, %c5_474] : memref<2x10x22xf32, #tpu.memory_space<vmem>>, vector<1x4x16xf32>
    %879 = vector.shape_cast %878 : vector<1x4x16xf32> to vector<4x16xf32>
    %880 = vector.broadcast %877 : f32 to vector<4x16xf32>
    %881 = arith.mulf %880, %879 : vector<4x16xf32>
    %882 = arith.addf %876, %881 : vector<4x16xf32>
    %c139 = arith.constant 139 : index
    %883 = memref.load %arg2[%c139] : memref<294xf32, #tpu.memory_space<smem>>
    %c0_475 = arith.constant 0 : index
    %c5_476 = arith.constant 5 : index
    %c6_477 = arith.constant 6 : index
    %884 = vector.load %arg6[%c0_475, %c5_476, %c6_477] : memref<2x10x22xf32, #tpu.memory_space<vmem>>, vector<1x4x16xf32>
    %885 = vector.shape_cast %884 : vector<1x4x16xf32> to vector<4x16xf32>
    %886 = vector.broadcast %883 : f32 to vector<4x16xf32>
    %887 = arith.mulf %886, %885 : vector<4x16xf32>
    %888 = arith.addf %882, %887 : vector<4x16xf32>
    %c140 = arith.constant 140 : index
    %889 = memref.load %arg2[%c140] : memref<294xf32, #tpu.memory_space<smem>>
    %c0_478 = arith.constant 0 : index
    %c6_479 = arith.constant 6 : index
    %c0_480 = arith.constant 0 : index
    %890 = vector.load %arg6[%c0_478, %c6_479, %c0_480] : memref<2x10x22xf32, #tpu.memory_space<vmem>>, vector<1x4x16xf32>
    %891 = vector.shape_cast %890 : vector<1x4x16xf32> to vector<4x16xf32>
    %892 = vector.broadcast %889 : f32 to vector<4x16xf32>
    %893 = arith.mulf %892, %891 : vector<4x16xf32>
    %894 = arith.addf %888, %893 : vector<4x16xf32>
    %c141 = arith.constant 141 : index
    %895 = memref.load %arg2[%c141] : memref<294xf32, #tpu.memory_space<smem>>
    %c0_481 = arith.constant 0 : index
    %c6_482 = arith.constant 6 : index
    %c1_483 = arith.constant 1 : index
    %896 = vector.load %arg6[%c0_481, %c6_482, %c1_483] : memref<2x10x22xf32, #tpu.memory_space<vmem>>, vector<1x4x16xf32>
    %897 = vector.shape_cast %896 : vector<1x4x16xf32> to vector<4x16xf32>
    %898 = vector.broadcast %895 : f32 to vector<4x16xf32>
    %899 = arith.mulf %898, %897 : vector<4x16xf32>
    %900 = arith.addf %894, %899 : vector<4x16xf32>
    %c142 = arith.constant 142 : index
    %901 = memref.load %arg2[%c142] : memref<294xf32, #tpu.memory_space<smem>>
    %c0_484 = arith.constant 0 : index
    %c6_485 = arith.constant 6 : index
    %c2_486 = arith.constant 2 : index
    %902 = vector.load %arg6[%c0_484, %c6_485, %c2_486] : memref<2x10x22xf32, #tpu.memory_space<vmem>>, vector<1x4x16xf32>
    %903 = vector.shape_cast %902 : vector<1x4x16xf32> to vector<4x16xf32>
    %904 = vector.broadcast %901 : f32 to vector<4x16xf32>
    %905 = arith.mulf %904, %903 : vector<4x16xf32>
    %906 = arith.addf %900, %905 : vector<4x16xf32>
    %c143 = arith.constant 143 : index
    %907 = memref.load %arg2[%c143] : memref<294xf32, #tpu.memory_space<smem>>
    %c0_487 = arith.constant 0 : index
    %c6_488 = arith.constant 6 : index
    %c3_489 = arith.constant 3 : index
    %908 = vector.load %arg6[%c0_487, %c6_488, %c3_489] : memref<2x10x22xf32, #tpu.memory_space<vmem>>, vector<1x4x16xf32>
    %909 = vector.shape_cast %908 : vector<1x4x16xf32> to vector<4x16xf32>
    %910 = vector.broadcast %907 : f32 to vector<4x16xf32>
    %911 = arith.mulf %910, %909 : vector<4x16xf32>
    %912 = arith.addf %906, %911 : vector<4x16xf32>
    %c144 = arith.constant 144 : index
    %913 = memref.load %arg2[%c144] : memref<294xf32, #tpu.memory_space<smem>>
    %c0_490 = arith.constant 0 : index
    %c6_491 = arith.constant 6 : index
    %c4_492 = arith.constant 4 : index
    %914 = vector.load %arg6[%c0_490, %c6_491, %c4_492] : memref<2x10x22xf32, #tpu.memory_space<vmem>>, vector<1x4x16xf32>
    %915 = vector.shape_cast %914 : vector<1x4x16xf32> to vector<4x16xf32>
    %916 = vector.broadcast %913 : f32 to vector<4x16xf32>
    %917 = arith.mulf %916, %915 : vector<4x16xf32>
    %918 = arith.addf %912, %917 : vector<4x16xf32>
    %c145 = arith.constant 145 : index
    %919 = memref.load %arg2[%c145] : memref<294xf32, #tpu.memory_space<smem>>
    %c0_493 = arith.constant 0 : index
    %c6_494 = arith.constant 6 : index
    %c5_495 = arith.constant 5 : index
    %920 = vector.load %arg6[%c0_493, %c6_494, %c5_495] : memref<2x10x22xf32, #tpu.memory_space<vmem>>, vector<1x4x16xf32>
    %921 = vector.shape_cast %920 : vector<1x4x16xf32> to vector<4x16xf32>
    %922 = vector.broadcast %919 : f32 to vector<4x16xf32>
    %923 = arith.mulf %922, %921 : vector<4x16xf32>
    %924 = arith.addf %918, %923 : vector<4x16xf32>
    %c146 = arith.constant 146 : index
    %925 = memref.load %arg2[%c146] : memref<294xf32, #tpu.memory_space<smem>>
    %c0_496 = arith.constant 0 : index
    %c6_497 = arith.constant 6 : index
    %c6_498 = arith.constant 6 : index
    %926 = vector.load %arg6[%c0_496, %c6_497, %c6_498] : memref<2x10x22xf32, #tpu.memory_space<vmem>>, vector<1x4x16xf32>
    %927 = vector.shape_cast %926 : vector<1x4x16xf32> to vector<4x16xf32>
    %928 = vector.broadcast %925 : f32 to vector<4x16xf32>
    %929 = arith.mulf %928, %927 : vector<4x16xf32>
    %930 = arith.addf %924, %929 : vector<4x16xf32>
    %c147 = arith.constant 147 : index
    %931 = memref.load %arg2[%c147] : memref<294xf32, #tpu.memory_space<smem>>
    %c1_499 = arith.constant 1 : index
    %c0_500 = arith.constant 0 : index
    %c0_501 = arith.constant 0 : index
    %932 = vector.load %arg6[%c1_499, %c0_500, %c0_501] : memref<2x10x22xf32, #tpu.memory_space<vmem>>, vector<1x4x16xf32>
    %933 = vector.shape_cast %932 : vector<1x4x16xf32> to vector<4x16xf32>
    %934 = vector.broadcast %931 : f32 to vector<4x16xf32>
    %935 = arith.mulf %934, %933 : vector<4x16xf32>
    %936 = arith.addf %930, %935 : vector<4x16xf32>
    %c148 = arith.constant 148 : index
    %937 = memref.load %arg2[%c148] : memref<294xf32, #tpu.memory_space<smem>>
    %c1_502 = arith.constant 1 : index
    %c0_503 = arith.constant 0 : index
    %c1_504 = arith.constant 1 : index
    %938 = vector.load %arg6[%c1_502, %c0_503, %c1_504] : memref<2x10x22xf32, #tpu.memory_space<vmem>>, vector<1x4x16xf32>
    %939 = vector.shape_cast %938 : vector<1x4x16xf32> to vector<4x16xf32>
    %940 = vector.broadcast %937 : f32 to vector<4x16xf32>
    %941 = arith.mulf %940, %939 : vector<4x16xf32>
    %942 = arith.addf %936, %941 : vector<4x16xf32>
    %c149 = arith.constant 149 : index
    %943 = memref.load %arg2[%c149] : memref<294xf32, #tpu.memory_space<smem>>
    %c1_505 = arith.constant 1 : index
    %c0_506 = arith.constant 0 : index
    %c2_507 = arith.constant 2 : index
    %944 = vector.load %arg6[%c1_505, %c0_506, %c2_507] : memref<2x10x22xf32, #tpu.memory_space<vmem>>, vector<1x4x16xf32>
    %945 = vector.shape_cast %944 : vector<1x4x16xf32> to vector<4x16xf32>
    %946 = vector.broadcast %943 : f32 to vector<4x16xf32>
    %947 = arith.mulf %946, %945 : vector<4x16xf32>
    %948 = arith.addf %942, %947 : vector<4x16xf32>
    %c150 = arith.constant 150 : index
    %949 = memref.load %arg2[%c150] : memref<294xf32, #tpu.memory_space<smem>>
    %c1_508 = arith.constant 1 : index
    %c0_509 = arith.constant 0 : index
    %c3_510 = arith.constant 3 : index
    %950 = vector.load %arg6[%c1_508, %c0_509, %c3_510] : memref<2x10x22xf32, #tpu.memory_space<vmem>>, vector<1x4x16xf32>
    %951 = vector.shape_cast %950 : vector<1x4x16xf32> to vector<4x16xf32>
    %952 = vector.broadcast %949 : f32 to vector<4x16xf32>
    %953 = arith.mulf %952, %951 : vector<4x16xf32>
    %954 = arith.addf %948, %953 : vector<4x16xf32>
    %c151 = arith.constant 151 : index
    %955 = memref.load %arg2[%c151] : memref<294xf32, #tpu.memory_space<smem>>
    %c1_511 = arith.constant 1 : index
    %c0_512 = arith.constant 0 : index
    %c4_513 = arith.constant 4 : index
    %956 = vector.load %arg6[%c1_511, %c0_512, %c4_513] : memref<2x10x22xf32, #tpu.memory_space<vmem>>, vector<1x4x16xf32>
    %957 = vector.shape_cast %956 : vector<1x4x16xf32> to vector<4x16xf32>
    %958 = vector.broadcast %955 : f32 to vector<4x16xf32>
    %959 = arith.mulf %958, %957 : vector<4x16xf32>
    %960 = arith.addf %954, %959 : vector<4x16xf32>
    %c152 = arith.constant 152 : index
    %961 = memref.load %arg2[%c152] : memref<294xf32, #tpu.memory_space<smem>>
    %c1_514 = arith.constant 1 : index
    %c0_515 = arith.constant 0 : index
    %c5_516 = arith.constant 5 : index
    %962 = vector.load %arg6[%c1_514, %c0_515, %c5_516] : memref<2x10x22xf32, #tpu.memory_space<vmem>>, vector<1x4x16xf32>
    %963 = vector.shape_cast %962 : vector<1x4x16xf32> to vector<4x16xf32>
    %964 = vector.broadcast %961 : f32 to vector<4x16xf32>
    %965 = arith.mulf %964, %963 : vector<4x16xf32>
    %966 = arith.addf %960, %965 : vector<4x16xf32>
    %c153 = arith.constant 153 : index
    %967 = memref.load %arg2[%c153] : memref<294xf32, #tpu.memory_space<smem>>
    %c1_517 = arith.constant 1 : index
    %c0_518 = arith.constant 0 : index
    %c6_519 = arith.constant 6 : index
    %968 = vector.load %arg6[%c1_517, %c0_518, %c6_519] : memref<2x10x22xf32, #tpu.memory_space<vmem>>, vector<1x4x16xf32>
    %969 = vector.shape_cast %968 : vector<1x4x16xf32> to vector<4x16xf32>
    %970 = vector.broadcast %967 : f32 to vector<4x16xf32>
    %971 = arith.mulf %970, %969 : vector<4x16xf32>
    %972 = arith.addf %966, %971 : vector<4x16xf32>
    %c154 = arith.constant 154 : index
    %973 = memref.load %arg2[%c154] : memref<294xf32, #tpu.memory_space<smem>>
    %c1_520 = arith.constant 1 : index
    %c1_521 = arith.constant 1 : index
    %c0_522 = arith.constant 0 : index
    %974 = vector.load %arg6[%c1_520, %c1_521, %c0_522] : memref<2x10x22xf32, #tpu.memory_space<vmem>>, vector<1x4x16xf32>
    %975 = vector.shape_cast %974 : vector<1x4x16xf32> to vector<4x16xf32>
    %976 = vector.broadcast %973 : f32 to vector<4x16xf32>
    %977 = arith.mulf %976, %975 : vector<4x16xf32>
    %978 = arith.addf %972, %977 : vector<4x16xf32>
    %c155 = arith.constant 155 : index
    %979 = memref.load %arg2[%c155] : memref<294xf32, #tpu.memory_space<smem>>
    %c1_523 = arith.constant 1 : index
    %c1_524 = arith.constant 1 : index
    %c1_525 = arith.constant 1 : index
    %980 = vector.load %arg6[%c1_523, %c1_524, %c1_525] : memref<2x10x22xf32, #tpu.memory_space<vmem>>, vector<1x4x16xf32>
    %981 = vector.shape_cast %980 : vector<1x4x16xf32> to vector<4x16xf32>
    %982 = vector.broadcast %979 : f32 to vector<4x16xf32>
    %983 = arith.mulf %982, %981 : vector<4x16xf32>
    %984 = arith.addf %978, %983 : vector<4x16xf32>
    %c156 = arith.constant 156 : index
    %985 = memref.load %arg2[%c156] : memref<294xf32, #tpu.memory_space<smem>>
    %c1_526 = arith.constant 1 : index
    %c1_527 = arith.constant 1 : index
    %c2_528 = arith.constant 2 : index
    %986 = vector.load %arg6[%c1_526, %c1_527, %c2_528] : memref<2x10x22xf32, #tpu.memory_space<vmem>>, vector<1x4x16xf32>
    %987 = vector.shape_cast %986 : vector<1x4x16xf32> to vector<4x16xf32>
    %988 = vector.broadcast %985 : f32 to vector<4x16xf32>
    %989 = arith.mulf %988, %987 : vector<4x16xf32>
    %990 = arith.addf %984, %989 : vector<4x16xf32>
    %c157 = arith.constant 157 : index
    %991 = memref.load %arg2[%c157] : memref<294xf32, #tpu.memory_space<smem>>
    %c1_529 = arith.constant 1 : index
    %c1_530 = arith.constant 1 : index
    %c3_531 = arith.constant 3 : index
    %992 = vector.load %arg6[%c1_529, %c1_530, %c3_531] : memref<2x10x22xf32, #tpu.memory_space<vmem>>, vector<1x4x16xf32>
    %993 = vector.shape_cast %992 : vector<1x4x16xf32> to vector<4x16xf32>
    %994 = vector.broadcast %991 : f32 to vector<4x16xf32>
    %995 = arith.mulf %994, %993 : vector<4x16xf32>
    %996 = arith.addf %990, %995 : vector<4x16xf32>
    %c158 = arith.constant 158 : index
    %997 = memref.load %arg2[%c158] : memref<294xf32, #tpu.memory_space<smem>>
    %c1_532 = arith.constant 1 : index
    %c1_533 = arith.constant 1 : index
    %c4_534 = arith.constant 4 : index
    %998 = vector.load %arg6[%c1_532, %c1_533, %c4_534] : memref<2x10x22xf32, #tpu.memory_space<vmem>>, vector<1x4x16xf32>
    %999 = vector.shape_cast %998 : vector<1x4x16xf32> to vector<4x16xf32>
    %1000 = vector.broadcast %997 : f32 to vector<4x16xf32>
    %1001 = arith.mulf %1000, %999 : vector<4x16xf32>
    %1002 = arith.addf %996, %1001 : vector<4x16xf32>
    %c159 = arith.constant 159 : index
    %1003 = memref.load %arg2[%c159] : memref<294xf32, #tpu.memory_space<smem>>
    %c1_535 = arith.constant 1 : index
    %c1_536 = arith.constant 1 : index
    %c5_537 = arith.constant 5 : index
    %1004 = vector.load %arg6[%c1_535, %c1_536, %c5_537] : memref<2x10x22xf32, #tpu.memory_space<vmem>>, vector<1x4x16xf32>
    %1005 = vector.shape_cast %1004 : vector<1x4x16xf32> to vector<4x16xf32>
    %1006 = vector.broadcast %1003 : f32 to vector<4x16xf32>
    %1007 = arith.mulf %1006, %1005 : vector<4x16xf32>
    %1008 = arith.addf %1002, %1007 : vector<4x16xf32>
    %c160 = arith.constant 160 : index
    %1009 = memref.load %arg2[%c160] : memref<294xf32, #tpu.memory_space<smem>>
    %c1_538 = arith.constant 1 : index
    %c1_539 = arith.constant 1 : index
    %c6_540 = arith.constant 6 : index
    %1010 = vector.load %arg6[%c1_538, %c1_539, %c6_540] : memref<2x10x22xf32, #tpu.memory_space<vmem>>, vector<1x4x16xf32>
    %1011 = vector.shape_cast %1010 : vector<1x4x16xf32> to vector<4x16xf32>
    %1012 = vector.broadcast %1009 : f32 to vector<4x16xf32>
    %1013 = arith.mulf %1012, %1011 : vector<4x16xf32>
    %1014 = arith.addf %1008, %1013 : vector<4x16xf32>
    %c161 = arith.constant 161 : index
    %1015 = memref.load %arg2[%c161] : memref<294xf32, #tpu.memory_space<smem>>
    %c1_541 = arith.constant 1 : index
    %c2_542 = arith.constant 2 : index
    %c0_543 = arith.constant 0 : index
    %1016 = vector.load %arg6[%c1_541, %c2_542, %c0_543] : memref<2x10x22xf32, #tpu.memory_space<vmem>>, vector<1x4x16xf32>
    %1017 = vector.shape_cast %1016 : vector<1x4x16xf32> to vector<4x16xf32>
    %1018 = vector.broadcast %1015 : f32 to vector<4x16xf32>
    %1019 = arith.mulf %1018, %1017 : vector<4x16xf32>
    %1020 = arith.addf %1014, %1019 : vector<4x16xf32>
    %c162 = arith.constant 162 : index
    %1021 = memref.load %arg2[%c162] : memref<294xf32, #tpu.memory_space<smem>>
    %c1_544 = arith.constant 1 : index
    %c2_545 = arith.constant 2 : index
    %c1_546 = arith.constant 1 : index
    %1022 = vector.load %arg6[%c1_544, %c2_545, %c1_546] : memref<2x10x22xf32, #tpu.memory_space<vmem>>, vector<1x4x16xf32>
    %1023 = vector.shape_cast %1022 : vector<1x4x16xf32> to vector<4x16xf32>
    %1024 = vector.broadcast %1021 : f32 to vector<4x16xf32>
    %1025 = arith.mulf %1024, %1023 : vector<4x16xf32>
    %1026 = arith.addf %1020, %1025 : vector<4x16xf32>
    %c163 = arith.constant 163 : index
    %1027 = memref.load %arg2[%c163] : memref<294xf32, #tpu.memory_space<smem>>
    %c1_547 = arith.constant 1 : index
    %c2_548 = arith.constant 2 : index
    %c2_549 = arith.constant 2 : index
    %1028 = vector.load %arg6[%c1_547, %c2_548, %c2_549] : memref<2x10x22xf32, #tpu.memory_space<vmem>>, vector<1x4x16xf32>
    %1029 = vector.shape_cast %1028 : vector<1x4x16xf32> to vector<4x16xf32>
    %1030 = vector.broadcast %1027 : f32 to vector<4x16xf32>
    %1031 = arith.mulf %1030, %1029 : vector<4x16xf32>
    %1032 = arith.addf %1026, %1031 : vector<4x16xf32>
    %c164 = arith.constant 164 : index
    %1033 = memref.load %arg2[%c164] : memref<294xf32, #tpu.memory_space<smem>>
    %c1_550 = arith.constant 1 : index
    %c2_551 = arith.constant 2 : index
    %c3_552 = arith.constant 3 : index
    %1034 = vector.load %arg6[%c1_550, %c2_551, %c3_552] : memref<2x10x22xf32, #tpu.memory_space<vmem>>, vector<1x4x16xf32>
    %1035 = vector.shape_cast %1034 : vector<1x4x16xf32> to vector<4x16xf32>
    %1036 = vector.broadcast %1033 : f32 to vector<4x16xf32>
    %1037 = arith.mulf %1036, %1035 : vector<4x16xf32>
    %1038 = arith.addf %1032, %1037 : vector<4x16xf32>
    %c165 = arith.constant 165 : index
    %1039 = memref.load %arg2[%c165] : memref<294xf32, #tpu.memory_space<smem>>
    %c1_553 = arith.constant 1 : index
    %c2_554 = arith.constant 2 : index
    %c4_555 = arith.constant 4 : index
    %1040 = vector.load %arg6[%c1_553, %c2_554, %c4_555] : memref<2x10x22xf32, #tpu.memory_space<vmem>>, vector<1x4x16xf32>
    %1041 = vector.shape_cast %1040 : vector<1x4x16xf32> to vector<4x16xf32>
    %1042 = vector.broadcast %1039 : f32 to vector<4x16xf32>
    %1043 = arith.mulf %1042, %1041 : vector<4x16xf32>
    %1044 = arith.addf %1038, %1043 : vector<4x16xf32>
    %c166 = arith.constant 166 : index
    %1045 = memref.load %arg2[%c166] : memref<294xf32, #tpu.memory_space<smem>>
    %c1_556 = arith.constant 1 : index
    %c2_557 = arith.constant 2 : index
    %c5_558 = arith.constant 5 : index
    %1046 = vector.load %arg6[%c1_556, %c2_557, %c5_558] : memref<2x10x22xf32, #tpu.memory_space<vmem>>, vector<1x4x16xf32>
    %1047 = vector.shape_cast %1046 : vector<1x4x16xf32> to vector<4x16xf32>
    %1048 = vector.broadcast %1045 : f32 to vector<4x16xf32>
    %1049 = arith.mulf %1048, %1047 : vector<4x16xf32>
    %1050 = arith.addf %1044, %1049 : vector<4x16xf32>
    %c167 = arith.constant 167 : index
    %1051 = memref.load %arg2[%c167] : memref<294xf32, #tpu.memory_space<smem>>
    %c1_559 = arith.constant 1 : index
    %c2_560 = arith.constant 2 : index
    %c6_561 = arith.constant 6 : index
    %1052 = vector.load %arg6[%c1_559, %c2_560, %c6_561] : memref<2x10x22xf32, #tpu.memory_space<vmem>>, vector<1x4x16xf32>
    %1053 = vector.shape_cast %1052 : vector<1x4x16xf32> to vector<4x16xf32>
    %1054 = vector.broadcast %1051 : f32 to vector<4x16xf32>
    %1055 = arith.mulf %1054, %1053 : vector<4x16xf32>
    %1056 = arith.addf %1050, %1055 : vector<4x16xf32>
    %c168 = arith.constant 168 : index
    %1057 = memref.load %arg2[%c168] : memref<294xf32, #tpu.memory_space<smem>>
    %c1_562 = arith.constant 1 : index
    %c3_563 = arith.constant 3 : index
    %c0_564 = arith.constant 0 : index
    %1058 = vector.load %arg6[%c1_562, %c3_563, %c0_564] : memref<2x10x22xf32, #tpu.memory_space<vmem>>, vector<1x4x16xf32>
    %1059 = vector.shape_cast %1058 : vector<1x4x16xf32> to vector<4x16xf32>
    %1060 = vector.broadcast %1057 : f32 to vector<4x16xf32>
    %1061 = arith.mulf %1060, %1059 : vector<4x16xf32>
    %1062 = arith.addf %1056, %1061 : vector<4x16xf32>
    %c169 = arith.constant 169 : index
    %1063 = memref.load %arg2[%c169] : memref<294xf32, #tpu.memory_space<smem>>
    %c1_565 = arith.constant 1 : index
    %c3_566 = arith.constant 3 : index
    %c1_567 = arith.constant 1 : index
    %1064 = vector.load %arg6[%c1_565, %c3_566, %c1_567] : memref<2x10x22xf32, #tpu.memory_space<vmem>>, vector<1x4x16xf32>
    %1065 = vector.shape_cast %1064 : vector<1x4x16xf32> to vector<4x16xf32>
    %1066 = vector.broadcast %1063 : f32 to vector<4x16xf32>
    %1067 = arith.mulf %1066, %1065 : vector<4x16xf32>
    %1068 = arith.addf %1062, %1067 : vector<4x16xf32>
    %c170 = arith.constant 170 : index
    %1069 = memref.load %arg2[%c170] : memref<294xf32, #tpu.memory_space<smem>>
    %c1_568 = arith.constant 1 : index
    %c3_569 = arith.constant 3 : index
    %c2_570 = arith.constant 2 : index
    %1070 = vector.load %arg6[%c1_568, %c3_569, %c2_570] : memref<2x10x22xf32, #tpu.memory_space<vmem>>, vector<1x4x16xf32>
    %1071 = vector.shape_cast %1070 : vector<1x4x16xf32> to vector<4x16xf32>
    %1072 = vector.broadcast %1069 : f32 to vector<4x16xf32>
    %1073 = arith.mulf %1072, %1071 : vector<4x16xf32>
    %1074 = arith.addf %1068, %1073 : vector<4x16xf32>
    %c171 = arith.constant 171 : index
    %1075 = memref.load %arg2[%c171] : memref<294xf32, #tpu.memory_space<smem>>
    %c1_571 = arith.constant 1 : index
    %c3_572 = arith.constant 3 : index
    %c3_573 = arith.constant 3 : index
    %1076 = vector.load %arg6[%c1_571, %c3_572, %c3_573] : memref<2x10x22xf32, #tpu.memory_space<vmem>>, vector<1x4x16xf32>
    %1077 = vector.shape_cast %1076 : vector<1x4x16xf32> to vector<4x16xf32>
    %1078 = vector.broadcast %1075 : f32 to vector<4x16xf32>
    %1079 = arith.mulf %1078, %1077 : vector<4x16xf32>
    %1080 = arith.addf %1074, %1079 : vector<4x16xf32>
    %c172 = arith.constant 172 : index
    %1081 = memref.load %arg2[%c172] : memref<294xf32, #tpu.memory_space<smem>>
    %c1_574 = arith.constant 1 : index
    %c3_575 = arith.constant 3 : index
    %c4_576 = arith.constant 4 : index
    %1082 = vector.load %arg6[%c1_574, %c3_575, %c4_576] : memref<2x10x22xf32, #tpu.memory_space<vmem>>, vector<1x4x16xf32>
    %1083 = vector.shape_cast %1082 : vector<1x4x16xf32> to vector<4x16xf32>
    %1084 = vector.broadcast %1081 : f32 to vector<4x16xf32>
    %1085 = arith.mulf %1084, %1083 : vector<4x16xf32>
    %1086 = arith.addf %1080, %1085 : vector<4x16xf32>
    %c173 = arith.constant 173 : index
    %1087 = memref.load %arg2[%c173] : memref<294xf32, #tpu.memory_space<smem>>
    %c1_577 = arith.constant 1 : index
    %c3_578 = arith.constant 3 : index
    %c5_579 = arith.constant 5 : index
    %1088 = vector.load %arg6[%c1_577, %c3_578, %c5_579] : memref<2x10x22xf32, #tpu.memory_space<vmem>>, vector<1x4x16xf32>
    %1089 = vector.shape_cast %1088 : vector<1x4x16xf32> to vector<4x16xf32>
    %1090 = vector.broadcast %1087 : f32 to vector<4x16xf32>
    %1091 = arith.mulf %1090, %1089 : vector<4x16xf32>
    %1092 = arith.addf %1086, %1091 : vector<4x16xf32>
    %c174 = arith.constant 174 : index
    %1093 = memref.load %arg2[%c174] : memref<294xf32, #tpu.memory_space<smem>>
    %c1_580 = arith.constant 1 : index
    %c3_581 = arith.constant 3 : index
    %c6_582 = arith.constant 6 : index
    %1094 = vector.load %arg6[%c1_580, %c3_581, %c6_582] : memref<2x10x22xf32, #tpu.memory_space<vmem>>, vector<1x4x16xf32>
    %1095 = vector.shape_cast %1094 : vector<1x4x16xf32> to vector<4x16xf32>
    %1096 = vector.broadcast %1093 : f32 to vector<4x16xf32>
    %1097 = arith.mulf %1096, %1095 : vector<4x16xf32>
    %1098 = arith.addf %1092, %1097 : vector<4x16xf32>
    %c175 = arith.constant 175 : index
    %1099 = memref.load %arg2[%c175] : memref<294xf32, #tpu.memory_space<smem>>
    %c1_583 = arith.constant 1 : index
    %c4_584 = arith.constant 4 : index
    %c0_585 = arith.constant 0 : index
    %1100 = vector.load %arg6[%c1_583, %c4_584, %c0_585] : memref<2x10x22xf32, #tpu.memory_space<vmem>>, vector<1x4x16xf32>
    %1101 = vector.shape_cast %1100 : vector<1x4x16xf32> to vector<4x16xf32>
    %1102 = vector.broadcast %1099 : f32 to vector<4x16xf32>
    %1103 = arith.mulf %1102, %1101 : vector<4x16xf32>
    %1104 = arith.addf %1098, %1103 : vector<4x16xf32>
    %c176 = arith.constant 176 : index
    %1105 = memref.load %arg2[%c176] : memref<294xf32, #tpu.memory_space<smem>>
    %c1_586 = arith.constant 1 : index
    %c4_587 = arith.constant 4 : index
    %c1_588 = arith.constant 1 : index
    %1106 = vector.load %arg6[%c1_586, %c4_587, %c1_588] : memref<2x10x22xf32, #tpu.memory_space<vmem>>, vector<1x4x16xf32>
    %1107 = vector.shape_cast %1106 : vector<1x4x16xf32> to vector<4x16xf32>
    %1108 = vector.broadcast %1105 : f32 to vector<4x16xf32>
    %1109 = arith.mulf %1108, %1107 : vector<4x16xf32>
    %1110 = arith.addf %1104, %1109 : vector<4x16xf32>
    %c177 = arith.constant 177 : index
    %1111 = memref.load %arg2[%c177] : memref<294xf32, #tpu.memory_space<smem>>
    %c1_589 = arith.constant 1 : index
    %c4_590 = arith.constant 4 : index
    %c2_591 = arith.constant 2 : index
    %1112 = vector.load %arg6[%c1_589, %c4_590, %c2_591] : memref<2x10x22xf32, #tpu.memory_space<vmem>>, vector<1x4x16xf32>
    %1113 = vector.shape_cast %1112 : vector<1x4x16xf32> to vector<4x16xf32>
    %1114 = vector.broadcast %1111 : f32 to vector<4x16xf32>
    %1115 = arith.mulf %1114, %1113 : vector<4x16xf32>
    %1116 = arith.addf %1110, %1115 : vector<4x16xf32>
    %c178 = arith.constant 178 : index
    %1117 = memref.load %arg2[%c178] : memref<294xf32, #tpu.memory_space<smem>>
    %c1_592 = arith.constant 1 : index
    %c4_593 = arith.constant 4 : index
    %c3_594 = arith.constant 3 : index
    %1118 = vector.load %arg6[%c1_592, %c4_593, %c3_594] : memref<2x10x22xf32, #tpu.memory_space<vmem>>, vector<1x4x16xf32>
    %1119 = vector.shape_cast %1118 : vector<1x4x16xf32> to vector<4x16xf32>
    %1120 = vector.broadcast %1117 : f32 to vector<4x16xf32>
    %1121 = arith.mulf %1120, %1119 : vector<4x16xf32>
    %1122 = arith.addf %1116, %1121 : vector<4x16xf32>
    %c179 = arith.constant 179 : index
    %1123 = memref.load %arg2[%c179] : memref<294xf32, #tpu.memory_space<smem>>
    %c1_595 = arith.constant 1 : index
    %c4_596 = arith.constant 4 : index
    %c4_597 = arith.constant 4 : index
    %1124 = vector.load %arg6[%c1_595, %c4_596, %c4_597] : memref<2x10x22xf32, #tpu.memory_space<vmem>>, vector<1x4x16xf32>
    %1125 = vector.shape_cast %1124 : vector<1x4x16xf32> to vector<4x16xf32>
    %1126 = vector.broadcast %1123 : f32 to vector<4x16xf32>
    %1127 = arith.mulf %1126, %1125 : vector<4x16xf32>
    %1128 = arith.addf %1122, %1127 : vector<4x16xf32>
    %c180 = arith.constant 180 : index
    %1129 = memref.load %arg2[%c180] : memref<294xf32, #tpu.memory_space<smem>>
    %c1_598 = arith.constant 1 : index
    %c4_599 = arith.constant 4 : index
    %c5_600 = arith.constant 5 : index
    %1130 = vector.load %arg6[%c1_598, %c4_599, %c5_600] : memref<2x10x22xf32, #tpu.memory_space<vmem>>, vector<1x4x16xf32>
    %1131 = vector.shape_cast %1130 : vector<1x4x16xf32> to vector<4x16xf32>
    %1132 = vector.broadcast %1129 : f32 to vector<4x16xf32>
    %1133 = arith.mulf %1132, %1131 : vector<4x16xf32>
    %1134 = arith.addf %1128, %1133 : vector<4x16xf32>
    %c181 = arith.constant 181 : index
    %1135 = memref.load %arg2[%c181] : memref<294xf32, #tpu.memory_space<smem>>
    %c1_601 = arith.constant 1 : index
    %c4_602 = arith.constant 4 : index
    %c6_603 = arith.constant 6 : index
    %1136 = vector.load %arg6[%c1_601, %c4_602, %c6_603] : memref<2x10x22xf32, #tpu.memory_space<vmem>>, vector<1x4x16xf32>
    %1137 = vector.shape_cast %1136 : vector<1x4x16xf32> to vector<4x16xf32>
    %1138 = vector.broadcast %1135 : f32 to vector<4x16xf32>
    %1139 = arith.mulf %1138, %1137 : vector<4x16xf32>
    %1140 = arith.addf %1134, %1139 : vector<4x16xf32>
    %c182 = arith.constant 182 : index
    %1141 = memref.load %arg2[%c182] : memref<294xf32, #tpu.memory_space<smem>>
    %c1_604 = arith.constant 1 : index
    %c5_605 = arith.constant 5 : index
    %c0_606 = arith.constant 0 : index
    %1142 = vector.load %arg6[%c1_604, %c5_605, %c0_606] : memref<2x10x22xf32, #tpu.memory_space<vmem>>, vector<1x4x16xf32>
    %1143 = vector.shape_cast %1142 : vector<1x4x16xf32> to vector<4x16xf32>
    %1144 = vector.broadcast %1141 : f32 to vector<4x16xf32>
    %1145 = arith.mulf %1144, %1143 : vector<4x16xf32>
    %1146 = arith.addf %1140, %1145 : vector<4x16xf32>
    %c183 = arith.constant 183 : index
    %1147 = memref.load %arg2[%c183] : memref<294xf32, #tpu.memory_space<smem>>
    %c1_607 = arith.constant 1 : index
    %c5_608 = arith.constant 5 : index
    %c1_609 = arith.constant 1 : index
    %1148 = vector.load %arg6[%c1_607, %c5_608, %c1_609] : memref<2x10x22xf32, #tpu.memory_space<vmem>>, vector<1x4x16xf32>
    %1149 = vector.shape_cast %1148 : vector<1x4x16xf32> to vector<4x16xf32>
    %1150 = vector.broadcast %1147 : f32 to vector<4x16xf32>
    %1151 = arith.mulf %1150, %1149 : vector<4x16xf32>
    %1152 = arith.addf %1146, %1151 : vector<4x16xf32>
    %c184 = arith.constant 184 : index
    %1153 = memref.load %arg2[%c184] : memref<294xf32, #tpu.memory_space<smem>>
    %c1_610 = arith.constant 1 : index
    %c5_611 = arith.constant 5 : index
    %c2_612 = arith.constant 2 : index
    %1154 = vector.load %arg6[%c1_610, %c5_611, %c2_612] : memref<2x10x22xf32, #tpu.memory_space<vmem>>, vector<1x4x16xf32>
    %1155 = vector.shape_cast %1154 : vector<1x4x16xf32> to vector<4x16xf32>
    %1156 = vector.broadcast %1153 : f32 to vector<4x16xf32>
    %1157 = arith.mulf %1156, %1155 : vector<4x16xf32>
    %1158 = arith.addf %1152, %1157 : vector<4x16xf32>
    %c185 = arith.constant 185 : index
    %1159 = memref.load %arg2[%c185] : memref<294xf32, #tpu.memory_space<smem>>
    %c1_613 = arith.constant 1 : index
    %c5_614 = arith.constant 5 : index
    %c3_615 = arith.constant 3 : index
    %1160 = vector.load %arg6[%c1_613, %c5_614, %c3_615] : memref<2x10x22xf32, #tpu.memory_space<vmem>>, vector<1x4x16xf32>
    %1161 = vector.shape_cast %1160 : vector<1x4x16xf32> to vector<4x16xf32>
    %1162 = vector.broadcast %1159 : f32 to vector<4x16xf32>
    %1163 = arith.mulf %1162, %1161 : vector<4x16xf32>
    %1164 = arith.addf %1158, %1163 : vector<4x16xf32>
    %c186 = arith.constant 186 : index
    %1165 = memref.load %arg2[%c186] : memref<294xf32, #tpu.memory_space<smem>>
    %c1_616 = arith.constant 1 : index
    %c5_617 = arith.constant 5 : index
    %c4_618 = arith.constant 4 : index
    %1166 = vector.load %arg6[%c1_616, %c5_617, %c4_618] : memref<2x10x22xf32, #tpu.memory_space<vmem>>, vector<1x4x16xf32>
    %1167 = vector.shape_cast %1166 : vector<1x4x16xf32> to vector<4x16xf32>
    %1168 = vector.broadcast %1165 : f32 to vector<4x16xf32>
    %1169 = arith.mulf %1168, %1167 : vector<4x16xf32>
    %1170 = arith.addf %1164, %1169 : vector<4x16xf32>
    %c187 = arith.constant 187 : index
    %1171 = memref.load %arg2[%c187] : memref<294xf32, #tpu.memory_space<smem>>
    %c1_619 = arith.constant 1 : index
    %c5_620 = arith.constant 5 : index
    %c5_621 = arith.constant 5 : index
    %1172 = vector.load %arg6[%c1_619, %c5_620, %c5_621] : memref<2x10x22xf32, #tpu.memory_space<vmem>>, vector<1x4x16xf32>
    %1173 = vector.shape_cast %1172 : vector<1x4x16xf32> to vector<4x16xf32>
    %1174 = vector.broadcast %1171 : f32 to vector<4x16xf32>
    %1175 = arith.mulf %1174, %1173 : vector<4x16xf32>
    %1176 = arith.addf %1170, %1175 : vector<4x16xf32>
    %c188 = arith.constant 188 : index
    %1177 = memref.load %arg2[%c188] : memref<294xf32, #tpu.memory_space<smem>>
    %c1_622 = arith.constant 1 : index
    %c5_623 = arith.constant 5 : index
    %c6_624 = arith.constant 6 : index
    %1178 = vector.load %arg6[%c1_622, %c5_623, %c6_624] : memref<2x10x22xf32, #tpu.memory_space<vmem>>, vector<1x4x16xf32>
    %1179 = vector.shape_cast %1178 : vector<1x4x16xf32> to vector<4x16xf32>
    %1180 = vector.broadcast %1177 : f32 to vector<4x16xf32>
    %1181 = arith.mulf %1180, %1179 : vector<4x16xf32>
    %1182 = arith.addf %1176, %1181 : vector<4x16xf32>
    %c189 = arith.constant 189 : index
    %1183 = memref.load %arg2[%c189] : memref<294xf32, #tpu.memory_space<smem>>
    %c1_625 = arith.constant 1 : index
    %c6_626 = arith.constant 6 : index
    %c0_627 = arith.constant 0 : index
    %1184 = vector.load %arg6[%c1_625, %c6_626, %c0_627] : memref<2x10x22xf32, #tpu.memory_space<vmem>>, vector<1x4x16xf32>
    %1185 = vector.shape_cast %1184 : vector<1x4x16xf32> to vector<4x16xf32>
    %1186 = vector.broadcast %1183 : f32 to vector<4x16xf32>
    %1187 = arith.mulf %1186, %1185 : vector<4x16xf32>
    %1188 = arith.addf %1182, %1187 : vector<4x16xf32>
    %c190 = arith.constant 190 : index
    %1189 = memref.load %arg2[%c190] : memref<294xf32, #tpu.memory_space<smem>>
    %c1_628 = arith.constant 1 : index
    %c6_629 = arith.constant 6 : index
    %c1_630 = arith.constant 1 : index
    %1190 = vector.load %arg6[%c1_628, %c6_629, %c1_630] : memref<2x10x22xf32, #tpu.memory_space<vmem>>, vector<1x4x16xf32>
    %1191 = vector.shape_cast %1190 : vector<1x4x16xf32> to vector<4x16xf32>
    %1192 = vector.broadcast %1189 : f32 to vector<4x16xf32>
    %1193 = arith.mulf %1192, %1191 : vector<4x16xf32>
    %1194 = arith.addf %1188, %1193 : vector<4x16xf32>
    %c191 = arith.constant 191 : index
    %1195 = memref.load %arg2[%c191] : memref<294xf32, #tpu.memory_space<smem>>
    %c1_631 = arith.constant 1 : index
    %c6_632 = arith.constant 6 : index
    %c2_633 = arith.constant 2 : index
    %1196 = vector.load %arg6[%c1_631, %c6_632, %c2_633] : memref<2x10x22xf32, #tpu.memory_space<vmem>>, vector<1x4x16xf32>
    %1197 = vector.shape_cast %1196 : vector<1x4x16xf32> to vector<4x16xf32>
    %1198 = vector.broadcast %1195 : f32 to vector<4x16xf32>
    %1199 = arith.mulf %1198, %1197 : vector<4x16xf32>
    %1200 = arith.addf %1194, %1199 : vector<4x16xf32>
    %c192 = arith.constant 192 : index
    %1201 = memref.load %arg2[%c192] : memref<294xf32, #tpu.memory_space<smem>>
    %c1_634 = arith.constant 1 : index
    %c6_635 = arith.constant 6 : index
    %c3_636 = arith.constant 3 : index
    %1202 = vector.load %arg6[%c1_634, %c6_635, %c3_636] : memref<2x10x22xf32, #tpu.memory_space<vmem>>, vector<1x4x16xf32>
    %1203 = vector.shape_cast %1202 : vector<1x4x16xf32> to vector<4x16xf32>
    %1204 = vector.broadcast %1201 : f32 to vector<4x16xf32>
    %1205 = arith.mulf %1204, %1203 : vector<4x16xf32>
    %1206 = arith.addf %1200, %1205 : vector<4x16xf32>
    %c193 = arith.constant 193 : index
    %1207 = memref.load %arg2[%c193] : memref<294xf32, #tpu.memory_space<smem>>
    %c1_637 = arith.constant 1 : index
    %c6_638 = arith.constant 6 : index
    %c4_639 = arith.constant 4 : index
    %1208 = vector.load %arg6[%c1_637, %c6_638, %c4_639] : memref<2x10x22xf32, #tpu.memory_space<vmem>>, vector<1x4x16xf32>
    %1209 = vector.shape_cast %1208 : vector<1x4x16xf32> to vector<4x16xf32>
    %1210 = vector.broadcast %1207 : f32 to vector<4x16xf32>
    %1211 = arith.mulf %1210, %1209 : vector<4x16xf32>
    %1212 = arith.addf %1206, %1211 : vector<4x16xf32>
    %c194 = arith.constant 194 : index
    %1213 = memref.load %arg2[%c194] : memref<294xf32, #tpu.memory_space<smem>>
    %c1_640 = arith.constant 1 : index
    %c6_641 = arith.constant 6 : index
    %c5_642 = arith.constant 5 : index
    %1214 = vector.load %arg6[%c1_640, %c6_641, %c5_642] : memref<2x10x22xf32, #tpu.memory_space<vmem>>, vector<1x4x16xf32>
    %1215 = vector.shape_cast %1214 : vector<1x4x16xf32> to vector<4x16xf32>
    %1216 = vector.broadcast %1213 : f32 to vector<4x16xf32>
    %1217 = arith.mulf %1216, %1215 : vector<4x16xf32>
    %1218 = arith.addf %1212, %1217 : vector<4x16xf32>
    %c195 = arith.constant 195 : index
    %1219 = memref.load %arg2[%c195] : memref<294xf32, #tpu.memory_space<smem>>
    %c1_643 = arith.constant 1 : index
    %c6_644 = arith.constant 6 : index
    %c6_645 = arith.constant 6 : index
    %1220 = vector.load %arg6[%c1_643, %c6_644, %c6_645] : memref<2x10x22xf32, #tpu.memory_space<vmem>>, vector<1x4x16xf32>
    %1221 = vector.shape_cast %1220 : vector<1x4x16xf32> to vector<4x16xf32>
    %1222 = vector.broadcast %1219 : f32 to vector<4x16xf32>
    %1223 = arith.mulf %1222, %1221 : vector<4x16xf32>
    %1224 = arith.addf %1218, %1223 : vector<4x16xf32>
    %1225 = vector.broadcast %621 : f32 to vector<4x16xf32>
    %1226 = arith.addf %1224, %1225 : vector<4x16xf32>
    %1227 = arith.negf %1226 : vector<4x16xf32>
    %1228 = math.exp %1227 : vector<4x16xf32>
    %cst_646 = arith.constant 1.000000e+00 : f32
    %1229 = vector.broadcast %cst_646 : f32 to vector<4x16xf32>
    %1230 = arith.addf %1229, %1228 : vector<4x16xf32>
    %1231 = arith.divf %1229, %1230 : vector<4x16xf32>
    %1232 = vector.shape_cast %616 : vector<4x16xf32> to vector<4x1x16xf32>
    %1233 = vector.shape_cast %1231 : vector<4x16xf32> to vector<4x16x1xf32>
    %1234 = vector.broadcast %1232 : vector<4x1x16xf32> to vector<4x16x16xf32>
    %1235 = vector.broadcast %1233 : vector<4x16x1xf32> to vector<4x16x16xf32>
    %1236 = arith.addf %1234, %1235 : vector<4x16x16xf32>
    %cst_647 = arith.constant dense<0xFF800000> : vector<16x16xf32>
    %1237 = vector.multi_reduction <maximumf>, %1, %cst_647 [0] : vector<4x16x16xf32> to vector<16x16xf32>
    %cst_648 = arith.constant dense<0.000000e+00> : vector<16x16xf32>
    %1238 = vector.multi_reduction <add>, %1, %cst_648 [0] : vector<4x16x16xf32> to vector<16x16xf32>
    %cst_649 = arith.constant 4.000000e+00 : f32
    %1239 = vector.broadcast %cst_649 : f32 to vector<16x16xf32>
    %1240 = arith.divf %1238, %1239 : vector<16x16xf32>
    %c2_650 = arith.constant 2 : index
    %1241 = memref.load %arg3[%c2_650] : memref<3xf32, #tpu.memory_space<smem>>
    %cst_651 = arith.constant 0.000000e+00 : f32
    %1242 = vector.broadcast %cst_651 : f32 to vector<2x3x22xf32>
    %c0_652 = arith.constant 0 : index
    %c0_653 = arith.constant 0 : index
    %c0_654 = arith.constant 0 : index
    %1243 = vector.load %arg7[%c0_652, %c0_653, %c0_654] : memref<2x22x22xf32, #tpu.memory_space<vmem>>, vector<2x3x22xf32>
    tpu.vector_store %arg7[%c0_652, %c0_653, %c0_654], %1242 {strides = array<i32>} : memref<2x22x22xf32, #tpu.memory_space<vmem>>, vector<2x3x22xf32>,
    %cst_655 = arith.constant 0.000000e+00 : f32
    %1244 = vector.broadcast %cst_655 : f32 to vector<2x3x22xf32>
    %c0_656 = arith.constant 0 : index
    %c19_657 = arith.constant 19 : index
    %c0_658 = arith.constant 0 : index
    %1245 = vector.load %arg7[%c0_656, %c19_657, %c0_658] : memref<2x22x22xf32, #tpu.memory_space<vmem>>, vector<2x3x22xf32>
    tpu.vector_store %arg7[%c0_656, %c19_657, %c0_658], %1244 {strides = array<i32>} : memref<2x22x22xf32, #tpu.memory_space<vmem>>, vector<2x3x22xf32>,
    %cst_659 = arith.constant 0.000000e+00 : f32
    %1246 = vector.broadcast %cst_659 : f32 to vector<2x22x3xf32>
    %c0_660 = arith.constant 0 : index
    %c0_661 = arith.constant 0 : index
    %c0_662 = arith.constant 0 : index
    %1247 = vector.load %arg7[%c0_660, %c0_661, %c0_662] : memref<2x22x22xf32, #tpu.memory_space<vmem>>, vector<2x22x3xf32>
    tpu.vector_store %arg7[%c0_660, %c0_661, %c0_662], %1246 {strides = array<i32>} : memref<2x22x22xf32, #tpu.memory_space<vmem>>, vector<2x22x3xf32>,
    %cst_663 = arith.constant 0.000000e+00 : f32
    %1248 = vector.broadcast %cst_663 : f32 to vector<2x22x3xf32>
    %c0_664 = arith.constant 0 : index
    %c0_665 = arith.constant 0 : index
    %c19_666 = arith.constant 19 : index
    %1249 = vector.load %arg7[%c0_664, %c0_665, %c19_666] : memref<2x22x22xf32, #tpu.memory_space<vmem>>, vector<2x22x3xf32>
    tpu.vector_store %arg7[%c0_664, %c0_665, %c19_666], %1248 {strides = array<i32>} : memref<2x22x22xf32, #tpu.memory_space<vmem>>, vector<2x22x3xf32>,
    %c0_667 = arith.constant 0 : index
    %c3_668 = arith.constant 3 : index
    %c3_669 = arith.constant 3 : index
    %1250 = vector.load %arg7[%c0_667, %c3_668, %c3_669] : memref<2x22x22xf32, #tpu.memory_space<vmem>>, vector<1x16x16xf32>
    %1251 = vector.shape_cast %1250 : vector<1x16x16xf32> to vector<16x16xf32>
    %1252 = vector.shape_cast %1237 : vector<16x16xf32> to vector<1x16x16xf32>
    tpu.vector_store %arg7[%c0_667, %c3_668, %c3_669], %1252 {strides = array<i32>} : memref<2x22x22xf32, #tpu.memory_space<vmem>>, vector<1x16x16xf32>,
    %c1_670 = arith.constant 1 : index
    %c3_671 = arith.constant 3 : index
    %c3_672 = arith.constant 3 : index
    %1253 = vector.load %arg7[%c1_670, %c3_671, %c3_672] : memref<2x22x22xf32, #tpu.memory_space<vmem>>, vector<1x16x16xf32>
    %1254 = vector.shape_cast %1253 : vector<1x16x16xf32> to vector<16x16xf32>
    %1255 = vector.shape_cast %1240 : vector<16x16xf32> to vector<1x16x16xf32>
    tpu.vector_store %arg7[%c1_670, %c3_671, %c3_672], %1255 {strides = array<i32>} : memref<2x22x22xf32, #tpu.memory_space<vmem>>, vector<1x16x16xf32>,
    %cst_673 = arith.constant 0.000000e+00 : f32
    %1256 = vector.broadcast %cst_673 : f32 to vector<16x16xf32>
    %c196 = arith.constant 196 : index
    %1257 = memref.load %arg2[%c196] : memref<294xf32, #tpu.memory_space<smem>>
    %c0_674 = arith.constant 0 : index
    %c0_675 = arith.constant 0 : index
    %c0_676 = arith.constant 0 : index
    %1258 = vector.load %arg7[%c0_674, %c0_675, %c0_676] : memref<2x22x22xf32, #tpu.memory_space<vmem>>, vector<1x16x16xf32>
    %1259 = vector.shape_cast %1258 : vector<1x16x16xf32> to vector<16x16xf32>
    %1260 = vector.broadcast %1257 : f32 to vector<16x16xf32>
    %1261 = arith.mulf %1260, %1259 : vector<16x16xf32>
    %1262 = arith.addf %1256, %1261 : vector<16x16xf32>
    %c197 = arith.constant 197 : index
    %1263 = memref.load %arg2[%c197] : memref<294xf32, #tpu.memory_space<smem>>
    %c0_677 = arith.constant 0 : index
    %c0_678 = arith.constant 0 : index
    %c1_679 = arith.constant 1 : index
    %1264 = vector.load %arg7[%c0_677, %c0_678, %c1_679] : memref<2x22x22xf32, #tpu.memory_space<vmem>>, vector<1x16x16xf32>
    %1265 = vector.shape_cast %1264 : vector<1x16x16xf32> to vector<16x16xf32>
    %1266 = vector.broadcast %1263 : f32 to vector<16x16xf32>
    %1267 = arith.mulf %1266, %1265 : vector<16x16xf32>
    %1268 = arith.addf %1262, %1267 : vector<16x16xf32>
    %c198 = arith.constant 198 : index
    %1269 = memref.load %arg2[%c198] : memref<294xf32, #tpu.memory_space<smem>>
    %c0_680 = arith.constant 0 : index
    %c0_681 = arith.constant 0 : index
    %c2_682 = arith.constant 2 : index
    %1270 = vector.load %arg7[%c0_680, %c0_681, %c2_682] : memref<2x22x22xf32, #tpu.memory_space<vmem>>, vector<1x16x16xf32>
    %1271 = vector.shape_cast %1270 : vector<1x16x16xf32> to vector<16x16xf32>
    %1272 = vector.broadcast %1269 : f32 to vector<16x16xf32>
    %1273 = arith.mulf %1272, %1271 : vector<16x16xf32>
    %1274 = arith.addf %1268, %1273 : vector<16x16xf32>
    %c199 = arith.constant 199 : index
    %1275 = memref.load %arg2[%c199] : memref<294xf32, #tpu.memory_space<smem>>
    %c0_683 = arith.constant 0 : index
    %c0_684 = arith.constant 0 : index
    %c3_685 = arith.constant 3 : index
    %1276 = vector.load %arg7[%c0_683, %c0_684, %c3_685] : memref<2x22x22xf32, #tpu.memory_space<vmem>>, vector<1x16x16xf32>
    %1277 = vector.shape_cast %1276 : vector<1x16x16xf32> to vector<16x16xf32>
    %1278 = vector.broadcast %1275 : f32 to vector<16x16xf32>
    %1279 = arith.mulf %1278, %1277 : vector<16x16xf32>
    %1280 = arith.addf %1274, %1279 : vector<16x16xf32>
    %c200 = arith.constant 200 : index
    %1281 = memref.load %arg2[%c200] : memref<294xf32, #tpu.memory_space<smem>>
    %c0_686 = arith.constant 0 : index
    %c0_687 = arith.constant 0 : index
    %c4_688 = arith.constant 4 : index
    %1282 = vector.load %arg7[%c0_686, %c0_687, %c4_688] : memref<2x22x22xf32, #tpu.memory_space<vmem>>, vector<1x16x16xf32>
    %1283 = vector.shape_cast %1282 : vector<1x16x16xf32> to vector<16x16xf32>
    %1284 = vector.broadcast %1281 : f32 to vector<16x16xf32>
    %1285 = arith.mulf %1284, %1283 : vector<16x16xf32>
    %1286 = arith.addf %1280, %1285 : vector<16x16xf32>
    %c201 = arith.constant 201 : index
    %1287 = memref.load %arg2[%c201] : memref<294xf32, #tpu.memory_space<smem>>
    %c0_689 = arith.constant 0 : index
    %c0_690 = arith.constant 0 : index
    %c5_691 = arith.constant 5 : index
    %1288 = vector.load %arg7[%c0_689, %c0_690, %c5_691] : memref<2x22x22xf32, #tpu.memory_space<vmem>>, vector<1x16x16xf32>
    %1289 = vector.shape_cast %1288 : vector<1x16x16xf32> to vector<16x16xf32>
    %1290 = vector.broadcast %1287 : f32 to vector<16x16xf32>
    %1291 = arith.mulf %1290, %1289 : vector<16x16xf32>
    %1292 = arith.addf %1286, %1291 : vector<16x16xf32>
    %c202 = arith.constant 202 : index
    %1293 = memref.load %arg2[%c202] : memref<294xf32, #tpu.memory_space<smem>>
    %c0_692 = arith.constant 0 : index
    %c0_693 = arith.constant 0 : index
    %c6_694 = arith.constant 6 : index
    %1294 = vector.load %arg7[%c0_692, %c0_693, %c6_694] : memref<2x22x22xf32, #tpu.memory_space<vmem>>, vector<1x16x16xf32>
    %1295 = vector.shape_cast %1294 : vector<1x16x16xf32> to vector<16x16xf32>
    %1296 = vector.broadcast %1293 : f32 to vector<16x16xf32>
    %1297 = arith.mulf %1296, %1295 : vector<16x16xf32>
    %1298 = arith.addf %1292, %1297 : vector<16x16xf32>
    %c203 = arith.constant 203 : index
    %1299 = memref.load %arg2[%c203] : memref<294xf32, #tpu.memory_space<smem>>
    %c0_695 = arith.constant 0 : index
    %c1_696 = arith.constant 1 : index
    %c0_697 = arith.constant 0 : index
    %1300 = vector.load %arg7[%c0_695, %c1_696, %c0_697] : memref<2x22x22xf32, #tpu.memory_space<vmem>>, vector<1x16x16xf32>
    %1301 = vector.shape_cast %1300 : vector<1x16x16xf32> to vector<16x16xf32>
    %1302 = vector.broadcast %1299 : f32 to vector<16x16xf32>
    %1303 = arith.mulf %1302, %1301 : vector<16x16xf32>
    %1304 = arith.addf %1298, %1303 : vector<16x16xf32>
    %c204 = arith.constant 204 : index
    %1305 = memref.load %arg2[%c204] : memref<294xf32, #tpu.memory_space<smem>>
    %c0_698 = arith.constant 0 : index
    %c1_699 = arith.constant 1 : index
    %c1_700 = arith.constant 1 : index
    %1306 = vector.load %arg7[%c0_698, %c1_699, %c1_700] : memref<2x22x22xf32, #tpu.memory_space<vmem>>, vector<1x16x16xf32>
    %1307 = vector.shape_cast %1306 : vector<1x16x16xf32> to vector<16x16xf32>
    %1308 = vector.broadcast %1305 : f32 to vector<16x16xf32>
    %1309 = arith.mulf %1308, %1307 : vector<16x16xf32>
    %1310 = arith.addf %1304, %1309 : vector<16x16xf32>
    %c205 = arith.constant 205 : index
    %1311 = memref.load %arg2[%c205] : memref<294xf32, #tpu.memory_space<smem>>
    %c0_701 = arith.constant 0 : index
    %c1_702 = arith.constant 1 : index
    %c2_703 = arith.constant 2 : index
    %1312 = vector.load %arg7[%c0_701, %c1_702, %c2_703] : memref<2x22x22xf32, #tpu.memory_space<vmem>>, vector<1x16x16xf32>
    %1313 = vector.shape_cast %1312 : vector<1x16x16xf32> to vector<16x16xf32>
    %1314 = vector.broadcast %1311 : f32 to vector<16x16xf32>
    %1315 = arith.mulf %1314, %1313 : vector<16x16xf32>
    %1316 = arith.addf %1310, %1315 : vector<16x16xf32>
    %c206 = arith.constant 206 : index
    %1317 = memref.load %arg2[%c206] : memref<294xf32, #tpu.memory_space<smem>>
    %c0_704 = arith.constant 0 : index
    %c1_705 = arith.constant 1 : index
    %c3_706 = arith.constant 3 : index
    %1318 = vector.load %arg7[%c0_704, %c1_705, %c3_706] : memref<2x22x22xf32, #tpu.memory_space<vmem>>, vector<1x16x16xf32>
    %1319 = vector.shape_cast %1318 : vector<1x16x16xf32> to vector<16x16xf32>
    %1320 = vector.broadcast %1317 : f32 to vector<16x16xf32>
    %1321 = arith.mulf %1320, %1319 : vector<16x16xf32>
    %1322 = arith.addf %1316, %1321 : vector<16x16xf32>
    %c207 = arith.constant 207 : index
    %1323 = memref.load %arg2[%c207] : memref<294xf32, #tpu.memory_space<smem>>
    %c0_707 = arith.constant 0 : index
    %c1_708 = arith.constant 1 : index
    %c4_709 = arith.constant 4 : index
    %1324 = vector.load %arg7[%c0_707, %c1_708, %c4_709] : memref<2x22x22xf32, #tpu.memory_space<vmem>>, vector<1x16x16xf32>
    %1325 = vector.shape_cast %1324 : vector<1x16x16xf32> to vector<16x16xf32>
    %1326 = vector.broadcast %1323 : f32 to vector<16x16xf32>
    %1327 = arith.mulf %1326, %1325 : vector<16x16xf32>
    %1328 = arith.addf %1322, %1327 : vector<16x16xf32>
    %c208 = arith.constant 208 : index
    %1329 = memref.load %arg2[%c208] : memref<294xf32, #tpu.memory_space<smem>>
    %c0_710 = arith.constant 0 : index
    %c1_711 = arith.constant 1 : index
    %c5_712 = arith.constant 5 : index
    %1330 = vector.load %arg7[%c0_710, %c1_711, %c5_712] : memref<2x22x22xf32, #tpu.memory_space<vmem>>, vector<1x16x16xf32>
    %1331 = vector.shape_cast %1330 : vector<1x16x16xf32> to vector<16x16xf32>
    %1332 = vector.broadcast %1329 : f32 to vector<16x16xf32>
    %1333 = arith.mulf %1332, %1331 : vector<16x16xf32>
    %1334 = arith.addf %1328, %1333 : vector<16x16xf32>
    %c209 = arith.constant 209 : index
    %1335 = memref.load %arg2[%c209] : memref<294xf32, #tpu.memory_space<smem>>
    %c0_713 = arith.constant 0 : index
    %c1_714 = arith.constant 1 : index
    %c6_715 = arith.constant 6 : index
    %1336 = vector.load %arg7[%c0_713, %c1_714, %c6_715] : memref<2x22x22xf32, #tpu.memory_space<vmem>>, vector<1x16x16xf32>
    %1337 = vector.shape_cast %1336 : vector<1x16x16xf32> to vector<16x16xf32>
    %1338 = vector.broadcast %1335 : f32 to vector<16x16xf32>
    %1339 = arith.mulf %1338, %1337 : vector<16x16xf32>
    %1340 = arith.addf %1334, %1339 : vector<16x16xf32>
    %c210 = arith.constant 210 : index
    %1341 = memref.load %arg2[%c210] : memref<294xf32, #tpu.memory_space<smem>>
    %c0_716 = arith.constant 0 : index
    %c2_717 = arith.constant 2 : index
    %c0_718 = arith.constant 0 : index
    %1342 = vector.load %arg7[%c0_716, %c2_717, %c0_718] : memref<2x22x22xf32, #tpu.memory_space<vmem>>, vector<1x16x16xf32>
    %1343 = vector.shape_cast %1342 : vector<1x16x16xf32> to vector<16x16xf32>
    %1344 = vector.broadcast %1341 : f32 to vector<16x16xf32>
    %1345 = arith.mulf %1344, %1343 : vector<16x16xf32>
    %1346 = arith.addf %1340, %1345 : vector<16x16xf32>
    %c211 = arith.constant 211 : index
    %1347 = memref.load %arg2[%c211] : memref<294xf32, #tpu.memory_space<smem>>
    %c0_719 = arith.constant 0 : index
    %c2_720 = arith.constant 2 : index
    %c1_721 = arith.constant 1 : index
    %1348 = vector.load %arg7[%c0_719, %c2_720, %c1_721] : memref<2x22x22xf32, #tpu.memory_space<vmem>>, vector<1x16x16xf32>
    %1349 = vector.shape_cast %1348 : vector<1x16x16xf32> to vector<16x16xf32>
    %1350 = vector.broadcast %1347 : f32 to vector<16x16xf32>
    %1351 = arith.mulf %1350, %1349 : vector<16x16xf32>
    %1352 = arith.addf %1346, %1351 : vector<16x16xf32>
    %c212 = arith.constant 212 : index
    %1353 = memref.load %arg2[%c212] : memref<294xf32, #tpu.memory_space<smem>>
    %c0_722 = arith.constant 0 : index
    %c2_723 = arith.constant 2 : index
    %c2_724 = arith.constant 2 : index
    %1354 = vector.load %arg7[%c0_722, %c2_723, %c2_724] : memref<2x22x22xf32, #tpu.memory_space<vmem>>, vector<1x16x16xf32>
    %1355 = vector.shape_cast %1354 : vector<1x16x16xf32> to vector<16x16xf32>
    %1356 = vector.broadcast %1353 : f32 to vector<16x16xf32>
    %1357 = arith.mulf %1356, %1355 : vector<16x16xf32>
    %1358 = arith.addf %1352, %1357 : vector<16x16xf32>
    %c213 = arith.constant 213 : index
    %1359 = memref.load %arg2[%c213] : memref<294xf32, #tpu.memory_space<smem>>
    %c0_725 = arith.constant 0 : index
    %c2_726 = arith.constant 2 : index
    %c3_727 = arith.constant 3 : index
    %1360 = vector.load %arg7[%c0_725, %c2_726, %c3_727] : memref<2x22x22xf32, #tpu.memory_space<vmem>>, vector<1x16x16xf32>
    %1361 = vector.shape_cast %1360 : vector<1x16x16xf32> to vector<16x16xf32>
    %1362 = vector.broadcast %1359 : f32 to vector<16x16xf32>
    %1363 = arith.mulf %1362, %1361 : vector<16x16xf32>
    %1364 = arith.addf %1358, %1363 : vector<16x16xf32>
    %c214 = arith.constant 214 : index
    %1365 = memref.load %arg2[%c214] : memref<294xf32, #tpu.memory_space<smem>>
    %c0_728 = arith.constant 0 : index
    %c2_729 = arith.constant 2 : index
    %c4_730 = arith.constant 4 : index
    %1366 = vector.load %arg7[%c0_728, %c2_729, %c4_730] : memref<2x22x22xf32, #tpu.memory_space<vmem>>, vector<1x16x16xf32>
    %1367 = vector.shape_cast %1366 : vector<1x16x16xf32> to vector<16x16xf32>
    %1368 = vector.broadcast %1365 : f32 to vector<16x16xf32>
    %1369 = arith.mulf %1368, %1367 : vector<16x16xf32>
    %1370 = arith.addf %1364, %1369 : vector<16x16xf32>
    %c215 = arith.constant 215 : index
    %1371 = memref.load %arg2[%c215] : memref<294xf32, #tpu.memory_space<smem>>
    %c0_731 = arith.constant 0 : index
    %c2_732 = arith.constant 2 : index
    %c5_733 = arith.constant 5 : index
    %1372 = vector.load %arg7[%c0_731, %c2_732, %c5_733] : memref<2x22x22xf32, #tpu.memory_space<vmem>>, vector<1x16x16xf32>
    %1373 = vector.shape_cast %1372 : vector<1x16x16xf32> to vector<16x16xf32>
    %1374 = vector.broadcast %1371 : f32 to vector<16x16xf32>
    %1375 = arith.mulf %1374, %1373 : vector<16x16xf32>
    %1376 = arith.addf %1370, %1375 : vector<16x16xf32>
    %c216 = arith.constant 216 : index
    %1377 = memref.load %arg2[%c216] : memref<294xf32, #tpu.memory_space<smem>>
    %c0_734 = arith.constant 0 : index
    %c2_735 = arith.constant 2 : index
    %c6_736 = arith.constant 6 : index
    %1378 = vector.load %arg7[%c0_734, %c2_735, %c6_736] : memref<2x22x22xf32, #tpu.memory_space<vmem>>, vector<1x16x16xf32>
    %1379 = vector.shape_cast %1378 : vector<1x16x16xf32> to vector<16x16xf32>
    %1380 = vector.broadcast %1377 : f32 to vector<16x16xf32>
    %1381 = arith.mulf %1380, %1379 : vector<16x16xf32>
    %1382 = arith.addf %1376, %1381 : vector<16x16xf32>
    %c217 = arith.constant 217 : index
    %1383 = memref.load %arg2[%c217] : memref<294xf32, #tpu.memory_space<smem>>
    %c0_737 = arith.constant 0 : index
    %c3_738 = arith.constant 3 : index
    %c0_739 = arith.constant 0 : index
    %1384 = vector.load %arg7[%c0_737, %c3_738, %c0_739] : memref<2x22x22xf32, #tpu.memory_space<vmem>>, vector<1x16x16xf32>
    %1385 = vector.shape_cast %1384 : vector<1x16x16xf32> to vector<16x16xf32>
    %1386 = vector.broadcast %1383 : f32 to vector<16x16xf32>
    %1387 = arith.mulf %1386, %1385 : vector<16x16xf32>
    %1388 = arith.addf %1382, %1387 : vector<16x16xf32>
    %c218 = arith.constant 218 : index
    %1389 = memref.load %arg2[%c218] : memref<294xf32, #tpu.memory_space<smem>>
    %c0_740 = arith.constant 0 : index
    %c3_741 = arith.constant 3 : index
    %c1_742 = arith.constant 1 : index
    %1390 = vector.load %arg7[%c0_740, %c3_741, %c1_742] : memref<2x22x22xf32, #tpu.memory_space<vmem>>, vector<1x16x16xf32>
    %1391 = vector.shape_cast %1390 : vector<1x16x16xf32> to vector<16x16xf32>
    %1392 = vector.broadcast %1389 : f32 to vector<16x16xf32>
    %1393 = arith.mulf %1392, %1391 : vector<16x16xf32>
    %1394 = arith.addf %1388, %1393 : vector<16x16xf32>
    %c219 = arith.constant 219 : index
    %1395 = memref.load %arg2[%c219] : memref<294xf32, #tpu.memory_space<smem>>
    %c0_743 = arith.constant 0 : index
    %c3_744 = arith.constant 3 : index
    %c2_745 = arith.constant 2 : index
    %1396 = vector.load %arg7[%c0_743, %c3_744, %c2_745] : memref<2x22x22xf32, #tpu.memory_space<vmem>>, vector<1x16x16xf32>
    %1397 = vector.shape_cast %1396 : vector<1x16x16xf32> to vector<16x16xf32>
    %1398 = vector.broadcast %1395 : f32 to vector<16x16xf32>
    %1399 = arith.mulf %1398, %1397 : vector<16x16xf32>
    %1400 = arith.addf %1394, %1399 : vector<16x16xf32>
    %c220 = arith.constant 220 : index
    %1401 = memref.load %arg2[%c220] : memref<294xf32, #tpu.memory_space<smem>>
    %c0_746 = arith.constant 0 : index
    %c3_747 = arith.constant 3 : index
    %c3_748 = arith.constant 3 : index
    %1402 = vector.load %arg7[%c0_746, %c3_747, %c3_748] : memref<2x22x22xf32, #tpu.memory_space<vmem>>, vector<1x16x16xf32>
    %1403 = vector.shape_cast %1402 : vector<1x16x16xf32> to vector<16x16xf32>
    %1404 = vector.broadcast %1401 : f32 to vector<16x16xf32>
    %1405 = arith.mulf %1404, %1403 : vector<16x16xf32>
    %1406 = arith.addf %1400, %1405 : vector<16x16xf32>
    %c221 = arith.constant 221 : index
    %1407 = memref.load %arg2[%c221] : memref<294xf32, #tpu.memory_space<smem>>
    %c0_749 = arith.constant 0 : index
    %c3_750 = arith.constant 3 : index
    %c4_751 = arith.constant 4 : index
    %1408 = vector.load %arg7[%c0_749, %c3_750, %c4_751] : memref<2x22x22xf32, #tpu.memory_space<vmem>>, vector<1x16x16xf32>
    %1409 = vector.shape_cast %1408 : vector<1x16x16xf32> to vector<16x16xf32>
    %1410 = vector.broadcast %1407 : f32 to vector<16x16xf32>
    %1411 = arith.mulf %1410, %1409 : vector<16x16xf32>
    %1412 = arith.addf %1406, %1411 : vector<16x16xf32>
    %c222 = arith.constant 222 : index
    %1413 = memref.load %arg2[%c222] : memref<294xf32, #tpu.memory_space<smem>>
    %c0_752 = arith.constant 0 : index
    %c3_753 = arith.constant 3 : index
    %c5_754 = arith.constant 5 : index
    %1414 = vector.load %arg7[%c0_752, %c3_753, %c5_754] : memref<2x22x22xf32, #tpu.memory_space<vmem>>, vector<1x16x16xf32>
    %1415 = vector.shape_cast %1414 : vector<1x16x16xf32> to vector<16x16xf32>
    %1416 = vector.broadcast %1413 : f32 to vector<16x16xf32>
    %1417 = arith.mulf %1416, %1415 : vector<16x16xf32>
    %1418 = arith.addf %1412, %1417 : vector<16x16xf32>
    %c223 = arith.constant 223 : index
    %1419 = memref.load %arg2[%c223] : memref<294xf32, #tpu.memory_space<smem>>
    %c0_755 = arith.constant 0 : index
    %c3_756 = arith.constant 3 : index
    %c6_757 = arith.constant 6 : index
    %1420 = vector.load %arg7[%c0_755, %c3_756, %c6_757] : memref<2x22x22xf32, #tpu.memory_space<vmem>>, vector<1x16x16xf32>
    %1421 = vector.shape_cast %1420 : vector<1x16x16xf32> to vector<16x16xf32>
    %1422 = vector.broadcast %1419 : f32 to vector<16x16xf32>
    %1423 = arith.mulf %1422, %1421 : vector<16x16xf32>
    %1424 = arith.addf %1418, %1423 : vector<16x16xf32>
    %c224 = arith.constant 224 : index
    %1425 = memref.load %arg2[%c224] : memref<294xf32, #tpu.memory_space<smem>>
    %c0_758 = arith.constant 0 : index
    %c4_759 = arith.constant 4 : index
    %c0_760 = arith.constant 0 : index
    %1426 = vector.load %arg7[%c0_758, %c4_759, %c0_760] : memref<2x22x22xf32, #tpu.memory_space<vmem>>, vector<1x16x16xf32>
    %1427 = vector.shape_cast %1426 : vector<1x16x16xf32> to vector<16x16xf32>
    %1428 = vector.broadcast %1425 : f32 to vector<16x16xf32>
    %1429 = arith.mulf %1428, %1427 : vector<16x16xf32>
    %1430 = arith.addf %1424, %1429 : vector<16x16xf32>
    %c225 = arith.constant 225 : index
    %1431 = memref.load %arg2[%c225] : memref<294xf32, #tpu.memory_space<smem>>
    %c0_761 = arith.constant 0 : index
    %c4_762 = arith.constant 4 : index
    %c1_763 = arith.constant 1 : index
    %1432 = vector.load %arg7[%c0_761, %c4_762, %c1_763] : memref<2x22x22xf32, #tpu.memory_space<vmem>>, vector<1x16x16xf32>
    %1433 = vector.shape_cast %1432 : vector<1x16x16xf32> to vector<16x16xf32>
    %1434 = vector.broadcast %1431 : f32 to vector<16x16xf32>
    %1435 = arith.mulf %1434, %1433 : vector<16x16xf32>
    %1436 = arith.addf %1430, %1435 : vector<16x16xf32>
    %c226 = arith.constant 226 : index
    %1437 = memref.load %arg2[%c226] : memref<294xf32, #tpu.memory_space<smem>>
    %c0_764 = arith.constant 0 : index
    %c4_765 = arith.constant 4 : index
    %c2_766 = arith.constant 2 : index
    %1438 = vector.load %arg7[%c0_764, %c4_765, %c2_766] : memref<2x22x22xf32, #tpu.memory_space<vmem>>, vector<1x16x16xf32>
    %1439 = vector.shape_cast %1438 : vector<1x16x16xf32> to vector<16x16xf32>
    %1440 = vector.broadcast %1437 : f32 to vector<16x16xf32>
    %1441 = arith.mulf %1440, %1439 : vector<16x16xf32>
    %1442 = arith.addf %1436, %1441 : vector<16x16xf32>
    %c227 = arith.constant 227 : index
    %1443 = memref.load %arg2[%c227] : memref<294xf32, #tpu.memory_space<smem>>
    %c0_767 = arith.constant 0 : index
    %c4_768 = arith.constant 4 : index
    %c3_769 = arith.constant 3 : index
    %1444 = vector.load %arg7[%c0_767, %c4_768, %c3_769] : memref<2x22x22xf32, #tpu.memory_space<vmem>>, vector<1x16x16xf32>
    %1445 = vector.shape_cast %1444 : vector<1x16x16xf32> to vector<16x16xf32>
    %1446 = vector.broadcast %1443 : f32 to vector<16x16xf32>
    %1447 = arith.mulf %1446, %1445 : vector<16x16xf32>
    %1448 = arith.addf %1442, %1447 : vector<16x16xf32>
    %c228 = arith.constant 228 : index
    %1449 = memref.load %arg2[%c228] : memref<294xf32, #tpu.memory_space<smem>>
    %c0_770 = arith.constant 0 : index
    %c4_771 = arith.constant 4 : index
    %c4_772 = arith.constant 4 : index
    %1450 = vector.load %arg7[%c0_770, %c4_771, %c4_772] : memref<2x22x22xf32, #tpu.memory_space<vmem>>, vector<1x16x16xf32>
    %1451 = vector.shape_cast %1450 : vector<1x16x16xf32> to vector<16x16xf32>
    %1452 = vector.broadcast %1449 : f32 to vector<16x16xf32>
    %1453 = arith.mulf %1452, %1451 : vector<16x16xf32>
    %1454 = arith.addf %1448, %1453 : vector<16x16xf32>
    %c229 = arith.constant 229 : index
    %1455 = memref.load %arg2[%c229] : memref<294xf32, #tpu.memory_space<smem>>
    %c0_773 = arith.constant 0 : index
    %c4_774 = arith.constant 4 : index
    %c5_775 = arith.constant 5 : index
    %1456 = vector.load %arg7[%c0_773, %c4_774, %c5_775] : memref<2x22x22xf32, #tpu.memory_space<vmem>>, vector<1x16x16xf32>
    %1457 = vector.shape_cast %1456 : vector<1x16x16xf32> to vector<16x16xf32>
    %1458 = vector.broadcast %1455 : f32 to vector<16x16xf32>
    %1459 = arith.mulf %1458, %1457 : vector<16x16xf32>
    %1460 = arith.addf %1454, %1459 : vector<16x16xf32>
    %c230 = arith.constant 230 : index
    %1461 = memref.load %arg2[%c230] : memref<294xf32, #tpu.memory_space<smem>>
    %c0_776 = arith.constant 0 : index
    %c4_777 = arith.constant 4 : index
    %c6_778 = arith.constant 6 : index
    %1462 = vector.load %arg7[%c0_776, %c4_777, %c6_778] : memref<2x22x22xf32, #tpu.memory_space<vmem>>, vector<1x16x16xf32>
    %1463 = vector.shape_cast %1462 : vector<1x16x16xf32> to vector<16x16xf32>
    %1464 = vector.broadcast %1461 : f32 to vector<16x16xf32>
    %1465 = arith.mulf %1464, %1463 : vector<16x16xf32>
    %1466 = arith.addf %1460, %1465 : vector<16x16xf32>
    %c231 = arith.constant 231 : index
    %1467 = memref.load %arg2[%c231] : memref<294xf32, #tpu.memory_space<smem>>
    %c0_779 = arith.constant 0 : index
    %c5_780 = arith.constant 5 : index
    %c0_781 = arith.constant 0 : index
    %1468 = vector.load %arg7[%c0_779, %c5_780, %c0_781] : memref<2x22x22xf32, #tpu.memory_space<vmem>>, vector<1x16x16xf32>
    %1469 = vector.shape_cast %1468 : vector<1x16x16xf32> to vector<16x16xf32>
    %1470 = vector.broadcast %1467 : f32 to vector<16x16xf32>
    %1471 = arith.mulf %1470, %1469 : vector<16x16xf32>
    %1472 = arith.addf %1466, %1471 : vector<16x16xf32>
    %c232 = arith.constant 232 : index
    %1473 = memref.load %arg2[%c232] : memref<294xf32, #tpu.memory_space<smem>>
    %c0_782 = arith.constant 0 : index
    %c5_783 = arith.constant 5 : index
    %c1_784 = arith.constant 1 : index
    %1474 = vector.load %arg7[%c0_782, %c5_783, %c1_784] : memref<2x22x22xf32, #tpu.memory_space<vmem>>, vector<1x16x16xf32>
    %1475 = vector.shape_cast %1474 : vector<1x16x16xf32> to vector<16x16xf32>
    %1476 = vector.broadcast %1473 : f32 to vector<16x16xf32>
    %1477 = arith.mulf %1476, %1475 : vector<16x16xf32>
    %1478 = arith.addf %1472, %1477 : vector<16x16xf32>
    %c233 = arith.constant 233 : index
    %1479 = memref.load %arg2[%c233] : memref<294xf32, #tpu.memory_space<smem>>
    %c0_785 = arith.constant 0 : index
    %c5_786 = arith.constant 5 : index
    %c2_787 = arith.constant 2 : index
    %1480 = vector.load %arg7[%c0_785, %c5_786, %c2_787] : memref<2x22x22xf32, #tpu.memory_space<vmem>>, vector<1x16x16xf32>
    %1481 = vector.shape_cast %1480 : vector<1x16x16xf32> to vector<16x16xf32>
    %1482 = vector.broadcast %1479 : f32 to vector<16x16xf32>
    %1483 = arith.mulf %1482, %1481 : vector<16x16xf32>
    %1484 = arith.addf %1478, %1483 : vector<16x16xf32>
    %c234 = arith.constant 234 : index
    %1485 = memref.load %arg2[%c234] : memref<294xf32, #tpu.memory_space<smem>>
    %c0_788 = arith.constant 0 : index
    %c5_789 = arith.constant 5 : index
    %c3_790 = arith.constant 3 : index
    %1486 = vector.load %arg7[%c0_788, %c5_789, %c3_790] : memref<2x22x22xf32, #tpu.memory_space<vmem>>, vector<1x16x16xf32>
    %1487 = vector.shape_cast %1486 : vector<1x16x16xf32> to vector<16x16xf32>
    %1488 = vector.broadcast %1485 : f32 to vector<16x16xf32>
    %1489 = arith.mulf %1488, %1487 : vector<16x16xf32>
    %1490 = arith.addf %1484, %1489 : vector<16x16xf32>
    %c235 = arith.constant 235 : index
    %1491 = memref.load %arg2[%c235] : memref<294xf32, #tpu.memory_space<smem>>
    %c0_791 = arith.constant 0 : index
    %c5_792 = arith.constant 5 : index
    %c4_793 = arith.constant 4 : index
    %1492 = vector.load %arg7[%c0_791, %c5_792, %c4_793] : memref<2x22x22xf32, #tpu.memory_space<vmem>>, vector<1x16x16xf32>
    %1493 = vector.shape_cast %1492 : vector<1x16x16xf32> to vector<16x16xf32>
    %1494 = vector.broadcast %1491 : f32 to vector<16x16xf32>
    %1495 = arith.mulf %1494, %1493 : vector<16x16xf32>
    %1496 = arith.addf %1490, %1495 : vector<16x16xf32>
    %c236 = arith.constant 236 : index
    %1497 = memref.load %arg2[%c236] : memref<294xf32, #tpu.memory_space<smem>>
    %c0_794 = arith.constant 0 : index
    %c5_795 = arith.constant 5 : index
    %c5_796 = arith.constant 5 : index
    %1498 = vector.load %arg7[%c0_794, %c5_795, %c5_796] : memref<2x22x22xf32, #tpu.memory_space<vmem>>, vector<1x16x16xf32>
    %1499 = vector.shape_cast %1498 : vector<1x16x16xf32> to vector<16x16xf32>
    %1500 = vector.broadcast %1497 : f32 to vector<16x16xf32>
    %1501 = arith.mulf %1500, %1499 : vector<16x16xf32>
    %1502 = arith.addf %1496, %1501 : vector<16x16xf32>
    %c237 = arith.constant 237 : index
    %1503 = memref.load %arg2[%c237] : memref<294xf32, #tpu.memory_space<smem>>
    %c0_797 = arith.constant 0 : index
    %c5_798 = arith.constant 5 : index
    %c6_799 = arith.constant 6 : index
    %1504 = vector.load %arg7[%c0_797, %c5_798, %c6_799] : memref<2x22x22xf32, #tpu.memory_space<vmem>>, vector<1x16x16xf32>
    %1505 = vector.shape_cast %1504 : vector<1x16x16xf32> to vector<16x16xf32>
    %1506 = vector.broadcast %1503 : f32 to vector<16x16xf32>
    %1507 = arith.mulf %1506, %1505 : vector<16x16xf32>
    %1508 = arith.addf %1502, %1507 : vector<16x16xf32>
    %c238 = arith.constant 238 : index
    %1509 = memref.load %arg2[%c238] : memref<294xf32, #tpu.memory_space<smem>>
    %c0_800 = arith.constant 0 : index
    %c6_801 = arith.constant 6 : index
    %c0_802 = arith.constant 0 : index
    %1510 = vector.load %arg7[%c0_800, %c6_801, %c0_802] : memref<2x22x22xf32, #tpu.memory_space<vmem>>, vector<1x16x16xf32>
    %1511 = vector.shape_cast %1510 : vector<1x16x16xf32> to vector<16x16xf32>
    %1512 = vector.broadcast %1509 : f32 to vector<16x16xf32>
    %1513 = arith.mulf %1512, %1511 : vector<16x16xf32>
    %1514 = arith.addf %1508, %1513 : vector<16x16xf32>
    %c239 = arith.constant 239 : index
    %1515 = memref.load %arg2[%c239] : memref<294xf32, #tpu.memory_space<smem>>
    %c0_803 = arith.constant 0 : index
    %c6_804 = arith.constant 6 : index
    %c1_805 = arith.constant 1 : index
    %1516 = vector.load %arg7[%c0_803, %c6_804, %c1_805] : memref<2x22x22xf32, #tpu.memory_space<vmem>>, vector<1x16x16xf32>
    %1517 = vector.shape_cast %1516 : vector<1x16x16xf32> to vector<16x16xf32>
    %1518 = vector.broadcast %1515 : f32 to vector<16x16xf32>
    %1519 = arith.mulf %1518, %1517 : vector<16x16xf32>
    %1520 = arith.addf %1514, %1519 : vector<16x16xf32>
    %c240 = arith.constant 240 : index
    %1521 = memref.load %arg2[%c240] : memref<294xf32, #tpu.memory_space<smem>>
    %c0_806 = arith.constant 0 : index
    %c6_807 = arith.constant 6 : index
    %c2_808 = arith.constant 2 : index
    %1522 = vector.load %arg7[%c0_806, %c6_807, %c2_808] : memref<2x22x22xf32, #tpu.memory_space<vmem>>, vector<1x16x16xf32>
    %1523 = vector.shape_cast %1522 : vector<1x16x16xf32> to vector<16x16xf32>
    %1524 = vector.broadcast %1521 : f32 to vector<16x16xf32>
    %1525 = arith.mulf %1524, %1523 : vector<16x16xf32>
    %1526 = arith.addf %1520, %1525 : vector<16x16xf32>
    %c241 = arith.constant 241 : index
    %1527 = memref.load %arg2[%c241] : memref<294xf32, #tpu.memory_space<smem>>
    %c0_809 = arith.constant 0 : index
    %c6_810 = arith.constant 6 : index
    %c3_811 = arith.constant 3 : index
    %1528 = vector.load %arg7[%c0_809, %c6_810, %c3_811] : memref<2x22x22xf32, #tpu.memory_space<vmem>>, vector<1x16x16xf32>
    %1529 = vector.shape_cast %1528 : vector<1x16x16xf32> to vector<16x16xf32>
    %1530 = vector.broadcast %1527 : f32 to vector<16x16xf32>
    %1531 = arith.mulf %1530, %1529 : vector<16x16xf32>
    %1532 = arith.addf %1526, %1531 : vector<16x16xf32>
    %c242 = arith.constant 242 : index
    %1533 = memref.load %arg2[%c242] : memref<294xf32, #tpu.memory_space<smem>>
    %c0_812 = arith.constant 0 : index
    %c6_813 = arith.constant 6 : index
    %c4_814 = arith.constant 4 : index
    %1534 = vector.load %arg7[%c0_812, %c6_813, %c4_814] : memref<2x22x22xf32, #tpu.memory_space<vmem>>, vector<1x16x16xf32>
    %1535 = vector.shape_cast %1534 : vector<1x16x16xf32> to vector<16x16xf32>
    %1536 = vector.broadcast %1533 : f32 to vector<16x16xf32>
    %1537 = arith.mulf %1536, %1535 : vector<16x16xf32>
    %1538 = arith.addf %1532, %1537 : vector<16x16xf32>
    %c243 = arith.constant 243 : index
    %1539 = memref.load %arg2[%c243] : memref<294xf32, #tpu.memory_space<smem>>
    %c0_815 = arith.constant 0 : index
    %c6_816 = arith.constant 6 : index
    %c5_817 = arith.constant 5 : index
    %1540 = vector.load %arg7[%c0_815, %c6_816, %c5_817] : memref<2x22x22xf32, #tpu.memory_space<vmem>>, vector<1x16x16xf32>
    %1541 = vector.shape_cast %1540 : vector<1x16x16xf32> to vector<16x16xf32>
    %1542 = vector.broadcast %1539 : f32 to vector<16x16xf32>
    %1543 = arith.mulf %1542, %1541 : vector<16x16xf32>
    %1544 = arith.addf %1538, %1543 : vector<16x16xf32>
    %c244 = arith.constant 244 : index
    %1545 = memref.load %arg2[%c244] : memref<294xf32, #tpu.memory_space<smem>>
    %c0_818 = arith.constant 0 : index
    %c6_819 = arith.constant 6 : index
    %c6_820 = arith.constant 6 : index
    %1546 = vector.load %arg7[%c0_818, %c6_819, %c6_820] : memref<2x22x22xf32, #tpu.memory_space<vmem>>, vector<1x16x16xf32>
    %1547 = vector.shape_cast %1546 : vector<1x16x16xf32> to vector<16x16xf32>
    %1548 = vector.broadcast %1545 : f32 to vector<16x16xf32>
    %1549 = arith.mulf %1548, %1547 : vector<16x16xf32>
    %1550 = arith.addf %1544, %1549 : vector<16x16xf32>
    %c245 = arith.constant 245 : index
    %1551 = memref.load %arg2[%c245] : memref<294xf32, #tpu.memory_space<smem>>
    %c1_821 = arith.constant 1 : index
    %c0_822 = arith.constant 0 : index
    %c0_823 = arith.constant 0 : index
    %1552 = vector.load %arg7[%c1_821, %c0_822, %c0_823] : memref<2x22x22xf32, #tpu.memory_space<vmem>>, vector<1x16x16xf32>
    %1553 = vector.shape_cast %1552 : vector<1x16x16xf32> to vector<16x16xf32>
    %1554 = vector.broadcast %1551 : f32 to vector<16x16xf32>
    %1555 = arith.mulf %1554, %1553 : vector<16x16xf32>
    %1556 = arith.addf %1550, %1555 : vector<16x16xf32>
    %c246 = arith.constant 246 : index
    %1557 = memref.load %arg2[%c246] : memref<294xf32, #tpu.memory_space<smem>>
    %c1_824 = arith.constant 1 : index
    %c0_825 = arith.constant 0 : index
    %c1_826 = arith.constant 1 : index
    %1558 = vector.load %arg7[%c1_824, %c0_825, %c1_826] : memref<2x22x22xf32, #tpu.memory_space<vmem>>, vector<1x16x16xf32>
    %1559 = vector.shape_cast %1558 : vector<1x16x16xf32> to vector<16x16xf32>
    %1560 = vector.broadcast %1557 : f32 to vector<16x16xf32>
    %1561 = arith.mulf %1560, %1559 : vector<16x16xf32>
    %1562 = arith.addf %1556, %1561 : vector<16x16xf32>
    %c247 = arith.constant 247 : index
    %1563 = memref.load %arg2[%c247] : memref<294xf32, #tpu.memory_space<smem>>
    %c1_827 = arith.constant 1 : index
    %c0_828 = arith.constant 0 : index
    %c2_829 = arith.constant 2 : index
    %1564 = vector.load %arg7[%c1_827, %c0_828, %c2_829] : memref<2x22x22xf32, #tpu.memory_space<vmem>>, vector<1x16x16xf32>
    %1565 = vector.shape_cast %1564 : vector<1x16x16xf32> to vector<16x16xf32>
    %1566 = vector.broadcast %1563 : f32 to vector<16x16xf32>
    %1567 = arith.mulf %1566, %1565 : vector<16x16xf32>
    %1568 = arith.addf %1562, %1567 : vector<16x16xf32>
    %c248 = arith.constant 248 : index
    %1569 = memref.load %arg2[%c248] : memref<294xf32, #tpu.memory_space<smem>>
    %c1_830 = arith.constant 1 : index
    %c0_831 = arith.constant 0 : index
    %c3_832 = arith.constant 3 : index
    %1570 = vector.load %arg7[%c1_830, %c0_831, %c3_832] : memref<2x22x22xf32, #tpu.memory_space<vmem>>, vector<1x16x16xf32>
    %1571 = vector.shape_cast %1570 : vector<1x16x16xf32> to vector<16x16xf32>
    %1572 = vector.broadcast %1569 : f32 to vector<16x16xf32>
    %1573 = arith.mulf %1572, %1571 : vector<16x16xf32>
    %1574 = arith.addf %1568, %1573 : vector<16x16xf32>
    %c249 = arith.constant 249 : index
    %1575 = memref.load %arg2[%c249] : memref<294xf32, #tpu.memory_space<smem>>
    %c1_833 = arith.constant 1 : index
    %c0_834 = arith.constant 0 : index
    %c4_835 = arith.constant 4 : index
    %1576 = vector.load %arg7[%c1_833, %c0_834, %c4_835] : memref<2x22x22xf32, #tpu.memory_space<vmem>>, vector<1x16x16xf32>
    %1577 = vector.shape_cast %1576 : vector<1x16x16xf32> to vector<16x16xf32>
    %1578 = vector.broadcast %1575 : f32 to vector<16x16xf32>
    %1579 = arith.mulf %1578, %1577 : vector<16x16xf32>
    %1580 = arith.addf %1574, %1579 : vector<16x16xf32>
    %c250 = arith.constant 250 : index
    %1581 = memref.load %arg2[%c250] : memref<294xf32, #tpu.memory_space<smem>>
    %c1_836 = arith.constant 1 : index
    %c0_837 = arith.constant 0 : index
    %c5_838 = arith.constant 5 : index
    %1582 = vector.load %arg7[%c1_836, %c0_837, %c5_838] : memref<2x22x22xf32, #tpu.memory_space<vmem>>, vector<1x16x16xf32>
    %1583 = vector.shape_cast %1582 : vector<1x16x16xf32> to vector<16x16xf32>
    %1584 = vector.broadcast %1581 : f32 to vector<16x16xf32>
    %1585 = arith.mulf %1584, %1583 : vector<16x16xf32>
    %1586 = arith.addf %1580, %1585 : vector<16x16xf32>
    %c251 = arith.constant 251 : index
    %1587 = memref.load %arg2[%c251] : memref<294xf32, #tpu.memory_space<smem>>
    %c1_839 = arith.constant 1 : index
    %c0_840 = arith.constant 0 : index
    %c6_841 = arith.constant 6 : index
    %1588 = vector.load %arg7[%c1_839, %c0_840, %c6_841] : memref<2x22x22xf32, #tpu.memory_space<vmem>>, vector<1x16x16xf32>
    %1589 = vector.shape_cast %1588 : vector<1x16x16xf32> to vector<16x16xf32>
    %1590 = vector.broadcast %1587 : f32 to vector<16x16xf32>
    %1591 = arith.mulf %1590, %1589 : vector<16x16xf32>
    %1592 = arith.addf %1586, %1591 : vector<16x16xf32>
    %c252 = arith.constant 252 : index
    %1593 = memref.load %arg2[%c252] : memref<294xf32, #tpu.memory_space<smem>>
    %c1_842 = arith.constant 1 : index
    %c1_843 = arith.constant 1 : index
    %c0_844 = arith.constant 0 : index
    %1594 = vector.load %arg7[%c1_842, %c1_843, %c0_844] : memref<2x22x22xf32, #tpu.memory_space<vmem>>, vector<1x16x16xf32>
    %1595 = vector.shape_cast %1594 : vector<1x16x16xf32> to vector<16x16xf32>
    %1596 = vector.broadcast %1593 : f32 to vector<16x16xf32>
    %1597 = arith.mulf %1596, %1595 : vector<16x16xf32>
    %1598 = arith.addf %1592, %1597 : vector<16x16xf32>
    %c253 = arith.constant 253 : index
    %1599 = memref.load %arg2[%c253] : memref<294xf32, #tpu.memory_space<smem>>
    %c1_845 = arith.constant 1 : index
    %c1_846 = arith.constant 1 : index
    %c1_847 = arith.constant 1 : index
    %1600 = vector.load %arg7[%c1_845, %c1_846, %c1_847] : memref<2x22x22xf32, #tpu.memory_space<vmem>>, vector<1x16x16xf32>
    %1601 = vector.shape_cast %1600 : vector<1x16x16xf32> to vector<16x16xf32>
    %1602 = vector.broadcast %1599 : f32 to vector<16x16xf32>
    %1603 = arith.mulf %1602, %1601 : vector<16x16xf32>
    %1604 = arith.addf %1598, %1603 : vector<16x16xf32>
    %c254 = arith.constant 254 : index
    %1605 = memref.load %arg2[%c254] : memref<294xf32, #tpu.memory_space<smem>>
    %c1_848 = arith.constant 1 : index
    %c1_849 = arith.constant 1 : index
    %c2_850 = arith.constant 2 : index
    %1606 = vector.load %arg7[%c1_848, %c1_849, %c2_850] : memref<2x22x22xf32, #tpu.memory_space<vmem>>, vector<1x16x16xf32>
    %1607 = vector.shape_cast %1606 : vector<1x16x16xf32> to vector<16x16xf32>
    %1608 = vector.broadcast %1605 : f32 to vector<16x16xf32>
    %1609 = arith.mulf %1608, %1607 : vector<16x16xf32>
    %1610 = arith.addf %1604, %1609 : vector<16x16xf32>
    %c255 = arith.constant 255 : index
    %1611 = memref.load %arg2[%c255] : memref<294xf32, #tpu.memory_space<smem>>
    %c1_851 = arith.constant 1 : index
    %c1_852 = arith.constant 1 : index
    %c3_853 = arith.constant 3 : index
    %1612 = vector.load %arg7[%c1_851, %c1_852, %c3_853] : memref<2x22x22xf32, #tpu.memory_space<vmem>>, vector<1x16x16xf32>
    %1613 = vector.shape_cast %1612 : vector<1x16x16xf32> to vector<16x16xf32>
    %1614 = vector.broadcast %1611 : f32 to vector<16x16xf32>
    %1615 = arith.mulf %1614, %1613 : vector<16x16xf32>
    %1616 = arith.addf %1610, %1615 : vector<16x16xf32>
    %c256 = arith.constant 256 : index
    %1617 = memref.load %arg2[%c256] : memref<294xf32, #tpu.memory_space<smem>>
    %c1_854 = arith.constant 1 : index
    %c1_855 = arith.constant 1 : index
    %c4_856 = arith.constant 4 : index
    %1618 = vector.load %arg7[%c1_854, %c1_855, %c4_856] : memref<2x22x22xf32, #tpu.memory_space<vmem>>, vector<1x16x16xf32>
    %1619 = vector.shape_cast %1618 : vector<1x16x16xf32> to vector<16x16xf32>
    %1620 = vector.broadcast %1617 : f32 to vector<16x16xf32>
    %1621 = arith.mulf %1620, %1619 : vector<16x16xf32>
    %1622 = arith.addf %1616, %1621 : vector<16x16xf32>
    %c257 = arith.constant 257 : index
    %1623 = memref.load %arg2[%c257] : memref<294xf32, #tpu.memory_space<smem>>
    %c1_857 = arith.constant 1 : index
    %c1_858 = arith.constant 1 : index
    %c5_859 = arith.constant 5 : index
    %1624 = vector.load %arg7[%c1_857, %c1_858, %c5_859] : memref<2x22x22xf32, #tpu.memory_space<vmem>>, vector<1x16x16xf32>
    %1625 = vector.shape_cast %1624 : vector<1x16x16xf32> to vector<16x16xf32>
    %1626 = vector.broadcast %1623 : f32 to vector<16x16xf32>
    %1627 = arith.mulf %1626, %1625 : vector<16x16xf32>
    %1628 = arith.addf %1622, %1627 : vector<16x16xf32>
    %c258 = arith.constant 258 : index
    %1629 = memref.load %arg2[%c258] : memref<294xf32, #tpu.memory_space<smem>>
    %c1_860 = arith.constant 1 : index
    %c1_861 = arith.constant 1 : index
    %c6_862 = arith.constant 6 : index
    %1630 = vector.load %arg7[%c1_860, %c1_861, %c6_862] : memref<2x22x22xf32, #tpu.memory_space<vmem>>, vector<1x16x16xf32>
    %1631 = vector.shape_cast %1630 : vector<1x16x16xf32> to vector<16x16xf32>
    %1632 = vector.broadcast %1629 : f32 to vector<16x16xf32>
    %1633 = arith.mulf %1632, %1631 : vector<16x16xf32>
    %1634 = arith.addf %1628, %1633 : vector<16x16xf32>
    %c259 = arith.constant 259 : index
    %1635 = memref.load %arg2[%c259] : memref<294xf32, #tpu.memory_space<smem>>
    %c1_863 = arith.constant 1 : index
    %c2_864 = arith.constant 2 : index
    %c0_865 = arith.constant 0 : index
    %1636 = vector.load %arg7[%c1_863, %c2_864, %c0_865] : memref<2x22x22xf32, #tpu.memory_space<vmem>>, vector<1x16x16xf32>
    %1637 = vector.shape_cast %1636 : vector<1x16x16xf32> to vector<16x16xf32>
    %1638 = vector.broadcast %1635 : f32 to vector<16x16xf32>
    %1639 = arith.mulf %1638, %1637 : vector<16x16xf32>
    %1640 = arith.addf %1634, %1639 : vector<16x16xf32>
    %c260 = arith.constant 260 : index
    %1641 = memref.load %arg2[%c260] : memref<294xf32, #tpu.memory_space<smem>>
    %c1_866 = arith.constant 1 : index
    %c2_867 = arith.constant 2 : index
    %c1_868 = arith.constant 1 : index
    %1642 = vector.load %arg7[%c1_866, %c2_867, %c1_868] : memref<2x22x22xf32, #tpu.memory_space<vmem>>, vector<1x16x16xf32>
    %1643 = vector.shape_cast %1642 : vector<1x16x16xf32> to vector<16x16xf32>
    %1644 = vector.broadcast %1641 : f32 to vector<16x16xf32>
    %1645 = arith.mulf %1644, %1643 : vector<16x16xf32>
    %1646 = arith.addf %1640, %1645 : vector<16x16xf32>
    %c261 = arith.constant 261 : index
    %1647 = memref.load %arg2[%c261] : memref<294xf32, #tpu.memory_space<smem>>
    %c1_869 = arith.constant 1 : index
    %c2_870 = arith.constant 2 : index
    %c2_871 = arith.constant 2 : index
    %1648 = vector.load %arg7[%c1_869, %c2_870, %c2_871] : memref<2x22x22xf32, #tpu.memory_space<vmem>>, vector<1x16x16xf32>
    %1649 = vector.shape_cast %1648 : vector<1x16x16xf32> to vector<16x16xf32>
    %1650 = vector.broadcast %1647 : f32 to vector<16x16xf32>
    %1651 = arith.mulf %1650, %1649 : vector<16x16xf32>
    %1652 = arith.addf %1646, %1651 : vector<16x16xf32>
    %c262 = arith.constant 262 : index
    %1653 = memref.load %arg2[%c262] : memref<294xf32, #tpu.memory_space<smem>>
    %c1_872 = arith.constant 1 : index
    %c2_873 = arith.constant 2 : index
    %c3_874 = arith.constant 3 : index
    %1654 = vector.load %arg7[%c1_872, %c2_873, %c3_874] : memref<2x22x22xf32, #tpu.memory_space<vmem>>, vector<1x16x16xf32>
    %1655 = vector.shape_cast %1654 : vector<1x16x16xf32> to vector<16x16xf32>
    %1656 = vector.broadcast %1653 : f32 to vector<16x16xf32>
    %1657 = arith.mulf %1656, %1655 : vector<16x16xf32>
    %1658 = arith.addf %1652, %1657 : vector<16x16xf32>
    %c263 = arith.constant 263 : index
    %1659 = memref.load %arg2[%c263] : memref<294xf32, #tpu.memory_space<smem>>
    %c1_875 = arith.constant 1 : index
    %c2_876 = arith.constant 2 : index
    %c4_877 = arith.constant 4 : index
    %1660 = vector.load %arg7[%c1_875, %c2_876, %c4_877] : memref<2x22x22xf32, #tpu.memory_space<vmem>>, vector<1x16x16xf32>
    %1661 = vector.shape_cast %1660 : vector<1x16x16xf32> to vector<16x16xf32>
    %1662 = vector.broadcast %1659 : f32 to vector<16x16xf32>
    %1663 = arith.mulf %1662, %1661 : vector<16x16xf32>
    %1664 = arith.addf %1658, %1663 : vector<16x16xf32>
    %c264 = arith.constant 264 : index
    %1665 = memref.load %arg2[%c264] : memref<294xf32, #tpu.memory_space<smem>>
    %c1_878 = arith.constant 1 : index
    %c2_879 = arith.constant 2 : index
    %c5_880 = arith.constant 5 : index
    %1666 = vector.load %arg7[%c1_878, %c2_879, %c5_880] : memref<2x22x22xf32, #tpu.memory_space<vmem>>, vector<1x16x16xf32>
    %1667 = vector.shape_cast %1666 : vector<1x16x16xf32> to vector<16x16xf32>
    %1668 = vector.broadcast %1665 : f32 to vector<16x16xf32>
    %1669 = arith.mulf %1668, %1667 : vector<16x16xf32>
    %1670 = arith.addf %1664, %1669 : vector<16x16xf32>
    %c265 = arith.constant 265 : index
    %1671 = memref.load %arg2[%c265] : memref<294xf32, #tpu.memory_space<smem>>
    %c1_881 = arith.constant 1 : index
    %c2_882 = arith.constant 2 : index
    %c6_883 = arith.constant 6 : index
    %1672 = vector.load %arg7[%c1_881, %c2_882, %c6_883] : memref<2x22x22xf32, #tpu.memory_space<vmem>>, vector<1x16x16xf32>
    %1673 = vector.shape_cast %1672 : vector<1x16x16xf32> to vector<16x16xf32>
    %1674 = vector.broadcast %1671 : f32 to vector<16x16xf32>
    %1675 = arith.mulf %1674, %1673 : vector<16x16xf32>
    %1676 = arith.addf %1670, %1675 : vector<16x16xf32>
    %c266 = arith.constant 266 : index
    %1677 = memref.load %arg2[%c266] : memref<294xf32, #tpu.memory_space<smem>>
    %c1_884 = arith.constant 1 : index
    %c3_885 = arith.constant 3 : index
    %c0_886 = arith.constant 0 : index
    %1678 = vector.load %arg7[%c1_884, %c3_885, %c0_886] : memref<2x22x22xf32, #tpu.memory_space<vmem>>, vector<1x16x16xf32>
    %1679 = vector.shape_cast %1678 : vector<1x16x16xf32> to vector<16x16xf32>
    %1680 = vector.broadcast %1677 : f32 to vector<16x16xf32>
    %1681 = arith.mulf %1680, %1679 : vector<16x16xf32>
    %1682 = arith.addf %1676, %1681 : vector<16x16xf32>
    %c267 = arith.constant 267 : index
    %1683 = memref.load %arg2[%c267] : memref<294xf32, #tpu.memory_space<smem>>
    %c1_887 = arith.constant 1 : index
    %c3_888 = arith.constant 3 : index
    %c1_889 = arith.constant 1 : index
    %1684 = vector.load %arg7[%c1_887, %c3_888, %c1_889] : memref<2x22x22xf32, #tpu.memory_space<vmem>>, vector<1x16x16xf32>
    %1685 = vector.shape_cast %1684 : vector<1x16x16xf32> to vector<16x16xf32>
    %1686 = vector.broadcast %1683 : f32 to vector<16x16xf32>
    %1687 = arith.mulf %1686, %1685 : vector<16x16xf32>
    %1688 = arith.addf %1682, %1687 : vector<16x16xf32>
    %c268 = arith.constant 268 : index
    %1689 = memref.load %arg2[%c268] : memref<294xf32, #tpu.memory_space<smem>>
    %c1_890 = arith.constant 1 : index
    %c3_891 = arith.constant 3 : index
    %c2_892 = arith.constant 2 : index
    %1690 = vector.load %arg7[%c1_890, %c3_891, %c2_892] : memref<2x22x22xf32, #tpu.memory_space<vmem>>, vector<1x16x16xf32>
    %1691 = vector.shape_cast %1690 : vector<1x16x16xf32> to vector<16x16xf32>
    %1692 = vector.broadcast %1689 : f32 to vector<16x16xf32>
    %1693 = arith.mulf %1692, %1691 : vector<16x16xf32>
    %1694 = arith.addf %1688, %1693 : vector<16x16xf32>
    %c269 = arith.constant 269 : index
    %1695 = memref.load %arg2[%c269] : memref<294xf32, #tpu.memory_space<smem>>
    %c1_893 = arith.constant 1 : index
    %c3_894 = arith.constant 3 : index
    %c3_895 = arith.constant 3 : index
    %1696 = vector.load %arg7[%c1_893, %c3_894, %c3_895] : memref<2x22x22xf32, #tpu.memory_space<vmem>>, vector<1x16x16xf32>
    %1697 = vector.shape_cast %1696 : vector<1x16x16xf32> to vector<16x16xf32>
    %1698 = vector.broadcast %1695 : f32 to vector<16x16xf32>
    %1699 = arith.mulf %1698, %1697 : vector<16x16xf32>
    %1700 = arith.addf %1694, %1699 : vector<16x16xf32>
    %c270 = arith.constant 270 : index
    %1701 = memref.load %arg2[%c270] : memref<294xf32, #tpu.memory_space<smem>>
    %c1_896 = arith.constant 1 : index
    %c3_897 = arith.constant 3 : index
    %c4_898 = arith.constant 4 : index
    %1702 = vector.load %arg7[%c1_896, %c3_897, %c4_898] : memref<2x22x22xf32, #tpu.memory_space<vmem>>, vector<1x16x16xf32>
    %1703 = vector.shape_cast %1702 : vector<1x16x16xf32> to vector<16x16xf32>
    %1704 = vector.broadcast %1701 : f32 to vector<16x16xf32>
    %1705 = arith.mulf %1704, %1703 : vector<16x16xf32>
    %1706 = arith.addf %1700, %1705 : vector<16x16xf32>
    %c271 = arith.constant 271 : index
    %1707 = memref.load %arg2[%c271] : memref<294xf32, #tpu.memory_space<smem>>
    %c1_899 = arith.constant 1 : index
    %c3_900 = arith.constant 3 : index
    %c5_901 = arith.constant 5 : index
    %1708 = vector.load %arg7[%c1_899, %c3_900, %c5_901] : memref<2x22x22xf32, #tpu.memory_space<vmem>>, vector<1x16x16xf32>
    %1709 = vector.shape_cast %1708 : vector<1x16x16xf32> to vector<16x16xf32>
    %1710 = vector.broadcast %1707 : f32 to vector<16x16xf32>
    %1711 = arith.mulf %1710, %1709 : vector<16x16xf32>
    %1712 = arith.addf %1706, %1711 : vector<16x16xf32>
    %c272 = arith.constant 272 : index
    %1713 = memref.load %arg2[%c272] : memref<294xf32, #tpu.memory_space<smem>>
    %c1_902 = arith.constant 1 : index
    %c3_903 = arith.constant 3 : index
    %c6_904 = arith.constant 6 : index
    %1714 = vector.load %arg7[%c1_902, %c3_903, %c6_904] : memref<2x22x22xf32, #tpu.memory_space<vmem>>, vector<1x16x16xf32>
    %1715 = vector.shape_cast %1714 : vector<1x16x16xf32> to vector<16x16xf32>
    %1716 = vector.broadcast %1713 : f32 to vector<16x16xf32>
    %1717 = arith.mulf %1716, %1715 : vector<16x16xf32>
    %1718 = arith.addf %1712, %1717 : vector<16x16xf32>
    %c273 = arith.constant 273 : index
    %1719 = memref.load %arg2[%c273] : memref<294xf32, #tpu.memory_space<smem>>
    %c1_905 = arith.constant 1 : index
    %c4_906 = arith.constant 4 : index
    %c0_907 = arith.constant 0 : index
    %1720 = vector.load %arg7[%c1_905, %c4_906, %c0_907] : memref<2x22x22xf32, #tpu.memory_space<vmem>>, vector<1x16x16xf32>
    %1721 = vector.shape_cast %1720 : vector<1x16x16xf32> to vector<16x16xf32>
    %1722 = vector.broadcast %1719 : f32 to vector<16x16xf32>
    %1723 = arith.mulf %1722, %1721 : vector<16x16xf32>
    %1724 = arith.addf %1718, %1723 : vector<16x16xf32>
    %c274 = arith.constant 274 : index
    %1725 = memref.load %arg2[%c274] : memref<294xf32, #tpu.memory_space<smem>>
    %c1_908 = arith.constant 1 : index
    %c4_909 = arith.constant 4 : index
    %c1_910 = arith.constant 1 : index
    %1726 = vector.load %arg7[%c1_908, %c4_909, %c1_910] : memref<2x22x22xf32, #tpu.memory_space<vmem>>, vector<1x16x16xf32>
    %1727 = vector.shape_cast %1726 : vector<1x16x16xf32> to vector<16x16xf32>
    %1728 = vector.broadcast %1725 : f32 to vector<16x16xf32>
    %1729 = arith.mulf %1728, %1727 : vector<16x16xf32>
    %1730 = arith.addf %1724, %1729 : vector<16x16xf32>
    %c275 = arith.constant 275 : index
    %1731 = memref.load %arg2[%c275] : memref<294xf32, #tpu.memory_space<smem>>
    %c1_911 = arith.constant 1 : index
    %c4_912 = arith.constant 4 : index
    %c2_913 = arith.constant 2 : index
    %1732 = vector.load %arg7[%c1_911, %c4_912, %c2_913] : memref<2x22x22xf32, #tpu.memory_space<vmem>>, vector<1x16x16xf32>
    %1733 = vector.shape_cast %1732 : vector<1x16x16xf32> to vector<16x16xf32>
    %1734 = vector.broadcast %1731 : f32 to vector<16x16xf32>
    %1735 = arith.mulf %1734, %1733 : vector<16x16xf32>
    %1736 = arith.addf %1730, %1735 : vector<16x16xf32>
    %c276 = arith.constant 276 : index
    %1737 = memref.load %arg2[%c276] : memref<294xf32, #tpu.memory_space<smem>>
    %c1_914 = arith.constant 1 : index
    %c4_915 = arith.constant 4 : index
    %c3_916 = arith.constant 3 : index
    %1738 = vector.load %arg7[%c1_914, %c4_915, %c3_916] : memref<2x22x22xf32, #tpu.memory_space<vmem>>, vector<1x16x16xf32>
    %1739 = vector.shape_cast %1738 : vector<1x16x16xf32> to vector<16x16xf32>
    %1740 = vector.broadcast %1737 : f32 to vector<16x16xf32>
    %1741 = arith.mulf %1740, %1739 : vector<16x16xf32>
    %1742 = arith.addf %1736, %1741 : vector<16x16xf32>
    %c277 = arith.constant 277 : index
    %1743 = memref.load %arg2[%c277] : memref<294xf32, #tpu.memory_space<smem>>
    %c1_917 = arith.constant 1 : index
    %c4_918 = arith.constant 4 : index
    %c4_919 = arith.constant 4 : index
    %1744 = vector.load %arg7[%c1_917, %c4_918, %c4_919] : memref<2x22x22xf32, #tpu.memory_space<vmem>>, vector<1x16x16xf32>
    %1745 = vector.shape_cast %1744 : vector<1x16x16xf32> to vector<16x16xf32>
    %1746 = vector.broadcast %1743 : f32 to vector<16x16xf32>
    %1747 = arith.mulf %1746, %1745 : vector<16x16xf32>
    %1748 = arith.addf %1742, %1747 : vector<16x16xf32>
    %c278 = arith.constant 278 : index
    %1749 = memref.load %arg2[%c278] : memref<294xf32, #tpu.memory_space<smem>>
    %c1_920 = arith.constant 1 : index
    %c4_921 = arith.constant 4 : index
    %c5_922 = arith.constant 5 : index
    %1750 = vector.load %arg7[%c1_920, %c4_921, %c5_922] : memref<2x22x22xf32, #tpu.memory_space<vmem>>, vector<1x16x16xf32>
    %1751 = vector.shape_cast %1750 : vector<1x16x16xf32> to vector<16x16xf32>
    %1752 = vector.broadcast %1749 : f32 to vector<16x16xf32>
    %1753 = arith.mulf %1752, %1751 : vector<16x16xf32>
    %1754 = arith.addf %1748, %1753 : vector<16x16xf32>
    %c279 = arith.constant 279 : index
    %1755 = memref.load %arg2[%c279] : memref<294xf32, #tpu.memory_space<smem>>
    %c1_923 = arith.constant 1 : index
    %c4_924 = arith.constant 4 : index
    %c6_925 = arith.constant 6 : index
    %1756 = vector.load %arg7[%c1_923, %c4_924, %c6_925] : memref<2x22x22xf32, #tpu.memory_space<vmem>>, vector<1x16x16xf32>
    %1757 = vector.shape_cast %1756 : vector<1x16x16xf32> to vector<16x16xf32>
    %1758 = vector.broadcast %1755 : f32 to vector<16x16xf32>
    %1759 = arith.mulf %1758, %1757 : vector<16x16xf32>
    %1760 = arith.addf %1754, %1759 : vector<16x16xf32>
    %c280 = arith.constant 280 : index
    %1761 = memref.load %arg2[%c280] : memref<294xf32, #tpu.memory_space<smem>>
    %c1_926 = arith.constant 1 : index
    %c5_927 = arith.constant 5 : index
    %c0_928 = arith.constant 0 : index
    %1762 = vector.load %arg7[%c1_926, %c5_927, %c0_928] : memref<2x22x22xf32, #tpu.memory_space<vmem>>, vector<1x16x16xf32>
    %1763 = vector.shape_cast %1762 : vector<1x16x16xf32> to vector<16x16xf32>
    %1764 = vector.broadcast %1761 : f32 to vector<16x16xf32>
    %1765 = arith.mulf %1764, %1763 : vector<16x16xf32>
    %1766 = arith.addf %1760, %1765 : vector<16x16xf32>
    %c281 = arith.constant 281 : index
    %1767 = memref.load %arg2[%c281] : memref<294xf32, #tpu.memory_space<smem>>
    %c1_929 = arith.constant 1 : index
    %c5_930 = arith.constant 5 : index
    %c1_931 = arith.constant 1 : index
    %1768 = vector.load %arg7[%c1_929, %c5_930, %c1_931] : memref<2x22x22xf32, #tpu.memory_space<vmem>>, vector<1x16x16xf32>
    %1769 = vector.shape_cast %1768 : vector<1x16x16xf32> to vector<16x16xf32>
    %1770 = vector.broadcast %1767 : f32 to vector<16x16xf32>
    %1771 = arith.mulf %1770, %1769 : vector<16x16xf32>
    %1772 = arith.addf %1766, %1771 : vector<16x16xf32>
    %c282 = arith.constant 282 : index
    %1773 = memref.load %arg2[%c282] : memref<294xf32, #tpu.memory_space<smem>>
    %c1_932 = arith.constant 1 : index
    %c5_933 = arith.constant 5 : index
    %c2_934 = arith.constant 2 : index
    %1774 = vector.load %arg7[%c1_932, %c5_933, %c2_934] : memref<2x22x22xf32, #tpu.memory_space<vmem>>, vector<1x16x16xf32>
    %1775 = vector.shape_cast %1774 : vector<1x16x16xf32> to vector<16x16xf32>
    %1776 = vector.broadcast %1773 : f32 to vector<16x16xf32>
    %1777 = arith.mulf %1776, %1775 : vector<16x16xf32>
    %1778 = arith.addf %1772, %1777 : vector<16x16xf32>
    %c283 = arith.constant 283 : index
    %1779 = memref.load %arg2[%c283] : memref<294xf32, #tpu.memory_space<smem>>
    %c1_935 = arith.constant 1 : index
    %c5_936 = arith.constant 5 : index
    %c3_937 = arith.constant 3 : index
    %1780 = vector.load %arg7[%c1_935, %c5_936, %c3_937] : memref<2x22x22xf32, #tpu.memory_space<vmem>>, vector<1x16x16xf32>
    %1781 = vector.shape_cast %1780 : vector<1x16x16xf32> to vector<16x16xf32>
    %1782 = vector.broadcast %1779 : f32 to vector<16x16xf32>
    %1783 = arith.mulf %1782, %1781 : vector<16x16xf32>
    %1784 = arith.addf %1778, %1783 : vector<16x16xf32>
    %c284 = arith.constant 284 : index
    %1785 = memref.load %arg2[%c284] : memref<294xf32, #tpu.memory_space<smem>>
    %c1_938 = arith.constant 1 : index
    %c5_939 = arith.constant 5 : index
    %c4_940 = arith.constant 4 : index
    %1786 = vector.load %arg7[%c1_938, %c5_939, %c4_940] : memref<2x22x22xf32, #tpu.memory_space<vmem>>, vector<1x16x16xf32>
    %1787 = vector.shape_cast %1786 : vector<1x16x16xf32> to vector<16x16xf32>
    %1788 = vector.broadcast %1785 : f32 to vector<16x16xf32>
    %1789 = arith.mulf %1788, %1787 : vector<16x16xf32>
    %1790 = arith.addf %1784, %1789 : vector<16x16xf32>
    %c285 = arith.constant 285 : index
    %1791 = memref.load %arg2[%c285] : memref<294xf32, #tpu.memory_space<smem>>
    %c1_941 = arith.constant 1 : index
    %c5_942 = arith.constant 5 : index
    %c5_943 = arith.constant 5 : index
    %1792 = vector.load %arg7[%c1_941, %c5_942, %c5_943] : memref<2x22x22xf32, #tpu.memory_space<vmem>>, vector<1x16x16xf32>
    %1793 = vector.shape_cast %1792 : vector<1x16x16xf32> to vector<16x16xf32>
    %1794 = vector.broadcast %1791 : f32 to vector<16x16xf32>
    %1795 = arith.mulf %1794, %1793 : vector<16x16xf32>
    %1796 = arith.addf %1790, %1795 : vector<16x16xf32>
    %c286 = arith.constant 286 : index
    %1797 = memref.load %arg2[%c286] : memref<294xf32, #tpu.memory_space<smem>>
    %c1_944 = arith.constant 1 : index
    %c5_945 = arith.constant 5 : index
    %c6_946 = arith.constant 6 : index
    %1798 = vector.load %arg7[%c1_944, %c5_945, %c6_946] : memref<2x22x22xf32, #tpu.memory_space<vmem>>, vector<1x16x16xf32>
    %1799 = vector.shape_cast %1798 : vector<1x16x16xf32> to vector<16x16xf32>
    %1800 = vector.broadcast %1797 : f32 to vector<16x16xf32>
    %1801 = arith.mulf %1800, %1799 : vector<16x16xf32>
    %1802 = arith.addf %1796, %1801 : vector<16x16xf32>
    %c287 = arith.constant 287 : index
    %1803 = memref.load %arg2[%c287] : memref<294xf32, #tpu.memory_space<smem>>
    %c1_947 = arith.constant 1 : index
    %c6_948 = arith.constant 6 : index
    %c0_949 = arith.constant 0 : index
    %1804 = vector.load %arg7[%c1_947, %c6_948, %c0_949] : memref<2x22x22xf32, #tpu.memory_space<vmem>>, vector<1x16x16xf32>
    %1805 = vector.shape_cast %1804 : vector<1x16x16xf32> to vector<16x16xf32>
    %1806 = vector.broadcast %1803 : f32 to vector<16x16xf32>
    %1807 = arith.mulf %1806, %1805 : vector<16x16xf32>
    %1808 = arith.addf %1802, %1807 : vector<16x16xf32>
    %c288 = arith.constant 288 : index
    %1809 = memref.load %arg2[%c288] : memref<294xf32, #tpu.memory_space<smem>>
    %c1_950 = arith.constant 1 : index
    %c6_951 = arith.constant 6 : index
    %c1_952 = arith.constant 1 : index
    %1810 = vector.load %arg7[%c1_950, %c6_951, %c1_952] : memref<2x22x22xf32, #tpu.memory_space<vmem>>, vector<1x16x16xf32>
    %1811 = vector.shape_cast %1810 : vector<1x16x16xf32> to vector<16x16xf32>
    %1812 = vector.broadcast %1809 : f32 to vector<16x16xf32>
    %1813 = arith.mulf %1812, %1811 : vector<16x16xf32>
    %1814 = arith.addf %1808, %1813 : vector<16x16xf32>
    %c289 = arith.constant 289 : index
    %1815 = memref.load %arg2[%c289] : memref<294xf32, #tpu.memory_space<smem>>
    %c1_953 = arith.constant 1 : index
    %c6_954 = arith.constant 6 : index
    %c2_955 = arith.constant 2 : index
    %1816 = vector.load %arg7[%c1_953, %c6_954, %c2_955] : memref<2x22x22xf32, #tpu.memory_space<vmem>>, vector<1x16x16xf32>
    %1817 = vector.shape_cast %1816 : vector<1x16x16xf32> to vector<16x16xf32>
    %1818 = vector.broadcast %1815 : f32 to vector<16x16xf32>
    %1819 = arith.mulf %1818, %1817 : vector<16x16xf32>
    %1820 = arith.addf %1814, %1819 : vector<16x16xf32>
    %c290 = arith.constant 290 : index
    %1821 = memref.load %arg2[%c290] : memref<294xf32, #tpu.memory_space<smem>>
    %c1_956 = arith.constant 1 : index
    %c6_957 = arith.constant 6 : index
    %c3_958 = arith.constant 3 : index
    %1822 = vector.load %arg7[%c1_956, %c6_957, %c3_958] : memref<2x22x22xf32, #tpu.memory_space<vmem>>, vector<1x16x16xf32>
    %1823 = vector.shape_cast %1822 : vector<1x16x16xf32> to vector<16x16xf32>
    %1824 = vector.broadcast %1821 : f32 to vector<16x16xf32>
    %1825 = arith.mulf %1824, %1823 : vector<16x16xf32>
    %1826 = arith.addf %1820, %1825 : vector<16x16xf32>
    %c291 = arith.constant 291 : index
    %1827 = memref.load %arg2[%c291] : memref<294xf32, #tpu.memory_space<smem>>
    %c1_959 = arith.constant 1 : index
    %c6_960 = arith.constant 6 : index
    %c4_961 = arith.constant 4 : index
    %1828 = vector.load %arg7[%c1_959, %c6_960, %c4_961] : memref<2x22x22xf32, #tpu.memory_space<vmem>>, vector<1x16x16xf32>
    %1829 = vector.shape_cast %1828 : vector<1x16x16xf32> to vector<16x16xf32>
    %1830 = vector.broadcast %1827 : f32 to vector<16x16xf32>
    %1831 = arith.mulf %1830, %1829 : vector<16x16xf32>
    %1832 = arith.addf %1826, %1831 : vector<16x16xf32>
    %c292 = arith.constant 292 : index
    %1833 = memref.load %arg2[%c292] : memref<294xf32, #tpu.memory_space<smem>>
    %c1_962 = arith.constant 1 : index
    %c6_963 = arith.constant 6 : index
    %c5_964 = arith.constant 5 : index
    %1834 = vector.load %arg7[%c1_962, %c6_963, %c5_964] : memref<2x22x22xf32, #tpu.memory_space<vmem>>, vector<1x16x16xf32>
    %1835 = vector.shape_cast %1834 : vector<1x16x16xf32> to vector<16x16xf32>
    %1836 = vector.broadcast %1833 : f32 to vector<16x16xf32>
    %1837 = arith.mulf %1836, %1835 : vector<16x16xf32>
    %1838 = arith.addf %1832, %1837 : vector<16x16xf32>
    %c293 = arith.constant 293 : index
    %1839 = memref.load %arg2[%c293] : memref<294xf32, #tpu.memory_space<smem>>
    %c1_965 = arith.constant 1 : index
    %c6_966 = arith.constant 6 : index
    %c6_967 = arith.constant 6 : index
    %1840 = vector.load %arg7[%c1_965, %c6_966, %c6_967] : memref<2x22x22xf32, #tpu.memory_space<vmem>>, vector<1x16x16xf32>
    %1841 = vector.shape_cast %1840 : vector<1x16x16xf32> to vector<16x16xf32>
    %1842 = vector.broadcast %1839 : f32 to vector<16x16xf32>
    %1843 = arith.mulf %1842, %1841 : vector<16x16xf32>
    %1844 = arith.addf %1838, %1843 : vector<16x16xf32>
    %1845 = vector.broadcast %1241 : f32 to vector<16x16xf32>
    %1846 = arith.addf %1844, %1845 : vector<16x16xf32>
    %1847 = arith.negf %1846 : vector<16x16xf32>
    %1848 = math.exp %1847 : vector<16x16xf32>
    %cst_968 = arith.constant 1.000000e+00 : f32
    %1849 = vector.broadcast %cst_968 : f32 to vector<16x16xf32>
    %1850 = arith.addf %1849, %1848 : vector<16x16xf32>
    %1851 = arith.divf %1849, %1850 : vector<16x16xf32>
    %1852 = vector.shape_cast %1851 : vector<16x16xf32> to vector<1x16x16xf32>
    %1853 = vector.broadcast %1852 : vector<1x16x16xf32> to vector<4x16x16xf32>
    %1854 = arith.addf %1236, %1853 : vector<4x16x16xf32>
    %cst_969 = arith.constant 0.333333343 : f32
    %1855 = vector.broadcast %cst_969 : f32 to vector<4x16x16xf32>
    %1856 = arith.mulf %1855, %1854 : vector<4x16x16xf32>
    %1857 = arith.mulf %1, %1856 : vector<4x16x16xf32>
    %c0_970 = arith.constant 0 : index
    %c0_971 = arith.constant 0 : index
    %c0_972 = arith.constant 0 : index
    %c0_973 = arith.constant 0 : index
    %1858 = vector.load %arg4[%c0_970, %c0_971, %c0_972, %c0_973] : memref<1x4x16x16xf32, #tpu.memory_space<vmem>>, vector<1x4x16x16xf32>
    %1859 = vector.shape_cast %1858 : vector<1x4x16x16xf32> to vector<4x16x16xf32>
    %1860 = vector.shape_cast %1857 : vector<4x16x16xf32> to vector<1x4x16x16xf32>
    tpu.vector_store %arg4[%c0_970, %c0_971, %c0_972, %c0_973], %1860 {strides = array<i32>} : memref<1x4x16x16xf32, #tpu.memory_space<vmem>>, vector<1x4x16x16xf32>,
    return
  }
  func.func @transform_0(%arg0: i32) -> (i32, i32, i32, i32) {
    %c0_i32 = arith.constant 0 : i32
    %c0_i32_0 = arith.constant 0 : i32
    %c0_i32_1 = arith.constant 0 : i32
    %c0_i32_2 = arith.constant 0 : i32
    return %arg0, %c0_i32, %c0_i32_0, %c0_i32_1 : i32, i32, i32, i32
  }
  func.func @transform_1(%arg0: i32) -> i32 {
    %c0_i32 = arith.constant 0 : i32
    %c0_i32_0 = arith.constant 0 : i32
    return %c0_i32 : i32
  }
  func.func @transform_2(%arg0: i32) -> i32 {
    %c0_i32 = arith.constant 0 : i32
    %c0_i32_0 = arith.constant 0 : i32
    return %c0_i32 : i32
  }
  func.func @transform_3(%arg0: i32) -> (i32, i32, i32, i32) {
    %c0_i32 = arith.constant 0 : i32
    %c0_i32_0 = arith.constant 0 : i32
    %c0_i32_1 = arith.constant 0 : i32
    %c0_i32_2 = arith.constant 0 : i32
    return %arg0, %c0_i32, %c0_i32_0, %c0_i32_1 : i32, i32, i32, i32
  }
}

</mosaic_0001>

<bundles_post_ra>
// kernel: tattention_forward.1
= control target key start
LH: loop header
LB: loop body
LE: loop exit
PB: predicated region body
PF: predicated region fallthrough
CT: control target
= control target key end

     0   :  { %8 = vsyncpa [#allocation7], 0  ;;  %s5781_s0 = inlined_call_operand.vmem [shape: f32[2,4,16,16], index: 0, kind: input, shape index: {}]   ;;  %s5782_s1 = inlined_call_operand.vmem [shape: f32[294], index: 1, kind: input, shape index: {}]   ;;  %s5783_s2 = inlined_call_operand.vmem [shape: f32[3], index: 2, kind: input, shape index: {}]   ;;  %s5784_s3 = inlined_call_operand.hbm [shape: f32[2,4,16,16], index: 3, kind: output, shape index: {}]  }
   0x1   :  { %9 = vsyncpa [#allocation9], 0 }
   0x2   :  { %10 = vsyncpa [#allocation6], 0 }
   0x3   :  { %12 = vsyncpa [#allocation6 + $0x1], 0  ;;  %s4118_s12 = smov 0   ;;  %s4120_s13 = smov 0  }
   0x4   :  { %s4122_s14 = smov 0   ;;  %s4124_s15 = smov 0  }
   0x5 LB: > { %s4139_s16 = sadd.s32 4294967295, %s4082_s15   ;;  %s3570_s17 = sadd.s32 4294967294, %s4082_s15   ;;  %s4082_s15 = sphi %s4124_s15, %s5802_s15   ;;  %s4078_s14 = sphi %s4122_s14, %s5801_s14   ;;  %s4074_s13 = sphi %s4120_s13, %s5800_s13   ;;  %s4070_s12 = sphi %s4118_s12, %s5799_s12  }
   0x6   : > { %s4143_s18 = sadd.s32 1, %s4082_s15   ;;  %s93_s19 = sadd.s32 1, %s4078_s14 }
   0x7   : > { %s90_s20 = ssub.s32 %s4082_s15, %s4143_s18  ;;  %p103_p0 = scmp.ne.s32.totalorder %s4078_s14, %s4074_s13 }
   0x8   : > { %p91_p1 = scmp.eq.s32.totalorder %s90_s20, 0  ;;  %p104_p2 = scmp.eq.s32.totalorder %s4139_s16, 1 }
   0x9   : > { %p109_p3 = scmp.ne.s32.totalorder %s4074_s13, %s4070_s12  ;;  %p110_p4 = scmp.eq.s32.totalorder %s3570_s17, 1 }
   0xa   : > { %s4154_s21 = scalar_select %p91_p1, %s4078_s14, %s93_s19  }
   0xb   : > { %p4156_p5 = por %p104_p2, %p103_p0  ;;  %p4160_p6 = por %p110_p4, %p109_p3 }
   0xc   : > { %p3571_p7 = scmp.ge.s32.totalorder %s4082_s15, 1  ;;  %p117_p8 = scmp.lt.s32.totalorder %s4082_s15, 3 }
   0xd   : > { %s5788_s22 = scalar_select %p4156_p5, 1, 0 }
   0xe   : > { %s5789_s23 = scalar_select %p4160_p6, 1, 0 }
   0xf   : > { %p5785_p9 = scmp.eq.s32.totalorder %s4139_s16, 0  ;;  %p4167_p10 = pnand %p3571_p7, %p117_p8 }
  0x10   : > { %s130_s27 = sshll.u32 %s5782_s1, 4  ;;  %s141_s30 = sshll.u32 %s5783_s2, 4  ;;  %s131_s27 = int_to_ptr.vmem [resolvable:$true] %s130_s27  ;;  %s142_s30 = int_to_ptr.vmem [resolvable:$true] %s141_s30 }
  0x11   : > { %s5790_s24 = scalar_select %p4167_p10, 1, 0 }
  0x12   : > { %p3897_p11 = pneg %p4167_p10  ;;  %s3982_s5 = scalar_lea.vmem %s131_s27, 48 }
  0x13   : > { %p3983_p13 = scmp.ne.s32.totalorder %s131_s27, %s3982_s5  ;;  %s3989_s6 = scalar_lea.vmem %s131_s27, 64 }
  0x14   : > { %p4181_p12 = pnand %p5785_p9, %p3897_p11  ;;  %p3990_p3 = scmp.lt.s32.totalorder %s131_s27, %s131_s27 }
  0x15   : > { %p3991_p4 = scmp.lt.s32.totalorder %s3989_s6, %s3982_s5 }
  0x16   : > { %p3984_p0 = pneg %p4181_p12 }
  0x17   : > { %p3992_p7 = por %p3991_p4, %p3990_p3 }
  0x18   : > { %p3985_p1 = pnand %p3984_p0, %p3983_p13 }
  0x1a   : > { %p3986_p2 = pneg %p3985_p1 }
  0x1c   : > { %p3993_p8 = pnand %p3992_p7, %p3986_p2 }
  0x1e   : > { %3996 = shalt.err (!%p3993_p8)
}
  0x1f   : > { %s4084_s7 = smov [#allocation5]   ;;  %s3997_s8 = scalar_lea.vmem %s142_s30, 16 }
  0x20   : > { %3900 = dma.vmem_to_smem (!%p4181_p12), %s131_s27, 48, %s4084_s7, [#allocation7]  }
  0x21   : > { %p3998_p11 = scmp.ne.s32.totalorder %s142_s30, %s3997_s8  ;;  %p4005_p5 = scmp.lt.s32.totalorder %s142_s30, %s142_s30 }
  0x22   : > { %p4006_p13 = scmp.lt.s32.totalorder %s3997_s8, %s3997_s8 }
  0x23   : > { %p4000_p9 = pnand %p3998_p11, %p3984_p0 }
  0x24   : > { %p4007_p1 = por %p4006_p13, %p4005_p5 }
  0x25   : > { %p4001_p6 = pneg %p4000_p9 }
  0x27   : > { %p4008_p10 = pnand %p4007_p1, %p4001_p6 }
  0x29   : > { %4011 = shalt.err (!%p4008_p10)
}
  0x2a   : > { %s4085_s9 = smov [#allocation8]   ;;  %p5792_p2 = scmp.ne.s32.totalorder %s5790_s24, 0 }
  0x2b   : > { %3903 = dma.vmem_to_smem (!%p4181_p12), %s142_s30, 16, %s4085_s9, [#allocation9]  }
  0x2c   : > { %162 = sbr.rel (%p5792_p2) target bundleno = 1393 (0x571), region = 32  ;;  %p5793_p3 = scmp.eq.s32.totalorder (!%p5792_p2), %s4139_s16, 0 }
  0x33   : > { %4057 = dma.done.wait (%p5793_p3), [#allocation7], 48   ;;  %p5794_p4 = pmov %p5793_p3 }
  0x34   : > { %p5795_p9 = pmov %p5793_p3 }
  0x35   : > { %4059 = vsyncadd (%p5794_p4), [#allocation7], 4294967248 }
  0x36   : > { %4061 = dma.done.wait (%p5795_p9), [#allocation9], 16   ;;  %p5796_p5 = pmov %p5793_p3 }
  0x38   : > { %4063 = vsyncadd (%p5796_p5), [#allocation9], 4294967280 }
  0x39   : > { %172 = sfence }
  0x3a   : > { %p191_p6 = scmp.lt.s32.totalorder %s4139_s16, 1  ;;  %vm283_vm0 = vcmask 174080   ;;  %vm288_vm1 = vcmask 23552   ;;  %vm290_vm2 = vcmask 17408   ;;  %v4086_v0 = vmov 0.0   ;;  %s4087_s24 = smov 3  }
  0x3b   : > { %284 = vst.msk [vmem:[#allocation2] sm:$0x7] %vm283_vm0, %v4086_v0  ;;  %286 = vst.msk [vmem:[#allocation2 + $0x7] sm:$0x7] %vm283_vm0, %v4086_v0  ;;  %vm294_vm3 = vcmask 179352   ;;  %vm296_vm4 = vcmask 173208  }
  0x3c   : > { %s4209_s10 = scalar_select %p191_p6, %s4139_s16, 1  ;;  %1121 = vst.msk [vmem:[#allocation3 + $0x17] sm:$0x7] %vm283_vm0, %v4086_v0  ;;  %285 = vst.msk [vmem:[#allocation2 + $0x10] sm:$0x7] %vm283_vm0, %v4086_v0  ;;  %vm204_vm5 = vcmask 130048  }
  0x3d   : > { %287 = vst.msk [vmem:[#allocation2 + $0x17] sm:$0x7] %vm283_vm0, %v4086_v0  ;;  %1118 = vst.msk [vmem:[#allocation3] sm:$0x7] %vm283_vm0, %v4086_v0  ;;  %vm304_vm6 = vcmask 1041409   ;;  %vm306_vm7 = vcmask 1042434  }
  0x3e   : > { %1119 = vst.msk [vmem:[#allocation3 + $0x10] sm:$0x7] %vm283_vm0, %v4086_v0  ;;  %1120 = vst.msk [vmem:[#allocation3 + $0x7] sm:$0x7] %vm283_vm0, %v4086_v0  ;;  %s3885_s11 = sshll.u32 %s4209_s10, 6  ;;  %vm308_vm8 = vcmask 1043459  }
  0x3f   : > { %2097 = vst.msk [vmem:[#allocation4] sm:$0x7] %vm283_vm0, %v4086_v0  ;;  %2098 = vst.msk [vmem:[#allocation4 + $0x18] sm:$0x7] %vm283_vm0, %v4086_v0  ;;  %s4287_s20 = scalar_lea.vmem %s5781_s0, %s3885_s11  ;;  %vm313_vm9 = vcmask 150552   ;;  %s3583_s25 = sld [smem:[#allocation5 + $0x3]] }
  0x40   : > { %2099 = vst.msk [vmem:[#allocation4 + $0x13] sm:$0x7] %vm283_vm0, %v4086_v0  ;;  %2100 = vst.msk [vmem:[#allocation4 + $0x2b] sm:$0x7] %vm283_vm0, %v4086_v0  ;;  %v196_v1 = vld [vmem:[%s4287_s20] sm:$0xff]  ;;  %v197_v2 = vld [vmem:[%s4287_s20 + $0x8] sm:$0xff] }
  0x41   : > { %2102 = vst.msk [vmem:[#allocation4 + $0x8] sm:$0xff] %vm288_vm1, %v4086_v0  ;;  %2106 = vst.msk [vmem:[#allocation4 + $0x20] sm:$0xff] %vm288_vm1, %v4086_v0  ;;  %v198_v3 = vld [vmem:[%s4287_s20 + $0x10] sm:$0xff]  ;;  %v199_v4 = vld [vmem:[%s4287_s20 + $0x18] sm:$0xff]  ;;  %v4296_v7 = vsel %vm204_vm5, %v196_v1, -inf  ;;  %v4299_v8 = vsel %vm204_vm5, %v197_v2, -inf }
  0x42   : > { %289 = vst.msk [vmem:[#allocation2] sm:$0xff] %vm288_vm1, %v4086_v0  ;;  %292 = vst.msk [vmem:[#allocation2 + $0x10] sm:$0xff] %vm288_vm1, %v4086_v0  ;;  %v200_v5 = vld [vmem:[%s4287_s20 + $0x20] sm:$0xff]  ;;  %v201_v6 = vld [vmem:[%s4287_s20 + $0x28] sm:$0xff]  ;;  %v4302_v9 = vsel %vm204_vm5, %v198_v3, -inf  ;;  %v207_v12 = vmax.f32 %v4296_v7, %v4299_v8  ;;  %v4309_v13 = vsel %vm204_vm5, %v199_v4, -inf }
  0x43   : > { %291 = vst.msk [vmem:[#allocation2 + $0x8] sm:$0x3] %vm290_vm2, %v4086_v0  ;;  %1125 = vst.msk [vmem:[#allocation3 + $0x18] sm:$0x3] %vm290_vm2, %v4086_v0  ;;  %v202_v10 = vld [vmem:[%s4287_s20 + $0x30] sm:$0xff]  ;;  %v203_v11 = vld [vmem:[%s4287_s20 + $0x38] sm:$0xff]  ;;  %v216_v16 = vmax.f32 %v4302_v9, %v4309_v13 }
  0x44   : > { %293 = vst.msk [vmem:[#allocation2 + $0x18] sm:$0x3] %vm290_vm2, %v4086_v0  ;;  %1123 = vst.msk [vmem:[#allocation3 + $0x8] sm:$0x3] %vm290_vm2, %v4086_v0  ;;  %v4312_v14 = vsel %vm204_vm5, %v200_v5, -inf  ;;  %v4315_v15 = vsel %vm204_vm5, %v201_v6, -inf }
  0x45   : > { %1122 = vst.msk [vmem:[#allocation3] sm:$0xff] %vm288_vm1, %v4086_v0  ;;  %1124 = vst.msk [vmem:[#allocation3 + $0x10] sm:$0xff] %vm288_vm1, %v4086_v0  ;;  %v225_v17 = vmax.f32 %v4312_v14, %v4315_v15  ;;  %v4322_v18 = vsel %vm204_vm5, %v202_v10, -inf  ;;  %v4325_v19 = vsel %vm204_vm5, %v203_v11, -inf  ;;  %v208_v20 = vrot.slane %v207_v12, 4  ;;  %s3581_s26 = sld [smem:[#allocation5 + $0x1]] }
  0x46   : > { %2101 = vst.msk [vmem:[#allocation4] sm:$0xff] %vm288_vm1, %v4086_v0  ;;  %2105 = vst.msk [vmem:[#allocation4 + $0x18] sm:$0xff] %vm288_vm1, %v4086_v0  ;;  %v234_v21 = vmax.f32 %v4322_v18, %v4325_v19  ;;  %v4330_v22 = vsel %vm204_vm5, %v196_v1, 0.0  ;;  %v4333_v23 = vsel %vm204_vm5, %v197_v2, 0.0  ;;  %v217_v24 = vrot.slane %v216_v16, 4  ;;  %s3585_s27 = sld [smem:[#allocation5 + $0x5]] }
  0x47   : > { %2109 = vst.msk [vmem:[#allocation4 + $0x8] sm:$0xff] %vm294_vm3, %v4086_v0  ;;  %2113 = vst.msk [vmem:[#allocation4 + $0x20] sm:$0xff] %vm294_vm3, %v4086_v0  ;;  %v226_v25 = vrot.slane %v225_v17, 4  ;;  %v243_v26 = vadd.f32 %v4333_v23, %v4330_v22  ;;  %v4338_v27 = vsel %vm204_vm5, %v198_v3, 0.0  ;;  %v209_v28 = vmax.f32 %v207_v12, %v208_v20  ;;  %s3582_s28 = sld [smem:[#allocation5 + $0x2]]  ;;  %s3588_s29 = sld [smem:[#allocation5 + $0x8]] }
  0x48   : > { %295 = vst.msk [vmem:[#allocation2] sm:$0xff] %vm294_vm3, %v4086_v0  ;;  %298 = vst.msk [vmem:[#allocation2 + $0x10] sm:$0xff] %vm294_vm3, %v4086_v0  ;;  %v235_v29 = vrot.slane %v234_v21, 4  ;;  %v4341_v30 = vsel %vm204_vm5, %v199_v4, 0.0  ;;  %v4344_v31 = vsel %vm204_vm5, %v200_v5, 0.0  ;;  %v218_v32 = vmax.f32 %v216_v16, %v217_v24  ;;  %s3584_s30 = sld [smem:[#allocation5 + $0x4]] }
  0x49   : > { %297 = vst.msk [vmem:[#allocation2 + $0x8] sm:$0x3] %vm296_vm4, %v4086_v0  ;;  %1129 = vst.msk [vmem:[#allocation3 + $0x18] sm:$0x3] %vm296_vm4, %v4086_v0  ;;  %v227_v33 = vmax.f32 %v225_v17, %v226_v25  ;;  %v244_v34 = vrot.slane %v243_v26, 4  ;;  %v252_v35 = vadd.f32 %v4341_v30, %v4338_v27  ;;  %v210_v36 = vrot.slane %v209_v28, 2 }
  0x4a   : > { %299 = vst.msk [vmem:[#allocation2 + $0x18] sm:$0x3] %vm296_vm4, %v4086_v0  ;;  %1127 = vst.msk [vmem:[#allocation3 + $0x8] sm:$0x3] %vm296_vm4, %v4086_v0  ;;  %v236_v37 = vmax.f32 %v234_v21, %v235_v29  ;;  %v4349_v38 = vsel %vm204_vm5, %v201_v6, 0.0  ;;  %v4352_v39 = vsel %vm204_vm5, %v202_v10, 0.0 }
  0x4b   : > { %1126 = vst.msk [vmem:[#allocation3] sm:$0xff] %vm294_vm3, %v4086_v0  ;;  %1128 = vst.msk [vmem:[#allocation3 + $0x10] sm:$0xff] %vm294_vm3, %v4086_v0  ;;  %v219_v40 = vrot.slane %v218_v32, 2  ;;  %v228_v41 = vrot.slane %v227_v33, 2  ;;  %v245_v42 = vadd.f32 %v244_v34, %v243_v26  ;;  %v253_v43 = vrot.slane %v252_v35, 4  ;;  %s3590_s4 = sld [smem:[#allocation5 + $0xa]] }
  0x4c   : > { %2108 = vst.msk [vmem:[#allocation4] sm:$0xff] %vm294_vm3, %v4086_v0  ;;  %2112 = vst.msk [vmem:[#allocation4 + $0x18] sm:$0xff] %vm294_vm3, %v4086_v0  ;;  %v211_v44 = vmax.f32 %v209_v28, %v210_v36  ;;  %v237_v45 = vrot.slane %v236_v37, 2  ;;  %v261_v46 = vadd.f32 %v4349_v38, %v4344_v31  ;;  %v4357_v47 = vsel %vm204_vm5, %v203_v11, 0.0  ;;  %s4088_s5 = smov 125   ;;  %s3586_s6 = sld [smem:[#allocation5 + $0x6]] }
  0x4d   : > { %v220_v48 = vmax.f32 %v218_v32, %v219_v40  ;;  %v229_v49 = vmax.f32 %v227_v33, %v228_v41  ;;  %v246_v50 = vrot.slane %v245_v42, 2  ;;  %v254_v51 = vadd.f32 %v253_v43, %v252_v35  ;;  %s4089_s7 = smov 127   ;;  %s3592_s8 = sld [smem:[#allocation5 + $0xc]] }
  0x4e   : > { %v212_v52 = vrot.slane %v211_v44, 1  ;;  %v238_v53 = vmax.f32 %v236_v37, %v237_v45  ;;  %v262_v54 = vrot.slane %v261_v46, 4  ;;  %v270_v55 = vadd.f32 %v4357_v47, %v4352_v39  ;;  %s4090_s9 = smov 123   ;;  %s3589_s10 = sld [smem:[#allocation5 + $0x9]] }
  0x4f   : > { %v221_v56 = vrot.slane %v220_v48, 1  ;;  %v230_v57 = vrot.slane %v229_v49, 1  ;;  %v247_v58 = vadd.f32 %v246_v50, %v245_v42  ;;  %v255_v59 = vrot.slane %v254_v51, 2  ;;  %s4091_s11 = smov 126   ;;  %s3595_s17 = sld [smem:[#allocation5 + $0xf]] }
  0x50   : > { %v213_v60 = vmax.f32 %v211_v44, %v212_v52  ;;  %v239_v61 = vrot.slane %v238_v53, 1  ;;  %v263_v62 = vadd.f32 %v262_v54, %v261_v46  ;;  %v271_v63 = vrot.slane %v270_v55, 4  ;;  %s3591_s19 = sld [smem:[#allocation5 + $0xb]]  ;;  %p5797_p12 = scmp.ne.s32.totalorder %s5788_s22, 0 }
  0x51   : > { %v222_v1 = vmax.f32 %v220_v48, %v221_v56  ;;  %v231_v2 = vmax.f32 %v229_v49, %v230_v57  ;;  %v248_v3 = vrot.slane %v247_v58, 1  ;;  %v256_v4 = vadd.f32 %v255_v59, %v254_v51 }
  0x52   : > { %v240_v5 = vmax.f32 %v238_v53, %v239_v61  ;;  %v264_v6 = vrot.slane %v263_v62, 2  ;;  %v272_v10 = vadd.f32 %v271_v63, %v270_v55  ;;  %v349_v44 = vstv %s3583_s25  ;;  %s4092_s25 = smov 124  }
  0x53   : > { %v305_v11 = vsel %vm304_vm6, %v222_v1, %v213_v60  ;;  %v249_v12 = vadd.f32 %v248_v3, %v247_v58  ;;  %v257_v16 = vrot.slane %v256_v4, 1  ;;  %v333_v45 = vstv %s3581_s26  ;;  %s3597_s26 = sld [smem:[#allocation5 + $0x11]] }
  0x54   : > { %v307_v17 = vsel %vm306_vm7, %v231_v2, %v305_v11  ;;  %v265_v20 = vadd.f32 %v264_v6, %v263_v62  ;;  %v273_v21 = vrot.slane %v272_v10, 2  ;;  %v365_v51 = vstv %s3585_s27  ;;  %s3593_s27 = sld [smem:[#allocation5 + $0xd]] }
  0x55   : > { %v309_v24 = vsel %vm308_vm8, %v240_v5, %v307_v17  ;;  %v258_v25 = vadd.f32 %v257_v16, %v256_v4  ;;  %v278_v26 = vmul.f32 0.0625, %v249_v12  ;;  %v341_v52 = vstv %s3582_s28  ;;  %s4093_s28 = smov 122  }
  0x56   : > { %310 = vrot.lane.b32.xlu0 %v309_v24, %s4087_s24  ;;  %v266_v28 = vrot.slane %v265_v20, 1  ;;  %v274_v29 = vadd.f32 %v273_v21, %v272_v10  ;;  %v386_v56 = vstv %s3588_s29  ;;  %v357_v57 = vstv %s3584_s30  ;;  %s3599_s29 = sld [smem:[#allocation5 + $0x13]]  ;;  %s3596_s30 = sld [smem:[#allocation5 + $0x10]] }
  0x57   : > { %v279_v32 = vmul.f32 0.0625, %v258_v25  ;;  %v402_v60 = vstv %s3590_s4  ;;  %v373_v61 = vstv %s3586_s6  ;;  %v418_v1 = vstv %s3592_s8  ;;  %s3602_s4 = sld [smem:[#allocation5 + $0x16]]  ;;  %s3598_s6 = sld [smem:[#allocation5 + $0x12]] }
  0x58   : > { %v267_v33 = vadd.f32 %v266_v28, %v265_v20  ;;  %v275_v34 = vrot.slane %v274_v29, 1  ;;  %v394_v2 = vstv %s3589_s10  ;;  %v439_v6 = vstv %s3595_s17  ;;  %s3604_s8 = sld [smem:[#allocation5 + $0x18]]  ;;  %s3600_s10 = sld [smem:[#allocation5 + $0x14]] }
  0x59   : > { %v319_v35 = vsel %vm304_vm6, %v279_v32, %v278_v26  ;;  %v410_v10 = vstv %s3591_s19  ;;  %v455_v16 = vstv %s3597_s26  ;;  %s3606_s17 = sld [smem:[#allocation5 + $0x1a]]  ;;  %s3603_s19 = sld [smem:[#allocation5 + $0x17]]  ;;  %vm1150_vm10 = vcmask 154712  }
  0x5a   : > { %v276_v36 = vadd.f32 %v275_v34, %v274_v29  ;;  %v280_v37 = vmul.f32 0.0625, %v267_v33  ;;  %v426_v17 = vstv %s3593_s27  ;;  %s3609_s26 = sld [smem:[#allocation5 + $0x1d]]  ;;  %s3605_s27 = sld [smem:[#allocation5 + $0x19]]  ;;  %vm2103_vm11 = vcmask 21504  }
  0x5b   : > { %2104 = vst.msk [vmem:[#allocation4 + $0x10] sm:$0x3f] %vm2103_vm11, %v4086_v0  ;;  %vm2110_vm12 = vcmask 177304   ;;  %2107 = vst.msk [vmem:[#allocation4 + $0x28] sm:$0x3f] %vm2103_vm11, %v4086_v0  ;;  %vm2123_vm13 = vcmask 154648  }
  0x5c   : > { %v281_v40 = vmul.f32 0.0625, %v276_v36  ;;  %v320_v41 = vsel %vm306_vm7, %v280_v37, %v319_v35  ;;  %v471_v24 = vstv %s3599_s29  ;;  %v447_v25 = vstv %s3596_s30  ;;  %s3611_s29 = sld [smem:[#allocation5 + $0x1f]]  ;;  %s3607_s30 = sld [smem:[#allocation5 + $0x1b]]  ;;  %2111 = vst.msk [vmem:[#allocation4 + $0x10] sm:$0x3f] %vm2110_vm12, %v4086_v0 }
  0x5d   : > { %v492_v32 = vstv %s3602_s4  ;;  %v463_v33 = vstv %s3598_s6  ;;  %s3613_s4 = sld [smem:[#allocation5 + $0x21]]  ;;  %s3610_s6 = sld [smem:[#allocation5 + $0x1e]]  ;;  %2114 = vst.msk [vmem:[#allocation4 + $0x28] sm:$0x3f] %vm2110_vm12, %v4086_v0 }
  0x5e   : > { %v321_v42 = vsel %vm308_vm8, %v281_v40, %v320_v41  ;;  %v508_v36 = vstv %s3604_s8  ;;  %v479_v37 = vstv %s3600_s10  ;;  %s3616_s8 = sld [smem:[#allocation5 + $0x24]]  ;;  %s3612_s10 = sld [smem:[#allocation5 + $0x20]] }
  0x5f   : > { %322 = vrot.lane.b32.xlu0 %v321_v42, %s4087_s24  ;;  %v524_v42 = vstv %s3606_s17  ;;  %s3618_s17 = sld [smem:[#allocation5 + $0x26]] }
  0xc8   : > { %v311_v43 = vpop.permute.xlu0 %310 }
  0xc9   : > { %314 = vst.msk [vmem:[#allocation2 + $0x3] sm:$0xf] %vm313_vm9, %v311_v43  ;;  %v500_v43 = vstv %s3603_s19  ;;  %s3614_s19 = sld [smem:[#allocation5 + $0x22]] }
  0xd0   : > { %v4370_v46 = vld [vmem:[#allocation2] sm:$0xf] }
  0xd1   : > { %v350_v48 = vmul.f32 %v349_v44, %v4370_v46  ;;  %v323_v49 = vpop.permute.xlu0 %322  ;;  %v334_v50 = vmul.f32 %v333_v45, %v4370_v46  ;;  %v366_v53 = vmul.f32 %v365_v51, %v4370_v46  ;;  %v4378_v54 = vld [vmem:[#allocation2 + $0x1] sm:$0xf]  ;;  %v342_v55 = vmul.f32 %v341_v52, %v4370_v46 }
  0xd2   : > { %326 = vst.msk [vmem:[#allocation2 + $0x13] sm:$0xf] %vm313_vm9, %v323_v49  ;;  %v387_v58 = vmul.f32 %v386_v56, %v4378_v54  ;;  %v358_v59 = vmul.f32 %v357_v57, %v4370_v46  ;;  %v403_v62 = vmul.f32 %v402_v60, %v4378_v54  ;;  %v374_v63 = vmul.f32 %v373_v61, %v4370_v46  ;;  %v4392_v4 = vld [vmem:[#allocation2 + $0x2] sm:$0xf] }
  0xd3   : > { %352 = vrot.lane.b32.xlu0 %v350_v48, %s4088_s5  ;;  %336 = vrot.lane.b32.xlu1 %v334_v50, %s4089_s7  ;;  %v419_v3 = vmul.f32 %v418_v1, %v4378_v54  ;;  %v395_v5 = vmul.f32 %v394_v2, %v4378_v54  ;;  %v440_v11 = vmul.f32 %v439_v6, %v4392_v4  ;;  %v4407_v29 = vld [vmem:[#allocation2 + $0x3] sm:$0xf]  ;;  %v545_v49 = vstv %s3609_s26  ;;  %s3620_s26 = sld [smem:[#allocation5 + $0x28]] }
  0xd4   : > { %v411_v12 = vmul.f32 %v410_v10, %v4378_v54  ;;  %v456_v20 = vmul.f32 %v455_v16, %v4392_v4  ;;  %v427_v21 = vmul.f32 %v426_v17, %v4378_v54  ;;  %v472_v26 = vmul.f32 %v471_v24, %v4392_v4  ;;  %v4421_v48 = vld [vmem:[#allocation2 + $0x4] sm:$0xf] }
  0xd5   : > { %v448_v28 = vmul.f32 %v447_v25, %v4392_v4  ;;  %v493_v34 = vmul.f32 %v492_v32, %v4407_v29  ;;  %v464_v35 = vmul.f32 %v463_v33, %v4392_v4  ;;  %v509_v40 = vmul.f32 %v508_v36, %v4407_v29 }
  0xd6   : > { %v480_v41 = vmul.f32 %v479_v37, %v4392_v4  ;;  %v525_v44 = vmul.f32 %v524_v42, %v4407_v29  ;;  %v501_v45 = vmul.f32 %v500_v43, %v4407_v29  ;;  %v516_v50 = vstv %s3605_s27  ;;  %s3617_s27 = sld [smem:[#allocation5 + $0x25]] }
  0xd7   : > { %368 = vrot.lane.b32.xlu0 %v366_v53, %s4090_s9  ;;  %344 = vrot.lane.b32.xlu1 %v342_v55, %s4091_s11  ;;  %v546_v51 = vmul.f32 %v545_v49, %v4421_v48  ;;  %v517_v52 = vmul.f32 %v516_v50, %v4407_v29  ;;  %v561_v53 = vstv %s3611_s29  ;;  %v532_v55 = vstv %s3607_s30  ;;  %s3623_s29 = sld [smem:[#allocation5 + $0x2b]]  ;;  %s3619_s30 = sld [smem:[#allocation5 + $0x27]] }
  0xd8   : > { %v562_v56 = vmul.f32 %v561_v53, %v4421_v48  ;;  %v533_v57 = vmul.f32 %v532_v55, %v4407_v29  ;;  %v569_v1 = vstv %s3612_s10  ;;  %v585_v6 = vstv %s3614_s19  ;;  %s3624_s10 = sld [smem:[#allocation5 + $0x2c]]  ;;  %s3626_s19 = sld [smem:[#allocation5 + $0x2e]] }
  0xdb   : > { %389 = vrot.lane.b32.xlu0 %v387_v58, %s4089_s7  ;;  %360 = vrot.lane.b32.xlu1 %v358_v59, %s4092_s25  ;;  %v577_v58 = vstv %s3613_s4  ;;  %v553_v59 = vstv %s3610_s6  ;;  %s3625_s4 = sld [smem:[#allocation5 + $0x2d]]  ;;  %s3621_s6 = sld [smem:[#allocation5 + $0x29]] }
  0xdc   : > { %v578_v60 = vmul.f32 %v577_v58, %v4421_v48  ;;  %v554_v61 = vmul.f32 %v553_v59, %v4421_v48  ;;  %v606_v16 = vstv %s3617_s27  ;;  %s3628_s27 = sld [smem:[#allocation5 + $0x30]]  ;;  %v4477_v59 = vld [vmem:[#allocation2 + $0x11] sm:$0xf] }
  0xdd   : > { %v651_v24 = vstv %s3623_s29  ;;  %v622_v25 = vstv %s3619_s30  ;;  %s3634_s29 = sld [smem:[#allocation5 + $0x36]]  ;;  %s3631_s30 = sld [smem:[#allocation5 + $0x33]] }
  0xde   : > { %v659_v37 = vstv %s3624_s10  ;;  %s3635_s10 = sld [smem:[#allocation5 + $0x37]] }
  0xdf   : > { %405 = vrot.lane.b32.xlu0 %v403_v62, %s4088_s5  ;;  %376 = vrot.lane.b32.xlu1 %v374_v63, %s4093_s28  ;;  %v4435_v62 = vld [vmem:[#allocation2 + $0x5] sm:$0xf]  ;;  %v598_v63 = vstv %s3616_s8  ;;  %s3627_s8 = sld [smem:[#allocation5 + $0x2f]] }
  0xe0   : > { %v599_v2 = vmul.f32 %v598_v63, %v4435_v62 }
  0xe1   : > { %v667_v32 = vstv %s3625_s4  ;;  %v638_v33 = vstv %s3621_s6  ;;  %s3637_s4 = sld [smem:[#allocation5 + $0x39]]  ;;  %s3633_s6 = sld [smem:[#allocation5 + $0x35]] }
  0xe3   : > { %421 = vrot.lane.b32.xlu0 %v419_v3, %s4090_s9  ;;  %397 = vrot.lane.b32.xlu1 %v395_v5, %s4091_s11  ;;  %v570_v3 = vmul.f32 %v569_v1, %v4421_v48  ;;  %v614_v5 = vstv %s3618_s17  ;;  %s3630_s17 = sld [smem:[#allocation5 + $0x32]]  ;;  %v736_v55 = vstv %s3634_s29 }
  0xe4   : > { %v615_v10 = vmul.f32 %v614_v5, %v4435_v62  ;;  %s3646_s29 = sld [smem:[#allocation5 + $0x42]] }
  0xe5   : > { %v683_v36 = vstv %s3627_s8  ;;  %s3639_s8 = sld [smem:[#allocation5 + $0x3b]] }
  0xe7   : > { %442 = vrot.lane.b32.xlu0 %v440_v11, %s4089_s7  ;;  %413 = vrot.lane.b32.xlu1 %v411_v12, %s4092_s25  ;;  %v586_v11 = vmul.f32 %v585_v6, %v4421_v48  ;;  %v630_v12 = vstv %s3620_s26  ;;  %s3632_s26 = sld [smem:[#allocation5 + $0x34]] }
  0xe8   : > { %v631_v17 = vmul.f32 %v630_v12, %v4435_v62 }
  0xeb   : > { %458 = vrot.lane.b32.xlu0 %v456_v20, %s4088_s5  ;;  %429 = vrot.lane.b32.xlu1 %v427_v21, %s4093_s28  ;;  %v607_v20 = vmul.f32 %v606_v16, %v4435_v62  ;;  %v4449_v21 = vld [vmem:[#allocation2 + $0x6] sm:$0xf] }
  0xec   : > { %v684_v42 = vmul.f32 %v683_v36, %v4449_v21  ;;  %v660_v43 = vmul.f32 %v659_v37, %v4449_v21 }
  0xed   : > { %v720_v49 = vstv %s3632_s26  ;;  %s3644_s26 = sld [smem:[#allocation5 + $0x40]] }
  0xef   : > { %474 = vrot.lane.b32.xlu0 %v472_v26, %s4090_s9  ;;  %450 = vrot.lane.b32.xlu1 %v448_v28, %s4091_s11  ;;  %v652_v26 = vmul.f32 %v651_v24, %v4449_v21  ;;  %v623_v28 = vmul.f32 %v622_v25, %v4435_v62 }
  0xf3   : > { %495 = vrot.lane.b32.xlu0 %v493_v34, %s4089_s7  ;;  %466 = vrot.lane.b32.xlu1 %v464_v35, %s4092_s25  ;;  %v668_v34 = vmul.f32 %v667_v32, %v4449_v21  ;;  %v639_v35 = vmul.f32 %v638_v33, %v4435_v62 }
  0xf7   : > { %511 = vrot.lane.b32.xlu0 %v509_v40, %s4088_s5  ;;  %482 = vrot.lane.b32.xlu1 %v480_v41, %s4093_s28  ;;  %v4461_v40 = vld [vmem:[#allocation2 + $0x10] sm:$0xf]  ;;  %v704_v41 = vstv %s3630_s17  ;;  %s3641_s17 = sld [smem:[#allocation5 + $0x3d]] }
  0xfb   : > { %527 = vrot.lane.b32.xlu0 %v525_v44, %s4090_s9  ;;  %503 = vrot.lane.b32.xlu1 %v501_v45, %s4091_s11  ;;  %v675_v44 = vstv %s3626_s19  ;;  %v705_v45 = vmul.f32 %v704_v41, %v4461_v40  ;;  %s3638_s19 = sld [smem:[#allocation5 + $0x3a]] }
  0xfc   : > { %v676_v50 = vmul.f32 %v675_v44, %v4449_v21 }
  0xff   : > { %548 = vrot.lane.b32.xlu0 %v546_v51, %s4089_s7  ;;  %519 = vrot.lane.b32.xlu1 %v517_v52, %s4092_s25  ;;  %v691_v51 = vstv %s3628_s27  ;;  %v721_v52 = vmul.f32 %v720_v49, %v4461_v40  ;;  %s3640_s27 = sld [smem:[#allocation5 + $0x3c]] }
 0x100   : > { %v692_v53 = vmul.f32 %v691_v51, %v4449_v21 }
 0x103   : > { %564 = vrot.lane.b32.xlu0 %v562_v56, %s4088_s5  ;;  %535 = vrot.lane.b32.xlu1 %v533_v57, %s4093_s28  ;;  %v712_v56 = vstv %s3631_s30  ;;  %v737_v57 = vmul.f32 %v736_v55, %v4461_v40  ;;  %s3642_s30 = sld [smem:[#allocation5 + $0x3e]] }
 0x104   : > { %v713_v58 = vmul.f32 %v712_v56, %v4461_v40 }
 0x105   : > { %v781_v24 = vstv %s3640_s27  ;;  %s4507_s27 = sld [smem:[#allocation5 + $0x4b]] }
 0x107   : > { %580 = vrot.lane.b32.xlu0 %v578_v60, %s4090_s9  ;;  %556 = vrot.lane.b32.xlu1 %v554_v61, %s4091_s11  ;;  %v757_v60 = vstv %s3637_s4  ;;  %v728_v61 = vstv %s3633_s6  ;;  %s3648_s4 = sld [smem:[#allocation5 + $0x44]]  ;;  %s3645_s6 = sld [smem:[#allocation5 + $0x41]] }
 0x108   : > { %v758_v63 = vmul.f32 %v757_v60, %v4477_v59  ;;  %v729_v1 = vmul.f32 %v728_v61, %v4461_v40 }
 0x109   : > { %v797_v32 = vstv %s3642_s30  ;;  %s4515_s30 = sld [smem:[#allocation5 + $0x4e]] }
 0x10b   : > { %601 = vrot.lane.b32.xlu0 %v599_v2, %s4089_s7  ;;  %572 = vrot.lane.b32.xlu1 %v570_v3, %s4092_s25  ;;  %v773_v2 = vstv %s3639_s8  ;;  %v744_v3 = vstv %s3635_s10  ;;  %s3651_s8 = sld [smem:[#allocation5 + $0x47]]  ;;  %s3647_s10 = sld [smem:[#allocation5 + $0x43]] }
 0x10c   : > { %v774_v5 = vmul.f32 %v773_v2, %v4477_v59  ;;  %v745_v6 = vmul.f32 %v744_v3, %v4461_v40 }
 0x10d   : > { %v818_v36 = vstv %s3645_s6  ;;  %s4521_s6 = sld [smem:[#allocation5 + $0x7]] }
 0x10f   : > { %617 = vrot.lane.b32.xlu0 %v615_v10, %s4088_s5  ;;  %588 = vrot.lane.b32.xlu1 %v586_v11, %s4093_s28  ;;  %v789_v10 = vstv %s3641_s17  ;;  %v765_v11 = vstv %s3638_s19  ;;  %s327_s17 = sld [smem:[#allocation5]]  ;;  %s3653_s19 = sld [smem:[#allocation5 + $0x49]] }
 0x110   : > { %v790_v12 = vmul.f32 %v789_v10, %v4477_v59  ;;  %v766_v16 = vmul.f32 %v765_v11, %v4477_v59 }
 0x111   : > { %v834_v44 = vstv %s3647_s10  ;;  %s4531_s10 = sld [smem:[#allocation5 + $0x4c]] }
 0x113   : > { %633 = vrot.lane.b32.xlu0 %v631_v17, %s4090_s9  ;;  %609 = vrot.lane.b32.xlu1 %v607_v20, %s4091_s11  ;;  %v4491_v17 = vld [vmem:[#allocation2 + $0x12] sm:$0xf]  ;;  %v810_v20 = vstv %s3644_s26  ;;  %s3649_s26 = sld [smem:[#allocation5 + $0x45]] }
 0x114   : > { %v811_v25 = vmul.f32 %v810_v20, %v4491_v17  ;;  %v819_v41 = vmul.f32 %v818_v36, %v4491_v17 }
 0x117   : > { %654 = vrot.lane.b32.xlu0 %v652_v26, %s4089_s7  ;;  %625 = vrot.lane.b32.xlu1 %v623_v28, %s4092_s25  ;;  %v782_v26 = vmul.f32 %v781_v24, %v4477_v59  ;;  %v826_v28 = vstv %s3646_s29  ;;  %s4510_s29 = sld [smem:[#allocation5 + $0x48]] }
 0x118   : > { %v827_v33 = vmul.f32 %v826_v28, %v4491_v17 }
 0x119   : > { %v850_v56 = vstv %s3649_s26  ;;  %s4550_s26 = sld [smem:[#allocation5 + $0x55]] }
 0x11b   : > { %670 = vrot.lane.b32.xlu0 %v668_v34, %s4088_s5  ;;  %641 = vrot.lane.b32.xlu1 %v639_v35, %s4093_s28  ;;  %v798_v34 = vmul.f32 %v797_v32, %v4477_v59  ;;  %v842_v35 = vstv %s3648_s4  ;;  %s4519_s4 = sld [smem:[#allocation5 + $0x4a]] }
 0x11c   : > { %v843_v37 = vmul.f32 %v842_v35, %v4491_v17 }
 0x11d   : > { %v871_v2 = vstv %s4510_s29  ;;  %s4559_s29 = sld [smem:[#allocation5 + $0xe]] }
 0x11f   : > { %686 = vrot.lane.b32.xlu0 %v684_v42, %s4090_s9  ;;  %662 = vrot.lane.b32.xlu1 %v660_v43, %s4091_s11  ;;  %v4505_v42 = vld [vmem:[#allocation2 + $0x13] sm:$0xf]  ;;  %v863_v43 = vstv %s3651_s8  ;;  %s4527_s8 = sld [smem:[#allocation5 + $0x50]] }
 0x120   : > { %v872_v11 = vmul.f32 %v871_v2, %v4505_v42 }
 0x121   : > { %v887_v24 = vstv %s4519_s4  ;;  %s4567_s4 = sld [smem:[#allocation5 + $0x53]] }
 0x123   : > { %707 = vrot.lane.b32.xlu0 %v705_v45, %s4089_s7  ;;  %678 = vrot.lane.b32.xlu1 %v676_v50, %s4092_s25  ;;  %v329_v45 = vstv %s327_s17  ;;  %v864_v50 = vmul.f32 %v863_v43, %v4505_v42  ;;  %s4539_s17 = sld [smem:[#allocation5 + $0x52]] }
 0x124   : > { %v330_v55 = vmul.f32 %v329_v45, %v4370_v46 }
 0x125   : > { %v932_v35 = vstv %s4527_s8  ;;  %s4579_s8 = sld [smem:[#allocation5 + $0x56]] }
 0x127   : > { %723 = vrot.lane.b32.xlu0 %v721_v52, %s4088_s5  ;;  %694 = vrot.lane.b32.xlu1 %v692_v53, %s4093_s28  ;;  %v835_v52 = vmul.f32 %v834_v44, %v4491_v17  ;;  %v879_v53 = vstv %s3653_s19  ;;  %s4543_s19 = sld [smem:[#allocation5 + $0x4f]] }
 0x128   : > { %v880_v60 = vmul.f32 %v879_v53, %v4505_v42 }
 0x12b   : > { %739 = vrot.lane.b32.xlu0 %v737_v57, %s4090_s9  ;;  %715 = vrot.lane.b32.xlu1 %v713_v58, %s4091_s11 }
 0x12f   : > { %760 = vrot.lane.b32.xlu0 %v758_v63, %s4089_s7  ;;  %731 = vrot.lane.b32.xlu1 %v729_v1, %s4092_s25  ;;  %v851_v63 = vmul.f32 %v850_v56, %v4491_v17  ;;  %v895_v1 = vstv %s4507_s27  ;;  %s4555_s27 = sld [smem:[#allocation5 + $0x51]] }
 0x133   : > { %776 = vrot.lane.b32.xlu0 %v774_v5, %s4088_s5  ;;  %747 = vrot.lane.b32.xlu1 %v745_v6, %s4093_s28  ;;  %v896_v6 = vmul.f32 %v895_v1, %v4505_v42 }
 0x135   : > { %v940_v1 = vstv %s4555_s27  ;;  %s4604_s27 = sld [smem:[#allocation5 + $0x15]] }
 0x137   : > { %792 = vrot.lane.b32.xlu0 %v790_v12, %s4090_s9  ;;  %768 = vrot.lane.b32.xlu1 %v766_v16, %s4091_s11  ;;  %v4536_v12 = vld [vmem:[#allocation2 + $0x14] sm:$0xf]  ;;  %v916_v16 = vstv %s4515_s30  ;;  %s4563_s30 = sld [smem:[#allocation5 + $0x57]] }
 0x138   : > { %v917_v32 = vmul.f32 %v916_v16, %v4536_v12  ;;  %v933_v45 = vmul.f32 %v932_v35, %v4536_v12 }
 0x13b   : > { %813 = vrot.lane.b32.xlu0 %v811_v25, %s4089_s7  ;;  %784 = vrot.lane.b32.xlu1 %v782_v26, %s4092_s25  ;;  %v382_v25 = vstv %s4521_s6  ;;  %s4575_s6 = sld [smem:[#allocation5 + $0x59]] }
 0x13c   : > { %v383_v36 = vmul.f32 %v382_v25, %v4378_v54  ;;  %v948_v54 = vstv %s4539_s17  ;;  %s4590_s17 = sld [smem:[#allocation5 + $0x58]] }
 0x13d   : > { %v949_v56 = vmul.f32 %v948_v54, %v4536_v12 }
 0x13f   : > { %829 = vrot.lane.b32.xlu0 %v827_v33, %s4088_s5  ;;  %800 = vrot.lane.b32.xlu1 %v798_v34, %s4093_s28  ;;  %v888_v34 = vmul.f32 %v887_v24, %v4505_v42 }
 0x142   : > { %v993_v54 = vstv %s4590_s17  ;;  %s3622_s17 = sld [smem:[#allocation5 + $0x2a]] }
 0x143   : > { %845 = vrot.lane.b32.xlu0 %v843_v37, %s4090_s9  ;;  %821 = vrot.lane.b32.xlu1 %v819_v41, %s4091_s11  ;;  %v903_v41 = vstv %s4531_s10  ;;  %s4586_s10 = sld [smem:[#allocation5 + $0x5c]] }
 0x145   : > { %v353_v49 = vpop.permute.xlu0 %352  ;;  %v337_v51 = vpop.permute.xlu1 %336 }
 0x146   : > { %v339_v57 = vadd.f32 %v337_v51, %v330_v55 }
 0x147   : > { %866 = vrot.lane.b32.xlu0 %v864_v50, %s4089_s7  ;;  %837 = vrot.lane.b32.xlu1 %v835_v52, %s4092_s25  ;;  %v904_v50 = vmul.f32 %v903_v41, %v4505_v42  ;;  %v924_v52 = vstv %s4543_s19  ;;  %s4597_s19 = sld [smem:[#allocation5 + $0x5e]] }
 0x149   : > { %v369_v58 = vpop.permute.xlu0 %368  ;;  %v345_v61 = vpop.permute.xlu1 %344 }
 0x14a   : > { %v347_v46 = vadd.f32 %v345_v61, %v339_v57  ;;  %v969_v61 = vstv %s4550_s26  ;;  %s4601_s26 = sld [smem:[#allocation5 + $0x5a]] }
 0x14b   : > { %882 = vrot.lane.b32.xlu0 %v880_v60, %s4088_s5  ;;  %853 = vrot.lane.b32.xlu1 %v851_v63, %s4093_s28  ;;  %v4572_v60 = vld [vmem:[#allocation2 + $0x15] sm:$0xf] }
 0x14c   : > { %v355_v3 = vadd.f32 %v353_v49, %v347_v46 }
 0x14d   : > { %v390_v5 = vpop.permute.xlu0 %389  ;;  %v361_v10 = vpop.permute.xlu1 %360 }
 0x14e   : > { %v363_v20 = vadd.f32 %v361_v10, %v355_v3  ;;  %v970_v3 = vmul.f32 %v969_v61, %v4572_v60  ;;  %v941_v10 = vmul.f32 %v940_v1, %v4536_v12 }
 0x14f   : > { %898 = vrot.lane.b32.xlu0 %v896_v6, %s4090_s9  ;;  %874 = vrot.lane.b32.xlu1 %v872_v11, %s4091_s11  ;;  %v985_v11 = vstv %s4563_s30  ;;  %s3673_s30 = sld [smem:[#allocation5 + $0x5d]] }
 0x150   : > { %v371_v26 = vadd.f32 %v369_v58, %v363_v20  ;;  %v925_v58 = vmul.f32 %v924_v52, %v4536_v12  ;;  %v956_v20 = vstv %s4567_s4  ;;  %v1009_v61 = vstv %s4601_s26  ;;  %s3675_s4 = sld [smem:[#allocation5 + $0x5f]]  ;;  %s3636_s26 = sld [smem:[#allocation5 + $0x38]] }
 0x151   : > { %v406_v28 = vpop.permute.xlu0 %405  ;;  %v377_v33 = vpop.permute.xlu1 %376 }
 0x152   : > { %v379_v37 = vadd.f32 %v377_v33, %v371_v26  ;;  %v957_v33 = vmul.f32 %v956_v20, %v4536_v12 }
 0x153   : > { %919 = vrot.lane.b32.xlu0 %v917_v32, %s4089_s7  ;;  %890 = vrot.lane.b32.xlu1 %v888_v34, %s4092_s25  ;;  %v1001_v34 = vstv %s4575_s6  ;;  %s3677_s6 = sld [smem:[#allocation5 + $0x61]] }
 0x154   : > { %v384_v43 = vadd.f32 %v383_v36, %v379_v37  ;;  %v977_v36 = vstv %s4579_s8  ;;  %v1002_v41 = vmul.f32 %v1001_v34, %v4572_v60  ;;  %s3608_s8 = sld [smem:[#allocation5 + $0x1c]] }
 0x155   : > { %v422_v44 = vpop.permute.xlu0 %421  ;;  %v398_v49 = vpop.permute.xlu1 %397 }
 0x156   : > { %v392_v51 = vadd.f32 %v390_v5, %v384_v43  ;;  %v435_v5 = vstv %s4559_s29  ;;  %s4611_s29 = sld [smem:[#allocation5 + $0x60]] }
 0x157   : > { %935 = vrot.lane.b32.xlu0 %v933_v45, %s4088_s5  ;;  %906 = vrot.lane.b32.xlu1 %v904_v50, %s4093_s28  ;;  %v436_v24 = vmul.f32 %v435_v5, %v4392_v4  ;;  %v4608_v45 = vld [vmem:[#allocation2 + $0x16] sm:$0xf]  ;;  %v1010_v5 = vmul.f32 %v1009_v61, %v4572_v60 }
 0x158   : > { %v400_v53 = vadd.f32 %v398_v49, %v392_v51  ;;  %v1022_v49 = vstv %s4586_s10  ;;  %s3615_s10 = sld [smem:[#allocation5 + $0x23]] }
 0x159   : > { %v443_v55 = vpop.permute.xlu0 %442  ;;  %v414_v57 = vpop.permute.xlu1 %413 }
 0x15a   : > { %v408_v63 = vadd.f32 %v406_v28, %v400_v53  ;;  %v986_v28 = vmul.f32 %v985_v11, %v4572_v60  ;;  %v1023_v53 = vmul.f32 %v1022_v49, %v4608_v45  ;;  %v541_v49 = vstv %s3608_s8  ;;  %s3682_s8 = sld [smem:[#allocation5 + $0x64]] }
 0x15b   : > { %951 = vrot.lane.b32.xlu0 %v949_v56, %s4090_s9  ;;  %927 = vrot.lane.b32.xlu1 %v925_v58, %s4091_s11  ;;  %v994_v56 = vmul.f32 %v993_v54, %v4572_v60 }
 0x15c   : > { %v416_v46 = vadd.f32 %v414_v57, %v408_v63  ;;  %v1038_v57 = vstv %s4597_s19  ;;  %v488_v63 = vstv %s4604_s27  ;;  %s3629_s19 = sld [smem:[#allocation5 + $0x31]]  ;;  %s3643_s27 = sld [smem:[#allocation5 + $0x3f]] }
 0x15d   : > { %v459_v2 = vpop.permute.xlu0 %458  ;;  %v430_v6 = vpop.permute.xlu1 %429 }
 0x15e   : > { %v424_v16 = vadd.f32 %v422_v44, %v416_v46  ;;  %v978_v44 = vmul.f32 %v977_v36, %v4572_v60 }
 0x15f   : > { %972 = vrot.lane.b32.xlu0 %v970_v3, %s4089_s7  ;;  %943 = vrot.lane.b32.xlu1 %v941_v10, %s4092_s25  ;;  %v489_v10 = vmul.f32 %v488_v63, %v4407_v29 }
 0x160   : > { %v432_v25 = vadd.f32 %v430_v6, %v424_v16  ;;  %v1054_v6 = vstv %s4611_s29  ;;  %v1030_v16 = vstv %s3673_s30  ;;  %s3650_s29 = sld [smem:[#allocation5 + $0x46]]  ;;  %s3657_s30 = sld [smem:[#allocation5 + $0x4d]] }
 0x161   : > { %v475_v26 = vpop.permute.xlu0 %474  ;;  %v451_v32 = vpop.permute.xlu1 %450 }
 0x162   : > { %v437_v35 = vadd.f32 %v436_v24, %v432_v25  ;;  %v1055_v25 = vmul.f32 %v1054_v6, %v4608_v45  ;;  %v594_v6 = vstv %s3615_s10  ;;  %s3681_s10 = sld [smem:[#allocation5 + $0x63]] }
 0x163   : > { %988 = vrot.lane.b32.xlu0 %v986_v28, %s4088_s5  ;;  %959 = vrot.lane.b32.xlu1 %v957_v33, %s4093_s28  ;;  %v1031_v28 = vmul.f32 %v1030_v16, %v4608_v45  ;;  %v1046_v33 = vstv %s3675_s4  ;;  %v595_v16 = vmul.f32 %v594_v6, %v4435_v62  ;;  %s3664_s4 = sld [smem:[#allocation5 + $0x54]] }
 0x164   : > { %v445_v4 = vadd.f32 %v443_v55, %v437_v35  ;;  %v1047_v36 = vmul.f32 %v1046_v33, %v4608_v45 }
 0x165   : > { %v496_v37 = vpop.permute.xlu0 %495  ;;  %v467_v43 = vpop.permute.xlu1 %466 }
 0x166   : > { %v453_v50 = vadd.f32 %v451_v32, %v445_v4 }
 0x167   : > { %1004 = vrot.lane.b32.xlu0 %v1002_v41, %s4090_s9  ;;  %980 = vrot.lane.b32.xlu1 %v978_v44, %s4091_s11  ;;  %v1062_v41 = vstv %s3677_s6  ;;  %s3671_s6 = sld [smem:[#allocation5 + $0x5b]] }
 0x168   : > { %v461_v51 = vadd.f32 %v459_v2, %v453_v50  ;;  %v1039_v2 = vmul.f32 %v1038_v57, %v4608_v45 }
 0x169   : > { %v512_v52 = vpop.permute.xlu0 %511  ;;  %v483_v55 = vpop.permute.xlu1 %482 }
 0x16a   : > { %v469_v58 = vadd.f32 %v467_v43, %v461_v51  ;;  %v542_v51 = vmul.f32 %v541_v49, %v4421_v48 }
 0x16b   : > { %1025 = vrot.lane.b32.xlu0 %v1023_v53, %s4089_s7  ;;  %996 = vrot.lane.b32.xlu1 %v994_v56, %s4092_s25 }
 0x16c   : > { %v477_v1 = vadd.f32 %v475_v26, %v469_v58 }
 0x16d   : > { %v528_v46 = vpop.permute.xlu0 %527  ;;  %v504_v3 = vpop.permute.xlu1 %503 }
 0x16e   : > { %v485_v11 = vadd.f32 %v483_v55, %v477_v1 }
 0x16f   : > { %1041 = vrot.lane.b32.xlu0 %v1039_v2, %s4088_s5  ;;  %1012 = vrot.lane.b32.xlu1 %v1010_v5, %s4093_s28 }
 0x170   : > { %v490_v20 = vadd.f32 %v489_v10, %v485_v11 }
 0x171   : > { %v549_v24 = vpop.permute.xlu0 %548  ;;  %v520_v26 = vpop.permute.xlu1 %519 }
 0x172   : > { %v498_v32 = vadd.f32 %v496_v37, %v490_v20  ;;  %v1063_v37 = vmul.f32 %v1062_v41, %v4608_v45 }
 0x173   : > { %1057 = vrot.lane.b32.xlu0 %v1055_v25, %s4090_s9  ;;  %1033 = vrot.lane.b32.xlu1 %v1031_v28, %s4091_s11 }
 0x174   : > { %v506_v29 = vadd.f32 %v504_v3, %v498_v32 }
 0x175   : > { %v565_v34 = vpop.permute.xlu0 %564  ;;  %v536_v35 = vpop.permute.xlu1 %535 }
 0x176   : > { %v514_v4 = vadd.f32 %v512_v52, %v506_v29 }
 0x177   : > { %1049 = vrot.lane.b32.xlu1 %v1047_v36, %s4092_s25  ;;  %v647_v36 = vstv %s3622_s17  ;;  %s3685_s17 = sld [smem:[#allocation5 + $0x67]] }
 0x178   : > { %v522_v43 = vadd.f32 %v520_v26, %v514_v4  ;;  %v648_v62 = vmul.f32 %v647_v36, %v4449_v21 }
 0x179   : > { %v581_v44 = vpop.permute.xlu0 %580  ;;  %v557_v50 = vpop.permute.xlu1 %556 }
 0x17a   : > { %v530_v54 = vadd.f32 %v528_v46, %v522_v43 }
 0x17b   : > { %1065 = vrot.lane.b32.xlu1 %v1063_v37, %s4093_s28 }
 0x17c   : > { %v538_v53 = vadd.f32 %v536_v35, %v530_v54 }
 0x17d   : > { %v602_v55 = vpop.permute.xlu0 %601  ;;  %v573_v56 = vpop.permute.xlu1 %572 }
 0x17e   : > { %v543_v57 = vadd.f32 %v542_v51, %v538_v53 }
 0x180   : > { %v551_v52 = vadd.f32 %v549_v24, %v543_v57  ;;  %v700_v57 = vstv %s3629_s19  ;;  %s3683_s19 = sld [smem:[#allocation5 + $0x65]] }
 0x181   : > { %v618_v58 = vpop.permute.xlu0 %617  ;;  %v589_v61 = vpop.permute.xlu1 %588 }
 0x182   : > { %v559_v63 = vadd.f32 %v557_v50, %v551_v52 }
 0x184   : > { %v567_v1 = vadd.f32 %v565_v34, %v559_v63 }
 0x185   : > { %v634_v2 = vpop.permute.xlu0 %633  ;;  %v610_v3 = vpop.permute.xlu1 %609 }
 0x186   : > { %v575_v5 = vadd.f32 %v573_v56, %v567_v1  ;;  %v701_v1 = vmul.f32 %v700_v57, %v4461_v40  ;;  %v859_v57 = vstv %s3650_s29  ;;  %s4709_s29 = sld [smem:[#allocation5 + $0x6c]] }
 0x188   : > { %v583_v10 = vadd.f32 %v581_v44, %v575_v5 }
 0x189   : > { %v655_v46 = vpop.permute.xlu0 %654  ;;  %v626_v11 = vpop.permute.xlu1 %625 }
 0x18a   : > { %v591_v48 = vadd.f32 %v589_v61, %v583_v10 }
 0x18c   : > { %v596_v20 = vadd.f32 %v595_v16, %v591_v48  ;;  %v753_v48 = vstv %s3636_s26  ;;  %s4701_s26 = sld [smem:[#allocation5 + $0x6a]] }
 0x18d   : > { %v671_v25 = vpop.permute.xlu0 %670  ;;  %v642_v26 = vpop.permute.xlu1 %641 }
 0x18e   : > { %v604_v28 = vadd.f32 %v602_v55, %v596_v20 }
 0x190   : > { %v612_v24 = vadd.f32 %v610_v3, %v604_v28 }
 0x191   : > { %v687_v32 = vpop.permute.xlu0 %686  ;;  %v663_v33 = vpop.permute.xlu1 %662 }
 0x192   : > { %1077 = vmax.xlane.f32.xlu0 %v4296_v7  ;;  %v620_v29 = vadd.f32 %v618_v58, %v612_v24 }
 0x194   : > { %v628_v34 = vadd.f32 %v626_v11, %v620_v29 }
 0x195   : > { %v708_v35 = vpop.permute.xlu0 %707  ;;  %v679_v4 = vpop.permute.xlu1 %678 }
 0x196   : > { %1081 = vmax.xlane.f32.xlu0 %v4302_v9  ;;  %v636_v41 = vadd.f32 %v634_v2, %v628_v34 }
 0x198   : > { %v644_v43 = vadd.f32 %v642_v26, %v636_v41  ;;  %v754_v26 = vmul.f32 %v753_v48, %v4477_v59 }
 0x199   : > { %v724_v44 = vpop.permute.xlu0 %723  ;;  %v695_v49 = vpop.permute.xlu1 %694 }
 0x19a   : > { %1083 = vmax.xlane.f32.xlu0 %v4309_v13  ;;  %v649_v50 = vadd.f32 %v648_v62, %v644_v43  ;;  %v806_v62 = vstv %s3643_s27  ;;  %s4703_s27 = sld [smem:[#allocation5 + $0x66]] }
 0x19c   : > { %v657_v37 = vadd.f32 %v655_v46, %v649_v50 }
 0x19d   : > { %v716_v54 = vpop.permute.xlu1 %715  ;;  %v740_v51 = vpop.permute.xlu0 %739 }
 0x19e   : > { %1087 = vmax.xlane.f32.xlu0 %v4315_v15  ;;  %v665_v53 = vadd.f32 %v663_v33, %v657_v37 }
 0x19f   : > { %1079 = vmax.xlane.f32.xlu1 %v4299_v8 }
 0x1a0   : > { %v673_v55 = vadd.f32 %v671_v25, %v665_v53 }
 0x1a1   : > { %v732_v56 = vpop.permute.xlu1 %731  ;;  %v761_v52 = vpop.permute.xlu0 %760 }
 0x1a2   : > { %1091 = vmax.xlane.f32.xlu0 %v4325_v19  ;;  %v681_v21 = vadd.f32 %v679_v4, %v673_v55 }
 0x1a3   : > { %1085 = vmax.xlane.f32.xlu1 %v4312_v14 }
 0x1a4   : > { %v689_v58 = vadd.f32 %v687_v32, %v681_v21 }
 0x1a5   : > { %v748_v61 = vpop.permute.xlu1 %747  ;;  %v777_v3 = vpop.permute.xlu0 %776 }
 0x1a6   : > { %1095 = vadd.xlane.f32.xlu0 %v4333_v23  ;;  %v697_v63 = vadd.f32 %v695_v49, %v689_v58  ;;  %v807_v49 = vmul.f32 %v806_v62, %v4491_v17 }
 0x1a7   : > { %1089 = vmax.xlane.f32.xlu1 %v4322_v18 }
 0x1a8   : > { %v702_v2 = vadd.f32 %v701_v1, %v697_v63  ;;  %v860_v63 = vmul.f32 %v859_v57, %v4505_v42 }
 0x1a9   : > { %v769_v5 = vpop.permute.xlu1 %768  ;;  %v793_v16 = vpop.permute.xlu0 %792 }
 0x1aa   : > { %1099 = vadd.xlane.f32.xlu0 %v4341_v30  ;;  %v710_v6 = vadd.f32 %v708_v35, %v702_v2 }
 0x1ab   : > { %1093 = vadd.xlane.f32.xlu1 %v4330_v22 }
 0x1ac   : > { %v718_v10 = vadd.f32 %v716_v54, %v710_v6 }
 0x1ad   : > { %v785_v46 = vpop.permute.xlu1 %784  ;;  %v814_v24 = vpop.permute.xlu0 %813 }
 0x1ae   : > { %1103 = vadd.xlane.f32.xlu0 %v4349_v38  ;;  %v726_v11 = vadd.f32 %v724_v44, %v718_v10 }
 0x1af   : > { %1097 = vadd.xlane.f32.xlu1 %v4338_v27 }
 0x1b0   : > { %v734_v40 = vadd.f32 %v732_v56, %v726_v11 }
 0x1b1   : > { %v801_v20 = vpop.permute.xlu1 %800  ;;  %v830_v35 = vpop.permute.xlu0 %829 }
 0x1b2   : > { %1107 = vadd.xlane.f32.xlu0 %v4357_v47  ;;  %v742_v25 = vadd.f32 %v740_v51, %v734_v40 }
 0x1b3   : > { %1101 = vadd.xlane.f32.xlu1 %v4344_v31 }
 0x1b4   : > { %v750_v28 = vadd.f32 %v748_v61, %v742_v25 }
 0x1b5   : > { %v822_v33 = vpop.permute.xlu1 %821  ;;  %v846_v44 = vpop.permute.xlu0 %845 }
 0x1b6   : > { %v755_v32 = vadd.f32 %v754_v26, %v750_v28 }
 0x1b7   : > { %1105 = vadd.xlane.f32.xlu1 %v4352_v39 }
 0x1b8   : > { %v763_v29 = vadd.f32 %v761_v52, %v755_v32 }
 0x1b9   : > { %v838_v4 = vpop.permute.xlu1 %837  ;;  %v867_v51 = vpop.permute.xlu0 %866 }
 0x1ba   : > { %v771_v34 = vadd.f32 %v769_v5, %v763_v29 }
 0x1bc   : > { %v779_v36 = vadd.f32 %v777_v3, %v771_v34 }
 0x1bd   : > { %v854_v59 = vpop.permute.xlu1 %853  ;;  %v883_v52 = vpop.permute.xlu0 %882 }
 0x1be   : > { %v787_v41 = vadd.f32 %v785_v46, %v779_v36  ;;  %v965_v36 = vstv %s3664_s4  ;;  %s4721_s4 = sld [smem:[#allocation5 + $0x6e]] }
 0x1bf   : > { %v966_v62 = vmul.f32 %v965_v36, %v4572_v60 }
 0x1c0   : > { %v795_v43 = vadd.f32 %v793_v16, %v787_v41  ;;  %v912_v16 = vstv %s3657_s30  ;;  %s4711_s30 = sld [smem:[#allocation5 + $0x68]] }
 0x1c1   : > { %v875_v55 = vpop.permute.xlu1 %874  ;;  %v899_v3 = vpop.permute.xlu0 %898 }
 0x1c2   : > { %v803_v50 = vadd.f32 %v801_v20, %v795_v43  ;;  %v913_v20 = vmul.f32 %v912_v16, %v4536_v12 }
 0x1c4   : > { %v808_v37 = vadd.f32 %v807_v49, %v803_v50 }
 0x1c5   : > { %v891_v61 = vpop.permute.xlu1 %890  ;;  %v920_v46 = vpop.permute.xlu0 %919 }
 0x1c6   : > { %v816_v54 = vadd.f32 %v814_v24, %v808_v37 }
 0x1c8   : > { %v824_v53 = vadd.f32 %v822_v33, %v816_v54 }
 0x1c9   : > { %v907_v5 = vpop.permute.xlu1 %906  ;;  %v936_v26 = vpop.permute.xlu0 %935 }
 0x1ca   : > { %v832_v56 = vadd.f32 %v830_v35, %v824_v53 }
 0x1cc   : > { %v840_v21 = vadd.f32 %v838_v4, %v832_v56 }
 0x1cd   : > { %v928_v40 = vpop.permute.xlu1 %927  ;;  %v952_v33 = vpop.permute.xlu0 %951 }
 0x1ce   : > { %v848_v58 = vadd.f32 %v846_v44, %v840_v21 }
 0x1d0   : > { %v856_v1 = vadd.f32 %v854_v59, %v848_v58 }
 0x1d1   : > { %v944_v24 = vpop.permute.xlu1 %943  ;;  %v973_v41 = vpop.permute.xlu0 %972 }
 0x1d2   : > { %v861_v2 = vadd.f32 %v860_v63, %v856_v1 }
 0x1d4   : > { %v869_v17 = vadd.f32 %v867_v51, %v861_v2 }
 0x1d5   : > { %v960_v34 = vpop.permute.xlu1 %959  ;;  %v989_v50 = vpop.permute.xlu0 %988 }
 0x1d6   : > { %v877_v6 = vadd.f32 %v875_v55, %v869_v17  ;;  %v1018_v55 = vstv %s3671_s6  ;;  %s4727_s6 = sld [smem:[#allocation5 + $0x6b]] }
 0x1d7   : > { %v1019_v57 = vmul.f32 %v1018_v55, %v4608_v45  ;;  %v1248_v55 = vstv %s3682_s8  ;;  %s3695_s8 = sld [smem:[#allocation5 + $0x71]] }
 0x1d8   : > { %v885_v10 = vadd.f32 %v883_v52, %v877_v6 }
 0x1d9   : > { %v981_v44 = vpop.permute.xlu1 %980  ;;  %v1005_v53 = vpop.permute.xlu0 %1004 }
 0x1da   : > { %v893_v11 = vadd.f32 %v891_v61, %v885_v10 }
 0x1dc   : > { %v901_v48 = vadd.f32 %v899_v3, %v893_v11  ;;  %v1138_v3 = vlaneseq }
 0x1dd   : > { %v997_v37 = vpop.permute.xlu1 %996  ;;  %v4665_v60 = vpop.permute.xlu0 %1025 }
 0x1de   : > { %v909_v25 = vadd.f32 %v907_v5, %v901_v48  ;;  %v1139_v6 = vand.u32 127, %v1138_v3  ;;  %v4677_v11 = vshrl.u32 %v1138_v3, 7 }
 0x1e0   : > { %v914_v28 = vadd.f32 %v913_v20, %v909_v25  ;;  %v1140_v45 = vadd.s32 4294967293, %v1139_v6  ;;  %v1145_v16 = vadd.s32 4294967285, %v1139_v6 }
 0x1e1   : > { %v1013_v21 = vpop.permute.xlu1 %1012  ;;  %v4667_v61 = vpop.permute.xlu0 %1041 }
 0x1e2   : > { %v922_v42 = vadd.f32 %v920_v46, %v914_v28  ;;  %v4680_v20 = vsub.s32 %v1140_v45, %v4677_v11  ;;  %v4683_v25 = vsub.s32 %v1145_v16, %v4677_v11  ;;  %v1272_v45 = vstv %s3685_s17  ;;  %s3697_s17 = sld [smem:[#allocation5 + $0x73]] }
 0x1e3   : > { %v1256_v16 = vstv %s3683_s19  ;;  %s3693_s19 = sld [smem:[#allocation5 + $0x6f]] }
 0x1e4   : > { %v930_v32 = vadd.f32 %v928_v40, %v922_v42 }
 0x1e5   : > { %v4669_v63 = vpop.permute.xlu0 %1057  ;;  %v4671_v1 = vpop.permute.xlu1 %1033 }
 0x1e6   : > { %v938_v29 = vadd.f32 %v936_v26, %v930_v32 }
 0x1e8   : > { %v946_v35 = vadd.f32 %v944_v24, %v938_v29 }
 0x1e9   : > { %v4673_v17 = vpop.permute.xlu1 %1049 }
 0x1ea   : > { %v954_v4 = vadd.f32 %v952_v33, %v946_v35 }
 0x1ec   : > { %v962_v43 = vadd.f32 %v960_v34, %v954_v4 }
 0x1ed   : > { %v4675_v46 = vpop.permute.xlu1 %1065 }
 0x1ee   : > { %v967_v49 = vadd.f32 %v966_v62, %v962_v43 }
 0x1f0   : > { %v975_v12 = vadd.f32 %v973_v41, %v967_v49 }
 0x1f2   : > { %v983_v59 = vadd.f32 %v981_v44, %v975_v12 }
 0x1f4   : > { %v991_v54 = vadd.f32 %v989_v50, %v983_v59 }
 0x1f6   : > { %v999_v51 = vadd.f32 %v997_v37, %v991_v54 }
 0x1f8   : > { %v1007_v56 = vadd.f32 %v1005_v53, %v999_v51 }
 0x1fa   : > { %v1015_v52 = vadd.f32 %v1013_v21, %v1007_v56  ;;  %v1240_v56 = vstv %s3681_s10  ;;  %s3691_s10 = sld [smem:[#allocation5 + $0x6d]] }
 0x1fc   : > { %v4663_v58 = vadd.f32 %v1019_v57, %v1015_v52 }
 0x21f   : > { %v1078_v2 = vpop.xlane.xlu0 %1077 }
 0x220   : > { %v1144_v32 = vrot.slane %v1078_v2, %v4680_v20 }
 0x223   : > { %v1082_v5 = vpop.xlane.xlu0 %1081 }
 0x224   : > { %v1155_v33 = vrot.slane %v1082_v5, %v4680_v20 }
 0x227   : > { %v1084_v10 = vpop.xlane.xlu0 %1083 }
 0x228   : > { %v1159_v29 = vrot.slane %v1084_v10, %v4683_v25 }
 0x22a   : > { %v1160_v43 = vsel %vm1150_vm10, %v1159_v29, %v1155_v33 }
 0x22b   : > { %v1088_v40 = vpop.xlane.xlu0 %1087 }
 0x22c   : > { %v1080_v48 = vpop.xlane.xlu1 %1079  ;;  %v1168_v42 = vrot.slane %v1088_v40, %v4683_v25 }
 0x22d   : > { %v1149_v28 = vrot.slane %v1080_v48, %v4683_v25 }
 0x22f   : > { %v1092_v26 = vpop.xlane.xlu0 %1091  ;;  %v1151_v36 = vsel %vm1150_vm10, %v1149_v28, %v1144_v32 }
 0x230   : > { %v1086_v24 = vpop.xlane.xlu1 %1085  ;;  %v1177_v4 = vrot.slane %v1092_v26, %v4683_v25  ;;  %v1179_v49 = vsel %vm304_vm6, %v1160_v43, %v1151_v36  ;;  %v1293_v36 = vstv %s4701_s26  ;;  %s3699_s26 = sld [smem:[#allocation5 + $0x75]] }
 0x231   : > { %v1164_v34 = vrot.slane %v1086_v24, %v4680_v20 }
 0x233   : > { %v1096_v35 = vpop.xlane.xlu0 %1095  ;;  %v1169_v41 = vsel %vm1150_vm10, %v1168_v42, %v1164_v34 }
 0x234   : > { %v1090_v62 = vpop.xlane.xlu1 %1089  ;;  %v1180_v12 = vsel %vm306_vm7, %v1169_v41, %v1179_v49  ;;  %v1110_v57 = vmul.f32 0.0625, %v1096_v35 }
 0x235   : > { %v1173_v44 = vrot.slane %v1090_v62, %v4680_v20 }
 0x236   : > { %v1199_v48 = vrot.slane %v1110_v57, %v4683_v25 }
 0x237   : > { %v1178_v50 = vsel %vm1150_vm10, %v1177_v4, %v1173_v44  ;;  %v1100_v59 = vpop.xlane.xlu0 %1099  ;;  %v1264_v4 = vstv %s4703_s27  ;;  %s3696_s27 = sld [smem:[#allocation5 + $0x72]] }
 0x238   : > { %v1181_v37 = vsel %vm308_vm8, %v1178_v50, %v1180_v12  ;;  %v1094_v54 = vpop.xlane.xlu1 %1093  ;;  %v1112_v3 = vmul.f32 0.0625, %v1100_v59 }
 0x239   : > { %1183 = vst.msk [vmem:[#allocation3 + $0x3] sm:$0xf] %vm313_vm9, %v1181_v37  ;;  %v1109_v21 = vmul.f32 0.0625, %v1094_v54  ;;  %v1309_v54 = vstv %s4709_s29  ;;  %s3702_s29 = sld [smem:[#allocation5 + $0x78]] }
 0x23a   : > { %v1208_v42 = vrot.slane %v1112_v3, %v4683_v25 }
 0x23b   : > { %v1104_v53 = vpop.xlane.xlu0 %1103  ;;  %v1195_v40 = vrot.slane %v1109_v21, %v4680_v20 }
 0x23c   : > { %v1098_v51 = vpop.xlane.xlu1 %1097  ;;  %v1114_v26 = vmul.f32 0.0625, %v1104_v53 }
 0x23d   : > { %v1111_v2 = vmul.f32 0.0625, %v1098_v51  ;;  %v1200_v41 = vsel %vm1150_vm10, %v1199_v48, %v1195_v40  ;;  %v1280_v51 = vstv %s4711_s30  ;;  %v1317_v40 = vstv %s3691_s10  ;;  %s3698_s30 = sld [smem:[#allocation5 + $0x74]]  ;;  %s3703_s10 = sld [smem:[#allocation5 + $0x79]] }
 0x23e   : > { %v1217_v43 = vrot.slane %v1114_v26, %v4683_v25 }
 0x23f   : > { %v1108_v28 = vpop.xlane.xlu0 %1107  ;;  %v1204_v24 = vrot.slane %v1111_v2, %v4680_v20 }
 0x240   : > { %v4705_v52 = vld [vmem:[#allocation3] sm:$0xf]  ;;  %v1102_v5 = vpop.xlane.xlu1 %1101  ;;  %v1116_v62 = vmul.f32 0.0625, %v1108_v28  ;;  %v1362_v28 = vstv %s3697_s17  ;;  %s3709_s17 = sld [smem:[#allocation5 + $0x7f]] }
 0x241   : > { %v1249_v6 = vmul.f32 %v1248_v55, %v4705_v52  ;;  %v1241_v10 = vmul.f32 %v1240_v56, %v4705_v52  ;;  %v1273_v33 = vmul.f32 %v1272_v45, %v4705_v52  ;;  %v1257_v29 = vmul.f32 %v1256_v16, %v4705_v52  ;;  %v4723_v35 = vld [vmem:[#allocation3 + $0x1] sm:$0xf] }
 0x242   : > { %v1113_v34 = vmul.f32 0.0625, %v1102_v5  ;;  %v1209_v49 = vsel %vm1150_vm10, %v1208_v42, %v1204_v24  ;;  %v1294_v12 = vmul.f32 %v1293_v36, %v4723_v35  ;;  %v1265_v50 = vmul.f32 %v1264_v4, %v4705_v52  ;;  %v4757_v45 = vld [vmem:[#allocation3 + $0x2] sm:$0xf] }
 0x243   : > { %1251 = vrot.lane.b32.xlu0 %v1249_v6, %s4091_s11  ;;  %1243 = vrot.lane.b32.xlu1 %v1241_v10, %s4089_s7  ;;  %v1228_v59 = vsel %vm304_vm6, %v1209_v49, %v1200_v41  ;;  %v1226_v55 = vrot.slane %v1116_v62, %v4683_v25  ;;  %v1310_v2 = vmul.f32 %v1309_v54, %v4723_v35  ;;  %v1325_v6 = vstv %s4721_s4  ;;  %s3704_s4 = sld [smem:[#allocation5 + $0x7a]]  ;;  %v4771_v4 = vld [vmem:[#allocation3 + $0x3] sm:$0xf] }
 0x244   : > { %v1106_v32 = vpop.xlane.xlu1 %1105  ;;  %v1213_v37 = vrot.slane %v1113_v34, %v4680_v20  ;;  %v1281_v3 = vmul.f32 %v1280_v51, %v4705_v52  ;;  %v1326_v25 = vmul.f32 %v1325_v6, %v4723_v35  ;;  %v1346_v16 = vstv %s3695_s8  ;;  %s3706_s8 = sld [smem:[#allocation5 + $0x7c]] }
 0x245   : > { %v1115_v44 = vmul.f32 0.0625, %v1106_v32  ;;  %v1347_v48 = vmul.f32 %v1346_v16, %v4757_v45  ;;  %v1318_v26 = vmul.f32 %v1317_v40, %v4723_v35  ;;  %v1333_v24 = vstv %s3693_s19  ;;  %s3705_s19 = sld [smem:[#allocation5 + $0x7b]] }
 0x246   : > { %v1218_v56 = vsel %vm1150_vm10, %v1217_v43, %v1213_v37  ;;  %v1363_v42 = vmul.f32 %v1362_v28, %v4757_v45  ;;  %v1334_v32 = vmul.f32 %v1333_v24, %v4723_v35  ;;  %v1399_v41 = vstv %s3702_s29  ;;  %s3713_s29 = sld [smem:[#allocation5 + $0x83]] }
 0x247   : > { %1275 = vrot.lane.b32.xlu0 %v1273_v33, %s4090_s9  ;;  %1259 = vrot.lane.b32.xlu1 %v1257_v29, %s4088_s5  ;;  %v1222_v53 = vrot.slane %v1115_v44, %v4680_v20  ;;  %v1229_v21 = vsel %vm306_vm7, %v1218_v56, %v1228_v59  ;;  %v1301_v20 = vstv %s4727_s6  ;;  %v1378_v33 = vstv %s3699_s26  ;;  %s3700_s6 = sld [smem:[#allocation5 + $0x76]]  ;;  %s3711_s26 = sld [smem:[#allocation5 + $0x81]] }
 0x248   : > { %v1302_v10 = vmul.f32 %v1301_v20, %v4723_v35  ;;  %v1354_v29 = vstv %s3696_s27  ;;  %v1379_v34 = vmul.f32 %v1378_v33, %v4757_v45  ;;  %v1370_v62 = vstv %s3698_s30  ;;  %s3707_s27 = sld [smem:[#allocation5 + $0x7d]]  ;;  %s3710_s30 = sld [smem:[#allocation5 + $0x80]] }
 0x249   : > { %v1227_v57 = vsel %vm1150_vm10, %v1226_v55, %v1222_v53  ;;  %v1355_v36 = vmul.f32 %v1354_v29, %v4757_v45  ;;  %v1400_v43 = vmul.f32 %v1399_v41, %v4771_v4  ;;  %v1371_v44 = vmul.f32 %v1370_v62, %v4757_v45  ;;  %v4785_v55 = vld [vmem:[#allocation3 + $0x4] sm:$0xf] }
 0x24a   : > { %v1230_v5 = vsel %vm308_vm8, %v1227_v57, %v1229_v21  ;;  %v1415_v49 = vstv %s3704_s4  ;;  %v1431_v37 = vstv %s3706_s8  ;;  %v1407_v54 = vstv %s3703_s10  ;;  %s3716_s4 = sld [smem:[#allocation5 + $0x86]]  ;;  %s3718_s8 = sld [smem:[#allocation5 + $0x88]] }
 0x24b   : > { %1296 = vrot.lane.b32.xlu0 %v1294_v12, %s4089_s7  ;;  %1267 = vrot.lane.b32.xlu1 %v1265_v50, %s4092_s25  ;;  %1233 = vst.msk [vmem:[#allocation3 + $0x13] sm:$0xf] %vm313_vm9, %v1230_v5  ;;  %v1416_v50 = vmul.f32 %v1415_v49, %v4771_v4  ;;  %v1432_v51 = vmul.f32 %v1431_v37, %v4771_v4  ;;  %v1452_v56 = vstv %s3709_s17  ;;  %v1423_v21 = vstv %s3705_s19  ;;  %s3714_s10 = sld [smem:[#allocation5 + $0x84]]  ;;  %s3720_s17 = sld [smem:[#allocation5 + $0x8a]] }
 0x24c   : > { %v1408_v53 = vmul.f32 %v1407_v54, %v4771_v4  ;;  %v1453_v57 = vmul.f32 %v1452_v56, %v4785_v55  ;;  %s3717_s19 = sld [smem:[#allocation5 + $0x87]] }
 0x24d   : > { %v1386_v12 = vstv %s3700_s6  ;;  %s3712_s6 = sld [smem:[#allocation5 + $0x82]] }
 0x24e   : > { %v1387_v59 = vmul.f32 %v1386_v12, %v4757_v45  ;;  %v1439_v5 = vstv %s3707_s27  ;;  %s3719_s27 = sld [smem:[#allocation5 + $0x89]] }
 0x24f   : > { %1312 = vrot.lane.b32.xlu0 %v1310_v2, %s4088_s5  ;;  %1283 = vrot.lane.b32.xlu1 %v1281_v3, %s4093_s28  ;;  %v1424_v2 = vmul.f32 %v1423_v21, %v4771_v4  ;;  %v1468_v3 = vstv %s3711_s26  ;;  %v1440_v20 = vmul.f32 %v1439_v5, %v4771_v4  ;;  %s3723_s26 = sld [smem:[#allocation5 + $0x8d]] }
 0x250   : > { %v1469_v6 = vmul.f32 %v1468_v3, %v4785_v55 }
 0x251   : > { %v1492_v33 = vstv %s3714_s10  ;;  %s3730_s10 = sld [smem:[#allocation5 + $0x94]] }
 0x252   : > { %v1513_v41 = vstv %s3717_s19  ;;  %s3732_s19 = sld [smem:[#allocation5 + $0x96]]  ;;  %v4827_v5 = vld [vmem:[#allocation3 + $0x10] sm:$0xf] }
 0x253   : > { %1328 = vrot.lane.b32.xlu0 %v1326_v25, %s4090_s9  ;;  %1304 = vrot.lane.b32.xlu1 %v1302_v10, %s4091_s11  ;;  %v1484_v25 = vstv %s3713_s29  ;;  %v1460_v10 = vstv %s3710_s30  ;;  %s3725_s29 = sld [smem:[#allocation5 + $0x8f]]  ;;  %s3721_s30 = sld [smem:[#allocation5 + $0x8b]] }
 0x254   : > { %v1485_v16 = vmul.f32 %v1484_v25, %v4785_v55  ;;  %v1461_v40 = vmul.f32 %v1460_v10, %v4785_v55  ;;  %v1476_v28 = vstv %s3712_s6  ;;  %v1529_v12 = vstv %s3719_s27  ;;  %s3724_s6 = sld [smem:[#allocation5 + $0x8e]]  ;;  %s3734_s27 = sld [smem:[#allocation5 + $0x98]] }
 0x255   : > { %v1558_v49 = vstv %s3723_s26  ;;  %s3731_s26 = sld [smem:[#allocation5 + $0x95]] }
 0x257   : > { %1349 = vrot.lane.b32.xlu0 %v1347_v48, %s4089_s7  ;;  %1320 = vrot.lane.b32.xlu1 %v1318_v26, %s4092_s25  ;;  %v4799_v48 = vld [vmem:[#allocation3 + $0x5] sm:$0xf]  ;;  %v1505_v26 = vstv %s3716_s4  ;;  %s3727_s4 = sld [smem:[#allocation5 + $0x91]] }
 0x258   : > { %v1506_v24 = vmul.f32 %v1505_v26, %v4799_v48 }
 0x259   : > { %v1574_v37 = vstv %s3725_s29  ;;  %v1545_v54 = vstv %s3721_s30  ;;  %s3733_s29 = sld [smem:[#allocation5 + $0x97]]  ;;  %s3737_s30 = sld [smem:[#allocation5 + $0x9b]] }
 0x25a   : > { %v1566_v21 = vstv %s3724_s6  ;;  %s3739_s6 = sld [smem:[#allocation5 + $0x9d]] }
 0x25b   : > { %1365 = vrot.lane.b32.xlu0 %v1363_v42, %s4088_s5  ;;  %1336 = vrot.lane.b32.xlu1 %v1334_v32, %s4093_s28  ;;  %v1477_v42 = vmul.f32 %v1476_v28, %v4785_v55  ;;  %v1521_v32 = vstv %s3718_s8  ;;  %s3726_s8 = sld [smem:[#allocation5 + $0x90]]  ;;  %v1619_v28 = vstv %s3731_s26 }
 0x25c   : > { %v1522_v29 = vmul.f32 %v1521_v32, %v4799_v48  ;;  %s3742_s26 = sld [smem:[#allocation5 + $0xa0]] }
 0x25d   : > { %v1590_v56 = vstv %s3727_s4  ;;  %s3735_s4 = sld [smem:[#allocation5 + $0x99]] }
 0x25f   : > { %1381 = vrot.lane.b32.xlu0 %v1379_v34, %s4090_s9  ;;  %1357 = vrot.lane.b32.xlu1 %v1355_v36, %s4091_s11  ;;  %v1493_v34 = vmul.f32 %v1492_v33, %v4785_v55  ;;  %v1537_v36 = vstv %s3720_s17  ;;  %s3728_s17 = sld [smem:[#allocation5 + $0x92]]  ;;  %v1635_v33 = vstv %s3733_s29  ;;  %s3745_s29 = sld [smem:[#allocation5 + $0xa3]] }
 0x260   : > { %v1538_v62 = vmul.f32 %v1537_v36, %v4799_v48  ;;  %v1636_v36 = vmul.f32 %v1635_v33, %v4827_v5 }
 0x261   : > { %v1582_v3 = vstv %s3726_s8  ;;  %s3738_s8 = sld [smem:[#allocation5 + $0x9c]] }
 0x263   : > { %1402 = vrot.lane.b32.xlu0 %v1400_v43, %s4089_s7  ;;  %1373 = vrot.lane.b32.xlu1 %v1371_v44, %s4092_s25  ;;  %v1514_v43 = vmul.f32 %v1513_v41, %v4799_v48  ;;  %v4813_v44 = vld [vmem:[#allocation3 + $0x6] sm:$0xf] }
 0x265   : > { %v1598_v10 = vstv %s3728_s17  ;;  %s3740_s17 = sld [smem:[#allocation5 + $0x9e]] }
 0x267   : > { %1418 = vrot.lane.b32.xlu0 %v1416_v50, %s4088_s5  ;;  %1389 = vrot.lane.b32.xlu1 %v1387_v59, %s4093_s28  ;;  %v1559_v50 = vmul.f32 %v1558_v49, %v4813_v44  ;;  %v1530_v59 = vmul.f32 %v1529_v12, %v4799_v48 }
 0x26b   : > { %1434 = vrot.lane.b32.xlu0 %v1432_v51, %s4090_s9  ;;  %1410 = vrot.lane.b32.xlu1 %v1408_v53, %s4091_s11  ;;  %v1575_v51 = vmul.f32 %v1574_v37, %v4813_v44  ;;  %v1546_v53 = vmul.f32 %v1545_v54, %v4799_v48 }
 0x26f   : > { %1455 = vrot.lane.b32.xlu0 %v1453_v57, %s4089_s7  ;;  %1426 = vrot.lane.b32.xlu1 %v1424_v2, %s4092_s25  ;;  %v1591_v57 = vmul.f32 %v1590_v56, %v4813_v44  ;;  %v1567_v2 = vmul.f32 %v1566_v21, %v4813_v44 }
 0x273   : > { %1471 = vrot.lane.b32.xlu0 %v1469_v6, %s4088_s5  ;;  %1442 = vrot.lane.b32.xlu1 %v1440_v20, %s4093_s28  ;;  %v1611_v6 = vstv %s3730_s10  ;;  %v1583_v20 = vmul.f32 %v1582_v3, %v4813_v44  ;;  %s3741_s10 = sld [smem:[#allocation5 + $0x9f]] }
 0x274   : > { %v1612_v25 = vmul.f32 %v1611_v6, %v4827_v5 }
 0x277   : > { %1487 = vrot.lane.b32.xlu0 %v1485_v16, %s4090_s9  ;;  %1463 = vrot.lane.b32.xlu1 %v1461_v40, %s4091_s11  ;;  %v1627_v16 = vstv %s3732_s19  ;;  %v1599_v40 = vmul.f32 %v1598_v10, %v4813_v44  ;;  %s3744_s19 = sld [smem:[#allocation5 + $0xa2]] }
 0x278   : > { %v1628_v26 = vmul.f32 %v1627_v16, %v4827_v5 }
 0x27b   : > { %1508 = vrot.lane.b32.xlu0 %v1506_v24, %s4089_s7  ;;  %1479 = vrot.lane.b32.xlu1 %v1477_v42, %s4092_s25  ;;  %v1643_v24 = vstv %s3734_s27  ;;  %v1620_v42 = vmul.f32 %v1619_v28, %v4827_v5  ;;  %s3746_s27 = sld [smem:[#allocation5 + $0xa4]] }
 0x27c   : > { %v1644_v32 = vmul.f32 %v1643_v24, %v4827_v5  ;;  %v4869_v24 = vld [vmem:[#allocation3 + $0x13] sm:$0xf] }
 0x27d   : > { %v1717_v56 = vstv %s3744_s19  ;;  %s4871_s19 = sld [smem:[#allocation5 + $0xaa]] }
 0x27f   : > { %1524 = vrot.lane.b32.xlu0 %v1522_v29, %s4088_s5  ;;  %1495 = vrot.lane.b32.xlu1 %v1493_v34, %s4093_s28  ;;  %v4841_v29 = vld [vmem:[#allocation3 + $0x11] sm:$0xf]  ;;  %v1664_v34 = vstv %s3737_s30  ;;  %s3748_s30 = sld [smem:[#allocation5 + $0xa6]] }
 0x280   : > { %v1665_v41 = vmul.f32 %v1664_v34, %v4841_v29 }
 0x281   : > { %v1733_v3 = vstv %s3746_s27  ;;  %s4880_s27 = sld [smem:[#allocation5 + $0xac]] }
 0x283   : > { %1540 = vrot.lane.b32.xlu0 %v1538_v62, %s4090_s9  ;;  %1516 = vrot.lane.b32.xlu1 %v1514_v43, %s4091_s11  ;;  %v1651_v62 = vstv %s3735_s4  ;;  %v1680_v43 = vstv %s3739_s6  ;;  %s3680_s4 = sld [smem:[#allocation5 + $0x62]]  ;;  %s3747_s6 = sld [smem:[#allocation5 + $0xa5]] }
 0x284   : > { %v1652_v49 = vmul.f32 %v1651_v62, %v4827_v5  ;;  %v1681_v12 = vmul.f32 %v1680_v43, %v4841_v29 }
 0x285   : > { %v1749_v10 = vstv %s3748_s30  ;;  %s4886_s30 = sld [smem:[#allocation5 + $0x69]] }
 0x287   : > { %1561 = vrot.lane.b32.xlu0 %v1559_v50, %s4089_s7  ;;  %1532 = vrot.lane.b32.xlu1 %v1530_v59, %s4092_s25  ;;  %v1672_v50 = vstv %s3738_s8  ;;  %v1696_v59 = vstv %s3741_s10  ;;  %s3751_s8 = sld [smem:[#allocation5 + $0xa9]]  ;;  %s3749_s10 = sld [smem:[#allocation5 + $0xa7]] }
 0x288   : > { %v1673_v37 = vmul.f32 %v1672_v50, %v4841_v29  ;;  %v1697_v54 = vmul.f32 %v1696_v59, %v4841_v29 }
 0x289   : > { %v1236_v16 = vstv %s3680_s4  ;;  %v1741_v28 = vstv %s3747_s6  ;;  %s4892_s4 = sld [smem:[#allocation5 + $0xae]]  ;;  %s4894_s6 = sld [smem:[#allocation5 + $0xb2]] }
 0x28b   : > { %1577 = vrot.lane.b32.xlu0 %v1575_v51, %s4088_s5  ;;  %1548 = vrot.lane.b32.xlu1 %v1546_v53, %s4093_s28  ;;  %v1688_v51 = vstv %s3740_s17  ;;  %v4855_v53 = vld [vmem:[#allocation3 + $0x12] sm:$0xf]  ;;  %s3753_s17 = sld [smem:[#allocation5 + $0xab]] }
 0x28c   : > { %v1689_v21 = vmul.f32 %v1688_v51, %v4841_v29 }
 0x28d   : > { %v1757_v43 = vstv %s3749_s10  ;;  %s4906_s10 = sld [smem:[#allocation5 + $0xb4]] }
 0x28e   : > { %v1758_v59 = vmul.f32 %v1757_v43, %v4855_v53 }
 0x28f   : > { %1593 = vrot.lane.b32.xlu0 %v1591_v57, %s4090_s9  ;;  %1569 = vrot.lane.b32.xlu1 %v1567_v2, %s4091_s11  ;;  %v1718_v57 = vmul.f32 %v1717_v56, %v4855_v53  ;;  %v1704_v2 = vstv %s3742_s26  ;;  %s4873_s26 = sld [smem:[#allocation5 + $0xad]] }
 0x290   : > { %v1705_v6 = vmul.f32 %v1704_v2, %v4841_v29 }
 0x293   : > { %1585 = vrot.lane.b32.xlu1 %v1583_v20, %s4092_s25  ;;  %1614 = vrot.lane.b32.xlu0 %v1612_v25, %s4089_s7  ;;  %v1734_v20 = vmul.f32 %v1733_v3, %v4855_v53  ;;  %v1725_v25 = vstv %s3745_s29  ;;  %s4882_s29 = sld [smem:[#allocation5 + $0xb0]] }
 0x295   : > { %v1802_v51 = vstv %s4873_s26  ;;  %s4924_s26 = sld [smem:[#allocation5 + $0x70]] }
 0x296   : > { %v1803_v3 = vmul.f32 %v1802_v51, %v4869_v24 }
 0x297   : > { %1601 = vrot.lane.b32.xlu1 %v1599_v40, %s4093_s28  ;;  %1630 = vrot.lane.b32.xlu0 %v1628_v26, %s4088_s5  ;;  %v1726_v40 = vmul.f32 %v1725_v25, %v4855_v53  ;;  %v1750_v26 = vmul.f32 %v1749_v10, %v4855_v53  ;;  %v4901_v25 = vld [vmem:[#allocation3 + $0x14] sm:$0xf] }
 0x299   : > { %v1823_v10 = vstv %s4882_s29  ;;  %s4930_s29 = sld [smem:[#allocation5 + $0xb9]] }
 0x29b   : > { %1622 = vrot.lane.b32.xlu1 %v1620_v42, %s4091_s11  ;;  %1646 = vrot.lane.b32.xlu0 %v1644_v32, %s4090_s9  ;;  %v1770_v42 = vstv %s3751_s8  ;;  %v1237_v32 = vmul.f32 %v1236_v16, %v4705_v52  ;;  %s4904_s8 = sld [smem:[#allocation5 + $0xb1]]  ;;  %v1289_v16 = vstv %s4886_s30  ;;  %s4940_s30 = sld [smem:[#allocation5 + $0xb8]] }
 0x29f   : > { %1638 = vrot.lane.b32.xlu1 %v1636_v36, %s4092_s25  ;;  %1667 = vrot.lane.b32.xlu0 %v1665_v41, %s4089_s7  ;;  %v1742_v36 = vmul.f32 %v1741_v28, %v4855_v53  ;;  %v1771_v41 = vmul.f32 %v1770_v42, %v4869_v24 }
 0x2a3   : > { %1654 = vrot.lane.b32.xlu1 %v1652_v49, %s4093_s28  ;;  %1683 = vrot.lane.b32.xlu0 %v1681_v12, %s4088_s5  ;;  %v1786_v49 = vstv %s3753_s17  ;;  %s4916_s17 = sld [smem:[#allocation5 + $0xb3]] }
 0x2a7   : > { %1675 = vrot.lane.b32.xlu1 %v1673_v37, %s4091_s11  ;;  %1699 = vrot.lane.b32.xlu0 %v1697_v54, %s4090_s9  ;;  %v1787_v37 = vmul.f32 %v1786_v49, %v4869_v24  ;;  %v1778_v54 = vstv %s4871_s19  ;;  %s4918_s19 = sld [smem:[#allocation5 + $0xb7]] }
 0x2a8   : > { %v1779_v2 = vmul.f32 %v1778_v54, %v4869_v24 }
 0x2ab   : > { %1691 = vrot.lane.b32.xlu1 %v1689_v21, %s4092_s25  ;;  %1720 = vrot.lane.b32.xlu0 %v1718_v57, %s4089_s7 }
 0x2af   : > { %1707 = vrot.lane.b32.xlu1 %v1705_v6, %s4093_s28  ;;  %1736 = vrot.lane.b32.xlu0 %v1734_v20, %s4088_s5  ;;  %v1794_v20 = vstv %s4880_s27  ;;  %s4928_s27 = sld [smem:[#allocation5 + $0xb5]] }
 0x2b0   : > { %v1795_v42 = vmul.f32 %v1794_v20, %v4869_v24 }
 0x2b3   : > { %1728 = vrot.lane.b32.xlu1 %v1726_v40, %s4091_s11  ;;  %1752 = vrot.lane.b32.xlu0 %v1750_v26, %s4090_s9 }
 0x2b5   : > { %v1244_v33 = vpop.permute.xlu1 %1243  ;;  %v1252_v34 = vpop.permute.xlu0 %1251 }
 0x2b6   : > { %v1246_v62 = vadd.f32 %v1244_v33, %v1237_v32  ;;  %v1824_v32 = vmul.f32 %v1823_v10, %v4901_v25  ;;  %v1290_v33 = vmul.f32 %v1289_v16, %v4723_v35  ;;  %v1342_v10 = vstv %s4924_s26  ;;  %s4976_s26 = sld [smem:[#allocation5 + $0xbf]] }
 0x2b7   : > { %1744 = vrot.lane.b32.xlu1 %v1742_v36, %s4092_s25  ;;  %1773 = vrot.lane.b32.xlu0 %v1771_v41, %s4089_s7  ;;  %v1810_v36 = vstv %s4892_s4  ;;  %v1839_v41 = vstv %s4894_s6  ;;  %s4942_s4 = sld [smem:[#allocation5 + $0xbb]]  ;;  %s4951_s6 = sld [smem:[#allocation5 + $0xba]] }
 0x2b8   : > { %v1254_v52 = vadd.f32 %v1252_v34, %v1246_v62  ;;  %v1840_v35 = vmul.f32 %v1839_v41, %v4901_v25 }
 0x2b9   : > { %v1260_v12 = vpop.permute.xlu1 %1259  ;;  %v1276_v50 = vpop.permute.xlu0 %1275 }
 0x2ba   : > { %v1262_v56 = vadd.f32 %v1260_v12, %v1254_v52  ;;  %v1811_v52 = vmul.f32 %v1810_v36, %v4869_v24 }
 0x2bb   : > { %1760 = vrot.lane.b32.xlu1 %v1758_v59, %s4093_s28  ;;  %1789 = vrot.lane.b32.xlu0 %v1787_v37, %s4088_s5  ;;  %v1855_v59 = vstv %s4906_s10  ;;  %s4962_s10 = sld [smem:[#allocation5 + $0xbc]] }
 0x2bd   : > { %v1268_v21 = vpop.permute.xlu1 %1267  ;;  %v1297_v57 = vpop.permute.xlu0 %1296 }
 0x2be   : > { %v1270_v6 = vadd.f32 %v1268_v21, %v1262_v56  ;;  %v1856_v21 = vmul.f32 %v1855_v59, %v4901_v25 }
 0x2bf   : > { %1781 = vrot.lane.b32.xlu1 %v1779_v2, %s4091_s11  ;;  %1805 = vrot.lane.b32.xlu0 %v1803_v3, %s4090_s9  ;;  %v1847_v2 = vstv %s4916_s17  ;;  %v4937_v3 = vld [vmem:[#allocation3 + $0x15] sm:$0xf]  ;;  %s4964_s17 = sld [smem:[#allocation5 + $0xc0]] }
 0x2c0   : > { %v1278_v40 = vadd.f32 %v1276_v50, %v1270_v6  ;;  %v1831_v50 = vstv %s4904_s8  ;;  %v1876_v6 = vstv %s4918_s19  ;;  %s4953_s8 = sld [smem:[#allocation5 + $0xbe]]  ;;  %s4968_s19 = sld [smem:[#allocation5 + $0x77]] }
 0x2c1   : > { %v1284_v26 = vpop.permute.xlu1 %1283  ;;  %v1313_v28 = vpop.permute.xlu0 %1312  ;;  %v1832_v56 = vmul.f32 %v1831_v50, %v4901_v25 }
 0x2c2   : > { %v1286_v34 = vadd.f32 %v1284_v26, %v1278_v40  ;;  %v1848_v26 = vmul.f32 %v1847_v2, %v4901_v25 }
 0x2c3   : > { %1797 = vrot.lane.b32.xlu1 %v1795_v42, %s4092_s25  ;;  %1826 = vrot.lane.b32.xlu0 %v1824_v32, %s4089_s7  ;;  %v1863_v32 = vstv %s4928_s27  ;;  %s4978_s27 = sld [smem:[#allocation5 + $0xc2]] }
 0x2c4   : > { %v1291_v62 = vadd.f32 %v1290_v33, %v1286_v34  ;;  %v1892_v33 = vstv %s4930_s29  ;;  %v1343_v34 = vmul.f32 %v1342_v10, %v4757_v45  ;;  %s4986_s29 = sld [smem:[#allocation5 + $0xc1]] }
 0x2c5   : > { %v1305_v43 = vpop.permute.xlu1 %1304  ;;  %v1329_v49 = vpop.permute.xlu0 %1328 }
 0x2c6   : > { %v1299_v12 = vadd.f32 %v1297_v57, %v1291_v62  ;;  %v1929_v2 = vstv %s4953_s8  ;;  %s3722_s8 = sld [smem:[#allocation5 + $0x8c]] }
 0x2c7   : > { %1813 = vrot.lane.b32.xlu1 %v1811_v52, %s4093_s28  ;;  %1842 = vrot.lane.b32.xlu0 %v1840_v35, %s4088_s5  ;;  %v1884_v35 = vstv %s4940_s30  ;;  %s3777_s30 = sld [smem:[#allocation5 + $0xc3]] }
 0x2c8   : > { %v1307_v37 = vadd.f32 %v1305_v43, %v1299_v12  ;;  %v1864_v43 = vmul.f32 %v1863_v32, %v4901_v25  ;;  %v1908_v12 = vstv %s4942_s4  ;;  %v1395_v32 = vstv %s4968_s19  ;;  %s3708_s4 = sld [smem:[#allocation5 + $0x7e]]  ;;  %s3750_s19 = sld [smem:[#allocation5 + $0xa8]] }
 0x2c9   : > { %v1321_v54 = vpop.permute.xlu1 %1320  ;;  %v1350_v51 = vpop.permute.xlu0 %1349 }
 0x2ca   : > { %v1315_v57 = vadd.f32 %v1313_v28, %v1307_v37  ;;  %v1877_v28 = vmul.f32 %v1876_v6, %v4937_v3  ;;  %v1885_v37 = vmul.f32 %v1884_v35, %v4937_v3  ;;  %v1961_v35 = vstv %s4978_s27  ;;  %s3764_s27 = sld [smem:[#allocation5 + $0xb6]] }
 0x2cb   : > { %1834 = vrot.lane.b32.xlu1 %v1832_v56, %s4091_s11  ;;  %1858 = vrot.lane.b32.xlu0 %v1856_v21, %s4090_s9  ;;  %v1900_v21 = vstv %s4951_s6  ;;  %s3715_s6 = sld [smem:[#allocation5 + $0x85]] }
 0x2cc   : > { %v1323_v20 = vadd.f32 %v1321_v54, %v1315_v57  ;;  %v1909_v54 = vmul.f32 %v1908_v12, %v4937_v3  ;;  %v4973_v57 = vld [vmem:[#allocation3 + $0x16] sm:$0xf]  ;;  %v1901_v10 = vmul.f32 %v1900_v21, %v4937_v3  ;;  %v2085_v12 = vmax.f32 %v4309_v13, %v4325_v19 }
 0x2cd   : > { %v1337_v16 = vpop.permute.xlu1 %1336  ;;  %v1366_v40 = vpop.permute.xlu0 %1365  ;;  %v1953_v21 = vstv %s4986_s29  ;;  %s3771_s29 = sld [smem:[#allocation5 + $0xbd]] }
 0x2ce   : > { %v1331_v42 = vadd.f32 %v1329_v49, %v1323_v20  ;;  %v1893_v49 = vmul.f32 %v1892_v33, %v4937_v3  ;;  %v1954_v13 = vmul.f32 %v1953_v21, %v4973_v57 }
 0x2cf   : > { %1850 = vrot.lane.b32.xlu1 %v1848_v26, %s4092_s25  ;;  %1879 = vrot.lane.b32.xlu0 %v1877_v28, %s4089_s7  ;;  %v1916_v28 = vstv %s4962_s10  ;;  %s3729_s10 = sld [smem:[#allocation5 + $0x93]] }
 0x2d0   : > { %v1339_v36 = vadd.f32 %v1337_v16, %v1331_v42  ;;  %v1930_v16 = vmul.f32 %v1929_v2, %v4973_v57  ;;  %v1945_v42 = vstv %s4964_s17  ;;  %s3743_s17 = sld [smem:[#allocation5 + $0xa1]] }
 0x2d1   : > { %v1358_v41 = vpop.permute.xlu1 %1357  ;;  %v1382_v62 = vpop.permute.xlu0 %1381 }
 0x2d2   : > { %v1344_v52 = vadd.f32 %v1343_v34, %v1339_v36  ;;  %v1917_v36 = vmul.f32 %v1916_v28, %v4937_v3 }
 0x2d3   : > { %1866 = vrot.lane.b32.xlu1 %v1864_v43, %s4093_s28  ;;  %1895 = vrot.lane.b32.xlu0 %v1893_v49, %s4088_s5  ;;  %v1396_v43 = vmul.f32 %v1395_v32, %v4771_v4 }
 0x2d4   : > { %v1352_v45 = vadd.f32 %v1350_v51, %v1344_v52  ;;  %v1937_v52 = vstv %s4976_s26  ;;  %s3757_s26 = sld [smem:[#allocation5 + $0xaf]] }
 0x2d5   : > { %v1374_v50 = vpop.permute.xlu1 %1373  ;;  %v1403_v59 = vpop.permute.xlu0 %1402  ;;  %v1938_v4 = vmul.f32 %v1937_v52, %v4973_v57 }
 0x2d6   : > { %v1360_v56 = vadd.f32 %v1358_v41, %v1352_v45  ;;  %v1946_v41 = vmul.f32 %v1945_v42, %v4973_v57 }
 0x2d7   : > { %1887 = vrot.lane.b32.xlu1 %v1885_v37, %s4091_s11  ;;  %1911 = vrot.lane.b32.xlu0 %v1909_v54, %s4090_s9  ;;  %v1962_v54 = vmul.f32 %v1961_v35, %v4973_v57 }
 0x2d8   : > { %v1368_v51 = vadd.f32 %v1366_v40, %v1360_v56 }
 0x2d9   : > { %v1390_v6 = vpop.permute.xlu1 %1389  ;;  %v1419_v20 = vpop.permute.xlu0 %1418 }
 0x2da   : > { %v1376_v26 = vadd.f32 %v1374_v50, %v1368_v51 }
 0x2db   : > { %1903 = vrot.lane.b32.xlu1 %v1901_v10, %s4092_s25  ;;  %1932 = vrot.lane.b32.xlu0 %v1930_v16, %s4089_s7  ;;  %v2081_v10 = vmax.f32 %v4296_v7, %v4312_v14 }
 0x2dc   : > { %v1384_v33 = vadd.f32 %v1382_v62, %v1376_v26  ;;  %v2084_v62 = vmax.f32 %v4299_v8, %v4315_v15  ;;  %v1448_v26 = vstv %s3708_s4  ;;  %s3782_s4 = sld [smem:[#allocation5 + $0xc6]] }
 0x2dd   : > { %v1411_v40 = vpop.permute.xlu1 %1410  ;;  %v1435_v34 = vpop.permute.xlu0 %1434 }
 0x2de   : > { %v1392_v49 = vadd.f32 %v1390_v6, %v1384_v33  ;;  %v2086_v2 = vmax.f32 %v2084_v62, %v2085_v12  ;;  %v1969_v6 = vstv %s3777_s30  ;;  %v2087_v62 = vadd.f32 %v4338_v27, %v4330_v22  ;;  %s3781_s30 = sld [smem:[#allocation5 + $0xc5]] }
 0x2df   : > { %1919 = vrot.lane.b32.xlu1 %v1917_v36, %s4093_s28  ;;  %1948 = vrot.lane.b32.xlu0 %v1946_v41, %s4088_s5  ;;  %v1970_v32 = vmul.f32 %v1969_v6, %v4973_v57 }
 0x2e0   : > { %v1397_v45 = vadd.f32 %v1396_v43, %v1392_v49 }
 0x2e1   : > { %v1427_v50 = vpop.permute.xlu1 %1426  ;;  %v1456_v37 = vpop.permute.xlu0 %1455 }
 0x2e2   : > { %v1405_v56 = vadd.f32 %v1403_v59, %v1397_v45  ;;  %v2082_v59 = vmax.f32 %v4302_v9, %v4322_v18  ;;  %v1501_v45 = vstv %s3715_s6  ;;  %s3783_s6 = sld [smem:[#allocation5 + $0xc7]] }
 0x2e3   : > { %1940 = vrot.lane.b32.xlu1 %v1938_v4, %s4091_s11  ;;  %1964 = vrot.lane.b32.xlu0 %v1962_v54, %s4090_s9 }
 0x2e4   : > { %v1413_v51 = vadd.f32 %v1411_v40, %v1405_v56  ;;  %v1449_v40 = vmul.f32 %v1448_v26, %v4785_v55  ;;  %v2090_v55 = vadd.f32 %v4341_v30, %v4333_v23  ;;  %v1502_v30 = vmul.f32 %v1501_v45, %v4799_v48 }
 0x2e5   : > { %v1443_v8 = vpop.permute.xlu1 %1442  ;;  %v1472_v15 = vpop.permute.xlu0 %1471 }
 0x2e6   : > { %v1421_v19 = vadd.f32 %v1419_v20, %v1413_v51  ;;  %v2083_v20 = vmax.f32 %v2081_v10, %v2082_v59 }
 0x2e7   : > { %1956 = vrot.lane.b32.xlu1 %v1954_v13, %s4092_s25  ;;  %2119 = vrot.lane.b32.xlu0 %v2086_v2, %s4087_s24 }
 0x2e8   : > { %v1429_v16 = vadd.f32 %v1427_v50, %v1421_v19  ;;  %v2091_v50 = vadd.f32 %v2090_v55, %v4349_v38 }
 0x2e9   : > { %v1464_v28 = vpop.permute.xlu1 %1463  ;;  %v1488_v42 = vpop.permute.xlu0 %1487 }
 0x2ea   : > { %v1437_v33 = vadd.f32 %v1435_v34, %v1429_v16  ;;  %v2092_v21 = vadd.f32 %v2091_v50, %v4357_v47 }
 0x2eb   : > { %1972 = vrot.lane.b32.xlu1 %v1970_v32, %s4093_s28 }
 0x2ec   : > { %v1445_v36 = vadd.f32 %v1443_v8, %v1437_v33  ;;  %v2095_v27 = vmul.f32 0.25, %v2092_v21 }
 0x2ed   : > { %v1480_v41 = vpop.permute.xlu1 %1479  ;;  %v1509_v7 = vpop.permute.xlu0 %1508 }
 0x2ee   : > { %v1450_v14 = vadd.f32 %v1449_v40, %v1445_v36 }
 0x2ef   : > { %2117 = vrot.lane.b32.xlu1 %v2083_v20, %s4087_s24 }
 0x2f0   : > { %v1458_v9 = vadd.f32 %v1456_v37, %v1450_v14  ;;  %v2088_v37 = vadd.f32 %v2087_v62, %v4344_v31 }
 0x2f1   : > { %v1496_v18 = vpop.permute.xlu1 %1495  ;;  %v1525_v43 = vpop.permute.xlu0 %1524 }
 0x2f2   : > { %v1466_v49 = vadd.f32 %v1464_v28, %v1458_v9  ;;  %v2089_v23 = vadd.f32 %v2088_v37, %v4352_v39  ;;  %v1554_v39 = vstv %s3722_s8  ;;  %v1607_v9 = vstv %s3729_s10  ;;  %s3784_s8 = sld [smem:[#allocation5 + $0xc8]]  ;;  %s3785_s10 = sld [smem:[#allocation5 + $0xc9]] }
 0x2f3   : > { %2130 = vrot.lane.b32.xlu1 %v2095_v27, %s4087_s24  ;;  %v1555_v59 = vmul.f32 %v1554_v39, %v4813_v44  ;;  %v1608_v44 = vmul.f32 %v1607_v9, %v4827_v5 }
 0x2f4   : > { %v1474_v52 = vadd.f32 %v1472_v15, %v1466_v49  ;;  %v2094_v2 = vmul.f32 0.25, %v2089_v23 }
 0x2f5   : > { %v1517_v35 = vpop.permute.xlu1 %1516  ;;  %v1541_v34 = vpop.permute.xlu0 %1540 }
 0x2f6   : > { %v1482_v12 = vadd.f32 %v1480_v41, %v1474_v52  ;;  %2128 = vrot.lane.b32.xlu0 %v2094_v2, %s4087_s24  ;;  %s3736_s24 = sld [smem:[#allocation5 + $0x9a]] }
 0x2f8   : > { %v1490_v4 = vadd.f32 %v1488_v42, %v1482_v12 }
 0x2f9   : > { %v1533_v54 = vpop.permute.xlu1 %1532  ;;  %v1562_v56 = vpop.permute.xlu0 %1561 }
 0x2fa   : > { %v1498_v22 = vadd.f32 %v1496_v18, %v1490_v4 }
 0x2fc   : > { %v1503_v51 = vadd.f32 %v1502_v30, %v1498_v22 }
 0x2fd   : > { %v1549_v0 = vpop.permute.xlu1 %1548  ;;  %v1578_v8 = vpop.permute.xlu0 %1577 }
 0x2fe   : > { %v1511_v31 = vadd.f32 %v1509_v7, %v1503_v51 }
 0x300   : > { %v1519_v38 = vadd.f32 %v1517_v35, %v1511_v31 }
 0x301   : > { %v1570_v15 = vpop.permute.xlu1 %1569  ;;  %v1594_v13 = vpop.permute.xlu0 %1593 }
 0x302   : > { %v1527_v47 = vadd.f32 %v1525_v43, %v1519_v38 }
 0x304   : > { %v1535_v19 = vadd.f32 %v1533_v54, %v1527_v47  ;;  %v1660_v54 = vstv %s3736_s24  ;;  %s3786_s24 = sld [smem:[#allocation5 + $0xca]] }
 0x305   : > { %v1586_v6 = vpop.permute.xlu1 %1585  ;;  %v1615_v48 = vpop.permute.xlu0 %1614  ;;  %v1661_v30 = vmul.f32 %v1660_v54, %v4841_v29 }
 0x306   : > { %v1543_v10 = vadd.f32 %v1541_v34, %v1535_v19  ;;  %v1713_v19 = vstv %s3743_s17  ;;  %s3788_s17 = sld [smem:[#allocation5 + $0xcc]] }
 0x308   : > { %v1551_v16 = vadd.f32 %v1549_v0, %v1543_v10  ;;  %v1714_v10 = vmul.f32 %v1713_v19, %v4855_v53 }
 0x309   : > { %v1602_v26 = vpop.permute.xlu1 %1601  ;;  %v1631_v28 = vpop.permute.xlu0 %1630 }
 0x30a   : > { %v1556_v42 = vadd.f32 %v1555_v59, %v1551_v16 }
 0x30c   : > { %v1564_v32 = vadd.f32 %v1562_v56, %v1556_v42 }
 0x30d   : > { %v1623_v33 = vpop.permute.xlu1 %1622  ;;  %v1647_v20 = vpop.permute.xlu0 %1646 }
 0x30e   : > { %v1572_v40 = vadd.f32 %v1570_v15, %v1564_v32 }
 0x310   : > { %v1580_v36 = vadd.f32 %v1578_v8, %v1572_v40 }
 0x311   : > { %v1639_v41 = vpop.permute.xlu1 %1638  ;;  %v1668_v7 = vpop.permute.xlu0 %1667 }
 0x312   : > { %v1588_v14 = vadd.f32 %v1586_v6, %v1580_v36  ;;  %v1766_v36 = vstv %s3750_s19  ;;  %s3789_s19 = sld [smem:[#allocation5 + $0xcd]] }
 0x313   : > { %v1767_v9 = vmul.f32 %v1766_v36, %v4869_v24 }
 0x314   : > { %v1596_v18 = vadd.f32 %v1594_v13, %v1588_v14 }
 0x315   : > { %v1655_v43 = vpop.permute.xlu1 %1654  ;;  %v1684_v49 = vpop.permute.xlu0 %1683 }
 0x316   : > { %v1604_v52 = vadd.f32 %v1602_v26, %v1596_v18 }
 0x318   : > { %v1609_v35 = vadd.f32 %v1608_v44, %v1604_v52 }
 0x319   : > { %v1676_v34 = vpop.permute.xlu1 %1675  ;;  %v1700_v55 = vpop.permute.xlu0 %1699 }
 0x31a   : > { %v1617_v62 = vadd.f32 %v1615_v48, %v1609_v35 }
 0x31c   : > { %v1625_v12 = vadd.f32 %v1623_v33, %v1617_v62 }
 0x31d   : > { %v1692_v45 = vpop.permute.xlu1 %1691  ;;  %v1721_v50 = vpop.permute.xlu0 %1720 }
 0x31e   : > { %v1633_v37 = vadd.f32 %v1631_v28, %v1625_v12 }
 0x320   : > { %v1641_v4 = vadd.f32 %v1639_v41, %v1633_v37 }
 0x321   : > { %v1708_v56 = vpop.permute.xlu1 %1707  ;;  %v1737_v21 = vpop.permute.xlu0 %1736 }
 0x322   : > { %v1649_v23 = vadd.f32 %v1647_v20, %v1641_v4 }
 0x324   : > { %v1657_v22 = vadd.f32 %v1655_v43, %v1649_v23 }
 0x325   : > { %v1729_v27 = vpop.permute.xlu1 %1728  ;;  %v1753_v2 = vpop.permute.xlu0 %1752 }
 0x326   : > { %v1662_v5 = vadd.f32 %v1661_v30, %v1657_v22 }
 0x328   : > { %v1670_v51 = vadd.f32 %v1668_v7, %v1662_v5 }
 0x329   : > { %v1745_v0 = vpop.permute.xlu1 %1744  ;;  %v1774_v8 = vpop.permute.xlu0 %1773 }
 0x32a   : > { %v1678_v31 = vadd.f32 %v1676_v34, %v1670_v51 }
 0x32c   : > { %v1686_v38 = vadd.f32 %v1684_v49, %v1678_v31 }
 0x32d   : > { %v1761_v15 = vpop.permute.xlu1 %1760  ;;  %v1790_v13 = vpop.permute.xlu0 %1789 }
 0x32e   : > { %v1694_v47 = vadd.f32 %v1692_v45, %v1686_v38 }
 0x330   : > { %v1702_v39 = vadd.f32 %v1700_v55, %v1694_v47 }
 0x331   : > { %v1782_v6 = vpop.permute.xlu1 %1781  ;;  %v1806_v48 = vpop.permute.xlu0 %1805 }
 0x332   : > { %v1710_v29 = vadd.f32 %v1708_v56, %v1702_v39 }
 0x334   : > { %v1715_v59 = vadd.f32 %v1714_v10, %v1710_v29 }
 0x335   : > { %v1798_v16 = vpop.permute.xlu1 %1797  ;;  %v1827_v26 = vpop.permute.xlu0 %1826 }
 0x336   : > { %v1723_v28 = vadd.f32 %v1721_v50, %v1715_v59  ;;  %v1819_v50 = vstv %s3757_s26  ;;  %v1925_v59 = vstv %s3771_s29  ;;  %s3679_s26 = sld [smem:[#allocation8 + $0x1]]  ;;  %s3791_s29 = sld [smem:[#allocation5 + $0xcf]] }
 0x337   : > { %v1820_v56 = vmul.f32 %v1819_v50, %v4901_v25 }
 0x338   : > { %v1731_v42 = vadd.f32 %v1729_v27, %v1723_v28 }
 0x339   : > { %v1814_v32 = vpop.permute.xlu1 %1813  ;;  %v1843_v33 = vpop.permute.xlu0 %1842 }
 0x33a   : > { %v1739_v20 = vadd.f32 %v1737_v21, %v1731_v42 }
 0x33c   : > { %v1747_v40 = vadd.f32 %v1745_v0, %v1739_v20 }
 0x33d   : > { %v1835_v41 = vpop.permute.xlu1 %1834  ;;  %v1859_v7 = vpop.permute.xlu0 %1858 }
 0x33e   : > { %v1755_v14 = vadd.f32 %v1753_v2, %v1747_v40  ;;  %v2160_v40 = vstv %s3782_s4  ;;  %s3793_s4 = sld [smem:[#allocation5 + $0xd1]] }
 0x340   : > { %v1763_v18 = vadd.f32 %v1761_v15, %v1755_v14 }
 0x341   : > { %v1851_v43 = vpop.permute.xlu1 %1850  ;;  %v1880_v53 = vpop.permute.xlu0 %1879 }
 0x342   : > { %v1768_v49 = vadd.f32 %v1767_v9, %v1763_v18  ;;  %v2174_v9 = vstv %s3783_s6  ;;  %s3795_s6 = sld [smem:[#allocation5 + $0xd3]] }
 0x344   : > { %v1776_v52 = vadd.f32 %v1774_v8, %v1768_v49  ;;  %v1872_v8 = vstv %s3764_s27  ;;  %s3790_s27 = sld [smem:[#allocation5 + $0xce]] }
 0x345   : > { %v1867_v44 = vpop.permute.xlu1 %1866  ;;  %v1896_v35 = vpop.permute.xlu0 %1895  ;;  %v1873_v25 = vmul.f32 %v1872_v8, %v4937_v3  ;;  %v1926_v3 = vmul.f32 %v1925_v59, %v4973_v57 }
 0x346   : > { %v1784_v34 = vadd.f32 %v1782_v6, %v1776_v52 }
 0x348   : > { %v1792_v55 = vadd.f32 %v1790_v13, %v1784_v34  ;;  %v2330_v59 = vstv %s3795_s6  ;;  %s3807_s6 = sld [smem:[#allocation5 + $0xdf]] }
 0x349   : > { %v1888_v62 = vpop.permute.xlu1 %1887  ;;  %v1912_v12 = vpop.permute.xlu0 %1911 }
 0x34a   : > { %v1800_v45 = vadd.f32 %v1798_v16, %v1792_v55 }
 0x34c   : > { %v1808_v37 = vadd.f32 %v1806_v48, %v1800_v45 }
 0x34d   : > { %v1904_v4 = vpop.permute.xlu1 %1903  ;;  %v1933_v54 = vpop.permute.xlu0 %1932 }
 0x34e   : > { %v1816_v24 = vadd.f32 %v1814_v32, %v1808_v37 }
 0x350   : > { %v1821_v21 = vadd.f32 %v1820_v56, %v1816_v24 }
 0x351   : > { %v1920_v23 = vpop.permute.xlu1 %1919  ;;  %v1949_v30 = vpop.permute.xlu0 %1948 }
 0x352   : > { %v1829_v22 = vadd.f32 %v1827_v26, %v1821_v21  ;;  %v2146_v26 = vstv %s3781_s30  ;;  %s3792_s30 = sld [smem:[#allocation5 + $0xd0]] }
 0x354   : > { %v1837_v27 = vadd.f32 %v1835_v41, %v1829_v22 }
 0x355   : > { %v1941_v2 = vpop.permute.xlu1 %1940  ;;  %v5039_v5 = vpop.permute.xlu0 %1964 }
 0x356   : > { %v1845_v51 = vadd.f32 %v1843_v33, %v1837_v27 }
 0x358   : > { %v1853_v0 = vadd.f32 %v1851_v43, %v1845_v51  ;;  %v2266_v51 = vstv %s3790_s27  ;;  %s3803_s27 = sld [smem:[#allocation5 + $0xdb]] }
 0x359   : > { %v1957_v31 = vpop.permute.xlu1 %1956  ;;  %v2120_v38 = vpop.permute.xlu0 %2119 }
 0x35a   : > { %v1861_v15 = vadd.f32 %v1859_v7, %v1853_v0  ;;  %2125 = vst.msk [vmem:[#allocation4 + $0xb] sm:$0xff] %vm2123_vm13, %v2120_v38  ;;  %v2280_v38 = vstv %s3791_s29  ;;  %s3804_s29 = sld [smem:[#allocation5 + $0xdc]] }
 0x35c   : > { %v1869_v13 = vadd.f32 %v1867_v44, %v1861_v15 }
 0x35d   : > { %v5043_v47 = vpop.permute.xlu1 %1972 }
 0x35e   : > { %v1874_v19 = vadd.f32 %v1873_v25, %v1869_v13 }
 0x360   : > { %v1882_v39 = vadd.f32 %v1880_v53, %v1874_v19  ;;  %v2188_v53 = vstv %s3784_s8  ;;  %s3796_s8 = sld [smem:[#allocation5 + $0xd4]] }
 0x361   : > { %v2118_v6 = vpop.permute.xlu1 %2117 }
 0x362   : > { %v1890_v48 = vadd.f32 %v1888_v62, %v1882_v39  ;;  %2124 = vst.msk [vmem:[#allocation4 + $0x3] sm:$0xff] %vm2123_vm13, %v2118_v6  ;;  %v2308_v6 = vstv %s3793_s4  ;;  %s3806_s4 = sld [smem:[#allocation5 + $0xde]] }
 0x364   : > { %v1898_v10 = vadd.f32 %v1896_v35, %v1890_v48  ;;  %v2202_v35 = vstv %s3785_s10  ;;  %s3797_s10 = sld [smem:[#allocation5 + $0xd5]] }
 0x365   : > { %v2131_v7 = vpop.permute.xlu1 %2130 }
 0x366   : > { %v1906_v29 = vadd.f32 %v1904_v4, %v1898_v10  ;;  %2136 = vst.msk [vmem:[#allocation4 + $0x23] sm:$0xff] %vm2123_vm13, %v2131_v7 }
 0x368   : > { %v1914_v16 = vadd.f32 %v1912_v12, %v1906_v29  ;;  %v2129_v14 = vpop.permute.xlu0 %2128  ;;  %v2216_v12 = vstv %s3786_s24  ;;  %s3798_s24 = sld [smem:[#allocation5 + $0xd6]] }
 0x369   : > { %v5046_v28 = vld [vmem:[#allocation4] sm:$0xff]  ;;  %v5049_v32 = vld [vmem:[#allocation4 + $0x8] sm:$0xff]  ;;  %2135 = vst.msk [vmem:[#allocation4 + $0x1b] sm:$0xff] %vm2123_vm13, %v2129_v14 }
 0x36a   : > { %v1922_v42 = vadd.f32 %v1920_v23, %v1914_v16  ;;  %v2147_v33 = vmul.f32 %v2146_v26, %v5046_v28  ;;  %v2148_v36 = vmul.f32 %v2146_v26, %v5049_v32  ;;  %v2161_v41 = vmul.f32 %v2160_v40, %v5046_v28  ;;  %v5074_v4 = vld [vmem:[#allocation4 + $0x1] sm:$0xff]  ;;  %v5079_v21 = vld [vmem:[#allocation4 + $0x9] sm:$0xff] }
 0x36b   : > { %v2162_v18 = vmul.f32 %v2160_v40, %v5049_v32  ;;  %v2175_v43 = vmul.f32 %v2174_v9, %v5046_v28  ;;  %v2176_v52 = vmul.f32 %v2174_v9, %v5049_v32  ;;  %v2189_v44 = vmul.f32 %v2188_v53, %v5046_v28  ;;  %v5104_v29 = vld [vmem:[#allocation4 + $0x2] sm:$0xff]  ;;  %v5108_v26 = vld [vmem:[#allocation4 + $0xa] sm:$0xff] }
 0x36c   : > { %v1927_v20 = vadd.f32 %v1926_v3, %v1922_v42  ;;  %2151 = vrot.lane.b32.xlu0 %v2147_v33, %s4089_s7  ;;  %2153 = vrot.lane.b32.xlu1 %v2148_v36, %s4089_s7  ;;  %v2190_v55 = vmul.f32 %v2188_v53, %v5049_v32  ;;  %v2203_v62 = vmul.f32 %v2202_v35, %v5046_v28  ;;  %v2344_v33 = vstv %s3796_s8  ;;  %s3809_s8 = sld [smem:[#allocation5 + $0xe1]] }
 0x36d   : > { %v2204_v50 = vmul.f32 %v2202_v35, %v5049_v32  ;;  %v2217_v37 = vmul.f32 %v2216_v12, %v5046_v28  ;;  %v2218_v24 = vmul.f32 %v2216_v12, %v5049_v32  ;;  %v2268_v25 = vmul.f32 %v2266_v51, %v5079_v21 }
 0x36e   : > { %v1935_v57 = vadd.f32 %v1933_v54, %v1927_v20  ;;  %v2238_v54 = vstv %s3788_s17  ;;  %v2281_v13 = vmul.f32 %v2280_v38, %v5074_v4  ;;  %v2282_v19 = vmul.f32 %v2280_v38, %v5079_v21  ;;  %s3799_s17 = sld [smem:[#allocation5 + $0xd7]] }
 0x36f   : > { %v2239_v23 = vmul.f32 %v2238_v54, %v5074_v4  ;;  %v2240_v27 = vmul.f32 %v2238_v54, %v5079_v21  ;;  %v2309_v10 = vmul.f32 %v2308_v6, %v5074_v4  ;;  %v2310_v16 = vmul.f32 %v2308_v6, %v5079_v21 }
 0x370   : > { %2165 = vrot.lane.b32.xlu0 %v2161_v41, %s4091_s11  ;;  %2167 = vrot.lane.b32.xlu1 %v2162_v18, %s4091_s11  ;;  %v1943_v49 = vadd.f32 %v1941_v2, %v1935_v57  ;;  %v1976_v2 = vstv %s3679_s26  ;;  %v2331_v42 = vmul.f32 %v2330_v59, %v5104_v29  ;;  %v2332_v20 = vmul.f32 %v2330_v59, %v5108_v26  ;;  %s3802_s26 = sld [smem:[#allocation5 + $0xda]] }
 0x371   : > { %v2345_v36 = vmul.f32 %v2344_v33, %v5104_v29  ;;  %v2358_v41 = vstv %s3797_s10  ;;  %v2346_v7 = vmul.f32 %v2344_v33, %v5108_v26  ;;  %v2372_v9 = vstv %s3798_s24  ;;  %s3810_s10 = sld [smem:[#allocation5 + $0xe2]]  ;;  %s3811_s24 = sld [smem:[#allocation5 + $0xe3]] }
 0x372   : > { %v1951_v34 = vadd.f32 %v1949_v30, %v1943_v49  ;;  %v2252_v30 = vstv %s3789_s19  ;;  %v2359_v14 = vmul.f32 %v2358_v41, %v5104_v29  ;;  %v2360_v57 = vmul.f32 %v2358_v41, %v5108_v26  ;;  %s3800_s19 = sld [smem:[#allocation5 + $0xd8]] }
 0x373   : > { %v2254_v8 = vmul.f32 %v2252_v30, %v5079_v21  ;;  %v2373_v18 = vmul.f32 %v2372_v9, %v5104_v29  ;;  %v2374_v53 = vmul.f32 %v2372_v9, %v5108_v26  ;;  %v5131_v35 = vsub.s32 0, %v4677_v11 }
 0x374   : > { %2179 = vrot.lane.b32.xlu0 %v2175_v43, %s4088_s5  ;;  %2181 = vrot.lane.b32.xlu1 %v2176_v52, %s4088_s5  ;;  %v1959_v45 = vadd.f32 %v1957_v31, %v1951_v34  ;;  %v2267_v31 = vmul.f32 %v2266_v51, %v5074_v4  ;;  %v2386_v43 = vstv %s3799_s17  ;;  %v2033_v12 = vsub.s32 2, %v4677_v11  ;;  %s5175_s17 = sld [smem:[#allocation5 + $0xe4]] }
 0x375   : > { %v2387_v49 = vmul.f32 %v2386_v43, %v5104_v29  ;;  %v2514_v59 = vstv %s3809_s8  ;;  %s5226_s8 = sld [smem:[#allocation5 + $0xeb]] }
 0x376   : > { %v1967_v56 = vadd.f32 %v5039_v5, %v1959_v45  ;;  %v2253_v5 = vmul.f32 %v2252_v30, %v5074_v4 }
 0x377   : > { %v2528_v33 = vstv %s3810_s10  ;;  %v2542_v41 = vstv %s3811_s24  ;;  %s5234_s10 = sld [smem:[#allocation5 + $0xec]]  ;;  %s5241_s24 = sld [smem:[#allocation5 + $0xed]] }
 0x378   : > { %2193 = vrot.lane.b32.xlu0 %v2189_v44, %s4092_s25  ;;  %2195 = vrot.lane.b32.xlu1 %v2190_v55, %s4092_s25  ;;  %v1975_v22 = vadd.f32 %v5043_v47, %v1967_v56  ;;  %v2294_v47 = vstv %s3792_s30  ;;  %v2388_v44 = vmul.f32 %v2386_v43, %v5108_v26  ;;  %v2022_v55 = vsub.s32 1, %v4677_v11  ;;  %s3805_s30 = sld [smem:[#allocation5 + $0xdd]] }
 0x379   : > { %v2295_v39 = vmul.f32 %v2294_v47, %v5074_v4  ;;  %v2296_v48 = vmul.f32 %v2294_v47, %v5079_v21  ;;  %v2400_v54 = vstv %s3800_s19  ;;  %s3780_s19 = sld [smem:[#allocation5 + $0xc4]] }
 0x37a   : > { %v1977_v0 = vadd.f32 %v1976_v2, %v1975_v22  ;;  %v2401_v56 = vmul.f32 %v2400_v54, %v5104_v29  ;;  %v2402_v30 = vmul.f32 %v2400_v54, %v5108_v26  ;;  %v5143_v22 = vld [vmem:[#allocation4 + $0xb] sm:$0xff]  ;;  %v2436_v2 = vstv %s3803_s27  ;;  %s5188_s27 = sld [smem:[#allocation5 + $0xe6]] }
 0x37c   : > { %2207 = vrot.lane.b32.xlu0 %v2203_v62, %s4090_s9  ;;  %2209 = vrot.lane.b32.xlu1 %v2204_v50, %s4090_s9  ;;  %v3778_v15 = vmul.f32 -1.442695, %v1977_v0  ;;  %v2044_v50 = vsub.s32 3, %v4677_v11  ;;  %v2450_v0 = vstv %s3804_s29  ;;  %s5196_s29 = sld [smem:[#allocation5 + $0xe8]] }
 0x37e   : > { %3958 = vpow2.f32 %v3778_v15  ;;  %v2464_v38 = vstv %s3805_s30  ;;  %v2452_v15 = vmul.f32 %v2450_v0, %v5143_v22  ;;  %s5198_s30 = sld [smem:[#allocation5 + $0xcb]] }
 0x37f   : > { %v2466_v47 = vmul.f32 %v2464_v38, %v5143_v22  ;;  %v2140_v43 = vstv %s3780_s19  ;;  %s5250_s19 = sld [smem:[#allocation5 + $0xd2]] }
 0x380   : > { %2221 = vrot.lane.b32.xlu0 %v2217_v37, %s4093_s28  ;;  %2223 = vrot.lane.b32.xlu1 %v2218_v24, %s4093_s28  ;;  %v5139_v24 = vld [vmem:[#allocation4 + $0x3] sm:$0xff] }
 0x381   : > { %v2437_v51 = vmul.f32 %v2436_v2, %v5139_v24 }
 0x384   : > { %2243 = vrot.lane.b32.xlu0 %v2239_v23, %s4089_s7  ;;  %2245 = vrot.lane.b32.xlu1 %v2240_v27, %s4089_s7  ;;  %v2422_v23 = vstv %s3802_s26  ;;  %s5181_s26 = sld [smem:[#allocation5 + $0xe5]] }
 0x385   : > { %v2423_v27 = vmul.f32 %v2422_v23, %v5139_v24 }
 0x388   : > { %2257 = vrot.lane.b32.xlu0 %v2253_v5, %s4091_s11  ;;  %2259 = vrot.lane.b32.xlu1 %v2254_v8, %s4091_s11  ;;  %v3959_v3 = vpop.eup %3958  ;;  %v2424_v5 = vmul.f32 %v2422_v23, %v5143_v22  ;;  %v2438_v8 = vmul.f32 %v2436_v2, %v5143_v22  ;;  %v2584_v23 = vstv %s5188_s27  ;;  %s5266_s27 = sld [smem:[#allocation5 + $0xf1]] }
 0x389   : > { %v1981_v40 = vadd.f32 1.0, %v3959_v3  ;;  %v5171_v3 = vld [vmem:[#allocation4 + $0xc] sm:$0xff] }
 0x38b   : > { %3960 = vrcp.f32 %v1981_v40 }
 0x38c   : > { %2271 = vrot.lane.b32.xlu0 %v2267_v31, %s4088_s5  ;;  %2273 = vrot.lane.b32.xlu1 %v2268_v25, %s4088_s5  ;;  %v2451_v31 = vmul.f32 %v2450_v0, %v5139_v24  ;;  %v2465_v25 = vmul.f32 %v2464_v38, %v5139_v24  ;;  %v5212_v0 = vld [vmem:[#allocation4 + $0x5] sm:$0xff]  ;;  %v2606_v38 = vstv %s5196_s29  ;;  %s5277_s29 = sld [smem:[#allocation5 + $0xf2]] }
 0x390   : > { %2285 = vrot.lane.b32.xlu0 %v2281_v13, %s4092_s25  ;;  %2287 = vrot.lane.b32.xlu1 %v2282_v19, %s4092_s25  ;;  %v2478_v13 = vstv %s3806_s4  ;;  %s5206_s4 = sld [smem:[#allocation5 + $0xe9]] }
 0x391   : > { %v2479_v19 = vmul.f32 %v2478_v13, %v5139_v24  ;;  %v2480_v6 = vmul.f32 %v2478_v13, %v5143_v22  ;;  %v2586_v13 = vmul.f32 %v2584_v23, %v5171_v3 }
 0x394   : > { %2299 = vrot.lane.b32.xlu0 %v2295_v39, %s4090_s9  ;;  %2301 = vrot.lane.b32.xlu1 %v2296_v48, %s4090_s9  ;;  %v2492_v39 = vstv %s3807_s6  ;;  %s5215_s6 = sld [smem:[#allocation5 + $0xea]] }
 0x395   : > { %v3961_v52 = vpop.eup %3960  ;;  %v2493_v48 = vmul.f32 %v2492_v39, %v5139_v24 }
 0x396   : > { %v2012_v34 = vrot.slane %v3961_v52, %v5131_v35  ;;  %v2023_v62 = vrot.slane %v3961_v52, %v2022_v55  ;;  %v2034_v45 = vrot.slane %v3961_v52, %v2033_v12  ;;  %v2045_v37 = vrot.slane %v3961_v52, %v2044_v50 }
 0x397   : > { %v2570_v55 = vstv %s5181_s26  ;;  %s5257_s26 = sld [smem:[#allocation5 + $0xf0]] }
 0x398   : > { %2313 = vrot.lane.b32.xlu0 %v2309_v10, %s4093_s28  ;;  %2315 = vrot.lane.b32.xlu1 %v2310_v16, %s4093_s28  ;;  %v5167_v10 = vld [vmem:[#allocation4 + $0x4] sm:$0xff]  ;;  %v2494_v16 = vmul.f32 %v2492_v39, %v5143_v22 }
 0x399   : > { %v2571_v54 = vmul.f32 %v2570_v55, %v5167_v10 }
 0x39c   : > { %2335 = vrot.lane.b32.xlu0 %v2331_v42, %s4089_s7  ;;  %2337 = vrot.lane.b32.xlu1 %v2332_v20, %s4089_s7  ;;  %v2515_v42 = vmul.f32 %v2514_v59, %v5167_v10  ;;  %v2516_v20 = vmul.f32 %v2514_v59, %v5171_v3 }
 0x3a0   : > { %2349 = vrot.lane.b32.xlu0 %v2345_v36, %s4091_s11  ;;  %2351 = vrot.lane.b32.xlu1 %v2346_v7, %s4091_s11  ;;  %v2529_v36 = vmul.f32 %v2528_v33, %v5167_v10 }
 0x3a4   : > { %2363 = vrot.lane.b32.xlu0 %v2359_v14, %s4088_s5  ;;  %2365 = vrot.lane.b32.xlu1 %v2360_v57, %s4088_s5  ;;  %v2530_v14 = vmul.f32 %v2528_v33, %v5171_v3  ;;  %v2543_v57 = vmul.f32 %v2542_v41, %v5167_v10  ;;  %v2620_v33 = vstv %s5206_s4  ;;  %s3828_s4 = sld [smem:[#allocation5 + $0xf4]] }
 0x3a8   : > { %2377 = vrot.lane.b32.xlu0 %v2373_v18, %s4092_s25  ;;  %2379 = vrot.lane.b32.xlu1 %v2374_v53, %s4092_s25  ;;  %v2556_v18 = vstv %s5175_s17  ;;  %s5248_s17 = sld [smem:[#allocation5 + $0xef]] }
 0x3a9   : > { %v2558_v12 = vmul.f32 %v2556_v18, %v5171_v3 }
 0x3ac   : > { %2391 = vrot.lane.b32.xlu0 %v2387_v49, %s4090_s9  ;;  %2393 = vrot.lane.b32.xlu1 %v2388_v44, %s4090_s9  ;;  %v2544_v49 = vmul.f32 %v2542_v41, %v5171_v3  ;;  %v2557_v44 = vmul.f32 %v2556_v18, %v5167_v10 }
 0x3b0   : > { %2014 = vbcast.lane.b32.xlu0 %v2012_v34, 256  ;;  %2018 = vbcast.lane.b32.xlu1 %v2012_v34, 264  ;;  %v2141_v34 = vmul.f32 %v2140_v43, %v5046_v28 }
 0x3b4   : > { %2025 = vbcast.lane.b32.xlu0 %v2023_v62, 256  ;;  %2029 = vbcast.lane.b32.xlu1 %v2023_v62, 264 }
 0x3b8   : > { %2036 = vbcast.lane.b32.xlu0 %v2034_v45, 256  ;;  %2040 = vbcast.lane.b32.xlu1 %v2034_v45, 264  ;;  %v2142_v45 = vmul.f32 %v2140_v43, %v5049_v32 }
 0x3bc   : > { %2047 = vbcast.lane.b32.xlu0 %v2045_v37, 256  ;;  %2051 = vbcast.lane.b32.xlu1 %v2045_v37, 264 }
 0x3c0   : > { %2405 = vrot.lane.b32.xlu0 %v2401_v56, %s4093_s28  ;;  %2407 = vrot.lane.b32.xlu1 %v2402_v30, %s4093_s28 }
 0x3c4   : > { %2427 = vrot.lane.b32.xlu0 %v2423_v27, %s4089_s7  ;;  %2429 = vrot.lane.b32.xlu1 %v2424_v5, %s4089_s7  ;;  %v2572_v27 = vmul.f32 %v2570_v55, %v5171_v3 }
 0x3c8   : > { %2441 = vrot.lane.b32.xlu0 %v2437_v51, %s4091_s11  ;;  %2443 = vrot.lane.b32.xlu1 %v2438_v8, %s4091_s11  ;;  %v2585_v51 = vmul.f32 %v2584_v23, %v5167_v10  ;;  %v2676_v23 = vstv %s5241_s24  ;;  %s5314_s24 = sld [smem:[#allocation5 + $0xf9]] }
 0x3cc   : > { %2455 = vrot.lane.b32.xlu0 %v2451_v31, %s4088_s5  ;;  %2457 = vrot.lane.b32.xlu1 %v2452_v15, %s4088_s5  ;;  %v2232_v15 = vstv %s5198_s30  ;;  %s3827_s30 = sld [smem:[#allocation5 + $0xf3]] }
 0x3cd   : > { %v2233_v59 = vmul.f32 %v2232_v15, %v5074_v4  ;;  %v2621_v4 = vmul.f32 %v2620_v33, %v5212_v0 }
 0x3d0   : > { %2469 = vrot.lane.b32.xlu0 %v2465_v25, %s4092_s25  ;;  %2471 = vrot.lane.b32.xlu1 %v2466_v47, %s4092_s25  ;;  %v5220_v47 = vld [vmem:[#allocation4 + $0xd] sm:$0xff] }
 0x3d1   : > { %v2622_v43 = vmul.f32 %v2620_v33, %v5220_v47 }
 0x3d4   : > { %2483 = vrot.lane.b32.xlu0 %v2479_v19, %s4090_s9  ;;  %2485 = vrot.lane.b32.xlu1 %v2480_v6, %s4090_s9 }
 0x3d8   : > { %2497 = vrot.lane.b32.xlu0 %v2493_v48, %s4093_s28  ;;  %2499 = vrot.lane.b32.xlu1 %v2494_v16, %s4093_s28  ;;  %v2607_v48 = vmul.f32 %v2606_v38, %v5212_v0 }
 0x3dc   : > { %2519 = vrot.lane.b32.xlu0 %v2515_v42, %s4089_s7  ;;  %2521 = vrot.lane.b32.xlu1 %v2516_v20, %s4089_s7 }
 0x3de   : > { %v2152_v40 = vpop.permute.xlu0 %2151  ;;  %v2154_v7 = vpop.permute.xlu1 %2153 }
 0x3df   : > { %v2157_v50 = vadd.f32 %v2152_v40, %v2141_v34  ;;  %v2158_v28 = vadd.f32 %v2154_v7, %v2142_v45  ;;  %v2608_v40 = vmul.f32 %v2606_v38, %v5220_v47 }
 0x3e0   : > { %2533 = vrot.lane.b32.xlu0 %v2529_v36, %s4091_s11  ;;  %2535 = vrot.lane.b32.xlu1 %v2530_v14, %s4091_s11  ;;  %v2234_v36 = vmul.f32 %v2232_v15, %v5079_v21  ;;  %v2698_v15 = vstv %s5248_s17  ;;  %s5325_s17 = sld [smem:[#allocation5 + $0xfa]] }
 0x3e2   : > { %v2166_v9 = vpop.permute.xlu0 %2165  ;;  %v2168_v53 = vpop.permute.xlu1 %2167 }
 0x3e3   : > { %v2171_v56 = vadd.f32 %v2166_v9, %v2157_v50  ;;  %v2172_v2 = vadd.f32 %v2168_v53, %v2158_v28 }
 0x3e4   : > { %2547 = vrot.lane.b32.xlu0 %v2543_v57, %s4088_s5  ;;  %2549 = vrot.lane.b32.xlu1 %v2544_v49, %s4088_s5  ;;  %v2634_v57 = vstv %s5215_s6  ;;  %v2648_v49 = vstv %s5226_s8  ;;  %s3830_s6 = sld [smem:[#allocation5 + $0xf6]]  ;;  %s3831_s8 = sld [smem:[#allocation5 + $0xf7]] }
 0x3e5   : > { %v2635_v53 = vmul.f32 %v2634_v57, %v5212_v0  ;;  %v2649_v55 = vmul.f32 %v2648_v49, %v5212_v0  ;;  %v2650_v45 = vmul.f32 %v2648_v49, %v5220_v47  ;;  %v2740_v49 = vstv %s5277_s29  ;;  %s5360_s29 = sld [smem:[#allocation5 + $0xfe]] }
 0x3e6   : > { %v2180_v52 = vpop.permute.xlu0 %2179  ;;  %v2182_v62 = vpop.permute.xlu1 %2181 }
 0x3e7   : > { %v2185_v32 = vadd.f32 %v2180_v52, %v2171_v56  ;;  %v2186_v8 = vadd.f32 %v2182_v62, %v2172_v2  ;;  %v2662_v62 = vstv %s5234_s10  ;;  %s5304_s10 = sld [smem:[#allocation5 + $0xf8]] }
 0x3e8   : > { %2561 = vrot.lane.b32.xlu0 %v2557_v44, %s4092_s25  ;;  %2563 = vrot.lane.b32.xlu1 %v2558_v12, %s4092_s25  ;;  %v2636_v44 = vmul.f32 %v2634_v57, %v5220_v47 }
 0x3ea   : > { %v2194_v37 = vpop.permute.xlu0 %2193  ;;  %v2196_v30 = vpop.permute.xlu1 %2195 }
 0x3eb   : > { %v2199_v31 = vadd.f32 %v2194_v37, %v2185_v32  ;;  %v2200_v19 = vadd.f32 %v2196_v30, %v2186_v8  ;;  %v5263_v8 = vld [vmem:[#allocation4 + $0x6] sm:$0xff] }
 0x3ec   : > { %2575 = vrot.lane.b32.xlu0 %v2571_v54, %s4090_s9  ;;  %2577 = vrot.lane.b32.xlu1 %v2572_v27, %s4090_s9  ;;  %v2663_v54 = vmul.f32 %v2662_v62, %v5212_v0  ;;  %v2664_v27 = vmul.f32 %v2662_v62, %v5220_v47  ;;  %v2754_v62 = vstv %s3827_s30  ;;  %s5370_s30 = sld [smem:[#allocation5 + $0xff]] }
 0x3ee   : > { %v2208_v5 = vpop.permute.xlu0 %2207  ;;  %v2210_v25 = vpop.permute.xlu1 %2209 }
 0x3ef   : > { %v2213_v39 = vadd.f32 %v2208_v5, %v2199_v31  ;;  %v2214_v16 = vadd.f32 %v2210_v25, %v2200_v19  ;;  %v2324_v25 = vstv %s5250_s19  ;;  %v2678_v19 = vmul.f32 %v2676_v23, %v5220_v47  ;;  %s5327_s19 = sld [smem:[#allocation5 + $0xd9]] }
 0x3f0   : > { %2589 = vrot.lane.b32.xlu0 %v2585_v51, %s4093_s28  ;;  %2591 = vrot.lane.b32.xlu1 %v2586_v13, %s4093_s28  ;;  %v2677_v51 = vmul.f32 %v2676_v23, %v5212_v0 }
 0x3f2   : > { %v2222_v6 = vpop.permute.xlu0 %2221  ;;  %v2224_v20 = vpop.permute.xlu1 %2223 }
 0x3f3   : > { %v2227_v42 = vadd.f32 %v2222_v6, %v2213_v39  ;;  %v2228_v41 = vadd.f32 %v2224_v20, %v2214_v16  ;;  %v5271_v39 = vld [vmem:[#allocation4 + $0xe] sm:$0xff]  ;;  %v2699_v16 = vmul.f32 %v2698_v15, %v5263_v8 }
 0x3f4   : > { %2611 = vrot.lane.b32.xlu0 %v2607_v48, %s4089_s7  ;;  %2613 = vrot.lane.b32.xlu1 %v2608_v40, %s4089_s7  ;;  %v2712_v40 = vstv %s5257_s26  ;;  %s5338_s26 = sld [smem:[#allocation5 + $0xfb]] }
 0x3f5   : > { %v2235_v7 = vadd.f32 %v2233_v59, %v2227_v42  ;;  %v2236_v9 = vadd.f32 %v2234_v36, %v2228_v41  ;;  %v2325_v42 = vmul.f32 %v2324_v25, %v5104_v29  ;;  %v2700_v41 = vmul.f32 %v2698_v15, %v5271_v39 }
 0x3f6   : > { %v2244_v14 = vpop.permute.xlu0 %2243  ;;  %v2246_v18 = vpop.permute.xlu1 %2245  ;;  %v2713_v29 = vmul.f32 %v2712_v40, %v5263_v8  ;;  %v2804_v15 = vstv %s3831_s8  ;;  %s5388_s8 = sld [smem:[#allocation5 + $0xe0]] }
 0x3f7   : > { %v2249_v50 = vadd.f32 %v2244_v14, %v2235_v7  ;;  %v2250_v28 = vadd.f32 %v2246_v18, %v2236_v9  ;;  %v2326_v7 = vmul.f32 %v2324_v25, %v5108_v26  ;;  %v2726_v18 = vstv %s5266_s27  ;;  %s5349_s27 = sld [smem:[#allocation5 + $0xfd]] }
 0x3f8   : > { %2625 = vrot.lane.b32.xlu0 %v2621_v4, %s4091_s11  ;;  %2627 = vrot.lane.b32.xlu1 %v2622_v43, %s4091_s11  ;;  %v2727_v26 = vmul.f32 %v2726_v18, %v5263_v8 }
 0x3fa   : > { %v2258_v21 = vpop.permute.xlu0 %2257  ;;  %v2260_v52 = vpop.permute.xlu1 %2259 }
 0x3fb   : > { %v2263_v56 = vadd.f32 %v2258_v21, %v2249_v50  ;;  %v2264_v2 = vadd.f32 %v2260_v52, %v2250_v28  ;;  %v2714_v21 = vmul.f32 %v2712_v40, %v5271_v39 }
 0x3fc   : > { %2639 = vrot.lane.b32.xlu0 %v2635_v53, %s4088_s5  ;;  %2641 = vrot.lane.b32.xlu1 %v2636_v44, %s4088_s5  ;;  %v2728_v44 = vmul.f32 %v2726_v18, %v5271_v39 }
 0x3fe   : > { %v2272_v34 = vpop.permute.xlu0 %2271  ;;  %v2274_v12 = vpop.permute.xlu1 %2273 }
 0x3ff   : > { %v2277_v32 = vadd.f32 %v2272_v34, %v2263_v56  ;;  %v2278_v31 = vadd.f32 %v2274_v12, %v2264_v2  ;;  %v2756_v56 = vmul.f32 %v2754_v62, %v5271_v39  ;;  %v5302_v2 = vld [vmem:[#allocation4 + $0x18] sm:$0xff] }
 0x400   : > { %2653 = vrot.lane.b32.xlu0 %v2649_v55, %s4092_s25  ;;  %2655 = vrot.lane.b32.xlu1 %v2650_v45, %s4092_s25  ;;  %v2741_v55 = vmul.f32 %v2740_v49, %v5263_v8  ;;  %v2742_v45 = vmul.f32 %v2740_v49, %v5271_v39 }
 0x402   : > { %v2286_v37 = vpop.permute.xlu0 %2285  ;;  %v2288_v30 = vpop.permute.xlu1 %2287 }
 0x403   : > { %v2291_v38 = vadd.f32 %v2286_v37, %v2277_v32  ;;  %v2292_v6 = vadd.f32 %v2288_v30, %v2278_v31  ;;  %v2755_v37 = vmul.f32 %v2754_v62, %v5263_v8 }
 0x404   : > { %2667 = vrot.lane.b32.xlu0 %v2663_v54, %s4090_s9  ;;  %2669 = vrot.lane.b32.xlu1 %v2664_v27, %s4090_s9  ;;  %v2768_v54 = vstv %s3828_s4  ;;  %v2790_v27 = vstv %s3830_s6  ;;  %s5379_s4 = sld [smem:[#allocation5 + $0x100]]  ;;  %s5386_s6 = sld [smem:[#allocation5 + $0x101]] }
 0x405   : > { %v2769_v30 = vmul.f32 %v2768_v54, %v5263_v8 }
 0x406   : > { %v2300_v5 = vpop.permute.xlu0 %2299  ;;  %v2302_v13 = vpop.permute.xlu1 %2301 }
 0x407   : > { %v2305_v48 = vadd.f32 %v2300_v5, %v2291_v38  ;;  %v2306_v33 = vadd.f32 %v2302_v13, %v2292_v6  ;;  %v2770_v5 = vmul.f32 %v2768_v54, %v5271_v39  ;;  %v2791_v38 = vmul.f32 %v2790_v27, %v5302_v2 }
 0x408   : > { %2681 = vrot.lane.b32.xlu0 %v2677_v51, %s4093_s28  ;;  %2683 = vrot.lane.b32.xlu1 %v2678_v19, %s4093_s28  ;;  %v5308_v51 = vld [vmem:[#allocation4 + $0x20] sm:$0xff]  ;;  %v2805_v6 = vmul.f32 %v2804_v15, %v5302_v2 }
 0x409   : > { %v2792_v13 = vmul.f32 %v2790_v27, %v5308_v51 }
 0x40a   : > { %v2314_v59 = vpop.permute.xlu0 %2313  ;;  %v2316_v36 = vpop.permute.xlu1 %2315 }
 0x40b   : > { %v2319_v20 = vadd.f32 %v2314_v59, %v2305_v48  ;;  %v2320_v14 = vadd.f32 %v2316_v36, %v2306_v33  ;;  %v2818_v48 = vstv %s5304_s10  ;;  %s5395_s10 = sld [smem:[#allocation5 + $0x102]] }
 0x40c   : > { %2703 = vrot.lane.b32.xlu0 %v2699_v16, %s4089_s7  ;;  %2705 = vrot.lane.b32.xlu1 %v2700_v41, %s4089_s7  ;;  %v2806_v16 = vmul.f32 %v2804_v15, %v5308_v51  ;;  %v2832_v41 = vstv %s5314_s24  ;;  %s5402_s24 = sld [smem:[#allocation5 + $0x104]] }
 0x40d   : > { %v2327_v4 = vadd.f32 %v2325_v42, %v2319_v20  ;;  %v2328_v57 = vadd.f32 %v2326_v7, %v2320_v14  ;;  %v2819_v20 = vmul.f32 %v2818_v48, %v5302_v2  ;;  %v2820_v14 = vmul.f32 %v2818_v48, %v5308_v51 }
 0x40e   : > { %v2336_v9 = vpop.permute.xlu0 %2335  ;;  %v2338_v43 = vpop.permute.xlu1 %2337  ;;  %v2833_v18 = vmul.f32 %v2832_v41, %v5302_v2  ;;  %v2834_v49 = vmul.f32 %v2832_v41, %v5308_v51  ;;  %v2896_v48 = vstv %s5360_s29  ;;  %s5439_s29 = sld [smem:[#allocation5 + $0xe7]] }
 0x40f   : > { %v2341_v42 = vadd.f32 %v2336_v9, %v2327_v4  ;;  %v2342_v40 = vadd.f32 %v2338_v43, %v2328_v57 }
 0x410   : > { %2717 = vrot.lane.b32.xlu0 %v2713_v29, %s4091_s11  ;;  %2719 = vrot.lane.b32.xlu1 %v2714_v21, %s4091_s11  ;;  %v2846_v21 = vstv %s5325_s17  ;;  %s5411_s17 = sld [smem:[#allocation5 + $0x105]] }
 0x411   : > { %v2848_v54 = vmul.f32 %v2846_v21, %v5308_v51 }
 0x412   : > { %v2350_v53 = vpop.permute.xlu0 %2349  ;;  %v2352_v52 = vpop.permute.xlu1 %2351 }
 0x413   : > { %v2355_v36 = vadd.f32 %v2350_v53, %v2341_v42  ;;  %v2356_v4 = vadd.f32 %v2352_v52, %v2342_v40  ;;  %v2416_v53 = vstv %s5327_s19  ;;  %s5421_s19 = sld [smem:[#allocation5 + $0x106]] }
 0x414   : > { %2731 = vrot.lane.b32.xlu0 %v2727_v26, %s4088_s5  ;;  %2733 = vrot.lane.b32.xlu1 %v2728_v44, %s4088_s5  ;;  %v2417_v62 = vmul.f32 %v2416_v53, %v5139_v24 }
 0x416   : > { %v2364_v34 = vpop.permute.xlu0 %2363  ;;  %v2366_v12 = vpop.permute.xlu1 %2365 }
 0x417   : > { %v2369_v9 = vadd.f32 %v2364_v34, %v2355_v36  ;;  %v2370_v57 = vadd.f32 %v2366_v12, %v2356_v4  ;;  %v2910_v36 = vstv %s5370_s30  ;;  %s5446_s30 = sld [smem:[#allocation5 + $0x109]] }
 0x418   : > { %2745 = vrot.lane.b32.xlu0 %v2741_v55, %s4092_s25  ;;  %2747 = vrot.lane.b32.xlu1 %v2742_v45, %s4092_s25  ;;  %v2847_v55 = vmul.f32 %v2846_v21, %v5302_v2  ;;  %v2924_v21 = vstv %s5379_s4  ;;  %s5453_s4 = sld [smem:[#allocation5 + $0x10b]] }
 0x41a   : > { %v2378_v50 = vpop.permute.xlu0 %2377  ;;  %v2380_v28 = vpop.permute.xlu1 %2379 }
 0x41b   : > { %v2383_v43 = vadd.f32 %v2378_v50, %v2369_v9  ;;  %v2384_v52 = vadd.f32 %v2380_v28, %v2370_v57  ;;  %v2860_v50 = vstv %s5338_s26  ;;  %v2418_v28 = vmul.f32 %v2416_v53, %v5143_v22  ;;  %v5374_v22 = vld [vmem:[#allocation4 + $0x21] sm:$0xff]  ;;  %s5430_s26 = sld [smem:[#allocation5 + $0x107]] }
 0x41c   : > { %2759 = vrot.lane.b32.xlu0 %v2755_v37, %s4090_s9  ;;  %2761 = vrot.lane.b32.xlu1 %v2756_v56, %s4090_s9  ;;  %v2861_v24 = vmul.f32 %v2860_v50, %v5302_v2  ;;  %v2862_v15 = vmul.f32 %v2860_v50, %v5308_v51  ;;  %v2508_v50 = vstv %s5388_s8  ;;  %s5472_s8 = sld [smem:[#allocation5 + $0x10d]] }
 0x41e   : > { %v2392_v23 = vpop.permute.xlu0 %2391  ;;  %v2394_v32 = vpop.permute.xlu1 %2393 }
 0x41f   : > { %v2397_v44 = vadd.f32 %v2392_v23, %v2383_v43  ;;  %v2398_v12 = vadd.f32 %v2394_v32, %v2384_v52  ;;  %v2882_v32 = vstv %s5349_s27  ;;  %s5437_s27 = sld [smem:[#allocation5 + $0x108]] }
 0x420   : > { %2773 = vrot.lane.b32.xlu0 %v2769_v30, %s4093_s28  ;;  %2775 = vrot.lane.b32.xlu1 %v2770_v5, %s4093_s28  ;;  %v5368_v5 = vld [vmem:[#allocation4 + $0x19] sm:$0xff]  ;;  %v2884_v42 = vmul.f32 %v2882_v32, %v5374_v22 }
 0x421   : > { %v2897_v40 = vmul.f32 %v2896_v48, %v5368_v5 }
 0x422   : > { %v5311_v31 = vpop.permute.xlu0 %2014  ;;  %v5316_v25 = vpop.permute.xlu1 %2018 }
 0x424   : > { %2795 = vrot.lane.b32.xlu0 %v2791_v38, %s4089_s7  ;;  %2797 = vrot.lane.b32.xlu1 %v2792_v13, %s4089_s7 }
 0x426   : > { %v5321_v19 = vpop.permute.xlu0 %2025  ;;  %v5329_v59 = vpop.permute.xlu1 %2029 }
 0x428   : > { %2809 = vrot.lane.b32.xlu0 %v2805_v6, %s4091_s11  ;;  %2811 = vrot.lane.b32.xlu1 %v2806_v16, %s4091_s11  ;;  %v2883_v6 = vmul.f32 %v2882_v32, %v5368_v5 }
 0x42a   : > { %v5334_v33 = vpop.permute.xlu0 %2036  ;;  %v5340_v7 = vpop.permute.xlu1 %2040 }
 0x42c   : > { %2823 = vrot.lane.b32.xlu0 %v2819_v20, %s4088_s5  ;;  %2825 = vrot.lane.b32.xlu1 %v2820_v14, %s4088_s5  ;;  %v2898_v14 = vmul.f32 %v2896_v48, %v5374_v22 }
 0x42e   : > { %v5345_v29 = vpop.permute.xlu0 %2047  ;;  %v5352_v26 = vpop.permute.xlu1 %2051 }
 0x430   : > { %2837 = vrot.lane.b32.xlu0 %v2833_v18, %s4092_s25  ;;  %2839 = vrot.lane.b32.xlu1 %v2834_v49, %s4092_s25  ;;  %v2911_v18 = vmul.f32 %v2910_v36, %v5368_v5  ;;  %v2912_v49 = vmul.f32 %v2910_v36, %v5374_v22  ;;  %v5419_v36 = vld [vmem:[#allocation4 + $0x1a] sm:$0xff] }
 0x432   : > { %v2406_v34 = vpop.permute.xlu0 %2405  ;;  %v2408_v37 = vpop.permute.xlu1 %2407 }
 0x433   : > { %v2411_v45 = vadd.f32 %v2406_v34, %v2397_v44  ;;  %v2412_v56 = vadd.f32 %v2408_v37, %v2398_v12 }
 0x434   : > { %2851 = vrot.lane.b32.xlu0 %v2847_v55, %s4090_s9  ;;  %2853 = vrot.lane.b32.xlu1 %v2848_v54, %s4090_s9  ;;  %v2925_v55 = vmul.f32 %v2924_v21, %v5368_v5  ;;  %v2926_v54 = vmul.f32 %v2924_v21, %v5374_v22 }
 0x435   : > { %v2419_v23 = vadd.f32 %v2417_v62, %v2411_v45  ;;  %v2420_v27 = vadd.f32 %v2418_v28, %v2412_v56  ;;  %v2938_v45 = vstv %s5386_s6  ;;  %s5462_s6 = sld [smem:[#allocation5 + $0x10c]] }
 0x436   : > { %v2428_v30 = vpop.permute.xlu0 %2427  ;;  %v2430_v38 = vpop.permute.xlu1 %2429 }
 0x437   : > { %v2433_v4 = vadd.f32 %v2428_v30, %v2419_v23  ;;  %v2434_v57 = vadd.f32 %v2430_v38, %v2420_v27  ;;  %v2939_v30 = vmul.f32 %v2938_v45, %v5368_v5  ;;  %v2952_v38 = vstv %s5395_s10  ;;  %s5481_s10 = sld [smem:[#allocation5 + $0x10e]] }
 0x438   : > { %2865 = vrot.lane.b32.xlu0 %v2861_v24, %s4093_s28  ;;  %2867 = vrot.lane.b32.xlu1 %v2862_v15, %s4093_s28  ;;  %v2509_v24 = vmul.f32 %v2508_v50, %v5167_v10  ;;  %v2953_v10 = vmul.f32 %v2952_v38, %v5368_v5 }
 0x43a   : > { %v2442_v13 = vpop.permute.xlu0 %2441  ;;  %v2444_v16 = vpop.permute.xlu1 %2443 }
 0x43b   : > { %v2447_v43 = vadd.f32 %v2442_v13, %v2433_v4  ;;  %v2448_v52 = vadd.f32 %v2444_v16, %v2434_v57  ;;  %v2940_v13 = vmul.f32 %v2938_v45, %v5374_v22 }
 0x43c   : > { %2887 = vrot.lane.b32.xlu0 %v2883_v6, %s4089_s7  ;;  %2889 = vrot.lane.b32.xlu1 %v2884_v42, %s4089_s7  ;;  %v2510_v6 = vmul.f32 %v2508_v50, %v5171_v3  ;;  %v5425_v3 = vld [vmem:[#allocation4 + $0x22] sm:$0xff]  ;;  %v3016_v50 = vstv %s5430_s26  ;;  %s5504_s26 = sld [smem:[#allocation5 + $0x112]] }
 0x43e   : > { %v2456_v20 = vpop.permute.xlu0 %2455  ;;  %v2458_v41 = vpop.permute.xlu1 %2457 }
 0x43f   : > { %v2461_v44 = vadd.f32 %v2456_v20, %v2447_v43  ;;  %v2462_v62 = vadd.f32 %v2458_v41, %v2448_v52 }
 0x440   : > { %2901 = vrot.lane.b32.xlu0 %v2897_v40, %s4091_s11  ;;  %2903 = vrot.lane.b32.xlu1 %v2898_v14, %s4091_s11  ;;  %v2974_v40 = vstv %s5402_s24  ;;  %v2954_v14 = vmul.f32 %v2952_v38, %v5374_v22  ;;  %v2600_v38 = vstv %s5439_s29  ;;  %s5488_s24 = sld [smem:[#allocation5 + $0x10f]]  ;;  %s5523_s29 = sld [smem:[#allocation5 + $0x114]] }
 0x441   : > { %v2976_v43 = vmul.f32 %v2974_v40, %v5425_v3 }
 0x442   : > { %v2470_v9 = vpop.permute.xlu0 %2469  ;;  %v2472_v53 = vpop.permute.xlu1 %2471 }
 0x443   : > { %v2475_v12 = vadd.f32 %v2470_v9, %v2461_v44  ;;  %v2476_v28 = vadd.f32 %v2472_v53, %v2462_v62  ;;  %v2975_v9 = vmul.f32 %v2974_v40, %v5419_v36 }
 0x444   : > { %2915 = vrot.lane.b32.xlu0 %v2911_v18, %s4088_s5  ;;  %2917 = vrot.lane.b32.xlu1 %v2912_v49, %s4088_s5  ;;  %v2988_v18 = vstv %s5411_s17  ;;  %v3002_v49 = vstv %s5421_s19  ;;  %s5490_s17 = sld [smem:[#allocation5 + $0xee]]  ;;  %s5497_s19 = sld [smem:[#allocation5 + $0x110]] }
 0x445   : > { %v2989_v53 = vmul.f32 %v2988_v18, %v5419_v36  ;;  %v2990_v44 = vmul.f32 %v2988_v18, %v5425_v3  ;;  %v3003_v62 = vmul.f32 %v3002_v49, %v5419_v36 }
 0x446   : > { %v2484_v34 = vpop.permute.xlu0 %2483  ;;  %v2486_v37 = vpop.permute.xlu1 %2485 }
 0x447   : > { %v2489_v56 = vadd.f32 %v2484_v34, %v2475_v12  ;;  %v2490_v27 = vadd.f32 %v2486_v37, %v2476_v28 }
 0x448   : > { %2929 = vrot.lane.b32.xlu0 %v2925_v55, %s4092_s25  ;;  %2931 = vrot.lane.b32.xlu1 %v2926_v54, %s4092_s25  ;;  %v3004_v54 = vmul.f32 %v3002_v49, %v5425_v3  ;;  %v5470_v49 = vld [vmem:[#allocation4 + $0x1b] sm:$0xff] }
 0x44a   : > { %v2498_v23 = vpop.permute.xlu0 %2497  ;;  %v2500_v15 = vpop.permute.xlu1 %2499 }
 0x44b   : > { %v2503_v32 = vadd.f32 %v2498_v23, %v2489_v56  ;;  %v2504_v48 = vadd.f32 %v2500_v15, %v2490_v27 }
 0x44c   : > { %2943 = vrot.lane.b32.xlu0 %v2939_v30, %s4090_s9  ;;  %2945 = vrot.lane.b32.xlu1 %v2940_v13, %s4090_s9  ;;  %v3017_v30 = vmul.f32 %v3016_v50, %v5419_v36  ;;  %v3018_v13 = vmul.f32 %v3016_v50, %v5425_v3 }
 0x44d   : > { %v2511_v16 = vadd.f32 %v2509_v24, %v2503_v32  ;;  %v2512_v20 = vadd.f32 %v2510_v6, %v2504_v48  ;;  %v3030_v32 = vstv %s5437_s27  ;;  %s5513_s27 = sld [smem:[#allocation5 + $0x113]] }
 0x44e   : > { %v2520_v42 = vpop.permute.xlu0 %2519  ;;  %v2522_v41 = vpop.permute.xlu1 %2521 }
 0x44f   : > { %v2525_v34 = vadd.f32 %v2520_v42, %v2511_v16  ;;  %v2526_v12 = vadd.f32 %v2522_v41, %v2512_v20  ;;  %v3031_v42 = vmul.f32 %v3030_v32, %v5419_v36  ;;  %v3044_v41 = vstv %s5446_s30  ;;  %s5532_s30 = sld [smem:[#allocation5 + $0x115]] }
 0x450   : > { %2957 = vrot.lane.b32.xlu0 %v2953_v10, %s4093_s28  ;;  %2959 = vrot.lane.b32.xlu1 %v2954_v14, %s4093_s28  ;;  %v2601_v10 = vmul.f32 %v2600_v38, %v5212_v0  ;;  %v3045_v0 = vmul.f32 %v3044_v41, %v5419_v36 }
 0x452   : > { %v2534_v4 = vpop.permute.xlu0 %2533  ;;  %v2536_v57 = vpop.permute.xlu1 %2535 }
 0x453   : > { %v2539_v45 = vadd.f32 %v2534_v4, %v2525_v34  ;;  %v2540_v28 = vadd.f32 %v2536_v57, %v2526_v12  ;;  %v3032_v4 = vmul.f32 %v3030_v32, %v5425_v3 }
 0x454   : > { %2979 = vrot.lane.b32.xlu0 %v2975_v9, %s4089_s7  ;;  %2981 = vrot.lane.b32.xlu1 %v2976_v43, %s4089_s7  ;;  %v2602_v9 = vmul.f32 %v2600_v38, %v5220_v47  ;;  %v5476_v47 = vld [vmem:[#allocation4 + $0x23] sm:$0xff]  ;;  %v3108_v38 = vstv %s5481_s10  ;;  %s5555_s10 = sld [smem:[#allocation5 + $0x119]] }
 0x456   : > { %v2548_v21 = vpop.permute.xlu0 %2547  ;;  %v2550_v52 = vpop.permute.xlu1 %2549 }
 0x457   : > { %v2553_v56 = vadd.f32 %v2548_v21, %v2539_v45  ;;  %v2554_v24 = vadd.f32 %v2550_v52, %v2540_v28 }
 0x458   : > { %2993 = vrot.lane.b32.xlu0 %v2989_v53, %s4091_s11  ;;  %2995 = vrot.lane.b32.xlu1 %v2990_v44, %s4091_s11  ;;  %v3066_v53 = vstv %s5453_s4  ;;  %v3046_v44 = vmul.f32 %v3044_v41, %v5425_v3  ;;  %v2692_v41 = vstv %s5490_s17  ;;  %s5539_s4 = sld [smem:[#allocation5 + $0x116]]  ;;  %s5574_s17 = sld [smem:[#allocation5 + $0x11b]] }
 0x459   : > { %v3068_v45 = vmul.f32 %v3066_v53, %v5476_v47 }
 0x45a   : > { %v2562_v55 = vpop.permute.xlu0 %2561  ;;  %v2564_v37 = vpop.permute.xlu1 %2563 }
 0x45b   : > { %v2567_v27 = vadd.f32 %v2562_v55, %v2553_v56  ;;  %v2568_v6 = vadd.f32 %v2564_v37, %v2554_v24  ;;  %v3067_v55 = vmul.f32 %v3066_v53, %v5470_v49 }
 0x45c   : > { %3007 = vrot.lane.b32.xlu0 %v3003_v62, %s4088_s5  ;;  %3009 = vrot.lane.b32.xlu1 %v3004_v54, %s4088_s5  ;;  %v3080_v62 = vstv %s5462_s6  ;;  %v3094_v54 = vstv %s5472_s8  ;;  %s5543_s6 = sld [smem:[#allocation5 + $0xf5]]  ;;  %s5548_s8 = sld [smem:[#allocation5 + $0x117]] }
 0x45d   : > { %v3081_v37 = vmul.f32 %v3080_v62, %v5470_v49  ;;  %v3082_v56 = vmul.f32 %v3080_v62, %v5476_v47  ;;  %v3095_v24 = vmul.f32 %v3094_v54, %v5470_v49 }
 0x45e   : > { %v2576_v23 = vpop.permute.xlu0 %2575  ;;  %v2578_v15 = vpop.permute.xlu1 %2577 }
 0x45f   : > { %v2581_v48 = vadd.f32 %v2576_v23, %v2567_v27  ;;  %v2582_v20 = vadd.f32 %v2578_v15, %v2568_v6 }
 0x460   : > { %3021 = vrot.lane.b32.xlu0 %v3017_v30, %s4092_s25  ;;  %3023 = vrot.lane.b32.xlu1 %v3018_v13, %s4092_s25  ;;  %v3096_v13 = vmul.f32 %v3094_v54, %v5476_v47  ;;  %v3158_v54 = vstv %s5504_s26  ;;  %s5590_s26 = sld [smem:[#allocation5 + $0x11d]] }
 0x462   : > { %v2590_v16 = vpop.permute.xlu0 %2589  ;;  %v2592_v14 = vpop.permute.xlu1 %2591 }
 0x463   : > { %v2595_v40 = vadd.f32 %v2590_v16, %v2581_v48  ;;  %v2596_v18 = vadd.f32 %v2592_v14, %v2582_v20 }
 0x464   : > { %3035 = vrot.lane.b32.xlu0 %v3031_v42, %s4090_s9  ;;  %3037 = vrot.lane.b32.xlu1 %v3032_v4, %s4090_s9  ;;  %v3109_v42 = vmul.f32 %v3108_v38, %v5470_v49  ;;  %v3110_v4 = vmul.f32 %v3108_v38, %v5476_v47  ;;  %v3172_v38 = vstv %s5513_s27  ;;  %s5594_s27 = sld [smem:[#allocation5 + $0xfc]] }
 0x465   : > { %v2603_v57 = vadd.f32 %v2601_v10, %v2595_v40  ;;  %v2604_v21 = vadd.f32 %v2602_v9, %v2596_v18  ;;  %v3122_v40 = vstv %s5488_s24  ;;  %s5564_s24 = sld [smem:[#allocation5 + $0x11a]] }
 0x466   : > { %v2612_v43 = vpop.permute.xlu0 %2611  ;;  %v2614_v52 = vpop.permute.xlu1 %2613 }
 0x467   : > { %v2617_v23 = vadd.f32 %v2612_v43, %v2603_v57  ;;  %v2618_v27 = vadd.f32 %v2614_v52, %v2604_v21  ;;  %v3123_v43 = vmul.f32 %v3122_v40, %v5470_v49  ;;  %v3136_v52 = vstv %s5497_s19  ;;  %s5583_s19 = sld [smem:[#allocation5 + $0x11c]] }
 0x468   : > { %3049 = vrot.lane.b32.xlu0 %v3045_v0, %s4093_s28  ;;  %3051 = vrot.lane.b32.xlu1 %v3046_v44, %s4093_s28  ;;  %v2693_v0 = vmul.f32 %v2692_v41, %v5263_v8  ;;  %v3137_v8 = vmul.f32 %v3136_v52, %v5470_v49 }
 0x46a   : > { %v2626_v34 = vpop.permute.xlu0 %2625  ;;  %v2628_v12 = vpop.permute.xlu1 %2627 }
 0x46b   : > { %v2631_v32 = vadd.f32 %v2626_v34, %v2617_v23  ;;  %v2632_v6 = vadd.f32 %v2628_v12, %v2618_v27  ;;  %v3124_v34 = vmul.f32 %v3122_v40, %v5476_v47  ;;  %v3138_v23 = vmul.f32 %v3136_v52, %v5476_v47 }
 0x46c   : > { %3071 = vrot.lane.b32.xlu0 %v3067_v55, %s4089_s7  ;;  %3073 = vrot.lane.b32.xlu1 %v3068_v45, %s4089_s7  ;;  %v2694_v55 = vmul.f32 %v2692_v41, %v5271_v39 }
 0x46e   : > { %v2640_v50 = vpop.permute.xlu0 %2639  ;;  %v2642_v28 = vpop.permute.xlu1 %2641 }
 0x46f   : > { %v2645_v48 = vadd.f32 %v2640_v50, %v2631_v32  ;;  %v2646_v10 = vadd.f32 %v2642_v28, %v2632_v6  ;;  %v5521_v28 = vld [vmem:[#allocation4 + $0x1c] sm:$0xff] }
 0x470   : > { %3085 = vrot.lane.b32.xlu0 %v3081_v37, %s4091_s11  ;;  %3087 = vrot.lane.b32.xlu1 %v3082_v56, %s4091_s11  ;;  %v3159_v27 = vmul.f32 %v3158_v54, %v5521_v28 }
 0x472   : > { %v2654_v30 = vpop.permute.xlu0 %2653  ;;  %v2656_v15 = vpop.permute.xlu1 %2655 }
 0x473   : > { %v2659_v20 = vadd.f32 %v2654_v30, %v2645_v48  ;;  %v2660_v9 = vadd.f32 %v2656_v15, %v2646_v10  ;;  %v5527_v30 = vld [vmem:[#allocation4 + $0x24] sm:$0xff]  ;;  %v3186_v10 = vstv %s5523_s29  ;;  %s5599_s29 = sld [smem:[#allocation5 + $0x11e]] }
 0x474   : > { %3099 = vrot.lane.b32.xlu0 %v3095_v24, %s4088_s5  ;;  %3101 = vrot.lane.b32.xlu1 %v3096_v13, %s4088_s5  ;;  %v3160_v13 = vmul.f32 %v3158_v54, %v5527_v30  ;;  %v3174_v40 = vmul.f32 %v3172_v38, %v5527_v30  ;;  %v3228_v54 = vstv %s5548_s8  ;;  %s5634_s8 = sld [smem:[#allocation5 + $0x123]] }
 0x476   : > { %v2668_v16 = vpop.permute.xlu0 %2667  ;;  %v2670_v14 = vpop.permute.xlu1 %2669 }
 0x477   : > { %v2673_v18 = vadd.f32 %v2668_v16, %v2659_v20  ;;  %v2674_v21 = vadd.f32 %v2670_v14, %v2660_v9  ;;  %v3173_v16 = vmul.f32 %v3172_v38, %v5521_v28  ;;  %v3229_v38 = vmul.f32 %v3228_v54, %v5521_v28 }
 0x478   : > { %3113 = vrot.lane.b32.xlu0 %v3109_v42, %s4092_s25  ;;  %3115 = vrot.lane.b32.xlu1 %v3110_v4, %s4092_s25  ;;  %v3187_v4 = vmul.f32 %v3186_v10, %v5521_v28 }
 0x47a   : > { %v2682_v57 = vpop.permute.xlu0 %2681  ;;  %v2684_v44 = vpop.permute.xlu1 %2683 }
 0x47b   : > { %v2687_v53 = vadd.f32 %v2682_v57, %v2673_v18  ;;  %v2688_v62 = vadd.f32 %v2684_v44, %v2674_v21  ;;  %v3200_v18 = vstv %s5532_s30  ;;  %v3214_v44 = vstv %s5539_s4  ;;  %s5606_s30 = sld [smem:[#allocation5 + $0x120]]  ;;  %s5615_s4 = sld [smem:[#allocation5 + $0x121]] }
 0x47c   : > { %3127 = vrot.lane.b32.xlu0 %v3123_v43, %s4090_s9  ;;  %3129 = vrot.lane.b32.xlu1 %v3124_v34, %s4090_s9  ;;  %v3188_v43 = vmul.f32 %v3186_v10, %v5527_v30 }
 0x47d   : > { %v2695_v12 = vadd.f32 %v2693_v0, %v2687_v53  ;;  %v2696_v50 = vadd.f32 %v2694_v55, %v2688_v62  ;;  %v3201_v53 = vmul.f32 %v3200_v18, %v5521_v28  ;;  %v3202_v55 = vmul.f32 %v3200_v18, %v5527_v30 }
 0x47e   : > { %v2704_v45 = vpop.permute.xlu0 %2703  ;;  %v2706_v56 = vpop.permute.xlu1 %2705  ;;  %v2784_v62 = vstv %s5543_s6  ;;  %s5625_s6 = sld [smem:[#allocation5 + $0x122]] }
 0x47f   : > { %v2709_v37 = vadd.f32 %v2704_v45, %v2695_v12  ;;  %v2710_v39 = vadd.f32 %v2706_v56, %v2696_v50  ;;  %v2785_v50 = vmul.f32 %v2784_v62, %v5302_v2 }
 0x480   : > { %3141 = vrot.lane.b32.xlu0 %v3137_v8, %s4093_s28  ;;  %3143 = vrot.lane.b32.xlu1 %v3138_v23, %s4093_s28  ;;  %v3215_v8 = vmul.f32 %v3214_v44, %v5521_v28  ;;  %v3216_v23 = vmul.f32 %v3214_v44, %v5527_v30 }
 0x482   : > { %v2718_v24 = vpop.permute.xlu0 %2717  ;;  %v2720_v15 = vpop.permute.xlu1 %2719 }
 0x483   : > { %v2723_v32 = vadd.f32 %v2718_v24, %v2709_v37  ;;  %v2724_v6 = vadd.f32 %v2720_v15, %v2710_v39  ;;  %v2786_v24 = vmul.f32 %v2784_v62, %v5308_v51  ;;  %v3292_v62 = vstv %s5583_s19  ;;  %s188_s19 = sand.u32 1, %s4074_s13  }
 0x484   : > { %3163 = vrot.lane.b32.xlu0 %v3159_v27, %s4089_s7  ;;  %3165 = vrot.lane.b32.xlu1 %v3160_v13, %s4089_s7  ;;  %v3250_v13 = vstv %s5555_s10  ;;  %s5641_s10 = sld [smem:[#allocation5 + $0x124]] }
 0x486   : > { %v2732_v48 = vpop.permute.xlu0 %2731  ;;  %v2734_v20 = vpop.permute.xlu1 %2733 }
 0x487   : > { %v2737_v42 = vadd.f32 %v2732_v48, %v2723_v32  ;;  %v2738_v41 = vadd.f32 %v2734_v20, %v2724_v6  ;;  %v5572_v6 = vld [vmem:[#allocation4 + $0x1d] sm:$0xff] }
 0x488   : > { %3177 = vrot.lane.b32.xlu0 %v3173_v16, %s4091_s11  ;;  %3179 = vrot.lane.b32.xlu1 %v3174_v40, %s4091_s11  ;;  %v3230_v16 = vmul.f32 %v3228_v54, %v5527_v30  ;;  %v3251_v20 = vmul.f32 %v3250_v13, %v5572_v6  ;;  %v3306_v54 = vstv %s5590_s26  ;;  %s3578_s26 = sshll.u32 %s188_s19, 6 }
 0x48a   : > { %v2746_v14 = vpop.permute.xlu0 %2745  ;;  %v2748_v57 = vpop.permute.xlu1 %2747 }
 0x48b   : > { %v2751_v9 = vadd.f32 %v2746_v14, %v2737_v42  ;;  %v2752_v0 = vadd.f32 %v2748_v57, %v2738_v41  ;;  %v5578_v42 = vld [vmem:[#allocation4 + $0x25] sm:$0xff]  ;;  %v3264_v41 = vstv %s5564_s24  ;;  %s5645_s24 = sld [smem:[#allocation5 + $0x103]] }
 0x48c   : > { %3191 = vrot.lane.b32.xlu0 %v3187_v4, %s4088_s5  ;;  %3193 = vrot.lane.b32.xlu1 %v3188_v43, %s4088_s5  ;;  %v3252_v4 = vmul.f32 %v3250_v13, %v5578_v42  ;;  %v3265_v57 = vmul.f32 %v3264_v41, %v5572_v6  ;;  %v3320_v13 = vstv %s5599_s29  ;;  %s5704_s29 = scalar_lea.vmem [#allocation10], %s3578_s26 }
 0x48e   : > { %v2760_v21 = vpop.permute.xlu0 %2759  ;;  %v2762_v34 = vpop.permute.xlu1 %2761 }
 0x48f   : > { %v2765_v52 = vadd.f32 %v2760_v21, %v2751_v9  ;;  %v2766_v12 = vadd.f32 %v2762_v34, %v2752_v0  ;;  %v3278_v0 = vstv %s5574_s17  ;;  %s3779_s17 = sld [smem:[#allocation8 + $0x2]] }
 0x490   : > { %3205 = vrot.lane.b32.xlu0 %v3201_v53, %s4092_s25  ;;  %3207 = vrot.lane.b32.xlu1 %v3202_v55, %s4092_s25  ;;  %v3266_v53 = vmul.f32 %v3264_v41, %v5578_v42  ;;  %v3279_v34 = vmul.f32 %v3278_v0, %v5572_v6  ;;  %v3321_v41 = vmul.f32 %v3320_v13, %v5572_v6 }
 0x492   : > { %v2774_v45 = vpop.permute.xlu0 %2773  ;;  %v2776_v56 = vpop.permute.xlu1 %2775 }
 0x493   : > { %v2779_v37 = vadd.f32 %v2774_v45, %v2765_v52  ;;  %v2780_v39 = vadd.f32 %v2776_v56, %v2766_v12  ;;  %v3280_v45 = vmul.f32 %v3278_v0, %v5578_v42  ;;  %v3356_v0 = vstv %s5615_s4 }
 0x494   : > { %3219 = vrot.lane.b32.xlu0 %v3215_v8, %s4090_s9  ;;  %3221 = vrot.lane.b32.xlu1 %v3216_v23, %s4090_s9  ;;  %v3294_v23 = vmul.f32 %v3292_v62, %v5578_v42 }
 0x495   : > { %v2787_v27 = vadd.f32 %v2785_v50, %v2779_v37  ;;  %v2788_v2 = vadd.f32 %v2786_v24, %v2780_v39  ;;  %v3293_v37 = vmul.f32 %v3292_v62, %v5572_v6  ;;  %v2876_v39 = vstv %s5594_s27  ;;  %s3886_s27 = sshll.u32 %s4139_s16, 10 }
 0x496   : > { %v2796_v32 = vpop.permute.xlu0 %2795  ;;  %v2798_v48 = vpop.permute.xlu1 %2797 }
 0x497   : > { %v2801_v15 = vadd.f32 %v2796_v32, %v2787_v27  ;;  %v2802_v51 = vadd.f32 %v2798_v48, %v2788_v2  ;;  %v3307_v32 = vmul.f32 %v3306_v54, %v5572_v6  ;;  %v2877_v2 = vmul.f32 %v2876_v39, %v5368_v5 }
 0x498   : > { %3233 = vrot.lane.b32.xlu0 %v3229_v38, %s4093_s28  ;;  %3235 = vrot.lane.b32.xlu1 %v3230_v16, %s4093_s28  ;;  %v3308_v16 = vmul.f32 %v3306_v54, %v5578_v42  ;;  %v3384_v54 = vstv %s5634_s8 }
 0x49a   : > { %v2810_v10 = vpop.permute.xlu0 %2809  ;;  %v2812_v14 = vpop.permute.xlu1 %2811 }
 0x49b   : > { %v2815_v40 = vadd.f32 %v2810_v10, %v2801_v15  ;;  %v2816_v9 = vadd.f32 %v2812_v14, %v2802_v51  ;;  %v2878_v51 = vmul.f32 %v2876_v39, %v5374_v22  ;;  %v3342_v14 = vstv %s5606_s30  ;;  %v5629_v22 = vld [vmem:[#allocation4 + $0x26] sm:$0xff]  ;;  %s3486_s30 = sshll.u32 %s5704_s29, 4  ;;  %s5718_s30 = int_to_ptr.vmem [resolvable:$true] %s3486_s30 }
 0x49c   : > { %3255 = vrot.lane.b32.xlu0 %v3251_v20, %s4089_s7  ;;  %3257 = vrot.lane.b32.xlu1 %v3252_v4, %s4089_s7  ;;  %v5623_v4 = vld [vmem:[#allocation4 + $0x1e] sm:$0xff]  ;;  %v3358_v62 = vmul.f32 %v3356_v0, %v5629_v22  ;;  %s4012_s8 = scalar_lea.vmem %s5718_s30, 1024 }
 0x49d   : > { %p4013_p10 = scmp.ne.s32.totalorder %s5718_s30, %s4012_s8 }
 0x49e   : > { %v2824_v18 = vpop.permute.xlu0 %2823  ;;  %v2826_v21 = vpop.permute.xlu1 %2825 }
 0x49f   : > { %v2829_v43 = vadd.f32 %v2824_v18, %v2815_v40  ;;  %v2830_v52 = vadd.f32 %v2826_v21, %v2816_v9  ;;  %v3322_v18 = vmul.f32 %v3320_v13, %v5578_v42  ;;  %p4014_p0 = pnand %p4013_p10, %p5797_p12 }
 0x4a0   : > { %3269 = vrot.lane.b32.xlu0 %v3265_v57, %s4091_s11  ;;  %3271 = vrot.lane.b32.xlu1 %v3266_v53, %s4091_s11  ;;  %v3344_v53 = vmul.f32 %v3342_v14, %v5629_v22 }
 0x4a1   : > { %p4015_p7 = pneg %p4014_p0 }
 0x4a2   : > { %v2838_v44 = vpop.permute.xlu0 %2837  ;;  %v2840_v12 = vpop.permute.xlu1 %2839 }
 0x4a3   : > { %v2843_v55 = vadd.f32 %v2838_v44, %v2829_v43  ;;  %v2844_v8 = vadd.f32 %v2840_v12, %v2830_v52  ;;  %v3343_v43 = vmul.f32 %v3342_v14, %v5623_v4  ;;  %v3357_v44 = vmul.f32 %v3356_v0, %v5623_v4 }
 0x4a4   : > { %3283 = vrot.lane.b32.xlu0 %v3279_v34, %s4088_s5  ;;  %3285 = vrot.lane.b32.xlu1 %v3280_v45, %s4088_s5  ;;  %v3370_v34 = vstv %s5625_s6  ;;  %s5716_s6 = scalar_lea.hbm %s5784_s3, %s3886_s27 }
 0x4a6   : > { %v2852_v50 = vpop.permute.xlu0 %2851  ;;  %v2854_v56 = vpop.permute.xlu1 %2853 }
 0x4a7   : > { %v2857_v24 = vadd.f32 %v2852_v50, %v2843_v55  ;;  %v2858_v38 = vadd.f32 %v2854_v56, %v2844_v8  ;;  %v3371_v8 = vmul.f32 %v3370_v34, %v5623_v4 }
 0x4a8   : > { %3297 = vrot.lane.b32.xlu0 %v3293_v37, %s4092_s25  ;;  %3299 = vrot.lane.b32.xlu1 %v3294_v23, %s4092_s25  ;;  %v3372_v23 = vmul.f32 %v3370_v34, %v5629_v22 }
 0x4aa   : > { %v2866_v27 = vpop.permute.xlu0 %2865  ;;  %v2868_v48 = vpop.permute.xlu1 %2867 }
 0x4ab   : > { %v2871_v15 = vadd.f32 %v2866_v27, %v2857_v24  ;;  %v2872_v10 = vadd.f32 %v2868_v48, %v2858_v38  ;;  %v3386_v48 = vmul.f32 %v3384_v54, %v5629_v22 }
 0x4ac   : > { %3311 = vrot.lane.b32.xlu0 %v3307_v32, %s4090_s9  ;;  %3313 = vrot.lane.b32.xlu1 %v3308_v16, %s4090_s9  ;;  %v3385_v32 = vmul.f32 %v3384_v54, %v5623_v4  ;;  %v2968_v16 = vstv %s5645_s24 }
 0x4ad   : > { %v2879_v20 = vadd.f32 %v2877_v2, %v2871_v15  ;;  %v2880_v5 = vadd.f32 %v2878_v51, %v2872_v10  ;;  %v3398_v15 = vstv %s5641_s10  ;;  %s4095_s10 = smov [#allocation10]  }
 0x4ae   : > { %v2888_v40 = vpop.permute.xlu0 %2887  ;;  %v2890_v9 = vpop.permute.xlu1 %2889  ;;  %s4016_s24 = sshll.u32 %s4095_s10, 4  ;;  %s4017_s24 = int_to_ptr.vmem [resolvable:$false] %s4016_s24 }
 0x4af   : > { %v2893_v12 = vadd.f32 %v2888_v40, %v2879_v20  ;;  %v2894_v50 = vadd.f32 %v2890_v9, %v2880_v5  ;;  %v3399_v40 = vmul.f32 %v3398_v15, %v5623_v4  ;;  %v2969_v5 = vmul.f32 %v2968_v16, %v5419_v36  ;;  %p4019_p8 = scmp.lt.s32.totalorder %s5718_s30, %s4017_s24 }
 0x4b0   : > { %3325 = vrot.lane.b32.xlu0 %v3321_v41, %s4093_s28  ;;  %3327 = vrot.lane.b32.xlu1 %v3322_v18, %s4093_s28 }
 0x4b2   : > { %v2902_v57 = vpop.permute.xlu0 %2901  ;;  %v2904_v21 = vpop.permute.xlu1 %2903 }
 0x4b3   : > { %v2907_v37 = vadd.f32 %v2902_v57, %v2893_v12  ;;  %v2908_v39 = vadd.f32 %v2904_v21, %v2894_v50  ;;  %v3400_v57 = vmul.f32 %v3398_v15, %v5629_v22 }
 0x4b4   : > { %3347 = vrot.lane.b32.xlu0 %v3343_v43, %s4089_s7  ;;  %3349 = vrot.lane.b32.xlu1 %v3344_v53, %s4089_s7  ;;  %s5650_s7 = sld [smem:[#allocation5 + $0x125]]  ;;  %v2970_v43 = vmul.f32 %v2968_v16, %v5425_v3 }
 0x4b6   : > { %v2916_v52 = vpop.permute.xlu0 %2915  ;;  %v2918_v55 = vpop.permute.xlu1 %2917 }
 0x4b7   : > { %v2921_v24 = vadd.f32 %v2916_v52, %v2907_v37  ;;  %v2922_v38 = vadd.f32 %v2918_v55, %v2908_v39 }
 0x4b8   : > { %3361 = vrot.lane.b32.xlu0 %v3357_v44, %s4091_s11  ;;  %3363 = vrot.lane.b32.xlu1 %v3358_v62, %s4091_s11  ;;  %s3864_s11 = sld [smem:[#allocation5 + $0x118]] }
 0x4ba   : > { %v2930_v45 = vpop.permute.xlu0 %2929  ;;  %v2932_v56 = vpop.permute.xlu1 %2931  ;;  %v3412_v9 = vstv %s5650_s7  ;;  %s4018_s7 = scalar_lea.vmem %s4017_s24, 2048 }
 0x4bb   : > { %v2935_v2 = vadd.f32 %v2930_v45, %v2921_v24  ;;  %v2936_v51 = vadd.f32 %v2932_v56, %v2922_v38  ;;  %v3413_v52 = vmul.f32 %v3412_v9, %v5623_v4  ;;  %v3414_v36 = vmul.f32 %v3412_v9, %v5629_v22  ;;  %p4020_p11 = scmp.lt.s32.totalorder %s4018_s7, %s4012_s8 }
 0x4bc   : > { %3375 = vrot.lane.b32.xlu0 %v3371_v8, %s4088_s5  ;;  %3377 = vrot.lane.b32.xlu1 %v3372_v23, %s4088_s5  ;;  %s3850_s5 = sld [smem:[#allocation5 + $0x10a]] }
 0x4bd   : > { %p4021_p13 = por %p4020_p11, %p4019_p8 }
 0x4be   : > { %v2944_v27 = vpop.permute.xlu0 %2943  ;;  %v2946_v13 = vpop.permute.xlu1 %2945 }
 0x4bf   : > { %v2949_v10 = vadd.f32 %v2944_v27, %v2935_v2  ;;  %v2950_v41 = vadd.f32 %v2946_v13, %v2936_v51  ;;  %p4022_p1 = pnand %p4021_p13, %p4015_p7 }
 0x4c0   : > { %3389 = vrot.lane.b32.xlu0 %v3385_v32, %s4092_s25  ;;  %3391 = vrot.lane.b32.xlu1 %v3386_v48, %s4092_s25  ;;  %s282_s25 = sld [smem:[#allocation8]] }
 0x4c2   : > { %v2958_v20 = vpop.permute.xlu0 %2957  ;;  %v2960_v18 = vpop.permute.xlu1 %2959  ;;  %v3060_v38 = vstv %s3850_s5 }
 0x4c3   : > { %v2963_v14 = vadd.f32 %v2958_v20, %v2949_v10  ;;  %v2964_v0 = vadd.f32 %v2960_v18, %v2950_v41  ;;  %v3061_v51 = vmul.f32 %v3060_v38, %v5470_v49 }
 0x4c4   : > { %3403 = vrot.lane.b32.xlu0 %v3399_v40, %s4090_s9  ;;  %3405 = vrot.lane.b32.xlu1 %v3400_v57, %s4090_s9  ;;  %v3062_v40 = vmul.f32 %v3060_v38, %v5476_v47  ;;  %s3857_s9 = sld [smem:[#allocation5 + $0x111]] }
 0x4c5   : > { %v2971_v21 = vadd.f32 %v2969_v5, %v2963_v14  ;;  %v2972_v44 = vadd.f32 %v2970_v43, %v2964_v0 }
 0x4c6   : > { %v2980_v53 = vpop.permute.xlu0 %2979  ;;  %v2982_v34 = vpop.permute.xlu1 %2981 }
 0x4c7   : > { %v2985_v3 = vadd.f32 %v2980_v53, %v2971_v21  ;;  %v2986_v50 = vadd.f32 %v2982_v34, %v2972_v44 }
 0x4c8   : > { %3417 = vrot.lane.b32.xlu0 %v3413_v52, %s4093_s28  ;;  %3419 = vrot.lane.b32.xlu1 %v3414_v36, %s4093_s28  ;;  %s3871_s28 = sld [smem:[#allocation5 + $0x11f]] }
 0x4ca   : > { %v2994_v55 = vpop.permute.xlu0 %2993  ;;  %v2996_v62 = vpop.permute.xlu1 %2995 }
 0x4cb   : > { %v2999_v37 = vadd.f32 %v2994_v55, %v2985_v3  ;;  %v3000_v56 = vadd.f32 %v2996_v62, %v2986_v50 }
 0x4ce   : > { %v3008_v12 = vpop.permute.xlu0 %3007  ;;  %v3010_v45 = vpop.permute.xlu1 %3009 }
 0x4cf   : > { %v3013_v23 = vadd.f32 %v3008_v12, %v2999_v37  ;;  %v3014_v24 = vadd.f32 %v3010_v45, %v3000_v56  ;;  %v3152_v45 = vstv %s3857_s9 }
 0x4d0   : > { %v3153_v56 = vmul.f32 %v3152_v45, %v5521_v28 }
 0x4d2   : > { %v3022_v8 = vpop.permute.xlu0 %3021  ;;  %v3024_v54 = vpop.permute.xlu1 %3023 }
 0x4d3   : > { %v3027_v27 = vadd.f32 %v3022_v8, %v3013_v23  ;;  %v3028_v2 = vadd.f32 %v3024_v54, %v3014_v24  ;;  %v3154_v24 = vmul.f32 %v3152_v45, %v5527_v30  ;;  %v1028_v30 = vadd.f32 %v4665_v60, %v4663_v58 }
 0x4d6   : > { %v3036_v39 = vpop.permute.xlu0 %3035  ;;  %v3038_v32 = vpop.permute.xlu1 %3037 }
 0x4d7   : > { %v3041_v15 = vadd.f32 %v3036_v39, %v3027_v27  ;;  %v3042_v48 = vadd.f32 %v3038_v32, %v3028_v2 }
 0x4da   : > { %v3050_v13 = vpop.permute.xlu0 %3049  ;;  %v3052_v10 = vpop.permute.xlu1 %3051 }
 0x4db   : > { %v3055_v16 = vadd.f32 %v3050_v13, %v3041_v15  ;;  %v3056_v20 = vadd.f32 %v3052_v10, %v3042_v48 }
 0x4dd   : > { %v3063_v41 = vadd.f32 %v3061_v51, %v3055_v16  ;;  %v3064_v14 = vadd.f32 %v3062_v40, %v3056_v20 }
 0x4de   : > { %v3072_v5 = vpop.permute.xlu0 %3071  ;;  %v3074_v9 = vpop.permute.xlu1 %3073 }
 0x4df   : > { %v3077_v21 = vadd.f32 %v3072_v5, %v3063_v41  ;;  %v3078_v52 = vadd.f32 %v3074_v9, %v3064_v14 }
 0x4e2   : > { %v3086_v18 = vpop.permute.xlu0 %3085  ;;  %v3088_v57 = vpop.permute.xlu1 %3087 }
 0x4e3   : > { %v3091_v44 = vadd.f32 %v3086_v18, %v3077_v21  ;;  %v3092_v36 = vadd.f32 %v3088_v57, %v3078_v52  ;;  %v1036_v52 = vadd.f32 %v4671_v1, %v1028_v30 }
 0x4e5   : > { %v1044_v58 = vadd.f32 %v4667_v61, %v1036_v52 }
 0x4e6   : > { %v3100_v43 = vpop.permute.xlu0 %3099  ;;  %v3102_v0 = vpop.permute.xlu1 %3101 }
 0x4e7   : > { %v3105_v49 = vadd.f32 %v3100_v43, %v3091_v44  ;;  %v3106_v62 = vadd.f32 %v3102_v0, %v3092_v36  ;;  %v3244_v43 = vstv %s3864_s11 }
 0x4e8   : > { %v3245_v36 = vmul.f32 %v3244_v43, %v5572_v6 }
 0x4ea   : > { %v3114_v53 = vpop.permute.xlu0 %3113  ;;  %v3116_v34 = vpop.permute.xlu1 %3115 }
 0x4eb   : > { %v3119_v12 = vadd.f32 %v3114_v53, %v3105_v49  ;;  %v3120_v3 = vadd.f32 %v3116_v34, %v3106_v62  ;;  %v3246_v62 = vmul.f32 %v3244_v43, %v5578_v42 }
 0x4ee   : > { %v3128_v55 = vpop.permute.xlu0 %3127  ;;  %v3130_v47 = vpop.permute.xlu1 %3129 }
 0x4ef   : > { %v3133_v8 = vadd.f32 %v3128_v55, %v3119_v12  ;;  %v3134_v37 = vadd.f32 %v3130_v47, %v3120_v3 }
 0x4f2   : > { %v3142_v50 = vpop.permute.xlu0 %3141  ;;  %v3144_v23 = vpop.permute.xlu1 %3143 }
 0x4f3   : > { %v3147_v54 = vadd.f32 %v3142_v50, %v3133_v8  ;;  %v3148_v39 = vadd.f32 %v3144_v23, %v3134_v37  ;;  %v1052_v8 = vadd.f32 %v4673_v17, %v1044_v58 }
 0x4f5   : > { %v3155_v27 = vadd.f32 %v3153_v56, %v3147_v54  ;;  %v3156_v38 = vadd.f32 %v3154_v24, %v3148_v39  ;;  %v1060_v37 = vadd.f32 %v4669_v63, %v1052_v8  ;;  %v1069_v24 = vstv %s282_s25 }
 0x4f6   : > { %v3164_v32 = vpop.permute.xlu0 %3163  ;;  %v3166_v2 = vpop.permute.xlu1 %3165 }
 0x4f7   : > { %v3169_v51 = vadd.f32 %v3164_v32, %v3155_v27  ;;  %v3170_v20 = vadd.f32 %v3166_v2, %v3156_v38  ;;  %v1068_v42 = vadd.f32 %v4675_v46, %v1060_v37 }
 0x4f9   : > { %v1070_v2 = vadd.f32 %v1069_v24, %v1068_v42 }
 0x4fa   : > { %v3178_v15 = vpop.permute.xlu0 %3177  ;;  %v3180_v13 = vpop.permute.xlu1 %3179 }
 0x4fb   : > { %v3183_v40 = vadd.f32 %v3178_v15, %v3169_v51  ;;  %v3184_v5 = vadd.f32 %v3180_v13, %v3170_v20 }
 0x4fe   : > { %v3192_v48 = vpop.permute.xlu0 %3191  ;;  %v3194_v16 = vpop.permute.xlu1 %3193 }
 0x4ff   : > { %v3197_v28 = vadd.f32 %v3192_v48, %v3183_v40  ;;  %v3198_v9 = vadd.f32 %v3194_v16, %v3184_v5  ;;  %v3336_v48 = vstv %s3871_s28 }
 0x500   : > { %v3337_v46 = vmul.f32 %v3336_v48, %v5623_v4 }
 0x502   : > { %v3206_v10 = vpop.permute.xlu0 %3205  ;;  %v3208_v41 = vpop.permute.xlu1 %3207 }
 0x503   : > { %v3211_v18 = vadd.f32 %v3206_v10, %v3197_v28  ;;  %v3212_v0 = vadd.f32 %v3208_v41, %v3198_v9  ;;  %v3678_v10 = vmul.f32 -1.442695, %v1070_v2  ;;  %v3338_v28 = vmul.f32 %v3336_v48, %v5629_v22 }
 0x505   : > { %3962 = vpow2.f32 %v3678_v10 }
 0x506   : > { %v3220_v14 = vpop.permute.xlu0 %3219  ;;  %v3222_v57 = vpop.permute.xlu1 %3221 }
 0x507   : > { %v3225_v21 = vadd.f32 %v3220_v14, %v3211_v18  ;;  %v3226_v44 = vadd.f32 %v3222_v57, %v3212_v0 }
 0x50a   : > { %v3234_v53 = vpop.permute.xlu0 %3233  ;;  %v3236_v49 = vpop.permute.xlu1 %3235 }
 0x50b   : > { %v3239_v34 = vadd.f32 %v3234_v53, %v3225_v21  ;;  %v3240_v55 = vadd.f32 %v3236_v49, %v3226_v44 }
 0x50d   : > { %v3247_v12 = vadd.f32 %v3245_v36, %v3239_v34  ;;  %v3248_v60 = vadd.f32 %v3246_v62, %v3240_v55 }
 0x50e   : > { %v3256_v47 = vpop.permute.xlu0 %3255  ;;  %v3258_v45 = vpop.permute.xlu1 %3257 }
 0x50f   : > { %v3261_v6 = vadd.f32 %v3256_v47, %v3247_v12  ;;  %v3262_v23 = vadd.f32 %v3258_v45, %v3248_v60  ;;  %v3963_v53 = vpop.eup %3962  ;;  %v4094_v60 = vmov 1966171168  }
 0x510   : > { %v1074_v4 = vadd.f32 1.0, %v3963_v53  ;;  %v1986_v45 = vunpack.c.l.s4 %v4094_v60 }
 0x512   : > { %v3270_v3 = vpop.permute.xlu0 %3269  ;;  %v3272_v50 = vpop.permute.xlu1 %3271  ;;  %3964 = vrcp.f32 %v1074_v4 }
 0x513   : > { %v3275_v39 = vadd.f32 %v3270_v3, %v3261_v6  ;;  %v3276_v27 = vadd.f32 %v3272_v50, %v3262_v23  ;;  %v3425_v50 = vstv %s3779_s17 }
 0x516   : > { %v3284_v1 = vpop.permute.xlu0 %3283  ;;  %v3286_v54 = vpop.permute.xlu1 %3285 }
 0x517   : > { %v3289_v32 = vadd.f32 %v3284_v1, %v3275_v39  ;;  %v3290_v17 = vadd.f32 %v3286_v54, %v3276_v27 }
 0x51a   : > { %v3298_v56 = vpop.permute.xlu0 %3297  ;;  %v3300_v61 = vpop.permute.xlu1 %3299 }
 0x51b   : > { %v3303_v15 = vadd.f32 %v3298_v56, %v3289_v32  ;;  %v3304_v16 = vadd.f32 %v3300_v61, %v3290_v17  ;;  %v1987_v56 = vunpack.c.0.s8 %v1986_v45  ;;  %v3978_v45 = vld [vmem:[%s4287_s20 + $0x20] sm:$0xff] }
 0x51c   : > { %v3965_v32 = vpop.eup %3964 }
 0x51d   : > { %v1990_v61 = vsub.s32 %v1987_v56, %v4677_v11 }
 0x51e   : > { %v3312_v38 = vpop.permute.xlu0 %3311  ;;  %v3314_v13 = vpop.permute.xlu1 %3313 }
 0x51f   : > { %v3317_v63 = vadd.f32 %v3312_v38, %v3303_v15  ;;  %v3318_v20 = vadd.f32 %v3314_v13, %v3304_v16  ;;  %v1991_v38 = vrot.slane %v3965_v32, %v1990_v61 }
 0x521   : > { %v1992_v2 = vcombine.high %v1991_v38, %v1991_v38  ;;  %v1999_v48 = vrot.slane %v1991_v38, %v1990_v61 }
 0x522   : > { %v3326_v51 = vpop.permute.xlu0 %3325  ;;  %v3328_v41 = vpop.permute.xlu1 %3327 }
 0x523   : > { %v3331_v40 = vadd.f32 %v3326_v51, %v3317_v63  ;;  %v3332_v5 = vadd.f32 %v3328_v41, %v3318_v20  ;;  %v2006_v16 = vrot.slane %v1992_v2, %v1990_v61  ;;  %v2007_v51 = vcombine.high %v1999_v48, %v1999_v48 }
 0x524   : > { %v2056_v11 = vrot.slane %v1999_v48, %v5131_v35 }
 0x525   : > { %v3339_v14 = vadd.f32 %v3337_v46, %v3331_v40  ;;  %v3340_v9 = vadd.f32 %v3338_v28, %v3332_v5  ;;  %v2008_v10 = vcombine.high %v2006_v16, %v2006_v16  ;;  %v2060_v20 = vrot.slane %v2006_v16, %v5131_v35 }
 0x526   : > { %v3348_v30 = vpop.permute.xlu0 %3347  ;;  %v3350_v18 = vpop.permute.xlu1 %3349  ;;  %v2064_v40 = vrot.slane %v2007_v51, %v5131_v35  ;;  %v2073_v41 = vadd.f32 %v2056_v11, %v5311_v31 }
 0x527   : > { %v3353_v52 = vadd.f32 %v3348_v30, %v3339_v14  ;;  %v3354_v34 = vadd.f32 %v3350_v18, %v3340_v9  ;;  %v2068_v46 = vrot.slane %v2008_v10, %v5131_v35  ;;  %v2075_v5 = vadd.f32 %v2060_v20, %v5321_v19 }
 0x528   : > { %v2077_v28 = vadd.f32 %v2064_v40, %v5334_v33  ;;  %v2074_v9 = vadd.f32 %v2056_v11, %v5316_v25  ;;  %v2076_v18 = vadd.f32 %v2060_v20, %v5329_v59 }
 0x529   : > { %v2079_v14 = vadd.f32 %v2068_v46, %v5345_v29  ;;  %v2080_v35 = vadd.f32 %v2068_v46, %v5352_v26 }
 0x52a   : > { %v3362_v57 = vpop.permute.xlu0 %3361  ;;  %v3364_v43 = vpop.permute.xlu1 %3363 }
 0x52b   : > { %v3367_v36 = vadd.f32 %v3362_v57, %v3353_v52  ;;  %v3368_v55 = vadd.f32 %v3364_v43, %v3354_v34  ;;  %v2078_v57 = vadd.f32 %v2064_v40, %v5340_v7 }
 0x52e   : > { %v3376_v0 = vpop.permute.xlu0 %3375  ;;  %v3378_v21 = vpop.permute.xlu1 %3377 }
 0x52f   : > { %v3381_v62 = vadd.f32 %v3376_v0, %v3367_v36  ;;  %v3382_v12 = vadd.f32 %v3378_v21, %v3368_v55 }
 0x532   : > { %v3390_v44 = vpop.permute.xlu0 %3389  ;;  %v3392_v49 = vpop.permute.xlu1 %3391 }
 0x533   : > { %v3395_v47 = vadd.f32 %v3390_v44, %v3381_v62  ;;  %v3396_v3 = vadd.f32 %v3392_v49, %v3382_v12  ;;  %v3974_v49 = vld [vmem:[%s4287_s20] sm:$0xff]  ;;  %v3975_v62 = vld [vmem:[%s4287_s20 + $0x10] sm:$0xff]  ;;  %v3976_v12 = vld [vmem:[%s4287_s20 + $0x8] sm:$0xff] }
 0x536   : > { %v3404_v22 = vpop.permute.xlu0 %3403  ;;  %v3406_v58 = vpop.permute.xlu1 %3405 }
 0x537   : > { %v3409_v8 = vadd.f32 %v3404_v22, %v3395_v47  ;;  %v3410_v37 = vadd.f32 %v3406_v58, %v3396_v3  ;;  %v3977_v58 = vld [vmem:[%s4287_s20 + $0x18] sm:$0xff] }
 0x53a   : > { %v3418_v1 = vpop.permute.xlu0 %3417  ;;  %v3420_v6 = vpop.permute.xlu1 %3419 }
 0x53b   : > { %v3423_v54 = vadd.f32 %v3418_v1, %v3409_v8  ;;  %v3424_v42 = vadd.f32 %v3420_v6, %v3410_v37  ;;  %v3979_v8 = vld [vmem:[%s4287_s20 + $0x28] sm:$0xff]  ;;  %v3980_v1 = vld [vmem:[%s4287_s20 + $0x30] sm:$0xff] }
 0x53d   : > { %v3426_v23 = vadd.f32 %v3425_v50, %v3423_v54  ;;  %v3427_v39 = vadd.f32 %v3425_v50, %v3424_v42  ;;  %v3981_v54 = vld [vmem:[%s4287_s20 + $0x38] sm:$0xff]  ;;  %s5740_s20 = scalar_lea.sflag [#allocation6], %s188_s19 }
 0x53f   : > { %v3878_v24 = vmul.f32 -1.442695, %v3426_v23  ;;  %v3879_v27 = vmul.f32 -1.442695, %v3427_v39 }
 0x541   : > { %3966 = vpow2.f32 %v3878_v24 }
 0x542   : > { %3968 = vpow2.f32 %v3879_v27 }
 0x54b   : > { %v3967_v17 = vpop.eup %3966 }
 0x54c   : > { %v3434_v15 = vadd.f32 1.0, %v3967_v17  ;;  %v3969_v13 = vpop.eup %3968 }
 0x54d   : > { %v3435_v63 = vadd.f32 1.0, %v3969_v13 }
 0x54e   : > { %3970 = vrcp.f32 %v3434_v15 }
 0x54f   : > { %3972 = vrcp.f32 %v3435_v63 }
 0x558   : > { %v3971_v30 = vpop.eup %3970 }
 0x559   : > { %v3440_v43 = vadd.f32 %v3971_v30, %v2073_v41  ;;  %v3442_v0 = vadd.f32 %v3971_v30, %v2075_v5  ;;  %v3444_v21 = vadd.f32 %v3971_v30, %v2077_v28  ;;  %v3446_v31 = vadd.f32 %v3971_v30, %v2079_v14  ;;  %v3973_v53 = vpop.eup %3972 }
 0x55a   : > { %v3441_v19 = vadd.f32 %v3973_v53, %v2074_v9  ;;  %v3443_v33 = vadd.f32 %v3973_v53, %v2076_v18  ;;  %v3445_v52 = vadd.f32 %v3973_v53, %v2078_v57  ;;  %v3447_v29 = vadd.f32 %v3973_v53, %v2080_v35 }
 0x55b   : > { %v3448_v25 = vmul.f32 0.33333334, %v3440_v43  ;;  %v3450_v59 = vmul.f32 0.33333334, %v3442_v0  ;;  %v3452_v7 = vmul.f32 0.33333334, %v3444_v21 }
 0x55c   : > { %v3449_v26 = vmul.f32 0.33333334, %v3441_v19  ;;  %v3451_v44 = vmul.f32 0.33333334, %v3443_v33  ;;  %v3453_v34 = vmul.f32 0.33333334, %v3445_v52 }
 0x55d   : > { %v3454_v36 = vmul.f32 0.33333334, %v3446_v31  ;;  %v3455_v4 = vmul.f32 0.33333334, %v3447_v29  ;;  %v3456_v55 = vmul.f32 %v3974_v49, %v3448_v25  ;;  %v3458_v22 = vmul.f32 %v3975_v62, %v3450_v59 }
 0x55e   : > { %v3457_v47 = vmul.f32 %v3976_v12, %v3449_v26  ;;  %v3459_v60 = vmul.f32 %v3977_v58, %v3451_v44  ;;  %v3460_v3 = vmul.f32 %v3978_v45, %v3452_v7  ;;  %v3461_v50 = vmul.f32 %v3979_v8, %v3453_v34 }
 0x55f   : > { %v3462_v37 = vmul.f32 %v3980_v1, %v3454_v36  ;;  %v3463_v6 = vmul.f32 %v3981_v54, %v3455_v4  ;;  %3464 = vst.msk [vmem:[%s5704_s29] sm:$0xff] %vm204_vm5, %v3456_v55  ;;  %3466 = vst.msk [vmem:[%s5704_s29 + $0x10] sm:$0xff] %vm204_vm5, %v3458_v22 }
 0x560   : > { %3465 = vst.msk [vmem:[%s5704_s29 + $0x8] sm:$0xff] %vm204_vm5, %v3457_v47  ;;  %3467 = vst.msk [vmem:[%s5704_s29 + $0x18] sm:$0xff] %vm204_vm5, %v3459_v60 }
 0x561   : > { %3468 = vst.msk [vmem:[%s5704_s29 + $0x20] sm:$0xff] %vm204_vm5, %v3460_v3  ;;  %3469 = vst.msk [vmem:[%s5704_s29 + $0x28] sm:$0xff] %vm204_vm5, %v3461_v50 }
 0x562   : > { %3470 = vst.msk [vmem:[%s5704_s29 + $0x30] sm:$0xff] %vm204_vm5, %v3462_v37  ;;  %3471 = vst.msk [vmem:[%s5704_s29 + $0x38] sm:$0xff] %vm204_vm5, %v3463_v6 }
 0x563   : > { %4025 = shalt.err (!%p4022_p1)
}
 0x564   : > { %s4026_s5 = scalar_lea.hbm %s5716_s6, 1024  ;;  %s4030_s25 = scalar_lea.hbm %s5784_s3, 2048 }
 0x565   : > { %p4027_p2 = scmp.ne.s32.totalorder %s5716_s6, %s4026_s5  ;;  %p4031_p9 = scmp.lt.u32.totalorder %s5716_s6, %s5784_s3 }
 0x566   : > { %p4032_p5 = scmp.lt.u32.totalorder %s4030_s25, %s4026_s5  ;;  %p4034_p10 = scmp.lt.u32.totalorder %s4026_s5, %s5716_s6 }
 0x567   : > { %p4028_p3 = pnand %p4027_p2, %p5797_p12 }
 0x568   : > { %p4033_p6 = por %p4032_p5, %p4031_p9 }
 0x569   : > { %p4029_p4 = pneg %p4028_p3 }
 0x56a   : > { %p4035_p0 = por %p4034_p10, %p4033_p6 }
 0x56c   : > { %p4036_p7 = pnand %p4035_p0, %p4029_p4 }
 0x56e   : > { %4039 = shalt.err (!%p4036_p7)
}
 0x56f   : > { %s4096_s19 = smov 128   ;;  %s4097_s26 = smov 8  }
 0x570   : > { %3895 = dma.vmem_to_hbm [thread:$0]  (%p5797_p12), %s5718_s30, 1024, %s5716_s6, %s5740_s20, %s4096_s19, %s4096_s19, %s4097_s26  }
 0x571 PF: > { %p3912_p8 = scmp.ge.s32.totalorder %s4082_s15, 2  ;;  %s3501_s27 = sand.u32 1, %s4070_s12  }
 0x572   : > { %p5798_p11 = scmp.ne.s32.totalorder %s5789_s23, 0  ;;  %s3502_s29 = scalar_lea.sflag [#allocation6], %s3501_s27 }
 0x574   : > { %p3905_p13 = pnand %p3912_p8, %p5798_p11 }
 0x576   : > { %4065 = dma.done.wait (!%p3905_p13), %s3502_s29, 1024  }
 0x577   : > { %4067 = vsyncadd (!%p3905_p13), %s3502_s29, 4294966272  ;;  %p15_p1 = scmp.ge.s32.totalorder %s4143_s18, 4   ;;  %s5799_s12 = smov %s4074_s13 }
 0x578   : > { %s5800_s13 = smov %s4078_s14  ;;  %s5801_s14 = smov %s4154_s21 }
 0x579   : > { %s5802_s15 = smov %s4143_s18  ;;  %17 = sbr.rel (!%p15_p1) target bundleno = 5 (0x5), region = 79 }
 0x580   :  { %3507 = vsyncpa [#allocation6], 1 }
 0x581   :  { %3509 = vsyncpa [#allocation6 + $0x1], 1 }
 0x582   :  { %3510 = vsyncpa [#allocation7], 1 }
 0x583   :  { %3512 = vsyncpa [#allocation7 + $0x1], 1 }
 0x584   :  { %3513 = vsyncpa [#allocation9], 1 }

</bundles_post_ra>
